<compile_context>
chip_gen: v6e
topology: v6e:2x2x1
jax: 0.10.0
libtpu: 0.0.40
codegen_flags: <defaults>
</compile_context>

<pallas_src>
import functools
import math

import jax
import jax.numpy as jnp
from jax.experimental import pallas as pl
from jax.experimental.pallas import tpu as pltpu

# ----------------------------- network dimensions -----------------------------
_H = 32                      # input spatial size
_K = 5                       # conv kernel size
_C1_IN, _C1_OUT = 3, 6
_C2_IN, _C2_OUT = 6, 16
_H1 = _H - _K + 1            # 28  conv1 output spatial
_P1 = _H1 // 2               # 14  pool1 output spatial
_H2 = _P1 - _K + 1           # 10  conv2 output spatial
_P2 = _H2 // 2               # 5   pool2 output spatial
_FLAT = _C2_OUT * _P2 * _P2  # 400
_FC1, _FC2, _FC3 = 120, 84, 10


# ------------------------------- fused kernel ---------------------------------
def _net_kernel(x_ref, w1_ref, b1_ref, w2_ref, b2_ref,
                f1_ref, fb1_ref, f2_ref, fb2_ref, f3_ref, fb3_ref,
                out_ref, pool1_ref, pool2_ref, cols_ref, *, n_batch: int):
    f32 = jnp.float32

    def sel_mats(p):
        # 0/1 matrices (p, 2p) that pick even / odd rows via an MXU matmul
        # (used for the "width" half of the 2x2 max-pool).
        r = jax.lax.broadcasted_iota(jnp.int32, (p, 2 * p), 0)
        c = jax.lax.broadcasted_iota(jnp.int32, (p, 2 * p), 1)
        return (c == 2 * r).astype(f32), (c == 2 * r + 1).astype(f32)

    s1e, s1o = sel_mats(_P1)   # (14, 28)
    s2e, s2o = sel_mats(_P2)   # (5, 10)

    def conv_relu_pool_rowpair(rows, in_c, out_w, w_mat, bias, se, so):
        """rows: K+1 consecutive input rows, each (in_width, in_c).
        Computes two adjacent conv output rows (+bias, ReLU) and their 2x2 max-pool.
        Returns (out_w // 2, out_c)."""
        kk_c = _K * _K * in_c

        def conv_row(base):
            # in-VMEM im2col for one conv output row: 25 static tap slices.
            for i in range(_K):
                src = rows[base + i]                       # (in_width, in_c)
                for j in range(_K):
                    c0 = (i * _K + j) * in_c
                    cols_ref[0:out_w, c0:c0 + in_c] = src[j:j + out_w, :]
            cols = cols_ref[0:out_w, 0:kk_c]               # (out_w, K*K*in_c)
            y = jnp.dot(cols, w_mat, preferred_element_type=f32) + bias
            return jnp.maximum(y, 0.0)                     # ReLU

        ym = jnp.maximum(conv_row(0), conv_row(1))         # max over the 2 rows
        return jnp.maximum(jnp.dot(se, ym, preferred_element_type=f32),
                           jnp.dot(so, ym, preferred_element_type=f32))

    # -------- conv1 (5x5, 3->6) + ReLU + 2x2 max-pool -> pool1_ref (n*14+po, 14, 6)
    for n in range(n_batch):
        def c1_body(po, carry, n=n):
            rows = [x_ref[n * _H + 2 * po + r] for r in range(_K + 1)]   # (32, 3)
            pool1_ref[n * _P1 + po] = conv_relu_pool_rowpair(
                rows, _C1_IN, _H1, w1_ref[...], b1_ref[...], s1e, s1o)
            return carry
        jax.lax.fori_loop(0, _P1, c1_body, 0)

    # -------- conv2 (5x5, 6->16) + ReLU + 2x2 max-pool -> pool2_ref (n*5+po, 5, 16)
    for n in range(n_batch):
        def c2_body(po, carry, n=n):
            rows = [pool1_ref[n * _P1 + 2 * po + r] for r in range(_K + 1)]  # (14, 6)
            pool2_ref[n * _P2 + po] = conv_relu_pool_rowpair(
                rows, _C2_IN, _H2, w2_ref[...], b2_ref[...], s2e, s2o)
            return carry
        jax.lax.fori_loop(0, _P2, c2_body, 0)

    # -------- fc1 -> ReLU -> fc2 -> ReLU -> fc3  (flatten folded into fc1 rows)
    for n in range(n_batch):
        acc = fb1_ref[...]                                 # (1, 120), start at bias
        for h in range(_P2):
            blk = pool2_ref[n * _P2 + h]                   # (5, 16) = (w, c)
            for w in range(_P2):
                k0 = (h * _P2 + w) * _C2_OUT
                acc = acc + jnp.dot(blk[w:w + 1, :], f1_ref[k0:k0 + _C2_OUT, :],
                                    preferred_element_type=f32)
        h1 = jnp.maximum(acc, 0.0)                                           # (1, 120)
        h2 = jnp.maximum(
            jnp.dot(h1, f2_ref[...], preferred_element_type=f32) + fb2_ref[...], 0.0)
        out_ref[n:n + 1, :] = (
            jnp.dot(h2, f3_ref[...], preferred_element_type=f32) + fb3_ref[...])


# ------------------------------- host wrappers ---------------------------------
def _build_forward(n_batch: int):
    vmem = pl.BlockSpec(memory_space=pltpu.MemorySpace.VMEM)
    call = pl.pallas_call(
        functools.partial(_net_kernel, n_batch=n_batch),
        out_shape=jax.ShapeDtypeStruct((n_batch, _FC3), jnp.float32),
        in_specs=[vmem] * 11,
        out_specs=vmem,
        scratch_shapes=[
            pltpu.VMEM((n_batch * _P1, _P1, _C1_OUT), jnp.float32),   # pool1 activations
            pltpu.VMEM((n_batch * _P2, _P2, _C2_OUT), jnp.float32),   # pool2 activations
            pltpu.VMEM((_H1, _K * _K * _C2_IN), jnp.float32),          # im2col cols buffer
        ],
    )

    @jax.jit
    def forward(prep, x_nchw):
        # NCHW -> NHWC, then merge (N, H) so the kernel only needs dynamic
        # indexing on a single untiled leading axis.
        x = jnp.transpose(x_nchw, (0, 2, 3, 1)).reshape(n_batch * _H, _H, _C1_IN)
        return call(x,
                    prep["w1"], prep["b1"], prep["w2"], prep["b2"],
                    prep["f1"], prep["fb1"], prep["f2"], prep["fb2"],
                    prep["f3"], prep["fb3"])

    return forward


def init_params(key):
    """Deterministic PyTorch-style uniform init, torch tensor layouts."""
    def uniform(k, shape, fan_in):
        bound = 1.0 / math.sqrt(fan_in)
        return jax.random.uniform(k, shape, jnp.float32, -bound, bound)

    ks = jax.random.split(key, 10)
    return {
        "conv1_w": uniform(ks[0], (_C1_OUT, _C1_IN, _K, _K), _C1_IN * _K * _K),
        "conv1_b": uniform(ks[1], (_C1_OUT,), _C1_IN * _K * _K),
        "conv2_w": uniform(ks[2], (_C2_OUT, _C2_IN, _K, _K), _C2_IN * _K * _K),
        "conv2_b": uniform(ks[3], (_C2_OUT,), _C2_IN * _K * _K),
        "fc1_w": uniform(ks[4], (_FC1, _FLAT), _FLAT),
        "fc1_b": uniform(ks[5], (_FC1,), _FLAT),
        "fc2_w": uniform(ks[6], (_FC2, _FC1), _FC1),
        "fc2_b": uniform(ks[7], (_FC2,), _FC1),
        "fc3_w": uniform(ks[8], (_FC3, _FC2), _FC2),
        "fc3_b": uniform(ks[9], (_FC3,), _FC2),
    }


def prepare_params(p):
    """One-time re-layout of the torch-style weights into MXU-friendly (K, N) matrices.

    Conv weights become im2col matrices with row order (kh, kw, in_c); fc1's 400 input
    rows are permuted so the kernel's (h, w, c) flatten matches torch's NCHW view(-1,400).
    Done once, outside the jitted forward (zero cost in the hot path)."""
    w1 = jnp.transpose(p["conv1_w"], (2, 3, 1, 0)).reshape(_K * _K * _C1_IN, _C1_OUT)
    w2 = jnp.transpose(p["conv2_w"], (2, 3, 1, 0)).reshape(_K * _K * _C2_IN, _C2_OUT)
    f1 = jnp.transpose(p["fc1_w"].reshape(_FC1, _C2_OUT, _P2, _P2),
                       (2, 3, 1, 0)).reshape(_FLAT, _FC1)
    return {
        "w1": w1, "b1": p["conv1_b"].reshape(1, -1),
        "w2": w2, "b2": p["conv2_b"].reshape(1, -1),
        "f1": f1, "fb1": p["fc1_b"].reshape(1, -1),
        "f2": p["fc2_w"].T, "fb2": p["fc2_b"].reshape(1, -1),
        "f3": p["fc3_w"].T, "fb3": p["fc3_b"].reshape(1, -1),
    }


def net_reference(params, x):
    """Pure-JAX (XLA) reference matching the PyTorch module, for a correctness check."""
    def conv(x, w, b):
        y = jax.lax.conv_general_dilated(
            x, w, window_strides=(1, 1), padding="VALID",
            dimension_numbers=("NCHW", "OIHW", "NCHW"))
        return y + b.reshape(1, -1, 1, 1)

    def pool(x):
        return jax.lax.reduce_window(x, -jnp.inf, jax.lax.max,
                                     (1, 1, 2, 2), (1, 1, 2, 2), "VALID")

    x = pool(jax.nn.relu(conv(x, params["conv1_w"], params["conv1_b"])))
    x = pool(jax.nn.relu(conv(x, params["conv2_w"], params["conv2_b"])))
    x = x.reshape(x.shape[0], -1)
    x = jax.nn.relu(x @ params["fc1_w"].T + params["fc1_b"])
    x = jax.nn.relu(x @ params["fc2_w"].T + params["fc2_b"])
    return x @ params["fc3_w"].T + params["fc3_b"]


if __name__ == "__main__":
    key = jax.random.PRNGKey(0)
    pkey, xkey = jax.random.split(key)
    params = init_params(pkey)
    prep = prepare_params(params)

    n_batch = 2
    x = jax.random.normal(xkey, (n_batch, _C1_IN, _H, _H), jnp.float32)

    forward = _build_forward(n_batch)
    out = jax.block_until_ready(forward(prep, x))
    assert out.shape == (n_batch, _FC3), out.shape

    ref = jax.block_until_ready(net_reference(params, x))
    err = float(jnp.max(jnp.abs(out - ref)))
    assert err < 2e-2, f"max abs error vs XLA reference: {err}"

    print("KERNEL_OK")
</pallas_src>

<mosaic_0001>
module attributes {stable_mosaic.version = 11 : i64} {
  func.func @_net_kernel(%arg0: memref<64x32x3xf32, #tpu.memory_space<vmem>>, %arg1: memref<75x6xf32, #tpu.memory_space<vmem>>, %arg2: memref<1x6xf32, #tpu.memory_space<vmem>>, %arg3: memref<150x16xf32, #tpu.memory_space<vmem>>, %arg4: memref<1x16xf32, #tpu.memory_space<vmem>>, %arg5: memref<400x120xf32, #tpu.memory_space<vmem>>, %arg6: memref<1x120xf32, #tpu.memory_space<vmem>>, %arg7: memref<120x84xf32, #tpu.memory_space<vmem>>, %arg8: memref<1x84xf32, #tpu.memory_space<vmem>>, %arg9: memref<84x10xf32, #tpu.memory_space<vmem>>, %arg10: memref<1x10xf32, #tpu.memory_space<vmem>>, %arg11: memref<2x10xf32, #tpu.memory_space<vmem>>, %arg12: memref<28x14x6xf32, #tpu.memory_space<vmem>>, %arg13: memref<10x5x16xf32, #tpu.memory_space<vmem>>, %arg14: memref<28x150xf32, #tpu.memory_space<vmem>>) attributes {dimension_semantics = [], scalar_prefetch = 0 : i64, scratch_operands = 3 : i64, tpu.core_type = #tpu.core_type<tc>} {
    %0 = tpu.iota {dimensions = array<i32: 0>} : vector<14x28xi32>
    %1 = tpu.iota {dimensions = array<i32: 1>} : vector<14x28xi32>
    %c2_i32 = arith.constant 2 : i32
    %2 = vector.broadcast %c2_i32 : i32 to vector<14x28xi32>
    %3 = arith.muli %2, %0 : vector<14x28xi32>
    %4 = arith.cmpi eq, %1, %3 : vector<14x28xi32>
    %5 = arith.extui %4 : vector<14x28xi1> to vector<14x28xi32>
    %6 = arith.sitofp %5 : vector<14x28xi32> to vector<14x28xf32>
    %c2_i32_0 = arith.constant 2 : i32
    %7 = vector.broadcast %c2_i32_0 : i32 to vector<14x28xi32>
    %8 = arith.muli %7, %0 : vector<14x28xi32>
    %c1_i32 = arith.constant 1 : i32
    %9 = vector.broadcast %c1_i32 : i32 to vector<14x28xi32>
    %10 = arith.addi %8, %9 : vector<14x28xi32>
    %11 = arith.cmpi eq, %1, %10 : vector<14x28xi32>
    %12 = arith.extui %11 : vector<14x28xi1> to vector<14x28xi32>
    %13 = arith.sitofp %12 : vector<14x28xi32> to vector<14x28xf32>
    %14 = tpu.iota {dimensions = array<i32: 0>} : vector<5x10xi32>
    %15 = tpu.iota {dimensions = array<i32: 1>} : vector<5x10xi32>
    %c2_i32_1 = arith.constant 2 : i32
    %16 = vector.broadcast %c2_i32_1 : i32 to vector<5x10xi32>
    %17 = arith.muli %16, %14 : vector<5x10xi32>
    %18 = arith.cmpi eq, %15, %17 : vector<5x10xi32>
    %19 = arith.extui %18 : vector<5x10xi1> to vector<5x10xi32>
    %20 = arith.sitofp %19 : vector<5x10xi32> to vector<5x10xf32>
    %c2_i32_2 = arith.constant 2 : i32
    %21 = vector.broadcast %c2_i32_2 : i32 to vector<5x10xi32>
    %22 = arith.muli %21, %14 : vector<5x10xi32>
    %c1_i32_3 = arith.constant 1 : i32
    %23 = vector.broadcast %c1_i32_3 : i32 to vector<5x10xi32>
    %24 = arith.addi %22, %23 : vector<5x10xi32>
    %25 = arith.cmpi eq, %15, %24 : vector<5x10xi32>
    %26 = arith.extui %25 : vector<5x10xi1> to vector<5x10xi32>
    %27 = arith.sitofp %26 : vector<5x10xi32> to vector<5x10xf32>
    %c0_i32 = arith.constant 0 : i32
    %c14_i32 = arith.constant 14 : i32
    %28 = arith.addi %c0_i32, %c14_i32 : i32
    %c1_i32_4 = arith.constant 1 : i32
    scf.for %arg15 = %c0_i32 to %28 step %c1_i32_4  : i32 {
      %c2_i32_194 = arith.constant 2 : i32
      %280 = arith.muli %c2_i32_194, %arg15 : i32
      %c0_i32_195 = arith.constant 0 : i32
      %281 = arith.addi %c0_i32_195, %280 : i32
      %c0_i32_196 = arith.constant 0 : i32
      %282 = arith.addi %281, %c0_i32_196 : i32
      %283 = arith.index_cast %282 : i32 to index
      %c0_197 = arith.constant 0 : index
      %c0_198 = arith.constant 0 : index
      %284 = vector.load %arg0[%283, %c0_197, %c0_198] : memref<64x32x3xf32, #tpu.memory_space<vmem>>, vector<1x32x3xf32>
      %285 = vector.shape_cast %284 : vector<1x32x3xf32> to vector<32x3xf32>
      %c2_i32_199 = arith.constant 2 : i32
      %286 = arith.muli %c2_i32_199, %arg15 : i32
      %c0_i32_200 = arith.constant 0 : i32
      %287 = arith.addi %c0_i32_200, %286 : i32
      %c1_i32_201 = arith.constant 1 : i32
      %288 = arith.addi %287, %c1_i32_201 : i32
      %289 = arith.index_cast %288 : i32 to index
      %c0_202 = arith.constant 0 : index
      %c0_203 = arith.constant 0 : index
      %290 = vector.load %arg0[%289, %c0_202, %c0_203] : memref<64x32x3xf32, #tpu.memory_space<vmem>>, vector<1x32x3xf32>
      %291 = vector.shape_cast %290 : vector<1x32x3xf32> to vector<32x3xf32>
      %c2_i32_204 = arith.constant 2 : i32
      %292 = arith.muli %c2_i32_204, %arg15 : i32
      %c0_i32_205 = arith.constant 0 : i32
      %293 = arith.addi %c0_i32_205, %292 : i32
      %c2_i32_206 = arith.constant 2 : i32
      %294 = arith.addi %293, %c2_i32_206 : i32
      %295 = arith.index_cast %294 : i32 to index
      %c0_207 = arith.constant 0 : index
      %c0_208 = arith.constant 0 : index
      %296 = vector.load %arg0[%295, %c0_207, %c0_208] : memref<64x32x3xf32, #tpu.memory_space<vmem>>, vector<1x32x3xf32>
      %297 = vector.shape_cast %296 : vector<1x32x3xf32> to vector<32x3xf32>
      %c2_i32_209 = arith.constant 2 : i32
      %298 = arith.muli %c2_i32_209, %arg15 : i32
      %c0_i32_210 = arith.constant 0 : i32
      %299 = arith.addi %c0_i32_210, %298 : i32
      %c3_i32 = arith.constant 3 : i32
      %300 = arith.addi %299, %c3_i32 : i32
      %301 = arith.index_cast %300 : i32 to index
      %c0_211 = arith.constant 0 : index
      %c0_212 = arith.constant 0 : index
      %302 = vector.load %arg0[%301, %c0_211, %c0_212] : memref<64x32x3xf32, #tpu.memory_space<vmem>>, vector<1x32x3xf32>
      %303 = vector.shape_cast %302 : vector<1x32x3xf32> to vector<32x3xf32>
      %c2_i32_213 = arith.constant 2 : i32
      %304 = arith.muli %c2_i32_213, %arg15 : i32
      %c0_i32_214 = arith.constant 0 : i32
      %305 = arith.addi %c0_i32_214, %304 : i32
      %c4_i32 = arith.constant 4 : i32
      %306 = arith.addi %305, %c4_i32 : i32
      %307 = arith.index_cast %306 : i32 to index
      %c0_215 = arith.constant 0 : index
      %c0_216 = arith.constant 0 : index
      %308 = vector.load %arg0[%307, %c0_215, %c0_216] : memref<64x32x3xf32, #tpu.memory_space<vmem>>, vector<1x32x3xf32>
      %309 = vector.shape_cast %308 : vector<1x32x3xf32> to vector<32x3xf32>
      %c2_i32_217 = arith.constant 2 : i32
      %310 = arith.muli %c2_i32_217, %arg15 : i32
      %c0_i32_218 = arith.constant 0 : i32
      %311 = arith.addi %c0_i32_218, %310 : i32
      %c5_i32_219 = arith.constant 5 : i32
      %312 = arith.addi %311, %c5_i32_219 : i32
      %313 = arith.index_cast %312 : i32 to index
      %c0_220 = arith.constant 0 : index
      %c0_221 = arith.constant 0 : index
      %314 = vector.load %arg0[%313, %c0_220, %c0_221] : memref<64x32x3xf32, #tpu.memory_space<vmem>>, vector<1x32x3xf32>
      %315 = vector.shape_cast %314 : vector<1x32x3xf32> to vector<32x3xf32>
      %c0_222 = arith.constant 0 : index
      %c0_223 = arith.constant 0 : index
      %316 = vector.load %arg1[%c0_222, %c0_223] : memref<75x6xf32, #tpu.memory_space<vmem>>, vector<75x6xf32>
      %c0_224 = arith.constant 0 : index
      %c0_225 = arith.constant 0 : index
      %317 = vector.load %arg2[%c0_224, %c0_225] : memref<1x6xf32, #tpu.memory_space<vmem>>, vector<1x6xf32>
      %318 = vector.extract_strided_slice %285 {offsets = [0, 0], sizes = [28, 3], strides = [1, 1]} : vector<32x3xf32> to vector<28x3xf32>
      %c0_226 = arith.constant 0 : index
      %c0_227 = arith.constant 0 : index
      %319 = vector.load %arg14[%c0_226, %c0_227] : memref<28x150xf32, #tpu.memory_space<vmem>>, vector<28x3xf32>
      tpu.vector_store %arg14[%c0_226, %c0_227], %318 {strides = array<i32>} : memref<28x150xf32, #tpu.memory_space<vmem>>, vector<28x3xf32>,
      %320 = vector.extract_strided_slice %285 {offsets = [1, 0], sizes = [28, 3], strides = [1, 1]} : vector<32x3xf32> to vector<28x3xf32>
      %c0_228 = arith.constant 0 : index
      %c3_229 = arith.constant 3 : index
      %321 = vector.load %arg14[%c0_228, %c3_229] : memref<28x150xf32, #tpu.memory_space<vmem>>, vector<28x3xf32>
      tpu.vector_store %arg14[%c0_228, %c3_229], %320 {strides = array<i32>} : memref<28x150xf32, #tpu.memory_space<vmem>>, vector<28x3xf32>,
      %322 = vector.extract_strided_slice %285 {offsets = [2, 0], sizes = [28, 3], strides = [1, 1]} : vector<32x3xf32> to vector<28x3xf32>
      %c0_230 = arith.constant 0 : index
      %c6_231 = arith.constant 6 : index
      %323 = vector.load %arg14[%c0_230, %c6_231] : memref<28x150xf32, #tpu.memory_space<vmem>>, vector<28x3xf32>
      tpu.vector_store %arg14[%c0_230, %c6_231], %322 {strides = array<i32>} : memref<28x150xf32, #tpu.memory_space<vmem>>, vector<28x3xf32>,
      %324 = vector.extract_strided_slice %285 {offsets = [3, 0], sizes = [28, 3], strides = [1, 1]} : vector<32x3xf32> to vector<28x3xf32>
      %c0_232 = arith.constant 0 : index
      %c9_233 = arith.constant 9 : index
      %325 = vector.load %arg14[%c0_232, %c9_233] : memref<28x150xf32, #tpu.memory_space<vmem>>, vector<28x3xf32>
      tpu.vector_store %arg14[%c0_232, %c9_233], %324 {strides = array<i32>} : memref<28x150xf32, #tpu.memory_space<vmem>>, vector<28x3xf32>,
      %326 = vector.extract_strided_slice %285 {offsets = [4, 0], sizes = [28, 3], strides = [1, 1]} : vector<32x3xf32> to vector<28x3xf32>
      %c0_234 = arith.constant 0 : index
      %c12 = arith.constant 12 : index
      %327 = vector.load %arg14[%c0_234, %c12] : memref<28x150xf32, #tpu.memory_space<vmem>>, vector<28x3xf32>
      tpu.vector_store %arg14[%c0_234, %c12], %326 {strides = array<i32>} : memref<28x150xf32, #tpu.memory_space<vmem>>, vector<28x3xf32>,
      %328 = vector.extract_strided_slice %291 {offsets = [0, 0], sizes = [28, 3], strides = [1, 1]} : vector<32x3xf32> to vector<28x3xf32>
      %c0_235 = arith.constant 0 : index
      %c15 = arith.constant 15 : index
      %329 = vector.load %arg14[%c0_235, %c15] : memref<28x150xf32, #tpu.memory_space<vmem>>, vector<28x3xf32>
      tpu.vector_store %arg14[%c0_235, %c15], %328 {strides = array<i32>} : memref<28x150xf32, #tpu.memory_space<vmem>>, vector<28x3xf32>,
      %330 = vector.extract_strided_slice %291 {offsets = [1, 0], sizes = [28, 3], strides = [1, 1]} : vector<32x3xf32> to vector<28x3xf32>
      %c0_236 = arith.constant 0 : index
      %c18 = arith.constant 18 : index
      %331 = vector.load %arg14[%c0_236, %c18] : memref<28x150xf32, #tpu.memory_space<vmem>>, vector<28x3xf32>
      tpu.vector_store %arg14[%c0_236, %c18], %330 {strides = array<i32>} : memref<28x150xf32, #tpu.memory_space<vmem>>, vector<28x3xf32>,
      %332 = vector.extract_strided_slice %291 {offsets = [2, 0], sizes = [28, 3], strides = [1, 1]} : vector<32x3xf32> to vector<28x3xf32>
      %c0_237 = arith.constant 0 : index
      %c21 = arith.constant 21 : index
      %333 = vector.load %arg14[%c0_237, %c21] : memref<28x150xf32, #tpu.memory_space<vmem>>, vector<28x3xf32>
      tpu.vector_store %arg14[%c0_237, %c21], %332 {strides = array<i32>} : memref<28x150xf32, #tpu.memory_space<vmem>>, vector<28x3xf32>,
      %334 = vector.extract_strided_slice %291 {offsets = [3, 0], sizes = [28, 3], strides = [1, 1]} : vector<32x3xf32> to vector<28x3xf32>
      %c0_238 = arith.constant 0 : index
      %c24 = arith.constant 24 : index
      %335 = vector.load %arg14[%c0_238, %c24] : memref<28x150xf32, #tpu.memory_space<vmem>>, vector<28x3xf32>
      tpu.vector_store %arg14[%c0_238, %c24], %334 {strides = array<i32>} : memref<28x150xf32, #tpu.memory_space<vmem>>, vector<28x3xf32>,
      %336 = vector.extract_strided_slice %291 {offsets = [4, 0], sizes = [28, 3], strides = [1, 1]} : vector<32x3xf32> to vector<28x3xf32>
      %c0_239 = arith.constant 0 : index
      %c27 = arith.constant 27 : index
      %337 = vector.load %arg14[%c0_239, %c27] : memref<28x150xf32, #tpu.memory_space<vmem>>, vector<28x3xf32>
      tpu.vector_store %arg14[%c0_239, %c27], %336 {strides = array<i32>} : memref<28x150xf32, #tpu.memory_space<vmem>>, vector<28x3xf32>,
      %338 = vector.extract_strided_slice %297 {offsets = [0, 0], sizes = [28, 3], strides = [1, 1]} : vector<32x3xf32> to vector<28x3xf32>
      %c0_240 = arith.constant 0 : index
      %c30 = arith.constant 30 : index
      %339 = vector.load %arg14[%c0_240, %c30] : memref<28x150xf32, #tpu.memory_space<vmem>>, vector<28x3xf32>
      tpu.vector_store %arg14[%c0_240, %c30], %338 {strides = array<i32>} : memref<28x150xf32, #tpu.memory_space<vmem>>, vector<28x3xf32>,
      %340 = vector.extract_strided_slice %297 {offsets = [1, 0], sizes = [28, 3], strides = [1, 1]} : vector<32x3xf32> to vector<28x3xf32>
      %c0_241 = arith.constant 0 : index
      %c33 = arith.constant 33 : index
      %341 = vector.load %arg14[%c0_241, %c33] : memref<28x150xf32, #tpu.memory_space<vmem>>, vector<28x3xf32>
      tpu.vector_store %arg14[%c0_241, %c33], %340 {strides = array<i32>} : memref<28x150xf32, #tpu.memory_space<vmem>>, vector<28x3xf32>,
      %342 = vector.extract_strided_slice %297 {offsets = [2, 0], sizes = [28, 3], strides = [1, 1]} : vector<32x3xf32> to vector<28x3xf32>
      %c0_242 = arith.constant 0 : index
      %c36 = arith.constant 36 : index
      %343 = vector.load %arg14[%c0_242, %c36] : memref<28x150xf32, #tpu.memory_space<vmem>>, vector<28x3xf32>
      tpu.vector_store %arg14[%c0_242, %c36], %342 {strides = array<i32>} : memref<28x150xf32, #tpu.memory_space<vmem>>, vector<28x3xf32>,
      %344 = vector.extract_strided_slice %297 {offsets = [3, 0], sizes = [28, 3], strides = [1, 1]} : vector<32x3xf32> to vector<28x3xf32>
      %c0_243 = arith.constant 0 : index
      %c39 = arith.constant 39 : index
      %345 = vector.load %arg14[%c0_243, %c39] : memref<28x150xf32, #tpu.memory_space<vmem>>, vector<28x3xf32>
      tpu.vector_store %arg14[%c0_243, %c39], %344 {strides = array<i32>} : memref<28x150xf32, #tpu.memory_space<vmem>>, vector<28x3xf32>,
      %346 = vector.extract_strided_slice %297 {offsets = [4, 0], sizes = [28, 3], strides = [1, 1]} : vector<32x3xf32> to vector<28x3xf32>
      %c0_244 = arith.constant 0 : index
      %c42 = arith.constant 42 : index
      %347 = vector.load %arg14[%c0_244, %c42] : memref<28x150xf32, #tpu.memory_space<vmem>>, vector<28x3xf32>
      tpu.vector_store %arg14[%c0_244, %c42], %346 {strides = array<i32>} : memref<28x150xf32, #tpu.memory_space<vmem>>, vector<28x3xf32>,
      %348 = vector.extract_strided_slice %303 {offsets = [0, 0], sizes = [28, 3], strides = [1, 1]} : vector<32x3xf32> to vector<28x3xf32>
      %c0_245 = arith.constant 0 : index
      %c45 = arith.constant 45 : index
      %349 = vector.load %arg14[%c0_245, %c45] : memref<28x150xf32, #tpu.memory_space<vmem>>, vector<28x3xf32>
      tpu.vector_store %arg14[%c0_245, %c45], %348 {strides = array<i32>} : memref<28x150xf32, #tpu.memory_space<vmem>>, vector<28x3xf32>,
      %350 = vector.extract_strided_slice %303 {offsets = [1, 0], sizes = [28, 3], strides = [1, 1]} : vector<32x3xf32> to vector<28x3xf32>
      %c0_246 = arith.constant 0 : index
      %c48_247 = arith.constant 48 : index
      %351 = vector.load %arg14[%c0_246, %c48_247] : memref<28x150xf32, #tpu.memory_space<vmem>>, vector<28x3xf32>
      tpu.vector_store %arg14[%c0_246, %c48_247], %350 {strides = array<i32>} : memref<28x150xf32, #tpu.memory_space<vmem>>, vector<28x3xf32>,
      %352 = vector.extract_strided_slice %303 {offsets = [2, 0], sizes = [28, 3], strides = [1, 1]} : vector<32x3xf32> to vector<28x3xf32>
      %c0_248 = arith.constant 0 : index
      %c51 = arith.constant 51 : index
      %353 = vector.load %arg14[%c0_248, %c51] : memref<28x150xf32, #tpu.memory_space<vmem>>, vector<28x3xf32>
      tpu.vector_store %arg14[%c0_248, %c51], %352 {strides = array<i32>} : memref<28x150xf32, #tpu.memory_space<vmem>>, vector<28x3xf32>,
      %354 = vector.extract_strided_slice %303 {offsets = [3, 0], sizes = [28, 3], strides = [1, 1]} : vector<32x3xf32> to vector<28x3xf32>
      %c0_249 = arith.constant 0 : index
      %c54 = arith.constant 54 : index
      %355 = vector.load %arg14[%c0_249, %c54] : memref<28x150xf32, #tpu.memory_space<vmem>>, vector<28x3xf32>
      tpu.vector_store %arg14[%c0_249, %c54], %354 {strides = array<i32>} : memref<28x150xf32, #tpu.memory_space<vmem>>, vector<28x3xf32>,
      %356 = vector.extract_strided_slice %303 {offsets = [4, 0], sizes = [28, 3], strides = [1, 1]} : vector<32x3xf32> to vector<28x3xf32>
      %c0_250 = arith.constant 0 : index
      %c57 = arith.constant 57 : index
      %357 = vector.load %arg14[%c0_250, %c57] : memref<28x150xf32, #tpu.memory_space<vmem>>, vector<28x3xf32>
      tpu.vector_store %arg14[%c0_250, %c57], %356 {strides = array<i32>} : memref<28x150xf32, #tpu.memory_space<vmem>>, vector<28x3xf32>,
      %358 = vector.extract_strided_slice %309 {offsets = [0, 0], sizes = [28, 3], strides = [1, 1]} : vector<32x3xf32> to vector<28x3xf32>
      %c0_251 = arith.constant 0 : index
      %c60 = arith.constant 60 : index
      %359 = vector.load %arg14[%c0_251, %c60] : memref<28x150xf32, #tpu.memory_space<vmem>>, vector<28x3xf32>
      tpu.vector_store %arg14[%c0_251, %c60], %358 {strides = array<i32>} : memref<28x150xf32, #tpu.memory_space<vmem>>, vector<28x3xf32>,
      %360 = vector.extract_strided_slice %309 {offsets = [1, 0], sizes = [28, 3], strides = [1, 1]} : vector<32x3xf32> to vector<28x3xf32>
      %c0_252 = arith.constant 0 : index
      %c63 = arith.constant 63 : index
      %361 = vector.load %arg14[%c0_252, %c63] : memref<28x150xf32, #tpu.memory_space<vmem>>, vector<28x3xf32>
      tpu.vector_store %arg14[%c0_252, %c63], %360 {strides = array<i32>} : memref<28x150xf32, #tpu.memory_space<vmem>>, vector<28x3xf32>,
      %362 = vector.extract_strided_slice %309 {offsets = [2, 0], sizes = [28, 3], strides = [1, 1]} : vector<32x3xf32> to vector<28x3xf32>
      %c0_253 = arith.constant 0 : index
      %c66 = arith.constant 66 : index
      %363 = vector.load %arg14[%c0_253, %c66] : memref<28x150xf32, #tpu.memory_space<vmem>>, vector<28x3xf32>
      tpu.vector_store %arg14[%c0_253, %c66], %362 {strides = array<i32>} : memref<28x150xf32, #tpu.memory_space<vmem>>, vector<28x3xf32>,
      %364 = vector.extract_strided_slice %309 {offsets = [3, 0], sizes = [28, 3], strides = [1, 1]} : vector<32x3xf32> to vector<28x3xf32>
      %c0_254 = arith.constant 0 : index
      %c69 = arith.constant 69 : index
      %365 = vector.load %arg14[%c0_254, %c69] : memref<28x150xf32, #tpu.memory_space<vmem>>, vector<28x3xf32>
      tpu.vector_store %arg14[%c0_254, %c69], %364 {strides = array<i32>} : memref<28x150xf32, #tpu.memory_space<vmem>>, vector<28x3xf32>,
      %366 = vector.extract_strided_slice %309 {offsets = [4, 0], sizes = [28, 3], strides = [1, 1]} : vector<32x3xf32> to vector<28x3xf32>
      %c0_255 = arith.constant 0 : index
      %c72 = arith.constant 72 : index
      %367 = vector.load %arg14[%c0_255, %c72] : memref<28x150xf32, #tpu.memory_space<vmem>>, vector<28x3xf32>
      tpu.vector_store %arg14[%c0_255, %c72], %366 {strides = array<i32>} : memref<28x150xf32, #tpu.memory_space<vmem>>, vector<28x3xf32>,
      %c0_256 = arith.constant 0 : index
      %c0_257 = arith.constant 0 : index
      %368 = vector.load %arg14[%c0_256, %c0_257] : memref<28x150xf32, #tpu.memory_space<vmem>>, vector<28x75xf32>
      %cst_258 = arith.constant dense<0.000000e+00> : vector<28x6xf32>
      %369 = tpu.matmul %368, %316, %cst_258 {dimension_numbers = #tpu.dot_dimension_numbers<[1], [0], [0], [1], [0, 0, 1, 1], [], []>} : vector<28x75xf32>, vector<75x6xf32>, vector<28x6xf32> -> vector<28x6xf32>
      %370 = vector.broadcast %317 : vector<1x6xf32> to vector<28x6xf32>
      %371 = arith.addf %369, %370 : vector<28x6xf32>
      %cst_259 = arith.constant 0.000000e+00 : f32
      %372 = vector.broadcast %cst_259 : f32 to vector<28x6xf32>
      %373 = arith.maximumf %371, %372 : vector<28x6xf32>
      %374 = vector.extract_strided_slice %291 {offsets = [0, 0], sizes = [28, 3], strides = [1, 1]} : vector<32x3xf32> to vector<28x3xf32>
      %c0_260 = arith.constant 0 : index
      %c0_261 = arith.constant 0 : index
      %375 = vector.load %arg14[%c0_260, %c0_261] : memref<28x150xf32, #tpu.memory_space<vmem>>, vector<28x3xf32>
      tpu.vector_store %arg14[%c0_260, %c0_261], %374 {strides = array<i32>} : memref<28x150xf32, #tpu.memory_space<vmem>>, vector<28x3xf32>,
      %376 = vector.extract_strided_slice %291 {offsets = [1, 0], sizes = [28, 3], strides = [1, 1]} : vector<32x3xf32> to vector<28x3xf32>
      %c0_262 = arith.constant 0 : index
      %c3_263 = arith.constant 3 : index
      %377 = vector.load %arg14[%c0_262, %c3_263] : memref<28x150xf32, #tpu.memory_space<vmem>>, vector<28x3xf32>
      tpu.vector_store %arg14[%c0_262, %c3_263], %376 {strides = array<i32>} : memref<28x150xf32, #tpu.memory_space<vmem>>, vector<28x3xf32>,
      %378 = vector.extract_strided_slice %291 {offsets = [2, 0], sizes = [28, 3], strides = [1, 1]} : vector<32x3xf32> to vector<28x3xf32>
      %c0_264 = arith.constant 0 : index
      %c6_265 = arith.constant 6 : index
      %379 = vector.load %arg14[%c0_264, %c6_265] : memref<28x150xf32, #tpu.memory_space<vmem>>, vector<28x3xf32>
      tpu.vector_store %arg14[%c0_264, %c6_265], %378 {strides = array<i32>} : memref<28x150xf32, #tpu.memory_space<vmem>>, vector<28x3xf32>,
      %380 = vector.extract_strided_slice %291 {offsets = [3, 0], sizes = [28, 3], strides = [1, 1]} : vector<32x3xf32> to vector<28x3xf32>
      %c0_266 = arith.constant 0 : index
      %c9_267 = arith.constant 9 : index
      %381 = vector.load %arg14[%c0_266, %c9_267] : memref<28x150xf32, #tpu.memory_space<vmem>>, vector<28x3xf32>
      tpu.vector_store %arg14[%c0_266, %c9_267], %380 {strides = array<i32>} : memref<28x150xf32, #tpu.memory_space<vmem>>, vector<28x3xf32>,
      %382 = vector.extract_strided_slice %291 {offsets = [4, 0], sizes = [28, 3], strides = [1, 1]} : vector<32x3xf32> to vector<28x3xf32>
      %c0_268 = arith.constant 0 : index
      %c12_269 = arith.constant 12 : index
      %383 = vector.load %arg14[%c0_268, %c12_269] : memref<28x150xf32, #tpu.memory_space<vmem>>, vector<28x3xf32>
      tpu.vector_store %arg14[%c0_268, %c12_269], %382 {strides = array<i32>} : memref<28x150xf32, #tpu.memory_space<vmem>>, vector<28x3xf32>,
      %384 = vector.extract_strided_slice %297 {offsets = [0, 0], sizes = [28, 3], strides = [1, 1]} : vector<32x3xf32> to vector<28x3xf32>
      %c0_270 = arith.constant 0 : index
      %c15_271 = arith.constant 15 : index
      %385 = vector.load %arg14[%c0_270, %c15_271] : memref<28x150xf32, #tpu.memory_space<vmem>>, vector<28x3xf32>
      tpu.vector_store %arg14[%c0_270, %c15_271], %384 {strides = array<i32>} : memref<28x150xf32, #tpu.memory_space<vmem>>, vector<28x3xf32>,
      %386 = vector.extract_strided_slice %297 {offsets = [1, 0], sizes = [28, 3], strides = [1, 1]} : vector<32x3xf32> to vector<28x3xf32>
      %c0_272 = arith.constant 0 : index
      %c18_273 = arith.constant 18 : index
      %387 = vector.load %arg14[%c0_272, %c18_273] : memref<28x150xf32, #tpu.memory_space<vmem>>, vector<28x3xf32>
      tpu.vector_store %arg14[%c0_272, %c18_273], %386 {strides = array<i32>} : memref<28x150xf32, #tpu.memory_space<vmem>>, vector<28x3xf32>,
      %388 = vector.extract_strided_slice %297 {offsets = [2, 0], sizes = [28, 3], strides = [1, 1]} : vector<32x3xf32> to vector<28x3xf32>
      %c0_274 = arith.constant 0 : index
      %c21_275 = arith.constant 21 : index
      %389 = vector.load %arg14[%c0_274, %c21_275] : memref<28x150xf32, #tpu.memory_space<vmem>>, vector<28x3xf32>
      tpu.vector_store %arg14[%c0_274, %c21_275], %388 {strides = array<i32>} : memref<28x150xf32, #tpu.memory_space<vmem>>, vector<28x3xf32>,
      %390 = vector.extract_strided_slice %297 {offsets = [3, 0], sizes = [28, 3], strides = [1, 1]} : vector<32x3xf32> to vector<28x3xf32>
      %c0_276 = arith.constant 0 : index
      %c24_277 = arith.constant 24 : index
      %391 = vector.load %arg14[%c0_276, %c24_277] : memref<28x150xf32, #tpu.memory_space<vmem>>, vector<28x3xf32>
      tpu.vector_store %arg14[%c0_276, %c24_277], %390 {strides = array<i32>} : memref<28x150xf32, #tpu.memory_space<vmem>>, vector<28x3xf32>,
      %392 = vector.extract_strided_slice %297 {offsets = [4, 0], sizes = [28, 3], strides = [1, 1]} : vector<32x3xf32> to vector<28x3xf32>
      %c0_278 = arith.constant 0 : index
      %c27_279 = arith.constant 27 : index
      %393 = vector.load %arg14[%c0_278, %c27_279] : memref<28x150xf32, #tpu.memory_space<vmem>>, vector<28x3xf32>
      tpu.vector_store %arg14[%c0_278, %c27_279], %392 {strides = array<i32>} : memref<28x150xf32, #tpu.memory_space<vmem>>, vector<28x3xf32>,
      %394 = vector.extract_strided_slice %303 {offsets = [0, 0], sizes = [28, 3], strides = [1, 1]} : vector<32x3xf32> to vector<28x3xf32>
      %c0_280 = arith.constant 0 : index
      %c30_281 = arith.constant 30 : index
      %395 = vector.load %arg14[%c0_280, %c30_281] : memref<28x150xf32, #tpu.memory_space<vmem>>, vector<28x3xf32>
      tpu.vector_store %arg14[%c0_280, %c30_281], %394 {strides = array<i32>} : memref<28x150xf32, #tpu.memory_space<vmem>>, vector<28x3xf32>,
      %396 = vector.extract_strided_slice %303 {offsets = [1, 0], sizes = [28, 3], strides = [1, 1]} : vector<32x3xf32> to vector<28x3xf32>
      %c0_282 = arith.constant 0 : index
      %c33_283 = arith.constant 33 : index
      %397 = vector.load %arg14[%c0_282, %c33_283] : memref<28x150xf32, #tpu.memory_space<vmem>>, vector<28x3xf32>
      tpu.vector_store %arg14[%c0_282, %c33_283], %396 {strides = array<i32>} : memref<28x150xf32, #tpu.memory_space<vmem>>, vector<28x3xf32>,
      %398 = vector.extract_strided_slice %303 {offsets = [2, 0], sizes = [28, 3], strides = [1, 1]} : vector<32x3xf32> to vector<28x3xf32>
      %c0_284 = arith.constant 0 : index
      %c36_285 = arith.constant 36 : index
      %399 = vector.load %arg14[%c0_284, %c36_285] : memref<28x150xf32, #tpu.memory_space<vmem>>, vector<28x3xf32>
      tpu.vector_store %arg14[%c0_284, %c36_285], %398 {strides = array<i32>} : memref<28x150xf32, #tpu.memory_space<vmem>>, vector<28x3xf32>,
      %400 = vector.extract_strided_slice %303 {offsets = [3, 0], sizes = [28, 3], strides = [1, 1]} : vector<32x3xf32> to vector<28x3xf32>
      %c0_286 = arith.constant 0 : index
      %c39_287 = arith.constant 39 : index
      %401 = vector.load %arg14[%c0_286, %c39_287] : memref<28x150xf32, #tpu.memory_space<vmem>>, vector<28x3xf32>
      tpu.vector_store %arg14[%c0_286, %c39_287], %400 {strides = array<i32>} : memref<28x150xf32, #tpu.memory_space<vmem>>, vector<28x3xf32>,
      %402 = vector.extract_strided_slice %303 {offsets = [4, 0], sizes = [28, 3], strides = [1, 1]} : vector<32x3xf32> to vector<28x3xf32>
      %c0_288 = arith.constant 0 : index
      %c42_289 = arith.constant 42 : index
      %403 = vector.load %arg14[%c0_288, %c42_289] : memref<28x150xf32, #tpu.memory_space<vmem>>, vector<28x3xf32>
      tpu.vector_store %arg14[%c0_288, %c42_289], %402 {strides = array<i32>} : memref<28x150xf32, #tpu.memory_space<vmem>>, vector<28x3xf32>,
      %404 = vector.extract_strided_slice %309 {offsets = [0, 0], sizes = [28, 3], strides = [1, 1]} : vector<32x3xf32> to vector<28x3xf32>
      %c0_290 = arith.constant 0 : index
      %c45_291 = arith.constant 45 : index
      %405 = vector.load %arg14[%c0_290, %c45_291] : memref<28x150xf32, #tpu.memory_space<vmem>>, vector<28x3xf32>
      tpu.vector_store %arg14[%c0_290, %c45_291], %404 {strides = array<i32>} : memref<28x150xf32, #tpu.memory_space<vmem>>, vector<28x3xf32>,
      %406 = vector.extract_strided_slice %309 {offsets = [1, 0], sizes = [28, 3], strides = [1, 1]} : vector<32x3xf32> to vector<28x3xf32>
      %c0_292 = arith.constant 0 : index
      %c48_293 = arith.constant 48 : index
      %407 = vector.load %arg14[%c0_292, %c48_293] : memref<28x150xf32, #tpu.memory_space<vmem>>, vector<28x3xf32>
      tpu.vector_store %arg14[%c0_292, %c48_293], %406 {strides = array<i32>} : memref<28x150xf32, #tpu.memory_space<vmem>>, vector<28x3xf32>,
      %408 = vector.extract_strided_slice %309 {offsets = [2, 0], sizes = [28, 3], strides = [1, 1]} : vector<32x3xf32> to vector<28x3xf32>
      %c0_294 = arith.constant 0 : index
      %c51_295 = arith.constant 51 : index
      %409 = vector.load %arg14[%c0_294, %c51_295] : memref<28x150xf32, #tpu.memory_space<vmem>>, vector<28x3xf32>
      tpu.vector_store %arg14[%c0_294, %c51_295], %408 {strides = array<i32>} : memref<28x150xf32, #tpu.memory_space<vmem>>, vector<28x3xf32>,
      %410 = vector.extract_strided_slice %309 {offsets = [3, 0], sizes = [28, 3], strides = [1, 1]} : vector<32x3xf32> to vector<28x3xf32>
      %c0_296 = arith.constant 0 : index
      %c54_297 = arith.constant 54 : index
      %411 = vector.load %arg14[%c0_296, %c54_297] : memref<28x150xf32, #tpu.memory_space<vmem>>, vector<28x3xf32>
      tpu.vector_store %arg14[%c0_296, %c54_297], %410 {strides = array<i32>} : memref<28x150xf32, #tpu.memory_space<vmem>>, vector<28x3xf32>,
      %412 = vector.extract_strided_slice %309 {offsets = [4, 0], sizes = [28, 3], strides = [1, 1]} : vector<32x3xf32> to vector<28x3xf32>
      %c0_298 = arith.constant 0 : index
      %c57_299 = arith.constant 57 : index
      %413 = vector.load %arg14[%c0_298, %c57_299] : memref<28x150xf32, #tpu.memory_space<vmem>>, vector<28x3xf32>
      tpu.vector_store %arg14[%c0_298, %c57_299], %412 {strides = array<i32>} : memref<28x150xf32, #tpu.memory_space<vmem>>, vector<28x3xf32>,
      %414 = vector.extract_strided_slice %315 {offsets = [0, 0], sizes = [28, 3], strides = [1, 1]} : vector<32x3xf32> to vector<28x3xf32>
      %c0_300 = arith.constant 0 : index
      %c60_301 = arith.constant 60 : index
      %415 = vector.load %arg14[%c0_300, %c60_301] : memref<28x150xf32, #tpu.memory_space<vmem>>, vector<28x3xf32>
      tpu.vector_store %arg14[%c0_300, %c60_301], %414 {strides = array<i32>} : memref<28x150xf32, #tpu.memory_space<vmem>>, vector<28x3xf32>,
      %416 = vector.extract_strided_slice %315 {offsets = [1, 0], sizes = [28, 3], strides = [1, 1]} : vector<32x3xf32> to vector<28x3xf32>
      %c0_302 = arith.constant 0 : index
      %c63_303 = arith.constant 63 : index
      %417 = vector.load %arg14[%c0_302, %c63_303] : memref<28x150xf32, #tpu.memory_space<vmem>>, vector<28x3xf32>
      tpu.vector_store %arg14[%c0_302, %c63_303], %416 {strides = array<i32>} : memref<28x150xf32, #tpu.memory_space<vmem>>, vector<28x3xf32>,
      %418 = vector.extract_strided_slice %315 {offsets = [2, 0], sizes = [28, 3], strides = [1, 1]} : vector<32x3xf32> to vector<28x3xf32>
      %c0_304 = arith.constant 0 : index
      %c66_305 = arith.constant 66 : index
      %419 = vector.load %arg14[%c0_304, %c66_305] : memref<28x150xf32, #tpu.memory_space<vmem>>, vector<28x3xf32>
      tpu.vector_store %arg14[%c0_304, %c66_305], %418 {strides = array<i32>} : memref<28x150xf32, #tpu.memory_space<vmem>>, vector<28x3xf32>,
      %420 = vector.extract_strided_slice %315 {offsets = [3, 0], sizes = [28, 3], strides = [1, 1]} : vector<32x3xf32> to vector<28x3xf32>
      %c0_306 = arith.constant 0 : index
      %c69_307 = arith.constant 69 : index
      %421 = vector.load %arg14[%c0_306, %c69_307] : memref<28x150xf32, #tpu.memory_space<vmem>>, vector<28x3xf32>
      tpu.vector_store %arg14[%c0_306, %c69_307], %420 {strides = array<i32>} : memref<28x150xf32, #tpu.memory_space<vmem>>, vector<28x3xf32>,
      %422 = vector.extract_strided_slice %315 {offsets = [4, 0], sizes = [28, 3], strides = [1, 1]} : vector<32x3xf32> to vector<28x3xf32>
      %c0_308 = arith.constant 0 : index
      %c72_309 = arith.constant 72 : index
      %423 = vector.load %arg14[%c0_308, %c72_309] : memref<28x150xf32, #tpu.memory_space<vmem>>, vector<28x3xf32>
      tpu.vector_store %arg14[%c0_308, %c72_309], %422 {strides = array<i32>} : memref<28x150xf32, #tpu.memory_space<vmem>>, vector<28x3xf32>,
      %c0_310 = arith.constant 0 : index
      %c0_311 = arith.constant 0 : index
      %424 = vector.load %arg14[%c0_310, %c0_311] : memref<28x150xf32, #tpu.memory_space<vmem>>, vector<28x75xf32>
      %cst_312 = arith.constant dense<0.000000e+00> : vector<28x6xf32>
      %425 = tpu.matmul %424, %316, %cst_312 {dimension_numbers = #tpu.dot_dimension_numbers<[1], [0], [0], [1], [0, 0, 1, 1], [], []>} : vector<28x75xf32>, vector<75x6xf32>, vector<28x6xf32> -> vector<28x6xf32>
      %426 = vector.broadcast %317 : vector<1x6xf32> to vector<28x6xf32>
      %427 = arith.addf %425, %426 : vector<28x6xf32>
      %cst_313 = arith.constant 0.000000e+00 : f32
      %428 = vector.broadcast %cst_313 : f32 to vector<28x6xf32>
      %429 = arith.maximumf %427, %428 : vector<28x6xf32>
      %430 = arith.maximumf %373, %429 : vector<28x6xf32>
      %cst_314 = arith.constant dense<0.000000e+00> : vector<14x6xf32>
      %431 = tpu.matmul %6, %430, %cst_314 {dimension_numbers = #tpu.dot_dimension_numbers<[1], [0], [0], [1], [0, 0, 1, 1], [], []>} : vector<14x28xf32>, vector<28x6xf32>, vector<14x6xf32> -> vector<14x6xf32>
      %cst_315 = arith.constant dense<0.000000e+00> : vector<14x6xf32>
      %432 = tpu.matmul %13, %430, %cst_315 {dimension_numbers = #tpu.dot_dimension_numbers<[1], [0], [0], [1], [0, 0, 1, 1], [], []>} : vector<14x28xf32>, vector<28x6xf32>, vector<14x6xf32> -> vector<14x6xf32>
      %433 = arith.maximumf %431, %432 : vector<14x6xf32>
      %c0_i32_316 = arith.constant 0 : i32
      %434 = arith.addi %c0_i32_316, %arg15 : i32
      %435 = arith.index_cast %434 : i32 to index
      %c0_317 = arith.constant 0 : index
      %c0_318 = arith.constant 0 : index
      %436 = vector.load %arg12[%435, %c0_317, %c0_318] : memref<28x14x6xf32, #tpu.memory_space<vmem>>, vector<1x14x6xf32>
      %437 = vector.shape_cast %436 : vector<1x14x6xf32> to vector<14x6xf32>
      %438 = vector.shape_cast %433 : vector<14x6xf32> to vector<1x14x6xf32>
      tpu.vector_store %arg12[%435, %c0_317, %c0_318], %438 {strides = array<i32>} : memref<28x14x6xf32, #tpu.memory_space<vmem>>, vector<1x14x6xf32>,
    }
    %c14_i32_5 = arith.constant 14 : i32
    %c0_i32_6 = arith.constant 0 : i32
    %c14_i32_7 = arith.constant 14 : i32
    %29 = arith.addi %c0_i32_6, %c14_i32_7 : i32
    %c1_i32_8 = arith.constant 1 : i32
    scf.for %arg15 = %c0_i32_6 to %29 step %c1_i32_8  : i32 {
      %c2_i32_194 = arith.constant 2 : i32
      %280 = arith.muli %c2_i32_194, %arg15 : i32
      %c32_i32 = arith.constant 32 : i32
      %281 = arith.addi %c32_i32, %280 : i32
      %c0_i32_195 = arith.constant 0 : i32
      %282 = arith.addi %281, %c0_i32_195 : i32
      %283 = arith.index_cast %282 : i32 to index
      %c0_196 = arith.constant 0 : index
      %c0_197 = arith.constant 0 : index
      %284 = vector.load %arg0[%283, %c0_196, %c0_197] : memref<64x32x3xf32, #tpu.memory_space<vmem>>, vector<1x32x3xf32>
      %285 = vector.shape_cast %284 : vector<1x32x3xf32> to vector<32x3xf32>
      %c2_i32_198 = arith.constant 2 : i32
      %286 = arith.muli %c2_i32_198, %arg15 : i32
      %c32_i32_199 = arith.constant 32 : i32
      %287 = arith.addi %c32_i32_199, %286 : i32
      %c1_i32_200 = arith.constant 1 : i32
      %288 = arith.addi %287, %c1_i32_200 : i32
      %289 = arith.index_cast %288 : i32 to index
      %c0_201 = arith.constant 0 : index
      %c0_202 = arith.constant 0 : index
      %290 = vector.load %arg0[%289, %c0_201, %c0_202] : memref<64x32x3xf32, #tpu.memory_space<vmem>>, vector<1x32x3xf32>
      %291 = vector.shape_cast %290 : vector<1x32x3xf32> to vector<32x3xf32>
      %c2_i32_203 = arith.constant 2 : i32
      %292 = arith.muli %c2_i32_203, %arg15 : i32
      %c32_i32_204 = arith.constant 32 : i32
      %293 = arith.addi %c32_i32_204, %292 : i32
      %c2_i32_205 = arith.constant 2 : i32
      %294 = arith.addi %293, %c2_i32_205 : i32
      %295 = arith.index_cast %294 : i32 to index
      %c0_206 = arith.constant 0 : index
      %c0_207 = arith.constant 0 : index
      %296 = vector.load %arg0[%295, %c0_206, %c0_207] : memref<64x32x3xf32, #tpu.memory_space<vmem>>, vector<1x32x3xf32>
      %297 = vector.shape_cast %296 : vector<1x32x3xf32> to vector<32x3xf32>
      %c2_i32_208 = arith.constant 2 : i32
      %298 = arith.muli %c2_i32_208, %arg15 : i32
      %c32_i32_209 = arith.constant 32 : i32
      %299 = arith.addi %c32_i32_209, %298 : i32
      %c3_i32 = arith.constant 3 : i32
      %300 = arith.addi %299, %c3_i32 : i32
      %301 = arith.index_cast %300 : i32 to index
      %c0_210 = arith.constant 0 : index
      %c0_211 = arith.constant 0 : index
      %302 = vector.load %arg0[%301, %c0_210, %c0_211] : memref<64x32x3xf32, #tpu.memory_space<vmem>>, vector<1x32x3xf32>
      %303 = vector.shape_cast %302 : vector<1x32x3xf32> to vector<32x3xf32>
      %c2_i32_212 = arith.constant 2 : i32
      %304 = arith.muli %c2_i32_212, %arg15 : i32
      %c32_i32_213 = arith.constant 32 : i32
      %305 = arith.addi %c32_i32_213, %304 : i32
      %c4_i32 = arith.constant 4 : i32
      %306 = arith.addi %305, %c4_i32 : i32
      %307 = arith.index_cast %306 : i32 to index
      %c0_214 = arith.constant 0 : index
      %c0_215 = arith.constant 0 : index
      %308 = vector.load %arg0[%307, %c0_214, %c0_215] : memref<64x32x3xf32, #tpu.memory_space<vmem>>, vector<1x32x3xf32>
      %309 = vector.shape_cast %308 : vector<1x32x3xf32> to vector<32x3xf32>
      %c2_i32_216 = arith.constant 2 : i32
      %310 = arith.muli %c2_i32_216, %arg15 : i32
      %c32_i32_217 = arith.constant 32 : i32
      %311 = arith.addi %c32_i32_217, %310 : i32
      %c5_i32_218 = arith.constant 5 : i32
      %312 = arith.addi %311, %c5_i32_218 : i32
      %313 = arith.index_cast %312 : i32 to index
      %c0_219 = arith.constant 0 : index
      %c0_220 = arith.constant 0 : index
      %314 = vector.load %arg0[%313, %c0_219, %c0_220] : memref<64x32x3xf32, #tpu.memory_space<vmem>>, vector<1x32x3xf32>
      %315 = vector.shape_cast %314 : vector<1x32x3xf32> to vector<32x3xf32>
      %c0_221 = arith.constant 0 : index
      %c0_222 = arith.constant 0 : index
      %316 = vector.load %arg1[%c0_221, %c0_222] : memref<75x6xf32, #tpu.memory_space<vmem>>, vector<75x6xf32>
      %c0_223 = arith.constant 0 : index
      %c0_224 = arith.constant 0 : index
      %317 = vector.load %arg2[%c0_223, %c0_224] : memref<1x6xf32, #tpu.memory_space<vmem>>, vector<1x6xf32>
      %318 = vector.extract_strided_slice %285 {offsets = [0, 0], sizes = [28, 3], strides = [1, 1]} : vector<32x3xf32> to vector<28x3xf32>
      %c0_225 = arith.constant 0 : index
      %c0_226 = arith.constant 0 : index
      %319 = vector.load %arg14[%c0_225, %c0_226] : memref<28x150xf32, #tpu.memory_space<vmem>>, vector<28x3xf32>
      tpu.vector_store %arg14[%c0_225, %c0_226], %318 {strides = array<i32>} : memref<28x150xf32, #tpu.memory_space<vmem>>, vector<28x3xf32>,
      %320 = vector.extract_strided_slice %285 {offsets = [1, 0], sizes = [28, 3], strides = [1, 1]} : vector<32x3xf32> to vector<28x3xf32>
      %c0_227 = arith.constant 0 : index
      %c3_228 = arith.constant 3 : index
      %321 = vector.load %arg14[%c0_227, %c3_228] : memref<28x150xf32, #tpu.memory_space<vmem>>, vector<28x3xf32>
      tpu.vector_store %arg14[%c0_227, %c3_228], %320 {strides = array<i32>} : memref<28x150xf32, #tpu.memory_space<vmem>>, vector<28x3xf32>,
      %322 = vector.extract_strided_slice %285 {offsets = [2, 0], sizes = [28, 3], strides = [1, 1]} : vector<32x3xf32> to vector<28x3xf32>
      %c0_229 = arith.constant 0 : index
      %c6_230 = arith.constant 6 : index
      %323 = vector.load %arg14[%c0_229, %c6_230] : memref<28x150xf32, #tpu.memory_space<vmem>>, vector<28x3xf32>
      tpu.vector_store %arg14[%c0_229, %c6_230], %322 {strides = array<i32>} : memref<28x150xf32, #tpu.memory_space<vmem>>, vector<28x3xf32>,
      %324 = vector.extract_strided_slice %285 {offsets = [3, 0], sizes = [28, 3], strides = [1, 1]} : vector<32x3xf32> to vector<28x3xf32>
      %c0_231 = arith.constant 0 : index
      %c9_232 = arith.constant 9 : index
      %325 = vector.load %arg14[%c0_231, %c9_232] : memref<28x150xf32, #tpu.memory_space<vmem>>, vector<28x3xf32>
      tpu.vector_store %arg14[%c0_231, %c9_232], %324 {strides = array<i32>} : memref<28x150xf32, #tpu.memory_space<vmem>>, vector<28x3xf32>,
      %326 = vector.extract_strided_slice %285 {offsets = [4, 0], sizes = [28, 3], strides = [1, 1]} : vector<32x3xf32> to vector<28x3xf32>
      %c0_233 = arith.constant 0 : index
      %c12 = arith.constant 12 : index
      %327 = vector.load %arg14[%c0_233, %c12] : memref<28x150xf32, #tpu.memory_space<vmem>>, vector<28x3xf32>
      tpu.vector_store %arg14[%c0_233, %c12], %326 {strides = array<i32>} : memref<28x150xf32, #tpu.memory_space<vmem>>, vector<28x3xf32>,
      %328 = vector.extract_strided_slice %291 {offsets = [0, 0], sizes = [28, 3], strides = [1, 1]} : vector<32x3xf32> to vector<28x3xf32>
      %c0_234 = arith.constant 0 : index
      %c15 = arith.constant 15 : index
      %329 = vector.load %arg14[%c0_234, %c15] : memref<28x150xf32, #tpu.memory_space<vmem>>, vector<28x3xf32>
      tpu.vector_store %arg14[%c0_234, %c15], %328 {strides = array<i32>} : memref<28x150xf32, #tpu.memory_space<vmem>>, vector<28x3xf32>,
      %330 = vector.extract_strided_slice %291 {offsets = [1, 0], sizes = [28, 3], strides = [1, 1]} : vector<32x3xf32> to vector<28x3xf32>
      %c0_235 = arith.constant 0 : index
      %c18 = arith.constant 18 : index
      %331 = vector.load %arg14[%c0_235, %c18] : memref<28x150xf32, #tpu.memory_space<vmem>>, vector<28x3xf32>
      tpu.vector_store %arg14[%c0_235, %c18], %330 {strides = array<i32>} : memref<28x150xf32, #tpu.memory_space<vmem>>, vector<28x3xf32>,
      %332 = vector.extract_strided_slice %291 {offsets = [2, 0], sizes = [28, 3], strides = [1, 1]} : vector<32x3xf32> to vector<28x3xf32>
      %c0_236 = arith.constant 0 : index
      %c21 = arith.constant 21 : index
      %333 = vector.load %arg14[%c0_236, %c21] : memref<28x150xf32, #tpu.memory_space<vmem>>, vector<28x3xf32>
      tpu.vector_store %arg14[%c0_236, %c21], %332 {strides = array<i32>} : memref<28x150xf32, #tpu.memory_space<vmem>>, vector<28x3xf32>,
      %334 = vector.extract_strided_slice %291 {offsets = [3, 0], sizes = [28, 3], strides = [1, 1]} : vector<32x3xf32> to vector<28x3xf32>
      %c0_237 = arith.constant 0 : index
      %c24 = arith.constant 24 : index
      %335 = vector.load %arg14[%c0_237, %c24] : memref<28x150xf32, #tpu.memory_space<vmem>>, vector<28x3xf32>
      tpu.vector_store %arg14[%c0_237, %c24], %334 {strides = array<i32>} : memref<28x150xf32, #tpu.memory_space<vmem>>, vector<28x3xf32>,
      %336 = vector.extract_strided_slice %291 {offsets = [4, 0], sizes = [28, 3], strides = [1, 1]} : vector<32x3xf32> to vector<28x3xf32>
      %c0_238 = arith.constant 0 : index
      %c27 = arith.constant 27 : index
      %337 = vector.load %arg14[%c0_238, %c27] : memref<28x150xf32, #tpu.memory_space<vmem>>, vector<28x3xf32>
      tpu.vector_store %arg14[%c0_238, %c27], %336 {strides = array<i32>} : memref<28x150xf32, #tpu.memory_space<vmem>>, vector<28x3xf32>,
      %338 = vector.extract_strided_slice %297 {offsets = [0, 0], sizes = [28, 3], strides = [1, 1]} : vector<32x3xf32> to vector<28x3xf32>
      %c0_239 = arith.constant 0 : index
      %c30 = arith.constant 30 : index
      %339 = vector.load %arg14[%c0_239, %c30] : memref<28x150xf32, #tpu.memory_space<vmem>>, vector<28x3xf32>
      tpu.vector_store %arg14[%c0_239, %c30], %338 {strides = array<i32>} : memref<28x150xf32, #tpu.memory_space<vmem>>, vector<28x3xf32>,
      %340 = vector.extract_strided_slice %297 {offsets = [1, 0], sizes = [28, 3], strides = [1, 1]} : vector<32x3xf32> to vector<28x3xf32>
      %c0_240 = arith.constant 0 : index
      %c33 = arith.constant 33 : index
      %341 = vector.load %arg14[%c0_240, %c33] : memref<28x150xf32, #tpu.memory_space<vmem>>, vector<28x3xf32>
      tpu.vector_store %arg14[%c0_240, %c33], %340 {strides = array<i32>} : memref<28x150xf32, #tpu.memory_space<vmem>>, vector<28x3xf32>,
      %342 = vector.extract_strided_slice %297 {offsets = [2, 0], sizes = [28, 3], strides = [1, 1]} : vector<32x3xf32> to vector<28x3xf32>
      %c0_241 = arith.constant 0 : index
      %c36 = arith.constant 36 : index
      %343 = vector.load %arg14[%c0_241, %c36] : memref<28x150xf32, #tpu.memory_space<vmem>>, vector<28x3xf32>
      tpu.vector_store %arg14[%c0_241, %c36], %342 {strides = array<i32>} : memref<28x150xf32, #tpu.memory_space<vmem>>, vector<28x3xf32>,
      %344 = vector.extract_strided_slice %297 {offsets = [3, 0], sizes = [28, 3], strides = [1, 1]} : vector<32x3xf32> to vector<28x3xf32>
      %c0_242 = arith.constant 0 : index
      %c39 = arith.constant 39 : index
      %345 = vector.load %arg14[%c0_242, %c39] : memref<28x150xf32, #tpu.memory_space<vmem>>, vector<28x3xf32>
      tpu.vector_store %arg14[%c0_242, %c39], %344 {strides = array<i32>} : memref<28x150xf32, #tpu.memory_space<vmem>>, vector<28x3xf32>,
      %346 = vector.extract_strided_slice %297 {offsets = [4, 0], sizes = [28, 3], strides = [1, 1]} : vector<32x3xf32> to vector<28x3xf32>
      %c0_243 = arith.constant 0 : index
      %c42 = arith.constant 42 : index
      %347 = vector.load %arg14[%c0_243, %c42] : memref<28x150xf32, #tpu.memory_space<vmem>>, vector<28x3xf32>
      tpu.vector_store %arg14[%c0_243, %c42], %346 {strides = array<i32>} : memref<28x150xf32, #tpu.memory_space<vmem>>, vector<28x3xf32>,
      %348 = vector.extract_strided_slice %303 {offsets = [0, 0], sizes = [28, 3], strides = [1, 1]} : vector<32x3xf32> to vector<28x3xf32>
      %c0_244 = arith.constant 0 : index
      %c45 = arith.constant 45 : index
      %349 = vector.load %arg14[%c0_244, %c45] : memref<28x150xf32, #tpu.memory_space<vmem>>, vector<28x3xf32>
      tpu.vector_store %arg14[%c0_244, %c45], %348 {strides = array<i32>} : memref<28x150xf32, #tpu.memory_space<vmem>>, vector<28x3xf32>,
      %350 = vector.extract_strided_slice %303 {offsets = [1, 0], sizes = [28, 3], strides = [1, 1]} : vector<32x3xf32> to vector<28x3xf32>
      %c0_245 = arith.constant 0 : index
      %c48_246 = arith.constant 48 : index
      %351 = vector.load %arg14[%c0_245, %c48_246] : memref<28x150xf32, #tpu.memory_space<vmem>>, vector<28x3xf32>
      tpu.vector_store %arg14[%c0_245, %c48_246], %350 {strides = array<i32>} : memref<28x150xf32, #tpu.memory_space<vmem>>, vector<28x3xf32>,
      %352 = vector.extract_strided_slice %303 {offsets = [2, 0], sizes = [28, 3], strides = [1, 1]} : vector<32x3xf32> to vector<28x3xf32>
      %c0_247 = arith.constant 0 : index
      %c51 = arith.constant 51 : index
      %353 = vector.load %arg14[%c0_247, %c51] : memref<28x150xf32, #tpu.memory_space<vmem>>, vector<28x3xf32>
      tpu.vector_store %arg14[%c0_247, %c51], %352 {strides = array<i32>} : memref<28x150xf32, #tpu.memory_space<vmem>>, vector<28x3xf32>,
      %354 = vector.extract_strided_slice %303 {offsets = [3, 0], sizes = [28, 3], strides = [1, 1]} : vector<32x3xf32> to vector<28x3xf32>
      %c0_248 = arith.constant 0 : index
      %c54 = arith.constant 54 : index
      %355 = vector.load %arg14[%c0_248, %c54] : memref<28x150xf32, #tpu.memory_space<vmem>>, vector<28x3xf32>
      tpu.vector_store %arg14[%c0_248, %c54], %354 {strides = array<i32>} : memref<28x150xf32, #tpu.memory_space<vmem>>, vector<28x3xf32>,
      %356 = vector.extract_strided_slice %303 {offsets = [4, 0], sizes = [28, 3], strides = [1, 1]} : vector<32x3xf32> to vector<28x3xf32>
      %c0_249 = arith.constant 0 : index
      %c57 = arith.constant 57 : index
      %357 = vector.load %arg14[%c0_249, %c57] : memref<28x150xf32, #tpu.memory_space<vmem>>, vector<28x3xf32>
      tpu.vector_store %arg14[%c0_249, %c57], %356 {strides = array<i32>} : memref<28x150xf32, #tpu.memory_space<vmem>>, vector<28x3xf32>,
      %358 = vector.extract_strided_slice %309 {offsets = [0, 0], sizes = [28, 3], strides = [1, 1]} : vector<32x3xf32> to vector<28x3xf32>
      %c0_250 = arith.constant 0 : index
      %c60 = arith.constant 60 : index
      %359 = vector.load %arg14[%c0_250, %c60] : memref<28x150xf32, #tpu.memory_space<vmem>>, vector<28x3xf32>
      tpu.vector_store %arg14[%c0_250, %c60], %358 {strides = array<i32>} : memref<28x150xf32, #tpu.memory_space<vmem>>, vector<28x3xf32>,
      %360 = vector.extract_strided_slice %309 {offsets = [1, 0], sizes = [28, 3], strides = [1, 1]} : vector<32x3xf32> to vector<28x3xf32>
      %c0_251 = arith.constant 0 : index
      %c63 = arith.constant 63 : index
      %361 = vector.load %arg14[%c0_251, %c63] : memref<28x150xf32, #tpu.memory_space<vmem>>, vector<28x3xf32>
      tpu.vector_store %arg14[%c0_251, %c63], %360 {strides = array<i32>} : memref<28x150xf32, #tpu.memory_space<vmem>>, vector<28x3xf32>,
      %362 = vector.extract_strided_slice %309 {offsets = [2, 0], sizes = [28, 3], strides = [1, 1]} : vector<32x3xf32> to vector<28x3xf32>
      %c0_252 = arith.constant 0 : index
      %c66 = arith.constant 66 : index
      %363 = vector.load %arg14[%c0_252, %c66] : memref<28x150xf32, #tpu.memory_space<vmem>>, vector<28x3xf32>
      tpu.vector_store %arg14[%c0_252, %c66], %362 {strides = array<i32>} : memref<28x150xf32, #tpu.memory_space<vmem>>, vector<28x3xf32>,
      %364 = vector.extract_strided_slice %309 {offsets = [3, 0], sizes = [28, 3], strides = [1, 1]} : vector<32x3xf32> to vector<28x3xf32>
      %c0_253 = arith.constant 0 : index
      %c69 = arith.constant 69 : index
      %365 = vector.load %arg14[%c0_253, %c69] : memref<28x150xf32, #tpu.memory_space<vmem>>, vector<28x3xf32>
      tpu.vector_store %arg14[%c0_253, %c69], %364 {strides = array<i32>} : memref<28x150xf32, #tpu.memory_space<vmem>>, vector<28x3xf32>,
      %366 = vector.extract_strided_slice %309 {offsets = [4, 0], sizes = [28, 3], strides = [1, 1]} : vector<32x3xf32> to vector<28x3xf32>
      %c0_254 = arith.constant 0 : index
      %c72 = arith.constant 72 : index
      %367 = vector.load %arg14[%c0_254, %c72] : memref<28x150xf32, #tpu.memory_space<vmem>>, vector<28x3xf32>
      tpu.vector_store %arg14[%c0_254, %c72], %366 {strides = array<i32>} : memref<28x150xf32, #tpu.memory_space<vmem>>, vector<28x3xf32>,
      %c0_255 = arith.constant 0 : index
      %c0_256 = arith.constant 0 : index
      %368 = vector.load %arg14[%c0_255, %c0_256] : memref<28x150xf32, #tpu.memory_space<vmem>>, vector<28x75xf32>
      %cst_257 = arith.constant dense<0.000000e+00> : vector<28x6xf32>
      %369 = tpu.matmul %368, %316, %cst_257 {dimension_numbers = #tpu.dot_dimension_numbers<[1], [0], [0], [1], [0, 0, 1, 1], [], []>} : vector<28x75xf32>, vector<75x6xf32>, vector<28x6xf32> -> vector<28x6xf32>
      %370 = vector.broadcast %317 : vector<1x6xf32> to vector<28x6xf32>
      %371 = arith.addf %369, %370 : vector<28x6xf32>
      %cst_258 = arith.constant 0.000000e+00 : f32
      %372 = vector.broadcast %cst_258 : f32 to vector<28x6xf32>
      %373 = arith.maximumf %371, %372 : vector<28x6xf32>
      %374 = vector.extract_strided_slice %291 {offsets = [0, 0], sizes = [28, 3], strides = [1, 1]} : vector<32x3xf32> to vector<28x3xf32>
      %c0_259 = arith.constant 0 : index
      %c0_260 = arith.constant 0 : index
      %375 = vector.load %arg14[%c0_259, %c0_260] : memref<28x150xf32, #tpu.memory_space<vmem>>, vector<28x3xf32>
      tpu.vector_store %arg14[%c0_259, %c0_260], %374 {strides = array<i32>} : memref<28x150xf32, #tpu.memory_space<vmem>>, vector<28x3xf32>,
      %376 = vector.extract_strided_slice %291 {offsets = [1, 0], sizes = [28, 3], strides = [1, 1]} : vector<32x3xf32> to vector<28x3xf32>
      %c0_261 = arith.constant 0 : index
      %c3_262 = arith.constant 3 : index
      %377 = vector.load %arg14[%c0_261, %c3_262] : memref<28x150xf32, #tpu.memory_space<vmem>>, vector<28x3xf32>
      tpu.vector_store %arg14[%c0_261, %c3_262], %376 {strides = array<i32>} : memref<28x150xf32, #tpu.memory_space<vmem>>, vector<28x3xf32>,
      %378 = vector.extract_strided_slice %291 {offsets = [2, 0], sizes = [28, 3], strides = [1, 1]} : vector<32x3xf32> to vector<28x3xf32>
      %c0_263 = arith.constant 0 : index
      %c6_264 = arith.constant 6 : index
      %379 = vector.load %arg14[%c0_263, %c6_264] : memref<28x150xf32, #tpu.memory_space<vmem>>, vector<28x3xf32>
      tpu.vector_store %arg14[%c0_263, %c6_264], %378 {strides = array<i32>} : memref<28x150xf32, #tpu.memory_space<vmem>>, vector<28x3xf32>,
      %380 = vector.extract_strided_slice %291 {offsets = [3, 0], sizes = [28, 3], strides = [1, 1]} : vector<32x3xf32> to vector<28x3xf32>
      %c0_265 = arith.constant 0 : index
      %c9_266 = arith.constant 9 : index
      %381 = vector.load %arg14[%c0_265, %c9_266] : memref<28x150xf32, #tpu.memory_space<vmem>>, vector<28x3xf32>
      tpu.vector_store %arg14[%c0_265, %c9_266], %380 {strides = array<i32>} : memref<28x150xf32, #tpu.memory_space<vmem>>, vector<28x3xf32>,
      %382 = vector.extract_strided_slice %291 {offsets = [4, 0], sizes = [28, 3], strides = [1, 1]} : vector<32x3xf32> to vector<28x3xf32>
      %c0_267 = arith.constant 0 : index
      %c12_268 = arith.constant 12 : index
      %383 = vector.load %arg14[%c0_267, %c12_268] : memref<28x150xf32, #tpu.memory_space<vmem>>, vector<28x3xf32>
      tpu.vector_store %arg14[%c0_267, %c12_268], %382 {strides = array<i32>} : memref<28x150xf32, #tpu.memory_space<vmem>>, vector<28x3xf32>,
      %384 = vector.extract_strided_slice %297 {offsets = [0, 0], sizes = [28, 3], strides = [1, 1]} : vector<32x3xf32> to vector<28x3xf32>
      %c0_269 = arith.constant 0 : index
      %c15_270 = arith.constant 15 : index
      %385 = vector.load %arg14[%c0_269, %c15_270] : memref<28x150xf32, #tpu.memory_space<vmem>>, vector<28x3xf32>
      tpu.vector_store %arg14[%c0_269, %c15_270], %384 {strides = array<i32>} : memref<28x150xf32, #tpu.memory_space<vmem>>, vector<28x3xf32>,
      %386 = vector.extract_strided_slice %297 {offsets = [1, 0], sizes = [28, 3], strides = [1, 1]} : vector<32x3xf32> to vector<28x3xf32>
      %c0_271 = arith.constant 0 : index
      %c18_272 = arith.constant 18 : index
      %387 = vector.load %arg14[%c0_271, %c18_272] : memref<28x150xf32, #tpu.memory_space<vmem>>, vector<28x3xf32>
      tpu.vector_store %arg14[%c0_271, %c18_272], %386 {strides = array<i32>} : memref<28x150xf32, #tpu.memory_space<vmem>>, vector<28x3xf32>,
      %388 = vector.extract_strided_slice %297 {offsets = [2, 0], sizes = [28, 3], strides = [1, 1]} : vector<32x3xf32> to vector<28x3xf32>
      %c0_273 = arith.constant 0 : index
      %c21_274 = arith.constant 21 : index
      %389 = vector.load %arg14[%c0_273, %c21_274] : memref<28x150xf32, #tpu.memory_space<vmem>>, vector<28x3xf32>
      tpu.vector_store %arg14[%c0_273, %c21_274], %388 {strides = array<i32>} : memref<28x150xf32, #tpu.memory_space<vmem>>, vector<28x3xf32>,
      %390 = vector.extract_strided_slice %297 {offsets = [3, 0], sizes = [28, 3], strides = [1, 1]} : vector<32x3xf32> to vector<28x3xf32>
      %c0_275 = arith.constant 0 : index
      %c24_276 = arith.constant 24 : index
      %391 = vector.load %arg14[%c0_275, %c24_276] : memref<28x150xf32, #tpu.memory_space<vmem>>, vector<28x3xf32>
      tpu.vector_store %arg14[%c0_275, %c24_276], %390 {strides = array<i32>} : memref<28x150xf32, #tpu.memory_space<vmem>>, vector<28x3xf32>,
      %392 = vector.extract_strided_slice %297 {offsets = [4, 0], sizes = [28, 3], strides = [1, 1]} : vector<32x3xf32> to vector<28x3xf32>
      %c0_277 = arith.constant 0 : index
      %c27_278 = arith.constant 27 : index
      %393 = vector.load %arg14[%c0_277, %c27_278] : memref<28x150xf32, #tpu.memory_space<vmem>>, vector<28x3xf32>
      tpu.vector_store %arg14[%c0_277, %c27_278], %392 {strides = array<i32>} : memref<28x150xf32, #tpu.memory_space<vmem>>, vector<28x3xf32>,
      %394 = vector.extract_strided_slice %303 {offsets = [0, 0], sizes = [28, 3], strides = [1, 1]} : vector<32x3xf32> to vector<28x3xf32>
      %c0_279 = arith.constant 0 : index
      %c30_280 = arith.constant 30 : index
      %395 = vector.load %arg14[%c0_279, %c30_280] : memref<28x150xf32, #tpu.memory_space<vmem>>, vector<28x3xf32>
      tpu.vector_store %arg14[%c0_279, %c30_280], %394 {strides = array<i32>} : memref<28x150xf32, #tpu.memory_space<vmem>>, vector<28x3xf32>,
      %396 = vector.extract_strided_slice %303 {offsets = [1, 0], sizes = [28, 3], strides = [1, 1]} : vector<32x3xf32> to vector<28x3xf32>
      %c0_281 = arith.constant 0 : index
      %c33_282 = arith.constant 33 : index
      %397 = vector.load %arg14[%c0_281, %c33_282] : memref<28x150xf32, #tpu.memory_space<vmem>>, vector<28x3xf32>
      tpu.vector_store %arg14[%c0_281, %c33_282], %396 {strides = array<i32>} : memref<28x150xf32, #tpu.memory_space<vmem>>, vector<28x3xf32>,
      %398 = vector.extract_strided_slice %303 {offsets = [2, 0], sizes = [28, 3], strides = [1, 1]} : vector<32x3xf32> to vector<28x3xf32>
      %c0_283 = arith.constant 0 : index
      %c36_284 = arith.constant 36 : index
      %399 = vector.load %arg14[%c0_283, %c36_284] : memref<28x150xf32, #tpu.memory_space<vmem>>, vector<28x3xf32>
      tpu.vector_store %arg14[%c0_283, %c36_284], %398 {strides = array<i32>} : memref<28x150xf32, #tpu.memory_space<vmem>>, vector<28x3xf32>,
      %400 = vector.extract_strided_slice %303 {offsets = [3, 0], sizes = [28, 3], strides = [1, 1]} : vector<32x3xf32> to vector<28x3xf32>
      %c0_285 = arith.constant 0 : index
      %c39_286 = arith.constant 39 : index
      %401 = vector.load %arg14[%c0_285, %c39_286] : memref<28x150xf32, #tpu.memory_space<vmem>>, vector<28x3xf32>
      tpu.vector_store %arg14[%c0_285, %c39_286], %400 {strides = array<i32>} : memref<28x150xf32, #tpu.memory_space<vmem>>, vector<28x3xf32>,
      %402 = vector.extract_strided_slice %303 {offsets = [4, 0], sizes = [28, 3], strides = [1, 1]} : vector<32x3xf32> to vector<28x3xf32>
      %c0_287 = arith.constant 0 : index
      %c42_288 = arith.constant 42 : index
      %403 = vector.load %arg14[%c0_287, %c42_288] : memref<28x150xf32, #tpu.memory_space<vmem>>, vector<28x3xf32>
      tpu.vector_store %arg14[%c0_287, %c42_288], %402 {strides = array<i32>} : memref<28x150xf32, #tpu.memory_space<vmem>>, vector<28x3xf32>,
      %404 = vector.extract_strided_slice %309 {offsets = [0, 0], sizes = [28, 3], strides = [1, 1]} : vector<32x3xf32> to vector<28x3xf32>
      %c0_289 = arith.constant 0 : index
      %c45_290 = arith.constant 45 : index
      %405 = vector.load %arg14[%c0_289, %c45_290] : memref<28x150xf32, #tpu.memory_space<vmem>>, vector<28x3xf32>
      tpu.vector_store %arg14[%c0_289, %c45_290], %404 {strides = array<i32>} : memref<28x150xf32, #tpu.memory_space<vmem>>, vector<28x3xf32>,
      %406 = vector.extract_strided_slice %309 {offsets = [1, 0], sizes = [28, 3], strides = [1, 1]} : vector<32x3xf32> to vector<28x3xf32>
      %c0_291 = arith.constant 0 : index
      %c48_292 = arith.constant 48 : index
      %407 = vector.load %arg14[%c0_291, %c48_292] : memref<28x150xf32, #tpu.memory_space<vmem>>, vector<28x3xf32>
      tpu.vector_store %arg14[%c0_291, %c48_292], %406 {strides = array<i32>} : memref<28x150xf32, #tpu.memory_space<vmem>>, vector<28x3xf32>,
      %408 = vector.extract_strided_slice %309 {offsets = [2, 0], sizes = [28, 3], strides = [1, 1]} : vector<32x3xf32> to vector<28x3xf32>
      %c0_293 = arith.constant 0 : index
      %c51_294 = arith.constant 51 : index
      %409 = vector.load %arg14[%c0_293, %c51_294] : memref<28x150xf32, #tpu.memory_space<vmem>>, vector<28x3xf32>
      tpu.vector_store %arg14[%c0_293, %c51_294], %408 {strides = array<i32>} : memref<28x150xf32, #tpu.memory_space<vmem>>, vector<28x3xf32>,
      %410 = vector.extract_strided_slice %309 {offsets = [3, 0], sizes = [28, 3], strides = [1, 1]} : vector<32x3xf32> to vector<28x3xf32>
      %c0_295 = arith.constant 0 : index
      %c54_296 = arith.constant 54 : index
      %411 = vector.load %arg14[%c0_295, %c54_296] : memref<28x150xf32, #tpu.memory_space<vmem>>, vector<28x3xf32>
      tpu.vector_store %arg14[%c0_295, %c54_296], %410 {strides = array<i32>} : memref<28x150xf32, #tpu.memory_space<vmem>>, vector<28x3xf32>,
      %412 = vector.extract_strided_slice %309 {offsets = [4, 0], sizes = [28, 3], strides = [1, 1]} : vector<32x3xf32> to vector<28x3xf32>
      %c0_297 = arith.constant 0 : index
      %c57_298 = arith.constant 57 : index
      %413 = vector.load %arg14[%c0_297, %c57_298] : memref<28x150xf32, #tpu.memory_space<vmem>>, vector<28x3xf32>
      tpu.vector_store %arg14[%c0_297, %c57_298], %412 {strides = array<i32>} : memref<28x150xf32, #tpu.memory_space<vmem>>, vector<28x3xf32>,
      %414 = vector.extract_strided_slice %315 {offsets = [0, 0], sizes = [28, 3], strides = [1, 1]} : vector<32x3xf32> to vector<28x3xf32>
      %c0_299 = arith.constant 0 : index
      %c60_300 = arith.constant 60 : index
      %415 = vector.load %arg14[%c0_299, %c60_300] : memref<28x150xf32, #tpu.memory_space<vmem>>, vector<28x3xf32>
      tpu.vector_store %arg14[%c0_299, %c60_300], %414 {strides = array<i32>} : memref<28x150xf32, #tpu.memory_space<vmem>>, vector<28x3xf32>,
      %416 = vector.extract_strided_slice %315 {offsets = [1, 0], sizes = [28, 3], strides = [1, 1]} : vector<32x3xf32> to vector<28x3xf32>
      %c0_301 = arith.constant 0 : index
      %c63_302 = arith.constant 63 : index
      %417 = vector.load %arg14[%c0_301, %c63_302] : memref<28x150xf32, #tpu.memory_space<vmem>>, vector<28x3xf32>
      tpu.vector_store %arg14[%c0_301, %c63_302], %416 {strides = array<i32>} : memref<28x150xf32, #tpu.memory_space<vmem>>, vector<28x3xf32>,
      %418 = vector.extract_strided_slice %315 {offsets = [2, 0], sizes = [28, 3], strides = [1, 1]} : vector<32x3xf32> to vector<28x3xf32>
      %c0_303 = arith.constant 0 : index
      %c66_304 = arith.constant 66 : index
      %419 = vector.load %arg14[%c0_303, %c66_304] : memref<28x150xf32, #tpu.memory_space<vmem>>, vector<28x3xf32>
      tpu.vector_store %arg14[%c0_303, %c66_304], %418 {strides = array<i32>} : memref<28x150xf32, #tpu.memory_space<vmem>>, vector<28x3xf32>,
      %420 = vector.extract_strided_slice %315 {offsets = [3, 0], sizes = [28, 3], strides = [1, 1]} : vector<32x3xf32> to vector<28x3xf32>
      %c0_305 = arith.constant 0 : index
      %c69_306 = arith.constant 69 : index
      %421 = vector.load %arg14[%c0_305, %c69_306] : memref<28x150xf32, #tpu.memory_space<vmem>>, vector<28x3xf32>
      tpu.vector_store %arg14[%c0_305, %c69_306], %420 {strides = array<i32>} : memref<28x150xf32, #tpu.memory_space<vmem>>, vector<28x3xf32>,
      %422 = vector.extract_strided_slice %315 {offsets = [4, 0], sizes = [28, 3], strides = [1, 1]} : vector<32x3xf32> to vector<28x3xf32>
      %c0_307 = arith.constant 0 : index
      %c72_308 = arith.constant 72 : index
      %423 = vector.load %arg14[%c0_307, %c72_308] : memref<28x150xf32, #tpu.memory_space<vmem>>, vector<28x3xf32>
      tpu.vector_store %arg14[%c0_307, %c72_308], %422 {strides = array<i32>} : memref<28x150xf32, #tpu.memory_space<vmem>>, vector<28x3xf32>,
      %c0_309 = arith.constant 0 : index
      %c0_310 = arith.constant 0 : index
      %424 = vector.load %arg14[%c0_309, %c0_310] : memref<28x150xf32, #tpu.memory_space<vmem>>, vector<28x75xf32>
      %cst_311 = arith.constant dense<0.000000e+00> : vector<28x6xf32>
      %425 = tpu.matmul %424, %316, %cst_311 {dimension_numbers = #tpu.dot_dimension_numbers<[1], [0], [0], [1], [0, 0, 1, 1], [], []>} : vector<28x75xf32>, vector<75x6xf32>, vector<28x6xf32> -> vector<28x6xf32>
      %426 = vector.broadcast %317 : vector<1x6xf32> to vector<28x6xf32>
      %427 = arith.addf %425, %426 : vector<28x6xf32>
      %cst_312 = arith.constant 0.000000e+00 : f32
      %428 = vector.broadcast %cst_312 : f32 to vector<28x6xf32>
      %429 = arith.maximumf %427, %428 : vector<28x6xf32>
      %430 = arith.maximumf %373, %429 : vector<28x6xf32>
      %cst_313 = arith.constant dense<0.000000e+00> : vector<14x6xf32>
      %431 = tpu.matmul %6, %430, %cst_313 {dimension_numbers = #tpu.dot_dimension_numbers<[1], [0], [0], [1], [0, 0, 1, 1], [], []>} : vector<14x28xf32>, vector<28x6xf32>, vector<14x6xf32> -> vector<14x6xf32>
      %cst_314 = arith.constant dense<0.000000e+00> : vector<14x6xf32>
      %432 = tpu.matmul %13, %430, %cst_314 {dimension_numbers = #tpu.dot_dimension_numbers<[1], [0], [0], [1], [0, 0, 1, 1], [], []>} : vector<14x28xf32>, vector<28x6xf32>, vector<14x6xf32> -> vector<14x6xf32>
      %433 = arith.maximumf %431, %432 : vector<14x6xf32>
      %c14_i32_315 = arith.constant 14 : i32
      %434 = arith.addi %c14_i32_315, %arg15 : i32
      %435 = arith.index_cast %434 : i32 to index
      %c0_316 = arith.constant 0 : index
      %c0_317 = arith.constant 0 : index
      %436 = vector.load %arg12[%435, %c0_316, %c0_317] : memref<28x14x6xf32, #tpu.memory_space<vmem>>, vector<1x14x6xf32>
      %437 = vector.shape_cast %436 : vector<1x14x6xf32> to vector<14x6xf32>
      %438 = vector.shape_cast %433 : vector<14x6xf32> to vector<1x14x6xf32>
      tpu.vector_store %arg12[%435, %c0_316, %c0_317], %438 {strides = array<i32>} : memref<28x14x6xf32, #tpu.memory_space<vmem>>, vector<1x14x6xf32>,
    }
    %c14_i32_9 = arith.constant 14 : i32
    %c0_i32_10 = arith.constant 0 : i32
    %c5_i32 = arith.constant 5 : i32
    %30 = arith.addi %c0_i32_10, %c5_i32 : i32
    %c1_i32_11 = arith.constant 1 : i32
    scf.for %arg15 = %c0_i32_10 to %30 step %c1_i32_11  : i32 {
      %c2_i32_194 = arith.constant 2 : i32
      %280 = arith.muli %c2_i32_194, %arg15 : i32
      %c0_i32_195 = arith.constant 0 : i32
      %281 = arith.addi %c0_i32_195, %280 : i32
      %c0_i32_196 = arith.constant 0 : i32
      %282 = arith.addi %281, %c0_i32_196 : i32
      %283 = arith.index_cast %282 : i32 to index
      %c0_197 = arith.constant 0 : index
      %c0_198 = arith.constant 0 : index
      %284 = vector.load %arg12[%283, %c0_197, %c0_198] : memref<28x14x6xf32, #tpu.memory_space<vmem>>, vector<1x14x6xf32>
      %285 = vector.shape_cast %284 : vector<1x14x6xf32> to vector<14x6xf32>
      %c2_i32_199 = arith.constant 2 : i32
      %286 = arith.muli %c2_i32_199, %arg15 : i32
      %c0_i32_200 = arith.constant 0 : i32
      %287 = arith.addi %c0_i32_200, %286 : i32
      %c1_i32_201 = arith.constant 1 : i32
      %288 = arith.addi %287, %c1_i32_201 : i32
      %289 = arith.index_cast %288 : i32 to index
      %c0_202 = arith.constant 0 : index
      %c0_203 = arith.constant 0 : index
      %290 = vector.load %arg12[%289, %c0_202, %c0_203] : memref<28x14x6xf32, #tpu.memory_space<vmem>>, vector<1x14x6xf32>
      %291 = vector.shape_cast %290 : vector<1x14x6xf32> to vector<14x6xf32>
      %c2_i32_204 = arith.constant 2 : i32
      %292 = arith.muli %c2_i32_204, %arg15 : i32
      %c0_i32_205 = arith.constant 0 : i32
      %293 = arith.addi %c0_i32_205, %292 : i32
      %c2_i32_206 = arith.constant 2 : i32
      %294 = arith.addi %293, %c2_i32_206 : i32
      %295 = arith.index_cast %294 : i32 to index
      %c0_207 = arith.constant 0 : index
      %c0_208 = arith.constant 0 : index
      %296 = vector.load %arg12[%295, %c0_207, %c0_208] : memref<28x14x6xf32, #tpu.memory_space<vmem>>, vector<1x14x6xf32>
      %297 = vector.shape_cast %296 : vector<1x14x6xf32> to vector<14x6xf32>
      %c2_i32_209 = arith.constant 2 : i32
      %298 = arith.muli %c2_i32_209, %arg15 : i32
      %c0_i32_210 = arith.constant 0 : i32
      %299 = arith.addi %c0_i32_210, %298 : i32
      %c3_i32 = arith.constant 3 : i32
      %300 = arith.addi %299, %c3_i32 : i32
      %301 = arith.index_cast %300 : i32 to index
      %c0_211 = arith.constant 0 : index
      %c0_212 = arith.constant 0 : index
      %302 = vector.load %arg12[%301, %c0_211, %c0_212] : memref<28x14x6xf32, #tpu.memory_space<vmem>>, vector<1x14x6xf32>
      %303 = vector.shape_cast %302 : vector<1x14x6xf32> to vector<14x6xf32>
      %c2_i32_213 = arith.constant 2 : i32
      %304 = arith.muli %c2_i32_213, %arg15 : i32
      %c0_i32_214 = arith.constant 0 : i32
      %305 = arith.addi %c0_i32_214, %304 : i32
      %c4_i32 = arith.constant 4 : i32
      %306 = arith.addi %305, %c4_i32 : i32
      %307 = arith.index_cast %306 : i32 to index
      %c0_215 = arith.constant 0 : index
      %c0_216 = arith.constant 0 : index
      %308 = vector.load %arg12[%307, %c0_215, %c0_216] : memref<28x14x6xf32, #tpu.memory_space<vmem>>, vector<1x14x6xf32>
      %309 = vector.shape_cast %308 : vector<1x14x6xf32> to vector<14x6xf32>
      %c2_i32_217 = arith.constant 2 : i32
      %310 = arith.muli %c2_i32_217, %arg15 : i32
      %c0_i32_218 = arith.constant 0 : i32
      %311 = arith.addi %c0_i32_218, %310 : i32
      %c5_i32_219 = arith.constant 5 : i32
      %312 = arith.addi %311, %c5_i32_219 : i32
      %313 = arith.index_cast %312 : i32 to index
      %c0_220 = arith.constant 0 : index
      %c0_221 = arith.constant 0 : index
      %314 = vector.load %arg12[%313, %c0_220, %c0_221] : memref<28x14x6xf32, #tpu.memory_space<vmem>>, vector<1x14x6xf32>
      %315 = vector.shape_cast %314 : vector<1x14x6xf32> to vector<14x6xf32>
      %c0_222 = arith.constant 0 : index
      %c0_223 = arith.constant 0 : index
      %316 = vector.load %arg3[%c0_222, %c0_223] : memref<150x16xf32, #tpu.memory_space<vmem>>, vector<150x16xf32>
      %c0_224 = arith.constant 0 : index
      %c0_225 = arith.constant 0 : index
      %317 = vector.load %arg4[%c0_224, %c0_225] : memref<1x16xf32, #tpu.memory_space<vmem>>, vector<1x16xf32>
      %318 = vector.extract_strided_slice %285 {offsets = [0, 0], sizes = [10, 6], strides = [1, 1]} : vector<14x6xf32> to vector<10x6xf32>
      %c0_226 = arith.constant 0 : index
      %c0_227 = arith.constant 0 : index
      %319 = vector.load %arg14[%c0_226, %c0_227] : memref<28x150xf32, #tpu.memory_space<vmem>>, vector<10x6xf32>
      tpu.vector_store %arg14[%c0_226, %c0_227], %318 {strides = array<i32>} : memref<28x150xf32, #tpu.memory_space<vmem>>, vector<10x6xf32>,
      %320 = vector.extract_strided_slice %285 {offsets = [1, 0], sizes = [10, 6], strides = [1, 1]} : vector<14x6xf32> to vector<10x6xf32>
      %c0_228 = arith.constant 0 : index
      %c6_229 = arith.constant 6 : index
      %321 = vector.load %arg14[%c0_228, %c6_229] : memref<28x150xf32, #tpu.memory_space<vmem>>, vector<10x6xf32>
      tpu.vector_store %arg14[%c0_228, %c6_229], %320 {strides = array<i32>} : memref<28x150xf32, #tpu.memory_space<vmem>>, vector<10x6xf32>,
      %322 = vector.extract_strided_slice %285 {offsets = [2, 0], sizes = [10, 6], strides = [1, 1]} : vector<14x6xf32> to vector<10x6xf32>
      %c0_230 = arith.constant 0 : index
      %c12 = arith.constant 12 : index
      %323 = vector.load %arg14[%c0_230, %c12] : memref<28x150xf32, #tpu.memory_space<vmem>>, vector<10x6xf32>
      tpu.vector_store %arg14[%c0_230, %c12], %322 {strides = array<i32>} : memref<28x150xf32, #tpu.memory_space<vmem>>, vector<10x6xf32>,
      %324 = vector.extract_strided_slice %285 {offsets = [3, 0], sizes = [10, 6], strides = [1, 1]} : vector<14x6xf32> to vector<10x6xf32>
      %c0_231 = arith.constant 0 : index
      %c18 = arith.constant 18 : index
      %325 = vector.load %arg14[%c0_231, %c18] : memref<28x150xf32, #tpu.memory_space<vmem>>, vector<10x6xf32>
      tpu.vector_store %arg14[%c0_231, %c18], %324 {strides = array<i32>} : memref<28x150xf32, #tpu.memory_space<vmem>>, vector<10x6xf32>,
      %326 = vector.extract_strided_slice %285 {offsets = [4, 0], sizes = [10, 6], strides = [1, 1]} : vector<14x6xf32> to vector<10x6xf32>
      %c0_232 = arith.constant 0 : index
      %c24 = arith.constant 24 : index
      %327 = vector.load %arg14[%c0_232, %c24] : memref<28x150xf32, #tpu.memory_space<vmem>>, vector<10x6xf32>
      tpu.vector_store %arg14[%c0_232, %c24], %326 {strides = array<i32>} : memref<28x150xf32, #tpu.memory_space<vmem>>, vector<10x6xf32>,
      %328 = vector.extract_strided_slice %291 {offsets = [0, 0], sizes = [10, 6], strides = [1, 1]} : vector<14x6xf32> to vector<10x6xf32>
      %c0_233 = arith.constant 0 : index
      %c30 = arith.constant 30 : index
      %329 = vector.load %arg14[%c0_233, %c30] : memref<28x150xf32, #tpu.memory_space<vmem>>, vector<10x6xf32>
      tpu.vector_store %arg14[%c0_233, %c30], %328 {strides = array<i32>} : memref<28x150xf32, #tpu.memory_space<vmem>>, vector<10x6xf32>,
      %330 = vector.extract_strided_slice %291 {offsets = [1, 0], sizes = [10, 6], strides = [1, 1]} : vector<14x6xf32> to vector<10x6xf32>
      %c0_234 = arith.constant 0 : index
      %c36 = arith.constant 36 : index
      %331 = vector.load %arg14[%c0_234, %c36] : memref<28x150xf32, #tpu.memory_space<vmem>>, vector<10x6xf32>
      tpu.vector_store %arg14[%c0_234, %c36], %330 {strides = array<i32>} : memref<28x150xf32, #tpu.memory_space<vmem>>, vector<10x6xf32>,
      %332 = vector.extract_strided_slice %291 {offsets = [2, 0], sizes = [10, 6], strides = [1, 1]} : vector<14x6xf32> to vector<10x6xf32>
      %c0_235 = arith.constant 0 : index
      %c42 = arith.constant 42 : index
      %333 = vector.load %arg14[%c0_235, %c42] : memref<28x150xf32, #tpu.memory_space<vmem>>, vector<10x6xf32>
      tpu.vector_store %arg14[%c0_235, %c42], %332 {strides = array<i32>} : memref<28x150xf32, #tpu.memory_space<vmem>>, vector<10x6xf32>,
      %334 = vector.extract_strided_slice %291 {offsets = [3, 0], sizes = [10, 6], strides = [1, 1]} : vector<14x6xf32> to vector<10x6xf32>
      %c0_236 = arith.constant 0 : index
      %c48_237 = arith.constant 48 : index
      %335 = vector.load %arg14[%c0_236, %c48_237] : memref<28x150xf32, #tpu.memory_space<vmem>>, vector<10x6xf32>
      tpu.vector_store %arg14[%c0_236, %c48_237], %334 {strides = array<i32>} : memref<28x150xf32, #tpu.memory_space<vmem>>, vector<10x6xf32>,
      %336 = vector.extract_strided_slice %291 {offsets = [4, 0], sizes = [10, 6], strides = [1, 1]} : vector<14x6xf32> to vector<10x6xf32>
      %c0_238 = arith.constant 0 : index
      %c54 = arith.constant 54 : index
      %337 = vector.load %arg14[%c0_238, %c54] : memref<28x150xf32, #tpu.memory_space<vmem>>, vector<10x6xf32>
      tpu.vector_store %arg14[%c0_238, %c54], %336 {strides = array<i32>} : memref<28x150xf32, #tpu.memory_space<vmem>>, vector<10x6xf32>,
      %338 = vector.extract_strided_slice %297 {offsets = [0, 0], sizes = [10, 6], strides = [1, 1]} : vector<14x6xf32> to vector<10x6xf32>
      %c0_239 = arith.constant 0 : index
      %c60 = arith.constant 60 : index
      %339 = vector.load %arg14[%c0_239, %c60] : memref<28x150xf32, #tpu.memory_space<vmem>>, vector<10x6xf32>
      tpu.vector_store %arg14[%c0_239, %c60], %338 {strides = array<i32>} : memref<28x150xf32, #tpu.memory_space<vmem>>, vector<10x6xf32>,
      %340 = vector.extract_strided_slice %297 {offsets = [1, 0], sizes = [10, 6], strides = [1, 1]} : vector<14x6xf32> to vector<10x6xf32>
      %c0_240 = arith.constant 0 : index
      %c66 = arith.constant 66 : index
      %341 = vector.load %arg14[%c0_240, %c66] : memref<28x150xf32, #tpu.memory_space<vmem>>, vector<10x6xf32>
      tpu.vector_store %arg14[%c0_240, %c66], %340 {strides = array<i32>} : memref<28x150xf32, #tpu.memory_space<vmem>>, vector<10x6xf32>,
      %342 = vector.extract_strided_slice %297 {offsets = [2, 0], sizes = [10, 6], strides = [1, 1]} : vector<14x6xf32> to vector<10x6xf32>
      %c0_241 = arith.constant 0 : index
      %c72 = arith.constant 72 : index
      %343 = vector.load %arg14[%c0_241, %c72] : memref<28x150xf32, #tpu.memory_space<vmem>>, vector<10x6xf32>
      tpu.vector_store %arg14[%c0_241, %c72], %342 {strides = array<i32>} : memref<28x150xf32, #tpu.memory_space<vmem>>, vector<10x6xf32>,
      %344 = vector.extract_strided_slice %297 {offsets = [3, 0], sizes = [10, 6], strides = [1, 1]} : vector<14x6xf32> to vector<10x6xf32>
      %c0_242 = arith.constant 0 : index
      %c78 = arith.constant 78 : index
      %345 = vector.load %arg14[%c0_242, %c78] : memref<28x150xf32, #tpu.memory_space<vmem>>, vector<10x6xf32>
      tpu.vector_store %arg14[%c0_242, %c78], %344 {strides = array<i32>} : memref<28x150xf32, #tpu.memory_space<vmem>>, vector<10x6xf32>,
      %346 = vector.extract_strided_slice %297 {offsets = [4, 0], sizes = [10, 6], strides = [1, 1]} : vector<14x6xf32> to vector<10x6xf32>
      %c0_243 = arith.constant 0 : index
      %c84 = arith.constant 84 : index
      %347 = vector.load %arg14[%c0_243, %c84] : memref<28x150xf32, #tpu.memory_space<vmem>>, vector<10x6xf32>
      tpu.vector_store %arg14[%c0_243, %c84], %346 {strides = array<i32>} : memref<28x150xf32, #tpu.memory_space<vmem>>, vector<10x6xf32>,
      %348 = vector.extract_strided_slice %303 {offsets = [0, 0], sizes = [10, 6], strides = [1, 1]} : vector<14x6xf32> to vector<10x6xf32>
      %c0_244 = arith.constant 0 : index
      %c90 = arith.constant 90 : index
      %349 = vector.load %arg14[%c0_244, %c90] : memref<28x150xf32, #tpu.memory_space<vmem>>, vector<10x6xf32>
      tpu.vector_store %arg14[%c0_244, %c90], %348 {strides = array<i32>} : memref<28x150xf32, #tpu.memory_space<vmem>>, vector<10x6xf32>,
      %350 = vector.extract_strided_slice %303 {offsets = [1, 0], sizes = [10, 6], strides = [1, 1]} : vector<14x6xf32> to vector<10x6xf32>
      %c0_245 = arith.constant 0 : index
      %c96_246 = arith.constant 96 : index
      %351 = vector.load %arg14[%c0_245, %c96_246] : memref<28x150xf32, #tpu.memory_space<vmem>>, vector<10x6xf32>
      tpu.vector_store %arg14[%c0_245, %c96_246], %350 {strides = array<i32>} : memref<28x150xf32, #tpu.memory_space<vmem>>, vector<10x6xf32>,
      %352 = vector.extract_strided_slice %303 {offsets = [2, 0], sizes = [10, 6], strides = [1, 1]} : vector<14x6xf32> to vector<10x6xf32>
      %c0_247 = arith.constant 0 : index
      %c102 = arith.constant 102 : index
      %353 = vector.load %arg14[%c0_247, %c102] : memref<28x150xf32, #tpu.memory_space<vmem>>, vector<10x6xf32>
      tpu.vector_store %arg14[%c0_247, %c102], %352 {strides = array<i32>} : memref<28x150xf32, #tpu.memory_space<vmem>>, vector<10x6xf32>,
      %354 = vector.extract_strided_slice %303 {offsets = [3, 0], sizes = [10, 6], strides = [1, 1]} : vector<14x6xf32> to vector<10x6xf32>
      %c0_248 = arith.constant 0 : index
      %c108 = arith.constant 108 : index
      %355 = vector.load %arg14[%c0_248, %c108] : memref<28x150xf32, #tpu.memory_space<vmem>>, vector<10x6xf32>
      tpu.vector_store %arg14[%c0_248, %c108], %354 {strides = array<i32>} : memref<28x150xf32, #tpu.memory_space<vmem>>, vector<10x6xf32>,
      %356 = vector.extract_strided_slice %303 {offsets = [4, 0], sizes = [10, 6], strides = [1, 1]} : vector<14x6xf32> to vector<10x6xf32>
      %c0_249 = arith.constant 0 : index
      %c114 = arith.constant 114 : index
      %357 = vector.load %arg14[%c0_249, %c114] : memref<28x150xf32, #tpu.memory_space<vmem>>, vector<10x6xf32>
      tpu.vector_store %arg14[%c0_249, %c114], %356 {strides = array<i32>} : memref<28x150xf32, #tpu.memory_space<vmem>>, vector<10x6xf32>,
      %358 = vector.extract_strided_slice %309 {offsets = [0, 0], sizes = [10, 6], strides = [1, 1]} : vector<14x6xf32> to vector<10x6xf32>
      %c0_250 = arith.constant 0 : index
      %c120 = arith.constant 120 : index
      %359 = vector.load %arg14[%c0_250, %c120] : memref<28x150xf32, #tpu.memory_space<vmem>>, vector<10x6xf32>
      tpu.vector_store %arg14[%c0_250, %c120], %358 {strides = array<i32>} : memref<28x150xf32, #tpu.memory_space<vmem>>, vector<10x6xf32>,
      %360 = vector.extract_strided_slice %309 {offsets = [1, 0], sizes = [10, 6], strides = [1, 1]} : vector<14x6xf32> to vector<10x6xf32>
      %c0_251 = arith.constant 0 : index
      %c126 = arith.constant 126 : index
      %361 = vector.load %arg14[%c0_251, %c126] : memref<28x150xf32, #tpu.memory_space<vmem>>, vector<10x6xf32>
      tpu.vector_store %arg14[%c0_251, %c126], %360 {strides = array<i32>} : memref<28x150xf32, #tpu.memory_space<vmem>>, vector<10x6xf32>,
      %362 = vector.extract_strided_slice %309 {offsets = [2, 0], sizes = [10, 6], strides = [1, 1]} : vector<14x6xf32> to vector<10x6xf32>
      %c0_252 = arith.constant 0 : index
      %c132 = arith.constant 132 : index
      %363 = vector.load %arg14[%c0_252, %c132] : memref<28x150xf32, #tpu.memory_space<vmem>>, vector<10x6xf32>
      tpu.vector_store %arg14[%c0_252, %c132], %362 {strides = array<i32>} : memref<28x150xf32, #tpu.memory_space<vmem>>, vector<10x6xf32>,
      %364 = vector.extract_strided_slice %309 {offsets = [3, 0], sizes = [10, 6], strides = [1, 1]} : vector<14x6xf32> to vector<10x6xf32>
      %c0_253 = arith.constant 0 : index
      %c138 = arith.constant 138 : index
      %365 = vector.load %arg14[%c0_253, %c138] : memref<28x150xf32, #tpu.memory_space<vmem>>, vector<10x6xf32>
      tpu.vector_store %arg14[%c0_253, %c138], %364 {strides = array<i32>} : memref<28x150xf32, #tpu.memory_space<vmem>>, vector<10x6xf32>,
      %366 = vector.extract_strided_slice %309 {offsets = [4, 0], sizes = [10, 6], strides = [1, 1]} : vector<14x6xf32> to vector<10x6xf32>
      %c0_254 = arith.constant 0 : index
      %c144_255 = arith.constant 144 : index
      %367 = vector.load %arg14[%c0_254, %c144_255] : memref<28x150xf32, #tpu.memory_space<vmem>>, vector<10x6xf32>
      tpu.vector_store %arg14[%c0_254, %c144_255], %366 {strides = array<i32>} : memref<28x150xf32, #tpu.memory_space<vmem>>, vector<10x6xf32>,
      %c0_256 = arith.constant 0 : index
      %c0_257 = arith.constant 0 : index
      %368 = vector.load %arg14[%c0_256, %c0_257] : memref<28x150xf32, #tpu.memory_space<vmem>>, vector<10x150xf32>
      %cst_258 = arith.constant dense<0.000000e+00> : vector<10x16xf32>
      %369 = tpu.matmul %368, %316, %cst_258 {dimension_numbers = #tpu.dot_dimension_numbers<[1], [0], [0], [1], [0, 0, 1, 1], [], []>} : vector<10x150xf32>, vector<150x16xf32>, vector<10x16xf32> -> vector<10x16xf32>
      %370 = vector.broadcast %317 : vector<1x16xf32> to vector<10x16xf32>
      %371 = arith.addf %369, %370 : vector<10x16xf32>
      %cst_259 = arith.constant 0.000000e+00 : f32
      %372 = vector.broadcast %cst_259 : f32 to vector<10x16xf32>
      %373 = arith.maximumf %371, %372 : vector<10x16xf32>
      %374 = vector.extract_strided_slice %291 {offsets = [0, 0], sizes = [10, 6], strides = [1, 1]} : vector<14x6xf32> to vector<10x6xf32>
      %c0_260 = arith.constant 0 : index
      %c0_261 = arith.constant 0 : index
      %375 = vector.load %arg14[%c0_260, %c0_261] : memref<28x150xf32, #tpu.memory_space<vmem>>, vector<10x6xf32>
      tpu.vector_store %arg14[%c0_260, %c0_261], %374 {strides = array<i32>} : memref<28x150xf32, #tpu.memory_space<vmem>>, vector<10x6xf32>,
      %376 = vector.extract_strided_slice %291 {offsets = [1, 0], sizes = [10, 6], strides = [1, 1]} : vector<14x6xf32> to vector<10x6xf32>
      %c0_262 = arith.constant 0 : index
      %c6_263 = arith.constant 6 : index
      %377 = vector.load %arg14[%c0_262, %c6_263] : memref<28x150xf32, #tpu.memory_space<vmem>>, vector<10x6xf32>
      tpu.vector_store %arg14[%c0_262, %c6_263], %376 {strides = array<i32>} : memref<28x150xf32, #tpu.memory_space<vmem>>, vector<10x6xf32>,
      %378 = vector.extract_strided_slice %291 {offsets = [2, 0], sizes = [10, 6], strides = [1, 1]} : vector<14x6xf32> to vector<10x6xf32>
      %c0_264 = arith.constant 0 : index
      %c12_265 = arith.constant 12 : index
      %379 = vector.load %arg14[%c0_264, %c12_265] : memref<28x150xf32, #tpu.memory_space<vmem>>, vector<10x6xf32>
      tpu.vector_store %arg14[%c0_264, %c12_265], %378 {strides = array<i32>} : memref<28x150xf32, #tpu.memory_space<vmem>>, vector<10x6xf32>,
      %380 = vector.extract_strided_slice %291 {offsets = [3, 0], sizes = [10, 6], strides = [1, 1]} : vector<14x6xf32> to vector<10x6xf32>
      %c0_266 = arith.constant 0 : index
      %c18_267 = arith.constant 18 : index
      %381 = vector.load %arg14[%c0_266, %c18_267] : memref<28x150xf32, #tpu.memory_space<vmem>>, vector<10x6xf32>
      tpu.vector_store %arg14[%c0_266, %c18_267], %380 {strides = array<i32>} : memref<28x150xf32, #tpu.memory_space<vmem>>, vector<10x6xf32>,
      %382 = vector.extract_strided_slice %291 {offsets = [4, 0], sizes = [10, 6], strides = [1, 1]} : vector<14x6xf32> to vector<10x6xf32>
      %c0_268 = arith.constant 0 : index
      %c24_269 = arith.constant 24 : index
      %383 = vector.load %arg14[%c0_268, %c24_269] : memref<28x150xf32, #tpu.memory_space<vmem>>, vector<10x6xf32>
      tpu.vector_store %arg14[%c0_268, %c24_269], %382 {strides = array<i32>} : memref<28x150xf32, #tpu.memory_space<vmem>>, vector<10x6xf32>,
      %384 = vector.extract_strided_slice %297 {offsets = [0, 0], sizes = [10, 6], strides = [1, 1]} : vector<14x6xf32> to vector<10x6xf32>
      %c0_270 = arith.constant 0 : index
      %c30_271 = arith.constant 30 : index
      %385 = vector.load %arg14[%c0_270, %c30_271] : memref<28x150xf32, #tpu.memory_space<vmem>>, vector<10x6xf32>
      tpu.vector_store %arg14[%c0_270, %c30_271], %384 {strides = array<i32>} : memref<28x150xf32, #tpu.memory_space<vmem>>, vector<10x6xf32>,
      %386 = vector.extract_strided_slice %297 {offsets = [1, 0], sizes = [10, 6], strides = [1, 1]} : vector<14x6xf32> to vector<10x6xf32>
      %c0_272 = arith.constant 0 : index
      %c36_273 = arith.constant 36 : index
      %387 = vector.load %arg14[%c0_272, %c36_273] : memref<28x150xf32, #tpu.memory_space<vmem>>, vector<10x6xf32>
      tpu.vector_store %arg14[%c0_272, %c36_273], %386 {strides = array<i32>} : memref<28x150xf32, #tpu.memory_space<vmem>>, vector<10x6xf32>,
      %388 = vector.extract_strided_slice %297 {offsets = [2, 0], sizes = [10, 6], strides = [1, 1]} : vector<14x6xf32> to vector<10x6xf32>
      %c0_274 = arith.constant 0 : index
      %c42_275 = arith.constant 42 : index
      %389 = vector.load %arg14[%c0_274, %c42_275] : memref<28x150xf32, #tpu.memory_space<vmem>>, vector<10x6xf32>
      tpu.vector_store %arg14[%c0_274, %c42_275], %388 {strides = array<i32>} : memref<28x150xf32, #tpu.memory_space<vmem>>, vector<10x6xf32>,
      %390 = vector.extract_strided_slice %297 {offsets = [3, 0], sizes = [10, 6], strides = [1, 1]} : vector<14x6xf32> to vector<10x6xf32>
      %c0_276 = arith.constant 0 : index
      %c48_277 = arith.constant 48 : index
      %391 = vector.load %arg14[%c0_276, %c48_277] : memref<28x150xf32, #tpu.memory_space<vmem>>, vector<10x6xf32>
      tpu.vector_store %arg14[%c0_276, %c48_277], %390 {strides = array<i32>} : memref<28x150xf32, #tpu.memory_space<vmem>>, vector<10x6xf32>,
      %392 = vector.extract_strided_slice %297 {offsets = [4, 0], sizes = [10, 6], strides = [1, 1]} : vector<14x6xf32> to vector<10x6xf32>
      %c0_278 = arith.constant 0 : index
      %c54_279 = arith.constant 54 : index
      %393 = vector.load %arg14[%c0_278, %c54_279] : memref<28x150xf32, #tpu.memory_space<vmem>>, vector<10x6xf32>
      tpu.vector_store %arg14[%c0_278, %c54_279], %392 {strides = array<i32>} : memref<28x150xf32, #tpu.memory_space<vmem>>, vector<10x6xf32>,
      %394 = vector.extract_strided_slice %303 {offsets = [0, 0], sizes = [10, 6], strides = [1, 1]} : vector<14x6xf32> to vector<10x6xf32>
      %c0_280 = arith.constant 0 : index
      %c60_281 = arith.constant 60 : index
      %395 = vector.load %arg14[%c0_280, %c60_281] : memref<28x150xf32, #tpu.memory_space<vmem>>, vector<10x6xf32>
      tpu.vector_store %arg14[%c0_280, %c60_281], %394 {strides = array<i32>} : memref<28x150xf32, #tpu.memory_space<vmem>>, vector<10x6xf32>,
      %396 = vector.extract_strided_slice %303 {offsets = [1, 0], sizes = [10, 6], strides = [1, 1]} : vector<14x6xf32> to vector<10x6xf32>
      %c0_282 = arith.constant 0 : index
      %c66_283 = arith.constant 66 : index
      %397 = vector.load %arg14[%c0_282, %c66_283] : memref<28x150xf32, #tpu.memory_space<vmem>>, vector<10x6xf32>
      tpu.vector_store %arg14[%c0_282, %c66_283], %396 {strides = array<i32>} : memref<28x150xf32, #tpu.memory_space<vmem>>, vector<10x6xf32>,
      %398 = vector.extract_strided_slice %303 {offsets = [2, 0], sizes = [10, 6], strides = [1, 1]} : vector<14x6xf32> to vector<10x6xf32>
      %c0_284 = arith.constant 0 : index
      %c72_285 = arith.constant 72 : index
      %399 = vector.load %arg14[%c0_284, %c72_285] : memref<28x150xf32, #tpu.memory_space<vmem>>, vector<10x6xf32>
      tpu.vector_store %arg14[%c0_284, %c72_285], %398 {strides = array<i32>} : memref<28x150xf32, #tpu.memory_space<vmem>>, vector<10x6xf32>,
      %400 = vector.extract_strided_slice %303 {offsets = [3, 0], sizes = [10, 6], strides = [1, 1]} : vector<14x6xf32> to vector<10x6xf32>
      %c0_286 = arith.constant 0 : index
      %c78_287 = arith.constant 78 : index
      %401 = vector.load %arg14[%c0_286, %c78_287] : memref<28x150xf32, #tpu.memory_space<vmem>>, vector<10x6xf32>
      tpu.vector_store %arg14[%c0_286, %c78_287], %400 {strides = array<i32>} : memref<28x150xf32, #tpu.memory_space<vmem>>, vector<10x6xf32>,
      %402 = vector.extract_strided_slice %303 {offsets = [4, 0], sizes = [10, 6], strides = [1, 1]} : vector<14x6xf32> to vector<10x6xf32>
      %c0_288 = arith.constant 0 : index
      %c84_289 = arith.constant 84 : index
      %403 = vector.load %arg14[%c0_288, %c84_289] : memref<28x150xf32, #tpu.memory_space<vmem>>, vector<10x6xf32>
      tpu.vector_store %arg14[%c0_288, %c84_289], %402 {strides = array<i32>} : memref<28x150xf32, #tpu.memory_space<vmem>>, vector<10x6xf32>,
      %404 = vector.extract_strided_slice %309 {offsets = [0, 0], sizes = [10, 6], strides = [1, 1]} : vector<14x6xf32> to vector<10x6xf32>
      %c0_290 = arith.constant 0 : index
      %c90_291 = arith.constant 90 : index
      %405 = vector.load %arg14[%c0_290, %c90_291] : memref<28x150xf32, #tpu.memory_space<vmem>>, vector<10x6xf32>
      tpu.vector_store %arg14[%c0_290, %c90_291], %404 {strides = array<i32>} : memref<28x150xf32, #tpu.memory_space<vmem>>, vector<10x6xf32>,
      %406 = vector.extract_strided_slice %309 {offsets = [1, 0], sizes = [10, 6], strides = [1, 1]} : vector<14x6xf32> to vector<10x6xf32>
      %c0_292 = arith.constant 0 : index
      %c96_293 = arith.constant 96 : index
      %407 = vector.load %arg14[%c0_292, %c96_293] : memref<28x150xf32, #tpu.memory_space<vmem>>, vector<10x6xf32>
      tpu.vector_store %arg14[%c0_292, %c96_293], %406 {strides = array<i32>} : memref<28x150xf32, #tpu.memory_space<vmem>>, vector<10x6xf32>,
      %408 = vector.extract_strided_slice %309 {offsets = [2, 0], sizes = [10, 6], strides = [1, 1]} : vector<14x6xf32> to vector<10x6xf32>
      %c0_294 = arith.constant 0 : index
      %c102_295 = arith.constant 102 : index
      %409 = vector.load %arg14[%c0_294, %c102_295] : memref<28x150xf32, #tpu.memory_space<vmem>>, vector<10x6xf32>
      tpu.vector_store %arg14[%c0_294, %c102_295], %408 {strides = array<i32>} : memref<28x150xf32, #tpu.memory_space<vmem>>, vector<10x6xf32>,
      %410 = vector.extract_strided_slice %309 {offsets = [3, 0], sizes = [10, 6], strides = [1, 1]} : vector<14x6xf32> to vector<10x6xf32>
      %c0_296 = arith.constant 0 : index
      %c108_297 = arith.constant 108 : index
      %411 = vector.load %arg14[%c0_296, %c108_297] : memref<28x150xf32, #tpu.memory_space<vmem>>, vector<10x6xf32>
      tpu.vector_store %arg14[%c0_296, %c108_297], %410 {strides = array<i32>} : memref<28x150xf32, #tpu.memory_space<vmem>>, vector<10x6xf32>,
      %412 = vector.extract_strided_slice %309 {offsets = [4, 0], sizes = [10, 6], strides = [1, 1]} : vector<14x6xf32> to vector<10x6xf32>
      %c0_298 = arith.constant 0 : index
      %c114_299 = arith.constant 114 : index
      %413 = vector.load %arg14[%c0_298, %c114_299] : memref<28x150xf32, #tpu.memory_space<vmem>>, vector<10x6xf32>
      tpu.vector_store %arg14[%c0_298, %c114_299], %412 {strides = array<i32>} : memref<28x150xf32, #tpu.memory_space<vmem>>, vector<10x6xf32>,
      %414 = vector.extract_strided_slice %315 {offsets = [0, 0], sizes = [10, 6], strides = [1, 1]} : vector<14x6xf32> to vector<10x6xf32>
      %c0_300 = arith.constant 0 : index
      %c120_301 = arith.constant 120 : index
      %415 = vector.load %arg14[%c0_300, %c120_301] : memref<28x150xf32, #tpu.memory_space<vmem>>, vector<10x6xf32>
      tpu.vector_store %arg14[%c0_300, %c120_301], %414 {strides = array<i32>} : memref<28x150xf32, #tpu.memory_space<vmem>>, vector<10x6xf32>,
      %416 = vector.extract_strided_slice %315 {offsets = [1, 0], sizes = [10, 6], strides = [1, 1]} : vector<14x6xf32> to vector<10x6xf32>
      %c0_302 = arith.constant 0 : index
      %c126_303 = arith.constant 126 : index
      %417 = vector.load %arg14[%c0_302, %c126_303] : memref<28x150xf32, #tpu.memory_space<vmem>>, vector<10x6xf32>
      tpu.vector_store %arg14[%c0_302, %c126_303], %416 {strides = array<i32>} : memref<28x150xf32, #tpu.memory_space<vmem>>, vector<10x6xf32>,
      %418 = vector.extract_strided_slice %315 {offsets = [2, 0], sizes = [10, 6], strides = [1, 1]} : vector<14x6xf32> to vector<10x6xf32>
      %c0_304 = arith.constant 0 : index
      %c132_305 = arith.constant 132 : index
      %419 = vector.load %arg14[%c0_304, %c132_305] : memref<28x150xf32, #tpu.memory_space<vmem>>, vector<10x6xf32>
      tpu.vector_store %arg14[%c0_304, %c132_305], %418 {strides = array<i32>} : memref<28x150xf32, #tpu.memory_space<vmem>>, vector<10x6xf32>,
      %420 = vector.extract_strided_slice %315 {offsets = [3, 0], sizes = [10, 6], strides = [1, 1]} : vector<14x6xf32> to vector<10x6xf32>
      %c0_306 = arith.constant 0 : index
      %c138_307 = arith.constant 138 : index
      %421 = vector.load %arg14[%c0_306, %c138_307] : memref<28x150xf32, #tpu.memory_space<vmem>>, vector<10x6xf32>
      tpu.vector_store %arg14[%c0_306, %c138_307], %420 {strides = array<i32>} : memref<28x150xf32, #tpu.memory_space<vmem>>, vector<10x6xf32>,
      %422 = vector.extract_strided_slice %315 {offsets = [4, 0], sizes = [10, 6], strides = [1, 1]} : vector<14x6xf32> to vector<10x6xf32>
      %c0_308 = arith.constant 0 : index
      %c144_309 = arith.constant 144 : index
      %423 = vector.load %arg14[%c0_308, %c144_309] : memref<28x150xf32, #tpu.memory_space<vmem>>, vector<10x6xf32>
      tpu.vector_store %arg14[%c0_308, %c144_309], %422 {strides = array<i32>} : memref<28x150xf32, #tpu.memory_space<vmem>>, vector<10x6xf32>,
      %c0_310 = arith.constant 0 : index
      %c0_311 = arith.constant 0 : index
      %424 = vector.load %arg14[%c0_310, %c0_311] : memref<28x150xf32, #tpu.memory_space<vmem>>, vector<10x150xf32>
      %cst_312 = arith.constant dense<0.000000e+00> : vector<10x16xf32>
      %425 = tpu.matmul %424, %316, %cst_312 {dimension_numbers = #tpu.dot_dimension_numbers<[1], [0], [0], [1], [0, 0, 1, 1], [], []>} : vector<10x150xf32>, vector<150x16xf32>, vector<10x16xf32> -> vector<10x16xf32>
      %426 = vector.broadcast %317 : vector<1x16xf32> to vector<10x16xf32>
      %427 = arith.addf %425, %426 : vector<10x16xf32>
      %cst_313 = arith.constant 0.000000e+00 : f32
      %428 = vector.broadcast %cst_313 : f32 to vector<10x16xf32>
      %429 = arith.maximumf %427, %428 : vector<10x16xf32>
      %430 = arith.maximumf %373, %429 : vector<10x16xf32>
      %cst_314 = arith.constant dense<0.000000e+00> : vector<5x16xf32>
      %431 = tpu.matmul %20, %430, %cst_314 {dimension_numbers = #tpu.dot_dimension_numbers<[1], [0], [0], [1], [0, 0, 1, 1], [], []>} : vector<5x10xf32>, vector<10x16xf32>, vector<5x16xf32> -> vector<5x16xf32>
      %cst_315 = arith.constant dense<0.000000e+00> : vector<5x16xf32>
      %432 = tpu.matmul %27, %430, %cst_315 {dimension_numbers = #tpu.dot_dimension_numbers<[1], [0], [0], [1], [0, 0, 1, 1], [], []>} : vector<5x10xf32>, vector<10x16xf32>, vector<5x16xf32> -> vector<5x16xf32>
      %433 = arith.maximumf %431, %432 : vector<5x16xf32>
      %c0_i32_316 = arith.constant 0 : i32
      %434 = arith.addi %c0_i32_316, %arg15 : i32
      %435 = arith.index_cast %434 : i32 to index
      %c0_317 = arith.constant 0 : index
      %c0_318 = arith.constant 0 : index
      %436 = vector.load %arg13[%435, %c0_317, %c0_318] : memref<10x5x16xf32, #tpu.memory_space<vmem>>, vector<1x5x16xf32>
      %437 = vector.shape_cast %436 : vector<1x5x16xf32> to vector<5x16xf32>
      %438 = vector.shape_cast %433 : vector<5x16xf32> to vector<1x5x16xf32>
      tpu.vector_store %arg13[%435, %c0_317, %c0_318], %438 {strides = array<i32>} : memref<10x5x16xf32, #tpu.memory_space<vmem>>, vector<1x5x16xf32>,
    }
    %c5_i32_12 = arith.constant 5 : i32
    %c0_i32_13 = arith.constant 0 : i32
    %c5_i32_14 = arith.constant 5 : i32
    %31 = arith.addi %c0_i32_13, %c5_i32_14 : i32
    %c1_i32_15 = arith.constant 1 : i32
    scf.for %arg15 = %c0_i32_13 to %31 step %c1_i32_15  : i32 {
      %c2_i32_194 = arith.constant 2 : i32
      %280 = arith.muli %c2_i32_194, %arg15 : i32
      %c14_i32_195 = arith.constant 14 : i32
      %281 = arith.addi %c14_i32_195, %280 : i32
      %c0_i32_196 = arith.constant 0 : i32
      %282 = arith.addi %281, %c0_i32_196 : i32
      %283 = arith.index_cast %282 : i32 to index
      %c0_197 = arith.constant 0 : index
      %c0_198 = arith.constant 0 : index
      %284 = vector.load %arg12[%283, %c0_197, %c0_198] : memref<28x14x6xf32, #tpu.memory_space<vmem>>, vector<1x14x6xf32>
      %285 = vector.shape_cast %284 : vector<1x14x6xf32> to vector<14x6xf32>
      %c2_i32_199 = arith.constant 2 : i32
      %286 = arith.muli %c2_i32_199, %arg15 : i32
      %c14_i32_200 = arith.constant 14 : i32
      %287 = arith.addi %c14_i32_200, %286 : i32
      %c1_i32_201 = arith.constant 1 : i32
      %288 = arith.addi %287, %c1_i32_201 : i32
      %289 = arith.index_cast %288 : i32 to index
      %c0_202 = arith.constant 0 : index
      %c0_203 = arith.constant 0 : index
      %290 = vector.load %arg12[%289, %c0_202, %c0_203] : memref<28x14x6xf32, #tpu.memory_space<vmem>>, vector<1x14x6xf32>
      %291 = vector.shape_cast %290 : vector<1x14x6xf32> to vector<14x6xf32>
      %c2_i32_204 = arith.constant 2 : i32
      %292 = arith.muli %c2_i32_204, %arg15 : i32
      %c14_i32_205 = arith.constant 14 : i32
      %293 = arith.addi %c14_i32_205, %292 : i32
      %c2_i32_206 = arith.constant 2 : i32
      %294 = arith.addi %293, %c2_i32_206 : i32
      %295 = arith.index_cast %294 : i32 to index
      %c0_207 = arith.constant 0 : index
      %c0_208 = arith.constant 0 : index
      %296 = vector.load %arg12[%295, %c0_207, %c0_208] : memref<28x14x6xf32, #tpu.memory_space<vmem>>, vector<1x14x6xf32>
      %297 = vector.shape_cast %296 : vector<1x14x6xf32> to vector<14x6xf32>
      %c2_i32_209 = arith.constant 2 : i32
      %298 = arith.muli %c2_i32_209, %arg15 : i32
      %c14_i32_210 = arith.constant 14 : i32
      %299 = arith.addi %c14_i32_210, %298 : i32
      %c3_i32 = arith.constant 3 : i32
      %300 = arith.addi %299, %c3_i32 : i32
      %301 = arith.index_cast %300 : i32 to index
      %c0_211 = arith.constant 0 : index
      %c0_212 = arith.constant 0 : index
      %302 = vector.load %arg12[%301, %c0_211, %c0_212] : memref<28x14x6xf32, #tpu.memory_space<vmem>>, vector<1x14x6xf32>
      %303 = vector.shape_cast %302 : vector<1x14x6xf32> to vector<14x6xf32>
      %c2_i32_213 = arith.constant 2 : i32
      %304 = arith.muli %c2_i32_213, %arg15 : i32
      %c14_i32_214 = arith.constant 14 : i32
      %305 = arith.addi %c14_i32_214, %304 : i32
      %c4_i32 = arith.constant 4 : i32
      %306 = arith.addi %305, %c4_i32 : i32
      %307 = arith.index_cast %306 : i32 to index
      %c0_215 = arith.constant 0 : index
      %c0_216 = arith.constant 0 : index
      %308 = vector.load %arg12[%307, %c0_215, %c0_216] : memref<28x14x6xf32, #tpu.memory_space<vmem>>, vector<1x14x6xf32>
      %309 = vector.shape_cast %308 : vector<1x14x6xf32> to vector<14x6xf32>
      %c2_i32_217 = arith.constant 2 : i32
      %310 = arith.muli %c2_i32_217, %arg15 : i32
      %c14_i32_218 = arith.constant 14 : i32
      %311 = arith.addi %c14_i32_218, %310 : i32
      %c5_i32_219 = arith.constant 5 : i32
      %312 = arith.addi %311, %c5_i32_219 : i32
      %313 = arith.index_cast %312 : i32 to index
      %c0_220 = arith.constant 0 : index
      %c0_221 = arith.constant 0 : index
      %314 = vector.load %arg12[%313, %c0_220, %c0_221] : memref<28x14x6xf32, #tpu.memory_space<vmem>>, vector<1x14x6xf32>
      %315 = vector.shape_cast %314 : vector<1x14x6xf32> to vector<14x6xf32>
      %c0_222 = arith.constant 0 : index
      %c0_223 = arith.constant 0 : index
      %316 = vector.load %arg3[%c0_222, %c0_223] : memref<150x16xf32, #tpu.memory_space<vmem>>, vector<150x16xf32>
      %c0_224 = arith.constant 0 : index
      %c0_225 = arith.constant 0 : index
      %317 = vector.load %arg4[%c0_224, %c0_225] : memref<1x16xf32, #tpu.memory_space<vmem>>, vector<1x16xf32>
      %318 = vector.extract_strided_slice %285 {offsets = [0, 0], sizes = [10, 6], strides = [1, 1]} : vector<14x6xf32> to vector<10x6xf32>
      %c0_226 = arith.constant 0 : index
      %c0_227 = arith.constant 0 : index
      %319 = vector.load %arg14[%c0_226, %c0_227] : memref<28x150xf32, #tpu.memory_space<vmem>>, vector<10x6xf32>
      tpu.vector_store %arg14[%c0_226, %c0_227], %318 {strides = array<i32>} : memref<28x150xf32, #tpu.memory_space<vmem>>, vector<10x6xf32>,
      %320 = vector.extract_strided_slice %285 {offsets = [1, 0], sizes = [10, 6], strides = [1, 1]} : vector<14x6xf32> to vector<10x6xf32>
      %c0_228 = arith.constant 0 : index
      %c6_229 = arith.constant 6 : index
      %321 = vector.load %arg14[%c0_228, %c6_229] : memref<28x150xf32, #tpu.memory_space<vmem>>, vector<10x6xf32>
      tpu.vector_store %arg14[%c0_228, %c6_229], %320 {strides = array<i32>} : memref<28x150xf32, #tpu.memory_space<vmem>>, vector<10x6xf32>,
      %322 = vector.extract_strided_slice %285 {offsets = [2, 0], sizes = [10, 6], strides = [1, 1]} : vector<14x6xf32> to vector<10x6xf32>
      %c0_230 = arith.constant 0 : index
      %c12 = arith.constant 12 : index
      %323 = vector.load %arg14[%c0_230, %c12] : memref<28x150xf32, #tpu.memory_space<vmem>>, vector<10x6xf32>
      tpu.vector_store %arg14[%c0_230, %c12], %322 {strides = array<i32>} : memref<28x150xf32, #tpu.memory_space<vmem>>, vector<10x6xf32>,
      %324 = vector.extract_strided_slice %285 {offsets = [3, 0], sizes = [10, 6], strides = [1, 1]} : vector<14x6xf32> to vector<10x6xf32>
      %c0_231 = arith.constant 0 : index
      %c18 = arith.constant 18 : index
      %325 = vector.load %arg14[%c0_231, %c18] : memref<28x150xf32, #tpu.memory_space<vmem>>, vector<10x6xf32>
      tpu.vector_store %arg14[%c0_231, %c18], %324 {strides = array<i32>} : memref<28x150xf32, #tpu.memory_space<vmem>>, vector<10x6xf32>,
      %326 = vector.extract_strided_slice %285 {offsets = [4, 0], sizes = [10, 6], strides = [1, 1]} : vector<14x6xf32> to vector<10x6xf32>
      %c0_232 = arith.constant 0 : index
      %c24 = arith.constant 24 : index
      %327 = vector.load %arg14[%c0_232, %c24] : memref<28x150xf32, #tpu.memory_space<vmem>>, vector<10x6xf32>
      tpu.vector_store %arg14[%c0_232, %c24], %326 {strides = array<i32>} : memref<28x150xf32, #tpu.memory_space<vmem>>, vector<10x6xf32>,
      %328 = vector.extract_strided_slice %291 {offsets = [0, 0], sizes = [10, 6], strides = [1, 1]} : vector<14x6xf32> to vector<10x6xf32>
      %c0_233 = arith.constant 0 : index
      %c30 = arith.constant 30 : index
      %329 = vector.load %arg14[%c0_233, %c30] : memref<28x150xf32, #tpu.memory_space<vmem>>, vector<10x6xf32>
      tpu.vector_store %arg14[%c0_233, %c30], %328 {strides = array<i32>} : memref<28x150xf32, #tpu.memory_space<vmem>>, vector<10x6xf32>,
      %330 = vector.extract_strided_slice %291 {offsets = [1, 0], sizes = [10, 6], strides = [1, 1]} : vector<14x6xf32> to vector<10x6xf32>
      %c0_234 = arith.constant 0 : index
      %c36 = arith.constant 36 : index
      %331 = vector.load %arg14[%c0_234, %c36] : memref<28x150xf32, #tpu.memory_space<vmem>>, vector<10x6xf32>
      tpu.vector_store %arg14[%c0_234, %c36], %330 {strides = array<i32>} : memref<28x150xf32, #tpu.memory_space<vmem>>, vector<10x6xf32>,
      %332 = vector.extract_strided_slice %291 {offsets = [2, 0], sizes = [10, 6], strides = [1, 1]} : vector<14x6xf32> to vector<10x6xf32>
      %c0_235 = arith.constant 0 : index
      %c42 = arith.constant 42 : index
      %333 = vector.load %arg14[%c0_235, %c42] : memref<28x150xf32, #tpu.memory_space<vmem>>, vector<10x6xf32>
      tpu.vector_store %arg14[%c0_235, %c42], %332 {strides = array<i32>} : memref<28x150xf32, #tpu.memory_space<vmem>>, vector<10x6xf32>,
      %334 = vector.extract_strided_slice %291 {offsets = [3, 0], sizes = [10, 6], strides = [1, 1]} : vector<14x6xf32> to vector<10x6xf32>
      %c0_236 = arith.constant 0 : index
      %c48_237 = arith.constant 48 : index
      %335 = vector.load %arg14[%c0_236, %c48_237] : memref<28x150xf32, #tpu.memory_space<vmem>>, vector<10x6xf32>
      tpu.vector_store %arg14[%c0_236, %c48_237], %334 {strides = array<i32>} : memref<28x150xf32, #tpu.memory_space<vmem>>, vector<10x6xf32>,
      %336 = vector.extract_strided_slice %291 {offsets = [4, 0], sizes = [10, 6], strides = [1, 1]} : vector<14x6xf32> to vector<10x6xf32>
      %c0_238 = arith.constant 0 : index
      %c54 = arith.constant 54 : index
      %337 = vector.load %arg14[%c0_238, %c54] : memref<28x150xf32, #tpu.memory_space<vmem>>, vector<10x6xf32>
      tpu.vector_store %arg14[%c0_238, %c54], %336 {strides = array<i32>} : memref<28x150xf32, #tpu.memory_space<vmem>>, vector<10x6xf32>,
      %338 = vector.extract_strided_slice %297 {offsets = [0, 0], sizes = [10, 6], strides = [1, 1]} : vector<14x6xf32> to vector<10x6xf32>
      %c0_239 = arith.constant 0 : index
      %c60 = arith.constant 60 : index
      %339 = vector.load %arg14[%c0_239, %c60] : memref<28x150xf32, #tpu.memory_space<vmem>>, vector<10x6xf32>
      tpu.vector_store %arg14[%c0_239, %c60], %338 {strides = array<i32>} : memref<28x150xf32, #tpu.memory_space<vmem>>, vector<10x6xf32>,
      %340 = vector.extract_strided_slice %297 {offsets = [1, 0], sizes = [10, 6], strides = [1, 1]} : vector<14x6xf32> to vector<10x6xf32>
      %c0_240 = arith.constant 0 : index
      %c66 = arith.constant 66 : index
      %341 = vector.load %arg14[%c0_240, %c66] : memref<28x150xf32, #tpu.memory_space<vmem>>, vector<10x6xf32>
      tpu.vector_store %arg14[%c0_240, %c66], %340 {strides = array<i32>} : memref<28x150xf32, #tpu.memory_space<vmem>>, vector<10x6xf32>,
      %342 = vector.extract_strided_slice %297 {offsets = [2, 0], sizes = [10, 6], strides = [1, 1]} : vector<14x6xf32> to vector<10x6xf32>
      %c0_241 = arith.constant 0 : index
      %c72 = arith.constant 72 : index
      %343 = vector.load %arg14[%c0_241, %c72] : memref<28x150xf32, #tpu.memory_space<vmem>>, vector<10x6xf32>
      tpu.vector_store %arg14[%c0_241, %c72], %342 {strides = array<i32>} : memref<28x150xf32, #tpu.memory_space<vmem>>, vector<10x6xf32>,
      %344 = vector.extract_strided_slice %297 {offsets = [3, 0], sizes = [10, 6], strides = [1, 1]} : vector<14x6xf32> to vector<10x6xf32>
      %c0_242 = arith.constant 0 : index
      %c78 = arith.constant 78 : index
      %345 = vector.load %arg14[%c0_242, %c78] : memref<28x150xf32, #tpu.memory_space<vmem>>, vector<10x6xf32>
      tpu.vector_store %arg14[%c0_242, %c78], %344 {strides = array<i32>} : memref<28x150xf32, #tpu.memory_space<vmem>>, vector<10x6xf32>,
      %346 = vector.extract_strided_slice %297 {offsets = [4, 0], sizes = [10, 6], strides = [1, 1]} : vector<14x6xf32> to vector<10x6xf32>
      %c0_243 = arith.constant 0 : index
      %c84 = arith.constant 84 : index
      %347 = vector.load %arg14[%c0_243, %c84] : memref<28x150xf32, #tpu.memory_space<vmem>>, vector<10x6xf32>
      tpu.vector_store %arg14[%c0_243, %c84], %346 {strides = array<i32>} : memref<28x150xf32, #tpu.memory_space<vmem>>, vector<10x6xf32>,
      %348 = vector.extract_strided_slice %303 {offsets = [0, 0], sizes = [10, 6], strides = [1, 1]} : vector<14x6xf32> to vector<10x6xf32>
      %c0_244 = arith.constant 0 : index
      %c90 = arith.constant 90 : index
      %349 = vector.load %arg14[%c0_244, %c90] : memref<28x150xf32, #tpu.memory_space<vmem>>, vector<10x6xf32>
      tpu.vector_store %arg14[%c0_244, %c90], %348 {strides = array<i32>} : memref<28x150xf32, #tpu.memory_space<vmem>>, vector<10x6xf32>,
      %350 = vector.extract_strided_slice %303 {offsets = [1, 0], sizes = [10, 6], strides = [1, 1]} : vector<14x6xf32> to vector<10x6xf32>
      %c0_245 = arith.constant 0 : index
      %c96_246 = arith.constant 96 : index
      %351 = vector.load %arg14[%c0_245, %c96_246] : memref<28x150xf32, #tpu.memory_space<vmem>>, vector<10x6xf32>
      tpu.vector_store %arg14[%c0_245, %c96_246], %350 {strides = array<i32>} : memref<28x150xf32, #tpu.memory_space<vmem>>, vector<10x6xf32>,
      %352 = vector.extract_strided_slice %303 {offsets = [2, 0], sizes = [10, 6], strides = [1, 1]} : vector<14x6xf32> to vector<10x6xf32>
      %c0_247 = arith.constant 0 : index
      %c102 = arith.constant 102 : index
      %353 = vector.load %arg14[%c0_247, %c102] : memref<28x150xf32, #tpu.memory_space<vmem>>, vector<10x6xf32>
      tpu.vector_store %arg14[%c0_247, %c102], %352 {strides = array<i32>} : memref<28x150xf32, #tpu.memory_space<vmem>>, vector<10x6xf32>,
      %354 = vector.extract_strided_slice %303 {offsets = [3, 0], sizes = [10, 6], strides = [1, 1]} : vector<14x6xf32> to vector<10x6xf32>
      %c0_248 = arith.constant 0 : index
      %c108 = arith.constant 108 : index
      %355 = vector.load %arg14[%c0_248, %c108] : memref<28x150xf32, #tpu.memory_space<vmem>>, vector<10x6xf32>
      tpu.vector_store %arg14[%c0_248, %c108], %354 {strides = array<i32>} : memref<28x150xf32, #tpu.memory_space<vmem>>, vector<10x6xf32>,
      %356 = vector.extract_strided_slice %303 {offsets = [4, 0], sizes = [10, 6], strides = [1, 1]} : vector<14x6xf32> to vector<10x6xf32>
      %c0_249 = arith.constant 0 : index
      %c114 = arith.constant 114 : index
      %357 = vector.load %arg14[%c0_249, %c114] : memref<28x150xf32, #tpu.memory_space<vmem>>, vector<10x6xf32>
      tpu.vector_store %arg14[%c0_249, %c114], %356 {strides = array<i32>} : memref<28x150xf32, #tpu.memory_space<vmem>>, vector<10x6xf32>,
      %358 = vector.extract_strided_slice %309 {offsets = [0, 0], sizes = [10, 6], strides = [1, 1]} : vector<14x6xf32> to vector<10x6xf32>
      %c0_250 = arith.constant 0 : index
      %c120 = arith.constant 120 : index
      %359 = vector.load %arg14[%c0_250, %c120] : memref<28x150xf32, #tpu.memory_space<vmem>>, vector<10x6xf32>
      tpu.vector_store %arg14[%c0_250, %c120], %358 {strides = array<i32>} : memref<28x150xf32, #tpu.memory_space<vmem>>, vector<10x6xf32>,
      %360 = vector.extract_strided_slice %309 {offsets = [1, 0], sizes = [10, 6], strides = [1, 1]} : vector<14x6xf32> to vector<10x6xf32>
      %c0_251 = arith.constant 0 : index
      %c126 = arith.constant 126 : index
      %361 = vector.load %arg14[%c0_251, %c126] : memref<28x150xf32, #tpu.memory_space<vmem>>, vector<10x6xf32>
      tpu.vector_store %arg14[%c0_251, %c126], %360 {strides = array<i32>} : memref<28x150xf32, #tpu.memory_space<vmem>>, vector<10x6xf32>,
      %362 = vector.extract_strided_slice %309 {offsets = [2, 0], sizes = [10, 6], strides = [1, 1]} : vector<14x6xf32> to vector<10x6xf32>
      %c0_252 = arith.constant 0 : index
      %c132 = arith.constant 132 : index
      %363 = vector.load %arg14[%c0_252, %c132] : memref<28x150xf32, #tpu.memory_space<vmem>>, vector<10x6xf32>
      tpu.vector_store %arg14[%c0_252, %c132], %362 {strides = array<i32>} : memref<28x150xf32, #tpu.memory_space<vmem>>, vector<10x6xf32>,
      %364 = vector.extract_strided_slice %309 {offsets = [3, 0], sizes = [10, 6], strides = [1, 1]} : vector<14x6xf32> to vector<10x6xf32>
      %c0_253 = arith.constant 0 : index
      %c138 = arith.constant 138 : index
      %365 = vector.load %arg14[%c0_253, %c138] : memref<28x150xf32, #tpu.memory_space<vmem>>, vector<10x6xf32>
      tpu.vector_store %arg14[%c0_253, %c138], %364 {strides = array<i32>} : memref<28x150xf32, #tpu.memory_space<vmem>>, vector<10x6xf32>,
      %366 = vector.extract_strided_slice %309 {offsets = [4, 0], sizes = [10, 6], strides = [1, 1]} : vector<14x6xf32> to vector<10x6xf32>
      %c0_254 = arith.constant 0 : index
      %c144_255 = arith.constant 144 : index
      %367 = vector.load %arg14[%c0_254, %c144_255] : memref<28x150xf32, #tpu.memory_space<vmem>>, vector<10x6xf32>
      tpu.vector_store %arg14[%c0_254, %c144_255], %366 {strides = array<i32>} : memref<28x150xf32, #tpu.memory_space<vmem>>, vector<10x6xf32>,
      %c0_256 = arith.constant 0 : index
      %c0_257 = arith.constant 0 : index
      %368 = vector.load %arg14[%c0_256, %c0_257] : memref<28x150xf32, #tpu.memory_space<vmem>>, vector<10x150xf32>
      %cst_258 = arith.constant dense<0.000000e+00> : vector<10x16xf32>
      %369 = tpu.matmul %368, %316, %cst_258 {dimension_numbers = #tpu.dot_dimension_numbers<[1], [0], [0], [1], [0, 0, 1, 1], [], []>} : vector<10x150xf32>, vector<150x16xf32>, vector<10x16xf32> -> vector<10x16xf32>
      %370 = vector.broadcast %317 : vector<1x16xf32> to vector<10x16xf32>
      %371 = arith.addf %369, %370 : vector<10x16xf32>
      %cst_259 = arith.constant 0.000000e+00 : f32
      %372 = vector.broadcast %cst_259 : f32 to vector<10x16xf32>
      %373 = arith.maximumf %371, %372 : vector<10x16xf32>
      %374 = vector.extract_strided_slice %291 {offsets = [0, 0], sizes = [10, 6], strides = [1, 1]} : vector<14x6xf32> to vector<10x6xf32>
      %c0_260 = arith.constant 0 : index
      %c0_261 = arith.constant 0 : index
      %375 = vector.load %arg14[%c0_260, %c0_261] : memref<28x150xf32, #tpu.memory_space<vmem>>, vector<10x6xf32>
      tpu.vector_store %arg14[%c0_260, %c0_261], %374 {strides = array<i32>} : memref<28x150xf32, #tpu.memory_space<vmem>>, vector<10x6xf32>,
      %376 = vector.extract_strided_slice %291 {offsets = [1, 0], sizes = [10, 6], strides = [1, 1]} : vector<14x6xf32> to vector<10x6xf32>
      %c0_262 = arith.constant 0 : index
      %c6_263 = arith.constant 6 : index
      %377 = vector.load %arg14[%c0_262, %c6_263] : memref<28x150xf32, #tpu.memory_space<vmem>>, vector<10x6xf32>
      tpu.vector_store %arg14[%c0_262, %c6_263], %376 {strides = array<i32>} : memref<28x150xf32, #tpu.memory_space<vmem>>, vector<10x6xf32>,
      %378 = vector.extract_strided_slice %291 {offsets = [2, 0], sizes = [10, 6], strides = [1, 1]} : vector<14x6xf32> to vector<10x6xf32>
      %c0_264 = arith.constant 0 : index
      %c12_265 = arith.constant 12 : index
      %379 = vector.load %arg14[%c0_264, %c12_265] : memref<28x150xf32, #tpu.memory_space<vmem>>, vector<10x6xf32>
      tpu.vector_store %arg14[%c0_264, %c12_265], %378 {strides = array<i32>} : memref<28x150xf32, #tpu.memory_space<vmem>>, vector<10x6xf32>,
      %380 = vector.extract_strided_slice %291 {offsets = [3, 0], sizes = [10, 6], strides = [1, 1]} : vector<14x6xf32> to vector<10x6xf32>
      %c0_266 = arith.constant 0 : index
      %c18_267 = arith.constant 18 : index
      %381 = vector.load %arg14[%c0_266, %c18_267] : memref<28x150xf32, #tpu.memory_space<vmem>>, vector<10x6xf32>
      tpu.vector_store %arg14[%c0_266, %c18_267], %380 {strides = array<i32>} : memref<28x150xf32, #tpu.memory_space<vmem>>, vector<10x6xf32>,
      %382 = vector.extract_strided_slice %291 {offsets = [4, 0], sizes = [10, 6], strides = [1, 1]} : vector<14x6xf32> to vector<10x6xf32>
      %c0_268 = arith.constant 0 : index
      %c24_269 = arith.constant 24 : index
      %383 = vector.load %arg14[%c0_268, %c24_269] : memref<28x150xf32, #tpu.memory_space<vmem>>, vector<10x6xf32>
      tpu.vector_store %arg14[%c0_268, %c24_269], %382 {strides = array<i32>} : memref<28x150xf32, #tpu.memory_space<vmem>>, vector<10x6xf32>,
      %384 = vector.extract_strided_slice %297 {offsets = [0, 0], sizes = [10, 6], strides = [1, 1]} : vector<14x6xf32> to vector<10x6xf32>
      %c0_270 = arith.constant 0 : index
      %c30_271 = arith.constant 30 : index
      %385 = vector.load %arg14[%c0_270, %c30_271] : memref<28x150xf32, #tpu.memory_space<vmem>>, vector<10x6xf32>
      tpu.vector_store %arg14[%c0_270, %c30_271], %384 {strides = array<i32>} : memref<28x150xf32, #tpu.memory_space<vmem>>, vector<10x6xf32>,
      %386 = vector.extract_strided_slice %297 {offsets = [1, 0], sizes = [10, 6], strides = [1, 1]} : vector<14x6xf32> to vector<10x6xf32>
      %c0_272 = arith.constant 0 : index
      %c36_273 = arith.constant 36 : index
      %387 = vector.load %arg14[%c0_272, %c36_273] : memref<28x150xf32, #tpu.memory_space<vmem>>, vector<10x6xf32>
      tpu.vector_store %arg14[%c0_272, %c36_273], %386 {strides = array<i32>} : memref<28x150xf32, #tpu.memory_space<vmem>>, vector<10x6xf32>,
      %388 = vector.extract_strided_slice %297 {offsets = [2, 0], sizes = [10, 6], strides = [1, 1]} : vector<14x6xf32> to vector<10x6xf32>
      %c0_274 = arith.constant 0 : index
      %c42_275 = arith.constant 42 : index
      %389 = vector.load %arg14[%c0_274, %c42_275] : memref<28x150xf32, #tpu.memory_space<vmem>>, vector<10x6xf32>
      tpu.vector_store %arg14[%c0_274, %c42_275], %388 {strides = array<i32>} : memref<28x150xf32, #tpu.memory_space<vmem>>, vector<10x6xf32>,
      %390 = vector.extract_strided_slice %297 {offsets = [3, 0], sizes = [10, 6], strides = [1, 1]} : vector<14x6xf32> to vector<10x6xf32>
      %c0_276 = arith.constant 0 : index
      %c48_277 = arith.constant 48 : index
      %391 = vector.load %arg14[%c0_276, %c48_277] : memref<28x150xf32, #tpu.memory_space<vmem>>, vector<10x6xf32>
      tpu.vector_store %arg14[%c0_276, %c48_277], %390 {strides = array<i32>} : memref<28x150xf32, #tpu.memory_space<vmem>>, vector<10x6xf32>,
      %392 = vector.extract_strided_slice %297 {offsets = [4, 0], sizes = [10, 6], strides = [1, 1]} : vector<14x6xf32> to vector<10x6xf32>
      %c0_278 = arith.constant 0 : index
      %c54_279 = arith.constant 54 : index
      %393 = vector.load %arg14[%c0_278, %c54_279] : memref<28x150xf32, #tpu.memory_space<vmem>>, vector<10x6xf32>
      tpu.vector_store %arg14[%c0_278, %c54_279], %392 {strides = array<i32>} : memref<28x150xf32, #tpu.memory_space<vmem>>, vector<10x6xf32>,
      %394 = vector.extract_strided_slice %303 {offsets = [0, 0], sizes = [10, 6], strides = [1, 1]} : vector<14x6xf32> to vector<10x6xf32>
      %c0_280 = arith.constant 0 : index
      %c60_281 = arith.constant 60 : index
      %395 = vector.load %arg14[%c0_280, %c60_281] : memref<28x150xf32, #tpu.memory_space<vmem>>, vector<10x6xf32>
      tpu.vector_store %arg14[%c0_280, %c60_281], %394 {strides = array<i32>} : memref<28x150xf32, #tpu.memory_space<vmem>>, vector<10x6xf32>,
      %396 = vector.extract_strided_slice %303 {offsets = [1, 0], sizes = [10, 6], strides = [1, 1]} : vector<14x6xf32> to vector<10x6xf32>
      %c0_282 = arith.constant 0 : index
      %c66_283 = arith.constant 66 : index
      %397 = vector.load %arg14[%c0_282, %c66_283] : memref<28x150xf32, #tpu.memory_space<vmem>>, vector<10x6xf32>
      tpu.vector_store %arg14[%c0_282, %c66_283], %396 {strides = array<i32>} : memref<28x150xf32, #tpu.memory_space<vmem>>, vector<10x6xf32>,
      %398 = vector.extract_strided_slice %303 {offsets = [2, 0], sizes = [10, 6], strides = [1, 1]} : vector<14x6xf32> to vector<10x6xf32>
      %c0_284 = arith.constant 0 : index
      %c72_285 = arith.constant 72 : index
      %399 = vector.load %arg14[%c0_284, %c72_285] : memref<28x150xf32, #tpu.memory_space<vmem>>, vector<10x6xf32>
      tpu.vector_store %arg14[%c0_284, %c72_285], %398 {strides = array<i32>} : memref<28x150xf32, #tpu.memory_space<vmem>>, vector<10x6xf32>,
      %400 = vector.extract_strided_slice %303 {offsets = [3, 0], sizes = [10, 6], strides = [1, 1]} : vector<14x6xf32> to vector<10x6xf32>
      %c0_286 = arith.constant 0 : index
      %c78_287 = arith.constant 78 : index
      %401 = vector.load %arg14[%c0_286, %c78_287] : memref<28x150xf32, #tpu.memory_space<vmem>>, vector<10x6xf32>
      tpu.vector_store %arg14[%c0_286, %c78_287], %400 {strides = array<i32>} : memref<28x150xf32, #tpu.memory_space<vmem>>, vector<10x6xf32>,
      %402 = vector.extract_strided_slice %303 {offsets = [4, 0], sizes = [10, 6], strides = [1, 1]} : vector<14x6xf32> to vector<10x6xf32>
      %c0_288 = arith.constant 0 : index
      %c84_289 = arith.constant 84 : index
      %403 = vector.load %arg14[%c0_288, %c84_289] : memref<28x150xf32, #tpu.memory_space<vmem>>, vector<10x6xf32>
      tpu.vector_store %arg14[%c0_288, %c84_289], %402 {strides = array<i32>} : memref<28x150xf32, #tpu.memory_space<vmem>>, vector<10x6xf32>,
      %404 = vector.extract_strided_slice %309 {offsets = [0, 0], sizes = [10, 6], strides = [1, 1]} : vector<14x6xf32> to vector<10x6xf32>
      %c0_290 = arith.constant 0 : index
      %c90_291 = arith.constant 90 : index
      %405 = vector.load %arg14[%c0_290, %c90_291] : memref<28x150xf32, #tpu.memory_space<vmem>>, vector<10x6xf32>
      tpu.vector_store %arg14[%c0_290, %c90_291], %404 {strides = array<i32>} : memref<28x150xf32, #tpu.memory_space<vmem>>, vector<10x6xf32>,
      %406 = vector.extract_strided_slice %309 {offsets = [1, 0], sizes = [10, 6], strides = [1, 1]} : vector<14x6xf32> to vector<10x6xf32>
      %c0_292 = arith.constant 0 : index
      %c96_293 = arith.constant 96 : index
      %407 = vector.load %arg14[%c0_292, %c96_293] : memref<28x150xf32, #tpu.memory_space<vmem>>, vector<10x6xf32>
      tpu.vector_store %arg14[%c0_292, %c96_293], %406 {strides = array<i32>} : memref<28x150xf32, #tpu.memory_space<vmem>>, vector<10x6xf32>,
      %408 = vector.extract_strided_slice %309 {offsets = [2, 0], sizes = [10, 6], strides = [1, 1]} : vector<14x6xf32> to vector<10x6xf32>
      %c0_294 = arith.constant 0 : index
      %c102_295 = arith.constant 102 : index
      %409 = vector.load %arg14[%c0_294, %c102_295] : memref<28x150xf32, #tpu.memory_space<vmem>>, vector<10x6xf32>
      tpu.vector_store %arg14[%c0_294, %c102_295], %408 {strides = array<i32>} : memref<28x150xf32, #tpu.memory_space<vmem>>, vector<10x6xf32>,
      %410 = vector.extract_strided_slice %309 {offsets = [3, 0], sizes = [10, 6], strides = [1, 1]} : vector<14x6xf32> to vector<10x6xf32>
      %c0_296 = arith.constant 0 : index
      %c108_297 = arith.constant 108 : index
      %411 = vector.load %arg14[%c0_296, %c108_297] : memref<28x150xf32, #tpu.memory_space<vmem>>, vector<10x6xf32>
      tpu.vector_store %arg14[%c0_296, %c108_297], %410 {strides = array<i32>} : memref<28x150xf32, #tpu.memory_space<vmem>>, vector<10x6xf32>,
      %412 = vector.extract_strided_slice %309 {offsets = [4, 0], sizes = [10, 6], strides = [1, 1]} : vector<14x6xf32> to vector<10x6xf32>
      %c0_298 = arith.constant 0 : index
      %c114_299 = arith.constant 114 : index
      %413 = vector.load %arg14[%c0_298, %c114_299] : memref<28x150xf32, #tpu.memory_space<vmem>>, vector<10x6xf32>
      tpu.vector_store %arg14[%c0_298, %c114_299], %412 {strides = array<i32>} : memref<28x150xf32, #tpu.memory_space<vmem>>, vector<10x6xf32>,
      %414 = vector.extract_strided_slice %315 {offsets = [0, 0], sizes = [10, 6], strides = [1, 1]} : vector<14x6xf32> to vector<10x6xf32>
      %c0_300 = arith.constant 0 : index
      %c120_301 = arith.constant 120 : index
      %415 = vector.load %arg14[%c0_300, %c120_301] : memref<28x150xf32, #tpu.memory_space<vmem>>, vector<10x6xf32>
      tpu.vector_store %arg14[%c0_300, %c120_301], %414 {strides = array<i32>} : memref<28x150xf32, #tpu.memory_space<vmem>>, vector<10x6xf32>,
      %416 = vector.extract_strided_slice %315 {offsets = [1, 0], sizes = [10, 6], strides = [1, 1]} : vector<14x6xf32> to vector<10x6xf32>
      %c0_302 = arith.constant 0 : index
      %c126_303 = arith.constant 126 : index
      %417 = vector.load %arg14[%c0_302, %c126_303] : memref<28x150xf32, #tpu.memory_space<vmem>>, vector<10x6xf32>
      tpu.vector_store %arg14[%c0_302, %c126_303], %416 {strides = array<i32>} : memref<28x150xf32, #tpu.memory_space<vmem>>, vector<10x6xf32>,
      %418 = vector.extract_strided_slice %315 {offsets = [2, 0], sizes = [10, 6], strides = [1, 1]} : vector<14x6xf32> to vector<10x6xf32>
      %c0_304 = arith.constant 0 : index
      %c132_305 = arith.constant 132 : index
      %419 = vector.load %arg14[%c0_304, %c132_305] : memref<28x150xf32, #tpu.memory_space<vmem>>, vector<10x6xf32>
      tpu.vector_store %arg14[%c0_304, %c132_305], %418 {strides = array<i32>} : memref<28x150xf32, #tpu.memory_space<vmem>>, vector<10x6xf32>,
      %420 = vector.extract_strided_slice %315 {offsets = [3, 0], sizes = [10, 6], strides = [1, 1]} : vector<14x6xf32> to vector<10x6xf32>
      %c0_306 = arith.constant 0 : index
      %c138_307 = arith.constant 138 : index
      %421 = vector.load %arg14[%c0_306, %c138_307] : memref<28x150xf32, #tpu.memory_space<vmem>>, vector<10x6xf32>
      tpu.vector_store %arg14[%c0_306, %c138_307], %420 {strides = array<i32>} : memref<28x150xf32, #tpu.memory_space<vmem>>, vector<10x6xf32>,
      %422 = vector.extract_strided_slice %315 {offsets = [4, 0], sizes = [10, 6], strides = [1, 1]} : vector<14x6xf32> to vector<10x6xf32>
      %c0_308 = arith.constant 0 : index
      %c144_309 = arith.constant 144 : index
      %423 = vector.load %arg14[%c0_308, %c144_309] : memref<28x150xf32, #tpu.memory_space<vmem>>, vector<10x6xf32>
      tpu.vector_store %arg14[%c0_308, %c144_309], %422 {strides = array<i32>} : memref<28x150xf32, #tpu.memory_space<vmem>>, vector<10x6xf32>,
      %c0_310 = arith.constant 0 : index
      %c0_311 = arith.constant 0 : index
      %424 = vector.load %arg14[%c0_310, %c0_311] : memref<28x150xf32, #tpu.memory_space<vmem>>, vector<10x150xf32>
      %cst_312 = arith.constant dense<0.000000e+00> : vector<10x16xf32>
      %425 = tpu.matmul %424, %316, %cst_312 {dimension_numbers = #tpu.dot_dimension_numbers<[1], [0], [0], [1], [0, 0, 1, 1], [], []>} : vector<10x150xf32>, vector<150x16xf32>, vector<10x16xf32> -> vector<10x16xf32>
      %426 = vector.broadcast %317 : vector<1x16xf32> to vector<10x16xf32>
      %427 = arith.addf %425, %426 : vector<10x16xf32>
      %cst_313 = arith.constant 0.000000e+00 : f32
      %428 = vector.broadcast %cst_313 : f32 to vector<10x16xf32>
      %429 = arith.maximumf %427, %428 : vector<10x16xf32>
      %430 = arith.maximumf %373, %429 : vector<10x16xf32>
      %cst_314 = arith.constant dense<0.000000e+00> : vector<5x16xf32>
      %431 = tpu.matmul %20, %430, %cst_314 {dimension_numbers = #tpu.dot_dimension_numbers<[1], [0], [0], [1], [0, 0, 1, 1], [], []>} : vector<5x10xf32>, vector<10x16xf32>, vector<5x16xf32> -> vector<5x16xf32>
      %cst_315 = arith.constant dense<0.000000e+00> : vector<5x16xf32>
      %432 = tpu.matmul %27, %430, %cst_315 {dimension_numbers = #tpu.dot_dimension_numbers<[1], [0], [0], [1], [0, 0, 1, 1], [], []>} : vector<5x10xf32>, vector<10x16xf32>, vector<5x16xf32> -> vector<5x16xf32>
      %433 = arith.maximumf %431, %432 : vector<5x16xf32>
      %c5_i32_316 = arith.constant 5 : i32
      %434 = arith.addi %c5_i32_316, %arg15 : i32
      %435 = arith.index_cast %434 : i32 to index
      %c0_317 = arith.constant 0 : index
      %c0_318 = arith.constant 0 : index
      %436 = vector.load %arg13[%435, %c0_317, %c0_318] : memref<10x5x16xf32, #tpu.memory_space<vmem>>, vector<1x5x16xf32>
      %437 = vector.shape_cast %436 : vector<1x5x16xf32> to vector<5x16xf32>
      %438 = vector.shape_cast %433 : vector<5x16xf32> to vector<1x5x16xf32>
      tpu.vector_store %arg13[%435, %c0_317, %c0_318], %438 {strides = array<i32>} : memref<10x5x16xf32, #tpu.memory_space<vmem>>, vector<1x5x16xf32>,
    }
    %c5_i32_16 = arith.constant 5 : i32
    %c0 = arith.constant 0 : index
    %c0_17 = arith.constant 0 : index
    %32 = vector.load %arg6[%c0, %c0_17] : memref<1x120xf32, #tpu.memory_space<vmem>>, vector<1x120xf32>
    %c0_18 = arith.constant 0 : index
    %c0_19 = arith.constant 0 : index
    %c0_20 = arith.constant 0 : index
    %33 = vector.load %arg13[%c0_18, %c0_19, %c0_20] : memref<10x5x16xf32, #tpu.memory_space<vmem>>, vector<1x5x16xf32>
    %34 = vector.shape_cast %33 : vector<1x5x16xf32> to vector<5x16xf32>
    %35 = vector.extract_strided_slice %34 {offsets = [0, 0], sizes = [1, 16], strides = [1, 1]} : vector<5x16xf32> to vector<1x16xf32>
    %c0_21 = arith.constant 0 : index
    %c0_22 = arith.constant 0 : index
    %36 = vector.load %arg5[%c0_21, %c0_22] : memref<400x120xf32, #tpu.memory_space<vmem>>, vector<16x120xf32>
    %cst = arith.constant dense<0.000000e+00> : vector<1x120xf32>
    %37 = tpu.matmul %35, %36, %cst {dimension_numbers = #tpu.dot_dimension_numbers<[1], [0], [0], [1], [0, 0, 1, 1], [], []>} : vector<1x16xf32>, vector<16x120xf32>, vector<1x120xf32> -> vector<1x120xf32>
    %38 = arith.addf %32, %37 : vector<1x120xf32>
    %39 = vector.extract_strided_slice %34 {offsets = [1, 0], sizes = [1, 16], strides = [1, 1]} : vector<5x16xf32> to vector<1x16xf32>
    %c16 = arith.constant 16 : index
    %c0_23 = arith.constant 0 : index
    %40 = vector.load %arg5[%c16, %c0_23] : memref<400x120xf32, #tpu.memory_space<vmem>>, vector<16x120xf32>
    %cst_24 = arith.constant dense<0.000000e+00> : vector<1x120xf32>
    %41 = tpu.matmul %39, %40, %cst_24 {dimension_numbers = #tpu.dot_dimension_numbers<[1], [0], [0], [1], [0, 0, 1, 1], [], []>} : vector<1x16xf32>, vector<16x120xf32>, vector<1x120xf32> -> vector<1x120xf32>
    %42 = arith.addf %38, %41 : vector<1x120xf32>
    %43 = vector.extract_strided_slice %34 {offsets = [2, 0], sizes = [1, 16], strides = [1, 1]} : vector<5x16xf32> to vector<1x16xf32>
    %c32 = arith.constant 32 : index
    %c0_25 = arith.constant 0 : index
    %44 = vector.load %arg5[%c32, %c0_25] : memref<400x120xf32, #tpu.memory_space<vmem>>, vector<16x120xf32>
    %cst_26 = arith.constant dense<0.000000e+00> : vector<1x120xf32>
    %45 = tpu.matmul %43, %44, %cst_26 {dimension_numbers = #tpu.dot_dimension_numbers<[1], [0], [0], [1], [0, 0, 1, 1], [], []>} : vector<1x16xf32>, vector<16x120xf32>, vector<1x120xf32> -> vector<1x120xf32>
    %46 = arith.addf %42, %45 : vector<1x120xf32>
    %47 = vector.extract_strided_slice %34 {offsets = [3, 0], sizes = [1, 16], strides = [1, 1]} : vector<5x16xf32> to vector<1x16xf32>
    %c48 = arith.constant 48 : index
    %c0_27 = arith.constant 0 : index
    %48 = vector.load %arg5[%c48, %c0_27] : memref<400x120xf32, #tpu.memory_space<vmem>>, vector<16x120xf32>
    %cst_28 = arith.constant dense<0.000000e+00> : vector<1x120xf32>
    %49 = tpu.matmul %47, %48, %cst_28 {dimension_numbers = #tpu.dot_dimension_numbers<[1], [0], [0], [1], [0, 0, 1, 1], [], []>} : vector<1x16xf32>, vector<16x120xf32>, vector<1x120xf32> -> vector<1x120xf32>
    %50 = arith.addf %46, %49 : vector<1x120xf32>
    %51 = vector.extract_strided_slice %34 {offsets = [4, 0], sizes = [1, 16], strides = [1, 1]} : vector<5x16xf32> to vector<1x16xf32>
    %c64 = arith.constant 64 : index
    %c0_29 = arith.constant 0 : index
    %52 = vector.load %arg5[%c64, %c0_29] : memref<400x120xf32, #tpu.memory_space<vmem>>, vector<16x120xf32>
    %cst_30 = arith.constant dense<0.000000e+00> : vector<1x120xf32>
    %53 = tpu.matmul %51, %52, %cst_30 {dimension_numbers = #tpu.dot_dimension_numbers<[1], [0], [0], [1], [0, 0, 1, 1], [], []>} : vector<1x16xf32>, vector<16x120xf32>, vector<1x120xf32> -> vector<1x120xf32>
    %54 = arith.addf %50, %53 : vector<1x120xf32>
    %c1 = arith.constant 1 : index
    %c0_31 = arith.constant 0 : index
    %c0_32 = arith.constant 0 : index
    %55 = vector.load %arg13[%c1, %c0_31, %c0_32] : memref<10x5x16xf32, #tpu.memory_space<vmem>>, vector<1x5x16xf32>
    %56 = vector.shape_cast %55 : vector<1x5x16xf32> to vector<5x16xf32>
    %57 = vector.extract_strided_slice %56 {offsets = [0, 0], sizes = [1, 16], strides = [1, 1]} : vector<5x16xf32> to vector<1x16xf32>
    %c80 = arith.constant 80 : index
    %c0_33 = arith.constant 0 : index
    %58 = vector.load %arg5[%c80, %c0_33] : memref<400x120xf32, #tpu.memory_space<vmem>>, vector<16x120xf32>
    %cst_34 = arith.constant dense<0.000000e+00> : vector<1x120xf32>
    %59 = tpu.matmul %57, %58, %cst_34 {dimension_numbers = #tpu.dot_dimension_numbers<[1], [0], [0], [1], [0, 0, 1, 1], [], []>} : vector<1x16xf32>, vector<16x120xf32>, vector<1x120xf32> -> vector<1x120xf32>
    %60 = arith.addf %54, %59 : vector<1x120xf32>
    %61 = vector.extract_strided_slice %56 {offsets = [1, 0], sizes = [1, 16], strides = [1, 1]} : vector<5x16xf32> to vector<1x16xf32>
    %c96 = arith.constant 96 : index
    %c0_35 = arith.constant 0 : index
    %62 = vector.load %arg5[%c96, %c0_35] : memref<400x120xf32, #tpu.memory_space<vmem>>, vector<16x120xf32>
    %cst_36 = arith.constant dense<0.000000e+00> : vector<1x120xf32>
    %63 = tpu.matmul %61, %62, %cst_36 {dimension_numbers = #tpu.dot_dimension_numbers<[1], [0], [0], [1], [0, 0, 1, 1], [], []>} : vector<1x16xf32>, vector<16x120xf32>, vector<1x120xf32> -> vector<1x120xf32>
    %64 = arith.addf %60, %63 : vector<1x120xf32>
    %65 = vector.extract_strided_slice %56 {offsets = [2, 0], sizes = [1, 16], strides = [1, 1]} : vector<5x16xf32> to vector<1x16xf32>
    %c112 = arith.constant 112 : index
    %c0_37 = arith.constant 0 : index
    %66 = vector.load %arg5[%c112, %c0_37] : memref<400x120xf32, #tpu.memory_space<vmem>>, vector<16x120xf32>
    %cst_38 = arith.constant dense<0.000000e+00> : vector<1x120xf32>
    %67 = tpu.matmul %65, %66, %cst_38 {dimension_numbers = #tpu.dot_dimension_numbers<[1], [0], [0], [1], [0, 0, 1, 1], [], []>} : vector<1x16xf32>, vector<16x120xf32>, vector<1x120xf32> -> vector<1x120xf32>
    %68 = arith.addf %64, %67 : vector<1x120xf32>
    %69 = vector.extract_strided_slice %56 {offsets = [3, 0], sizes = [1, 16], strides = [1, 1]} : vector<5x16xf32> to vector<1x16xf32>
    %c128 = arith.constant 128 : index
    %c0_39 = arith.constant 0 : index
    %70 = vector.load %arg5[%c128, %c0_39] : memref<400x120xf32, #tpu.memory_space<vmem>>, vector<16x120xf32>
    %cst_40 = arith.constant dense<0.000000e+00> : vector<1x120xf32>
    %71 = tpu.matmul %69, %70, %cst_40 {dimension_numbers = #tpu.dot_dimension_numbers<[1], [0], [0], [1], [0, 0, 1, 1], [], []>} : vector<1x16xf32>, vector<16x120xf32>, vector<1x120xf32> -> vector<1x120xf32>
    %72 = arith.addf %68, %71 : vector<1x120xf32>
    %73 = vector.extract_strided_slice %56 {offsets = [4, 0], sizes = [1, 16], strides = [1, 1]} : vector<5x16xf32> to vector<1x16xf32>
    %c144 = arith.constant 144 : index
    %c0_41 = arith.constant 0 : index
    %74 = vector.load %arg5[%c144, %c0_41] : memref<400x120xf32, #tpu.memory_space<vmem>>, vector<16x120xf32>
    %cst_42 = arith.constant dense<0.000000e+00> : vector<1x120xf32>
    %75 = tpu.matmul %73, %74, %cst_42 {dimension_numbers = #tpu.dot_dimension_numbers<[1], [0], [0], [1], [0, 0, 1, 1], [], []>} : vector<1x16xf32>, vector<16x120xf32>, vector<1x120xf32> -> vector<1x120xf32>
    %76 = arith.addf %72, %75 : vector<1x120xf32>
    %c2 = arith.constant 2 : index
    %c0_43 = arith.constant 0 : index
    %c0_44 = arith.constant 0 : index
    %77 = vector.load %arg13[%c2, %c0_43, %c0_44] : memref<10x5x16xf32, #tpu.memory_space<vmem>>, vector<1x5x16xf32>
    %78 = vector.shape_cast %77 : vector<1x5x16xf32> to vector<5x16xf32>
    %79 = vector.extract_strided_slice %78 {offsets = [0, 0], sizes = [1, 16], strides = [1, 1]} : vector<5x16xf32> to vector<1x16xf32>
    %c160 = arith.constant 160 : index
    %c0_45 = arith.constant 0 : index
    %80 = vector.load %arg5[%c160, %c0_45] : memref<400x120xf32, #tpu.memory_space<vmem>>, vector<16x120xf32>
    %cst_46 = arith.constant dense<0.000000e+00> : vector<1x120xf32>
    %81 = tpu.matmul %79, %80, %cst_46 {dimension_numbers = #tpu.dot_dimension_numbers<[1], [0], [0], [1], [0, 0, 1, 1], [], []>} : vector<1x16xf32>, vector<16x120xf32>, vector<1x120xf32> -> vector<1x120xf32>
    %82 = arith.addf %76, %81 : vector<1x120xf32>
    %83 = vector.extract_strided_slice %78 {offsets = [1, 0], sizes = [1, 16], strides = [1, 1]} : vector<5x16xf32> to vector<1x16xf32>
    %c176 = arith.constant 176 : index
    %c0_47 = arith.constant 0 : index
    %84 = vector.load %arg5[%c176, %c0_47] : memref<400x120xf32, #tpu.memory_space<vmem>>, vector<16x120xf32>
    %cst_48 = arith.constant dense<0.000000e+00> : vector<1x120xf32>
    %85 = tpu.matmul %83, %84, %cst_48 {dimension_numbers = #tpu.dot_dimension_numbers<[1], [0], [0], [1], [0, 0, 1, 1], [], []>} : vector<1x16xf32>, vector<16x120xf32>, vector<1x120xf32> -> vector<1x120xf32>
    %86 = arith.addf %82, %85 : vector<1x120xf32>
    %87 = vector.extract_strided_slice %78 {offsets = [2, 0], sizes = [1, 16], strides = [1, 1]} : vector<5x16xf32> to vector<1x16xf32>
    %c192 = arith.constant 192 : index
    %c0_49 = arith.constant 0 : index
    %88 = vector.load %arg5[%c192, %c0_49] : memref<400x120xf32, #tpu.memory_space<vmem>>, vector<16x120xf32>
    %cst_50 = arith.constant dense<0.000000e+00> : vector<1x120xf32>
    %89 = tpu.matmul %87, %88, %cst_50 {dimension_numbers = #tpu.dot_dimension_numbers<[1], [0], [0], [1], [0, 0, 1, 1], [], []>} : vector<1x16xf32>, vector<16x120xf32>, vector<1x120xf32> -> vector<1x120xf32>
    %90 = arith.addf %86, %89 : vector<1x120xf32>
    %91 = vector.extract_strided_slice %78 {offsets = [3, 0], sizes = [1, 16], strides = [1, 1]} : vector<5x16xf32> to vector<1x16xf32>
    %c208 = arith.constant 208 : index
    %c0_51 = arith.constant 0 : index
    %92 = vector.load %arg5[%c208, %c0_51] : memref<400x120xf32, #tpu.memory_space<vmem>>, vector<16x120xf32>
    %cst_52 = arith.constant dense<0.000000e+00> : vector<1x120xf32>
    %93 = tpu.matmul %91, %92, %cst_52 {dimension_numbers = #tpu.dot_dimension_numbers<[1], [0], [0], [1], [0, 0, 1, 1], [], []>} : vector<1x16xf32>, vector<16x120xf32>, vector<1x120xf32> -> vector<1x120xf32>
    %94 = arith.addf %90, %93 : vector<1x120xf32>
    %95 = vector.extract_strided_slice %78 {offsets = [4, 0], sizes = [1, 16], strides = [1, 1]} : vector<5x16xf32> to vector<1x16xf32>
    %c224 = arith.constant 224 : index
    %c0_53 = arith.constant 0 : index
    %96 = vector.load %arg5[%c224, %c0_53] : memref<400x120xf32, #tpu.memory_space<vmem>>, vector<16x120xf32>
    %cst_54 = arith.constant dense<0.000000e+00> : vector<1x120xf32>
    %97 = tpu.matmul %95, %96, %cst_54 {dimension_numbers = #tpu.dot_dimension_numbers<[1], [0], [0], [1], [0, 0, 1, 1], [], []>} : vector<1x16xf32>, vector<16x120xf32>, vector<1x120xf32> -> vector<1x120xf32>
    %98 = arith.addf %94, %97 : vector<1x120xf32>
    %c3 = arith.constant 3 : index
    %c0_55 = arith.constant 0 : index
    %c0_56 = arith.constant 0 : index
    %99 = vector.load %arg13[%c3, %c0_55, %c0_56] : memref<10x5x16xf32, #tpu.memory_space<vmem>>, vector<1x5x16xf32>
    %100 = vector.shape_cast %99 : vector<1x5x16xf32> to vector<5x16xf32>
    %101 = vector.extract_strided_slice %100 {offsets = [0, 0], sizes = [1, 16], strides = [1, 1]} : vector<5x16xf32> to vector<1x16xf32>
    %c240 = arith.constant 240 : index
    %c0_57 = arith.constant 0 : index
    %102 = vector.load %arg5[%c240, %c0_57] : memref<400x120xf32, #tpu.memory_space<vmem>>, vector<16x120xf32>
    %cst_58 = arith.constant dense<0.000000e+00> : vector<1x120xf32>
    %103 = tpu.matmul %101, %102, %cst_58 {dimension_numbers = #tpu.dot_dimension_numbers<[1], [0], [0], [1], [0, 0, 1, 1], [], []>} : vector<1x16xf32>, vector<16x120xf32>, vector<1x120xf32> -> vector<1x120xf32>
    %104 = arith.addf %98, %103 : vector<1x120xf32>
    %105 = vector.extract_strided_slice %100 {offsets = [1, 0], sizes = [1, 16], strides = [1, 1]} : vector<5x16xf32> to vector<1x16xf32>
    %c256 = arith.constant 256 : index
    %c0_59 = arith.constant 0 : index
    %106 = vector.load %arg5[%c256, %c0_59] : memref<400x120xf32, #tpu.memory_space<vmem>>, vector<16x120xf32>
    %cst_60 = arith.constant dense<0.000000e+00> : vector<1x120xf32>
    %107 = tpu.matmul %105, %106, %cst_60 {dimension_numbers = #tpu.dot_dimension_numbers<[1], [0], [0], [1], [0, 0, 1, 1], [], []>} : vector<1x16xf32>, vector<16x120xf32>, vector<1x120xf32> -> vector<1x120xf32>
    %108 = arith.addf %104, %107 : vector<1x120xf32>
    %109 = vector.extract_strided_slice %100 {offsets = [2, 0], sizes = [1, 16], strides = [1, 1]} : vector<5x16xf32> to vector<1x16xf32>
    %c272 = arith.constant 272 : index
    %c0_61 = arith.constant 0 : index
    %110 = vector.load %arg5[%c272, %c0_61] : memref<400x120xf32, #tpu.memory_space<vmem>>, vector<16x120xf32>
    %cst_62 = arith.constant dense<0.000000e+00> : vector<1x120xf32>
    %111 = tpu.matmul %109, %110, %cst_62 {dimension_numbers = #tpu.dot_dimension_numbers<[1], [0], [0], [1], [0, 0, 1, 1], [], []>} : vector<1x16xf32>, vector<16x120xf32>, vector<1x120xf32> -> vector<1x120xf32>
    %112 = arith.addf %108, %111 : vector<1x120xf32>
    %113 = vector.extract_strided_slice %100 {offsets = [3, 0], sizes = [1, 16], strides = [1, 1]} : vector<5x16xf32> to vector<1x16xf32>
    %c288 = arith.constant 288 : index
    %c0_63 = arith.constant 0 : index
    %114 = vector.load %arg5[%c288, %c0_63] : memref<400x120xf32, #tpu.memory_space<vmem>>, vector<16x120xf32>
    %cst_64 = arith.constant dense<0.000000e+00> : vector<1x120xf32>
    %115 = tpu.matmul %113, %114, %cst_64 {dimension_numbers = #tpu.dot_dimension_numbers<[1], [0], [0], [1], [0, 0, 1, 1], [], []>} : vector<1x16xf32>, vector<16x120xf32>, vector<1x120xf32> -> vector<1x120xf32>
    %116 = arith.addf %112, %115 : vector<1x120xf32>
    %117 = vector.extract_strided_slice %100 {offsets = [4, 0], sizes = [1, 16], strides = [1, 1]} : vector<5x16xf32> to vector<1x16xf32>
    %c304 = arith.constant 304 : index
    %c0_65 = arith.constant 0 : index
    %118 = vector.load %arg5[%c304, %c0_65] : memref<400x120xf32, #tpu.memory_space<vmem>>, vector<16x120xf32>
    %cst_66 = arith.constant dense<0.000000e+00> : vector<1x120xf32>
    %119 = tpu.matmul %117, %118, %cst_66 {dimension_numbers = #tpu.dot_dimension_numbers<[1], [0], [0], [1], [0, 0, 1, 1], [], []>} : vector<1x16xf32>, vector<16x120xf32>, vector<1x120xf32> -> vector<1x120xf32>
    %120 = arith.addf %116, %119 : vector<1x120xf32>
    %c4 = arith.constant 4 : index
    %c0_67 = arith.constant 0 : index
    %c0_68 = arith.constant 0 : index
    %121 = vector.load %arg13[%c4, %c0_67, %c0_68] : memref<10x5x16xf32, #tpu.memory_space<vmem>>, vector<1x5x16xf32>
    %122 = vector.shape_cast %121 : vector<1x5x16xf32> to vector<5x16xf32>
    %123 = vector.extract_strided_slice %122 {offsets = [0, 0], sizes = [1, 16], strides = [1, 1]} : vector<5x16xf32> to vector<1x16xf32>
    %c320 = arith.constant 320 : index
    %c0_69 = arith.constant 0 : index
    %124 = vector.load %arg5[%c320, %c0_69] : memref<400x120xf32, #tpu.memory_space<vmem>>, vector<16x120xf32>
    %cst_70 = arith.constant dense<0.000000e+00> : vector<1x120xf32>
    %125 = tpu.matmul %123, %124, %cst_70 {dimension_numbers = #tpu.dot_dimension_numbers<[1], [0], [0], [1], [0, 0, 1, 1], [], []>} : vector<1x16xf32>, vector<16x120xf32>, vector<1x120xf32> -> vector<1x120xf32>
    %126 = arith.addf %120, %125 : vector<1x120xf32>
    %127 = vector.extract_strided_slice %122 {offsets = [1, 0], sizes = [1, 16], strides = [1, 1]} : vector<5x16xf32> to vector<1x16xf32>
    %c336 = arith.constant 336 : index
    %c0_71 = arith.constant 0 : index
    %128 = vector.load %arg5[%c336, %c0_71] : memref<400x120xf32, #tpu.memory_space<vmem>>, vector<16x120xf32>
    %cst_72 = arith.constant dense<0.000000e+00> : vector<1x120xf32>
    %129 = tpu.matmul %127, %128, %cst_72 {dimension_numbers = #tpu.dot_dimension_numbers<[1], [0], [0], [1], [0, 0, 1, 1], [], []>} : vector<1x16xf32>, vector<16x120xf32>, vector<1x120xf32> -> vector<1x120xf32>
    %130 = arith.addf %126, %129 : vector<1x120xf32>
    %131 = vector.extract_strided_slice %122 {offsets = [2, 0], sizes = [1, 16], strides = [1, 1]} : vector<5x16xf32> to vector<1x16xf32>
    %c352 = arith.constant 352 : index
    %c0_73 = arith.constant 0 : index
    %132 = vector.load %arg5[%c352, %c0_73] : memref<400x120xf32, #tpu.memory_space<vmem>>, vector<16x120xf32>
    %cst_74 = arith.constant dense<0.000000e+00> : vector<1x120xf32>
    %133 = tpu.matmul %131, %132, %cst_74 {dimension_numbers = #tpu.dot_dimension_numbers<[1], [0], [0], [1], [0, 0, 1, 1], [], []>} : vector<1x16xf32>, vector<16x120xf32>, vector<1x120xf32> -> vector<1x120xf32>
    %134 = arith.addf %130, %133 : vector<1x120xf32>
    %135 = vector.extract_strided_slice %122 {offsets = [3, 0], sizes = [1, 16], strides = [1, 1]} : vector<5x16xf32> to vector<1x16xf32>
    %c368 = arith.constant 368 : index
    %c0_75 = arith.constant 0 : index
    %136 = vector.load %arg5[%c368, %c0_75] : memref<400x120xf32, #tpu.memory_space<vmem>>, vector<16x120xf32>
    %cst_76 = arith.constant dense<0.000000e+00> : vector<1x120xf32>
    %137 = tpu.matmul %135, %136, %cst_76 {dimension_numbers = #tpu.dot_dimension_numbers<[1], [0], [0], [1], [0, 0, 1, 1], [], []>} : vector<1x16xf32>, vector<16x120xf32>, vector<1x120xf32> -> vector<1x120xf32>
    %138 = arith.addf %134, %137 : vector<1x120xf32>
    %139 = vector.extract_strided_slice %122 {offsets = [4, 0], sizes = [1, 16], strides = [1, 1]} : vector<5x16xf32> to vector<1x16xf32>
    %c384 = arith.constant 384 : index
    %c0_77 = arith.constant 0 : index
    %140 = vector.load %arg5[%c384, %c0_77] : memref<400x120xf32, #tpu.memory_space<vmem>>, vector<16x120xf32>
    %cst_78 = arith.constant dense<0.000000e+00> : vector<1x120xf32>
    %141 = tpu.matmul %139, %140, %cst_78 {dimension_numbers = #tpu.dot_dimension_numbers<[1], [0], [0], [1], [0, 0, 1, 1], [], []>} : vector<1x16xf32>, vector<16x120xf32>, vector<1x120xf32> -> vector<1x120xf32>
    %142 = arith.addf %138, %141 : vector<1x120xf32>
    %cst_79 = arith.constant 0.000000e+00 : f32
    %143 = vector.broadcast %cst_79 : f32 to vector<1x120xf32>
    %144 = arith.maximumf %142, %143 : vector<1x120xf32>
    %c0_80 = arith.constant 0 : index
    %c0_81 = arith.constant 0 : index
    %145 = vector.load %arg7[%c0_80, %c0_81] : memref<120x84xf32, #tpu.memory_space<vmem>>, vector<120x84xf32>
    %cst_82 = arith.constant dense<0.000000e+00> : vector<1x84xf32>
    %146 = tpu.matmul %144, %145, %cst_82 {dimension_numbers = #tpu.dot_dimension_numbers<[1], [0], [0], [1], [0, 0, 1, 1], [], []>} : vector<1x120xf32>, vector<120x84xf32>, vector<1x84xf32> -> vector<1x84xf32>
    %c0_83 = arith.constant 0 : index
    %c0_84 = arith.constant 0 : index
    %147 = vector.load %arg8[%c0_83, %c0_84] : memref<1x84xf32, #tpu.memory_space<vmem>>, vector<1x84xf32>
    %148 = arith.addf %146, %147 : vector<1x84xf32>
    %cst_85 = arith.constant 0.000000e+00 : f32
    %149 = vector.broadcast %cst_85 : f32 to vector<1x84xf32>
    %150 = arith.maximumf %148, %149 : vector<1x84xf32>
    %c0_86 = arith.constant 0 : index
    %c0_87 = arith.constant 0 : index
    %151 = vector.load %arg9[%c0_86, %c0_87] : memref<84x10xf32, #tpu.memory_space<vmem>>, vector<84x10xf32>
    %cst_88 = arith.constant dense<0.000000e+00> : vector<1x10xf32>
    %152 = tpu.matmul %150, %151, %cst_88 {dimension_numbers = #tpu.dot_dimension_numbers<[1], [0], [0], [1], [0, 0, 1, 1], [], []>} : vector<1x84xf32>, vector<84x10xf32>, vector<1x10xf32> -> vector<1x10xf32>
    %c0_89 = arith.constant 0 : index
    %c0_90 = arith.constant 0 : index
    %153 = vector.load %arg10[%c0_89, %c0_90] : memref<1x10xf32, #tpu.memory_space<vmem>>, vector<1x10xf32>
    %154 = arith.addf %152, %153 : vector<1x10xf32>
    %c0_91 = arith.constant 0 : index
    %c0_92 = arith.constant 0 : index
    %155 = vector.load %arg11[%c0_91, %c0_92] : memref<2x10xf32, #tpu.memory_space<vmem>>, vector<1x10xf32>
    tpu.vector_store %arg11[%c0_91, %c0_92], %154 {strides = array<i32>} : memref<2x10xf32, #tpu.memory_space<vmem>>, vector<1x10xf32>,
    %c0_93 = arith.constant 0 : index
    %c0_94 = arith.constant 0 : index
    %156 = vector.load %arg6[%c0_93, %c0_94] : memref<1x120xf32, #tpu.memory_space<vmem>>, vector<1x120xf32>
    %c5 = arith.constant 5 : index
    %c0_95 = arith.constant 0 : index
    %c0_96 = arith.constant 0 : index
    %157 = vector.load %arg13[%c5, %c0_95, %c0_96] : memref<10x5x16xf32, #tpu.memory_space<vmem>>, vector<1x5x16xf32>
    %158 = vector.shape_cast %157 : vector<1x5x16xf32> to vector<5x16xf32>
    %159 = vector.extract_strided_slice %158 {offsets = [0, 0], sizes = [1, 16], strides = [1, 1]} : vector<5x16xf32> to vector<1x16xf32>
    %c0_97 = arith.constant 0 : index
    %c0_98 = arith.constant 0 : index
    %160 = vector.load %arg5[%c0_97, %c0_98] : memref<400x120xf32, #tpu.memory_space<vmem>>, vector<16x120xf32>
    %cst_99 = arith.constant dense<0.000000e+00> : vector<1x120xf32>
    %161 = tpu.matmul %159, %160, %cst_99 {dimension_numbers = #tpu.dot_dimension_numbers<[1], [0], [0], [1], [0, 0, 1, 1], [], []>} : vector<1x16xf32>, vector<16x120xf32>, vector<1x120xf32> -> vector<1x120xf32>
    %162 = arith.addf %156, %161 : vector<1x120xf32>
    %163 = vector.extract_strided_slice %158 {offsets = [1, 0], sizes = [1, 16], strides = [1, 1]} : vector<5x16xf32> to vector<1x16xf32>
    %c16_100 = arith.constant 16 : index
    %c0_101 = arith.constant 0 : index
    %164 = vector.load %arg5[%c16_100, %c0_101] : memref<400x120xf32, #tpu.memory_space<vmem>>, vector<16x120xf32>
    %cst_102 = arith.constant dense<0.000000e+00> : vector<1x120xf32>
    %165 = tpu.matmul %163, %164, %cst_102 {dimension_numbers = #tpu.dot_dimension_numbers<[1], [0], [0], [1], [0, 0, 1, 1], [], []>} : vector<1x16xf32>, vector<16x120xf32>, vector<1x120xf32> -> vector<1x120xf32>
    %166 = arith.addf %162, %165 : vector<1x120xf32>
    %167 = vector.extract_strided_slice %158 {offsets = [2, 0], sizes = [1, 16], strides = [1, 1]} : vector<5x16xf32> to vector<1x16xf32>
    %c32_103 = arith.constant 32 : index
    %c0_104 = arith.constant 0 : index
    %168 = vector.load %arg5[%c32_103, %c0_104] : memref<400x120xf32, #tpu.memory_space<vmem>>, vector<16x120xf32>
    %cst_105 = arith.constant dense<0.000000e+00> : vector<1x120xf32>
    %169 = tpu.matmul %167, %168, %cst_105 {dimension_numbers = #tpu.dot_dimension_numbers<[1], [0], [0], [1], [0, 0, 1, 1], [], []>} : vector<1x16xf32>, vector<16x120xf32>, vector<1x120xf32> -> vector<1x120xf32>
    %170 = arith.addf %166, %169 : vector<1x120xf32>
    %171 = vector.extract_strided_slice %158 {offsets = [3, 0], sizes = [1, 16], strides = [1, 1]} : vector<5x16xf32> to vector<1x16xf32>
    %c48_106 = arith.constant 48 : index
    %c0_107 = arith.constant 0 : index
    %172 = vector.load %arg5[%c48_106, %c0_107] : memref<400x120xf32, #tpu.memory_space<vmem>>, vector<16x120xf32>
    %cst_108 = arith.constant dense<0.000000e+00> : vector<1x120xf32>
    %173 = tpu.matmul %171, %172, %cst_108 {dimension_numbers = #tpu.dot_dimension_numbers<[1], [0], [0], [1], [0, 0, 1, 1], [], []>} : vector<1x16xf32>, vector<16x120xf32>, vector<1x120xf32> -> vector<1x120xf32>
    %174 = arith.addf %170, %173 : vector<1x120xf32>
    %175 = vector.extract_strided_slice %158 {offsets = [4, 0], sizes = [1, 16], strides = [1, 1]} : vector<5x16xf32> to vector<1x16xf32>
    %c64_109 = arith.constant 64 : index
    %c0_110 = arith.constant 0 : index
    %176 = vector.load %arg5[%c64_109, %c0_110] : memref<400x120xf32, #tpu.memory_space<vmem>>, vector<16x120xf32>
    %cst_111 = arith.constant dense<0.000000e+00> : vector<1x120xf32>
    %177 = tpu.matmul %175, %176, %cst_111 {dimension_numbers = #tpu.dot_dimension_numbers<[1], [0], [0], [1], [0, 0, 1, 1], [], []>} : vector<1x16xf32>, vector<16x120xf32>, vector<1x120xf32> -> vector<1x120xf32>
    %178 = arith.addf %174, %177 : vector<1x120xf32>
    %c6 = arith.constant 6 : index
    %c0_112 = arith.constant 0 : index
    %c0_113 = arith.constant 0 : index
    %179 = vector.load %arg13[%c6, %c0_112, %c0_113] : memref<10x5x16xf32, #tpu.memory_space<vmem>>, vector<1x5x16xf32>
    %180 = vector.shape_cast %179 : vector<1x5x16xf32> to vector<5x16xf32>
    %181 = vector.extract_strided_slice %180 {offsets = [0, 0], sizes = [1, 16], strides = [1, 1]} : vector<5x16xf32> to vector<1x16xf32>
    %c80_114 = arith.constant 80 : index
    %c0_115 = arith.constant 0 : index
    %182 = vector.load %arg5[%c80_114, %c0_115] : memref<400x120xf32, #tpu.memory_space<vmem>>, vector<16x120xf32>
    %cst_116 = arith.constant dense<0.000000e+00> : vector<1x120xf32>
    %183 = tpu.matmul %181, %182, %cst_116 {dimension_numbers = #tpu.dot_dimension_numbers<[1], [0], [0], [1], [0, 0, 1, 1], [], []>} : vector<1x16xf32>, vector<16x120xf32>, vector<1x120xf32> -> vector<1x120xf32>
    %184 = arith.addf %178, %183 : vector<1x120xf32>
    %185 = vector.extract_strided_slice %180 {offsets = [1, 0], sizes = [1, 16], strides = [1, 1]} : vector<5x16xf32> to vector<1x16xf32>
    %c96_117 = arith.constant 96 : index
    %c0_118 = arith.constant 0 : index
    %186 = vector.load %arg5[%c96_117, %c0_118] : memref<400x120xf32, #tpu.memory_space<vmem>>, vector<16x120xf32>
    %cst_119 = arith.constant dense<0.000000e+00> : vector<1x120xf32>
    %187 = tpu.matmul %185, %186, %cst_119 {dimension_numbers = #tpu.dot_dimension_numbers<[1], [0], [0], [1], [0, 0, 1, 1], [], []>} : vector<1x16xf32>, vector<16x120xf32>, vector<1x120xf32> -> vector<1x120xf32>
    %188 = arith.addf %184, %187 : vector<1x120xf32>
    %189 = vector.extract_strided_slice %180 {offsets = [2, 0], sizes = [1, 16], strides = [1, 1]} : vector<5x16xf32> to vector<1x16xf32>
    %c112_120 = arith.constant 112 : index
    %c0_121 = arith.constant 0 : index
    %190 = vector.load %arg5[%c112_120, %c0_121] : memref<400x120xf32, #tpu.memory_space<vmem>>, vector<16x120xf32>
    %cst_122 = arith.constant dense<0.000000e+00> : vector<1x120xf32>
    %191 = tpu.matmul %189, %190, %cst_122 {dimension_numbers = #tpu.dot_dimension_numbers<[1], [0], [0], [1], [0, 0, 1, 1], [], []>} : vector<1x16xf32>, vector<16x120xf32>, vector<1x120xf32> -> vector<1x120xf32>
    %192 = arith.addf %188, %191 : vector<1x120xf32>
    %193 = vector.extract_strided_slice %180 {offsets = [3, 0], sizes = [1, 16], strides = [1, 1]} : vector<5x16xf32> to vector<1x16xf32>
    %c128_123 = arith.constant 128 : index
    %c0_124 = arith.constant 0 : index
    %194 = vector.load %arg5[%c128_123, %c0_124] : memref<400x120xf32, #tpu.memory_space<vmem>>, vector<16x120xf32>
    %cst_125 = arith.constant dense<0.000000e+00> : vector<1x120xf32>
    %195 = tpu.matmul %193, %194, %cst_125 {dimension_numbers = #tpu.dot_dimension_numbers<[1], [0], [0], [1], [0, 0, 1, 1], [], []>} : vector<1x16xf32>, vector<16x120xf32>, vector<1x120xf32> -> vector<1x120xf32>
    %196 = arith.addf %192, %195 : vector<1x120xf32>
    %197 = vector.extract_strided_slice %180 {offsets = [4, 0], sizes = [1, 16], strides = [1, 1]} : vector<5x16xf32> to vector<1x16xf32>
    %c144_126 = arith.constant 144 : index
    %c0_127 = arith.constant 0 : index
    %198 = vector.load %arg5[%c144_126, %c0_127] : memref<400x120xf32, #tpu.memory_space<vmem>>, vector<16x120xf32>
    %cst_128 = arith.constant dense<0.000000e+00> : vector<1x120xf32>
    %199 = tpu.matmul %197, %198, %cst_128 {dimension_numbers = #tpu.dot_dimension_numbers<[1], [0], [0], [1], [0, 0, 1, 1], [], []>} : vector<1x16xf32>, vector<16x120xf32>, vector<1x120xf32> -> vector<1x120xf32>
    %200 = arith.addf %196, %199 : vector<1x120xf32>
    %c7 = arith.constant 7 : index
    %c0_129 = arith.constant 0 : index
    %c0_130 = arith.constant 0 : index
    %201 = vector.load %arg13[%c7, %c0_129, %c0_130] : memref<10x5x16xf32, #tpu.memory_space<vmem>>, vector<1x5x16xf32>
    %202 = vector.shape_cast %201 : vector<1x5x16xf32> to vector<5x16xf32>
    %203 = vector.extract_strided_slice %202 {offsets = [0, 0], sizes = [1, 16], strides = [1, 1]} : vector<5x16xf32> to vector<1x16xf32>
    %c160_131 = arith.constant 160 : index
    %c0_132 = arith.constant 0 : index
    %204 = vector.load %arg5[%c160_131, %c0_132] : memref<400x120xf32, #tpu.memory_space<vmem>>, vector<16x120xf32>
    %cst_133 = arith.constant dense<0.000000e+00> : vector<1x120xf32>
    %205 = tpu.matmul %203, %204, %cst_133 {dimension_numbers = #tpu.dot_dimension_numbers<[1], [0], [0], [1], [0, 0, 1, 1], [], []>} : vector<1x16xf32>, vector<16x120xf32>, vector<1x120xf32> -> vector<1x120xf32>
    %206 = arith.addf %200, %205 : vector<1x120xf32>
    %207 = vector.extract_strided_slice %202 {offsets = [1, 0], sizes = [1, 16], strides = [1, 1]} : vector<5x16xf32> to vector<1x16xf32>
    %c176_134 = arith.constant 176 : index
    %c0_135 = arith.constant 0 : index
    %208 = vector.load %arg5[%c176_134, %c0_135] : memref<400x120xf32, #tpu.memory_space<vmem>>, vector<16x120xf32>
    %cst_136 = arith.constant dense<0.000000e+00> : vector<1x120xf32>
    %209 = tpu.matmul %207, %208, %cst_136 {dimension_numbers = #tpu.dot_dimension_numbers<[1], [0], [0], [1], [0, 0, 1, 1], [], []>} : vector<1x16xf32>, vector<16x120xf32>, vector<1x120xf32> -> vector<1x120xf32>
    %210 = arith.addf %206, %209 : vector<1x120xf32>
    %211 = vector.extract_strided_slice %202 {offsets = [2, 0], sizes = [1, 16], strides = [1, 1]} : vector<5x16xf32> to vector<1x16xf32>
    %c192_137 = arith.constant 192 : index
    %c0_138 = arith.constant 0 : index
    %212 = vector.load %arg5[%c192_137, %c0_138] : memref<400x120xf32, #tpu.memory_space<vmem>>, vector<16x120xf32>
    %cst_139 = arith.constant dense<0.000000e+00> : vector<1x120xf32>
    %213 = tpu.matmul %211, %212, %cst_139 {dimension_numbers = #tpu.dot_dimension_numbers<[1], [0], [0], [1], [0, 0, 1, 1], [], []>} : vector<1x16xf32>, vector<16x120xf32>, vector<1x120xf32> -> vector<1x120xf32>
    %214 = arith.addf %210, %213 : vector<1x120xf32>
    %215 = vector.extract_strided_slice %202 {offsets = [3, 0], sizes = [1, 16], strides = [1, 1]} : vector<5x16xf32> to vector<1x16xf32>
    %c208_140 = arith.constant 208 : index
    %c0_141 = arith.constant 0 : index
    %216 = vector.load %arg5[%c208_140, %c0_141] : memref<400x120xf32, #tpu.memory_space<vmem>>, vector<16x120xf32>
    %cst_142 = arith.constant dense<0.000000e+00> : vector<1x120xf32>
    %217 = tpu.matmul %215, %216, %cst_142 {dimension_numbers = #tpu.dot_dimension_numbers<[1], [0], [0], [1], [0, 0, 1, 1], [], []>} : vector<1x16xf32>, vector<16x120xf32>, vector<1x120xf32> -> vector<1x120xf32>
    %218 = arith.addf %214, %217 : vector<1x120xf32>
    %219 = vector.extract_strided_slice %202 {offsets = [4, 0], sizes = [1, 16], strides = [1, 1]} : vector<5x16xf32> to vector<1x16xf32>
    %c224_143 = arith.constant 224 : index
    %c0_144 = arith.constant 0 : index
    %220 = vector.load %arg5[%c224_143, %c0_144] : memref<400x120xf32, #tpu.memory_space<vmem>>, vector<16x120xf32>
    %cst_145 = arith.constant dense<0.000000e+00> : vector<1x120xf32>
    %221 = tpu.matmul %219, %220, %cst_145 {dimension_numbers = #tpu.dot_dimension_numbers<[1], [0], [0], [1], [0, 0, 1, 1], [], []>} : vector<1x16xf32>, vector<16x120xf32>, vector<1x120xf32> -> vector<1x120xf32>
    %222 = arith.addf %218, %221 : vector<1x120xf32>
    %c8 = arith.constant 8 : index
    %c0_146 = arith.constant 0 : index
    %c0_147 = arith.constant 0 : index
    %223 = vector.load %arg13[%c8, %c0_146, %c0_147] : memref<10x5x16xf32, #tpu.memory_space<vmem>>, vector<1x5x16xf32>
    %224 = vector.shape_cast %223 : vector<1x5x16xf32> to vector<5x16xf32>
    %225 = vector.extract_strided_slice %224 {offsets = [0, 0], sizes = [1, 16], strides = [1, 1]} : vector<5x16xf32> to vector<1x16xf32>
    %c240_148 = arith.constant 240 : index
    %c0_149 = arith.constant 0 : index
    %226 = vector.load %arg5[%c240_148, %c0_149] : memref<400x120xf32, #tpu.memory_space<vmem>>, vector<16x120xf32>
    %cst_150 = arith.constant dense<0.000000e+00> : vector<1x120xf32>
    %227 = tpu.matmul %225, %226, %cst_150 {dimension_numbers = #tpu.dot_dimension_numbers<[1], [0], [0], [1], [0, 0, 1, 1], [], []>} : vector<1x16xf32>, vector<16x120xf32>, vector<1x120xf32> -> vector<1x120xf32>
    %228 = arith.addf %222, %227 : vector<1x120xf32>
    %229 = vector.extract_strided_slice %224 {offsets = [1, 0], sizes = [1, 16], strides = [1, 1]} : vector<5x16xf32> to vector<1x16xf32>
    %c256_151 = arith.constant 256 : index
    %c0_152 = arith.constant 0 : index
    %230 = vector.load %arg5[%c256_151, %c0_152] : memref<400x120xf32, #tpu.memory_space<vmem>>, vector<16x120xf32>
    %cst_153 = arith.constant dense<0.000000e+00> : vector<1x120xf32>
    %231 = tpu.matmul %229, %230, %cst_153 {dimension_numbers = #tpu.dot_dimension_numbers<[1], [0], [0], [1], [0, 0, 1, 1], [], []>} : vector<1x16xf32>, vector<16x120xf32>, vector<1x120xf32> -> vector<1x120xf32>
    %232 = arith.addf %228, %231 : vector<1x120xf32>
    %233 = vector.extract_strided_slice %224 {offsets = [2, 0], sizes = [1, 16], strides = [1, 1]} : vector<5x16xf32> to vector<1x16xf32>
    %c272_154 = arith.constant 272 : index
    %c0_155 = arith.constant 0 : index
    %234 = vector.load %arg5[%c272_154, %c0_155] : memref<400x120xf32, #tpu.memory_space<vmem>>, vector<16x120xf32>
    %cst_156 = arith.constant dense<0.000000e+00> : vector<1x120xf32>
    %235 = tpu.matmul %233, %234, %cst_156 {dimension_numbers = #tpu.dot_dimension_numbers<[1], [0], [0], [1], [0, 0, 1, 1], [], []>} : vector<1x16xf32>, vector<16x120xf32>, vector<1x120xf32> -> vector<1x120xf32>
    %236 = arith.addf %232, %235 : vector<1x120xf32>
    %237 = vector.extract_strided_slice %224 {offsets = [3, 0], sizes = [1, 16], strides = [1, 1]} : vector<5x16xf32> to vector<1x16xf32>
    %c288_157 = arith.constant 288 : index
    %c0_158 = arith.constant 0 : index
    %238 = vector.load %arg5[%c288_157, %c0_158] : memref<400x120xf32, #tpu.memory_space<vmem>>, vector<16x120xf32>
    %cst_159 = arith.constant dense<0.000000e+00> : vector<1x120xf32>
    %239 = tpu.matmul %237, %238, %cst_159 {dimension_numbers = #tpu.dot_dimension_numbers<[1], [0], [0], [1], [0, 0, 1, 1], [], []>} : vector<1x16xf32>, vector<16x120xf32>, vector<1x120xf32> -> vector<1x120xf32>
    %240 = arith.addf %236, %239 : vector<1x120xf32>
    %241 = vector.extract_strided_slice %224 {offsets = [4, 0], sizes = [1, 16], strides = [1, 1]} : vector<5x16xf32> to vector<1x16xf32>
    %c304_160 = arith.constant 304 : index
    %c0_161 = arith.constant 0 : index
    %242 = vector.load %arg5[%c304_160, %c0_161] : memref<400x120xf32, #tpu.memory_space<vmem>>, vector<16x120xf32>
    %cst_162 = arith.constant dense<0.000000e+00> : vector<1x120xf32>
    %243 = tpu.matmul %241, %242, %cst_162 {dimension_numbers = #tpu.dot_dimension_numbers<[1], [0], [0], [1], [0, 0, 1, 1], [], []>} : vector<1x16xf32>, vector<16x120xf32>, vector<1x120xf32> -> vector<1x120xf32>
    %244 = arith.addf %240, %243 : vector<1x120xf32>
    %c9 = arith.constant 9 : index
    %c0_163 = arith.constant 0 : index
    %c0_164 = arith.constant 0 : index
    %245 = vector.load %arg13[%c9, %c0_163, %c0_164] : memref<10x5x16xf32, #tpu.memory_space<vmem>>, vector<1x5x16xf32>
    %246 = vector.shape_cast %245 : vector<1x5x16xf32> to vector<5x16xf32>
    %247 = vector.extract_strided_slice %246 {offsets = [0, 0], sizes = [1, 16], strides = [1, 1]} : vector<5x16xf32> to vector<1x16xf32>
    %c320_165 = arith.constant 320 : index
    %c0_166 = arith.constant 0 : index
    %248 = vector.load %arg5[%c320_165, %c0_166] : memref<400x120xf32, #tpu.memory_space<vmem>>, vector<16x120xf32>
    %cst_167 = arith.constant dense<0.000000e+00> : vector<1x120xf32>
    %249 = tpu.matmul %247, %248, %cst_167 {dimension_numbers = #tpu.dot_dimension_numbers<[1], [0], [0], [1], [0, 0, 1, 1], [], []>} : vector<1x16xf32>, vector<16x120xf32>, vector<1x120xf32> -> vector<1x120xf32>
    %250 = arith.addf %244, %249 : vector<1x120xf32>
    %251 = vector.extract_strided_slice %246 {offsets = [1, 0], sizes = [1, 16], strides = [1, 1]} : vector<5x16xf32> to vector<1x16xf32>
    %c336_168 = arith.constant 336 : index
    %c0_169 = arith.constant 0 : index
    %252 = vector.load %arg5[%c336_168, %c0_169] : memref<400x120xf32, #tpu.memory_space<vmem>>, vector<16x120xf32>
    %cst_170 = arith.constant dense<0.000000e+00> : vector<1x120xf32>
    %253 = tpu.matmul %251, %252, %cst_170 {dimension_numbers = #tpu.dot_dimension_numbers<[1], [0], [0], [1], [0, 0, 1, 1], [], []>} : vector<1x16xf32>, vector<16x120xf32>, vector<1x120xf32> -> vector<1x120xf32>
    %254 = arith.addf %250, %253 : vector<1x120xf32>
    %255 = vector.extract_strided_slice %246 {offsets = [2, 0], sizes = [1, 16], strides = [1, 1]} : vector<5x16xf32> to vector<1x16xf32>
    %c352_171 = arith.constant 352 : index
    %c0_172 = arith.constant 0 : index
    %256 = vector.load %arg5[%c352_171, %c0_172] : memref<400x120xf32, #tpu.memory_space<vmem>>, vector<16x120xf32>
    %cst_173 = arith.constant dense<0.000000e+00> : vector<1x120xf32>
    %257 = tpu.matmul %255, %256, %cst_173 {dimension_numbers = #tpu.dot_dimension_numbers<[1], [0], [0], [1], [0, 0, 1, 1], [], []>} : vector<1x16xf32>, vector<16x120xf32>, vector<1x120xf32> -> vector<1x120xf32>
    %258 = arith.addf %254, %257 : vector<1x120xf32>
    %259 = vector.extract_strided_slice %246 {offsets = [3, 0], sizes = [1, 16], strides = [1, 1]} : vector<5x16xf32> to vector<1x16xf32>
    %c368_174 = arith.constant 368 : index
    %c0_175 = arith.constant 0 : index
    %260 = vector.load %arg5[%c368_174, %c0_175] : memref<400x120xf32, #tpu.memory_space<vmem>>, vector<16x120xf32>
    %cst_176 = arith.constant dense<0.000000e+00> : vector<1x120xf32>
    %261 = tpu.matmul %259, %260, %cst_176 {dimension_numbers = #tpu.dot_dimension_numbers<[1], [0], [0], [1], [0, 0, 1, 1], [], []>} : vector<1x16xf32>, vector<16x120xf32>, vector<1x120xf32> -> vector<1x120xf32>
    %262 = arith.addf %258, %261 : vector<1x120xf32>
    %263 = vector.extract_strided_slice %246 {offsets = [4, 0], sizes = [1, 16], strides = [1, 1]} : vector<5x16xf32> to vector<1x16xf32>
    %c384_177 = arith.constant 384 : index
    %c0_178 = arith.constant 0 : index
    %264 = vector.load %arg5[%c384_177, %c0_178] : memref<400x120xf32, #tpu.memory_space<vmem>>, vector<16x120xf32>
    %cst_179 = arith.constant dense<0.000000e+00> : vector<1x120xf32>
    %265 = tpu.matmul %263, %264, %cst_179 {dimension_numbers = #tpu.dot_dimension_numbers<[1], [0], [0], [1], [0, 0, 1, 1], [], []>} : vector<1x16xf32>, vector<16x120xf32>, vector<1x120xf32> -> vector<1x120xf32>
    %266 = arith.addf %262, %265 : vector<1x120xf32>
    %cst_180 = arith.constant 0.000000e+00 : f32
    %267 = vector.broadcast %cst_180 : f32 to vector<1x120xf32>
    %268 = arith.maximumf %266, %267 : vector<1x120xf32>
    %c0_181 = arith.constant 0 : index
    %c0_182 = arith.constant 0 : index
    %269 = vector.load %arg7[%c0_181, %c0_182] : memref<120x84xf32, #tpu.memory_space<vmem>>, vector<120x84xf32>
    %cst_183 = arith.constant dense<0.000000e+00> : vector<1x84xf32>
    %270 = tpu.matmul %268, %269, %cst_183 {dimension_numbers = #tpu.dot_dimension_numbers<[1], [0], [0], [1], [0, 0, 1, 1], [], []>} : vector<1x120xf32>, vector<120x84xf32>, vector<1x84xf32> -> vector<1x84xf32>
    %c0_184 = arith.constant 0 : index
    %c0_185 = arith.constant 0 : index
    %271 = vector.load %arg8[%c0_184, %c0_185] : memref<1x84xf32, #tpu.memory_space<vmem>>, vector<1x84xf32>
    %272 = arith.addf %270, %271 : vector<1x84xf32>
    %cst_186 = arith.constant 0.000000e+00 : f32
    %273 = vector.broadcast %cst_186 : f32 to vector<1x84xf32>
    %274 = arith.maximumf %272, %273 : vector<1x84xf32>
    %c0_187 = arith.constant 0 : index
    %c0_188 = arith.constant 0 : index
    %275 = vector.load %arg9[%c0_187, %c0_188] : memref<84x10xf32, #tpu.memory_space<vmem>>, vector<84x10xf32>
    %cst_189 = arith.constant dense<0.000000e+00> : vector<1x10xf32>
    %276 = tpu.matmul %274, %275, %cst_189 {dimension_numbers = #tpu.dot_dimension_numbers<[1], [0], [0], [1], [0, 0, 1, 1], [], []>} : vector<1x84xf32>, vector<84x10xf32>, vector<1x10xf32> -> vector<1x10xf32>
    %c0_190 = arith.constant 0 : index
    %c0_191 = arith.constant 0 : index
    %277 = vector.load %arg10[%c0_190, %c0_191] : memref<1x10xf32, #tpu.memory_space<vmem>>, vector<1x10xf32>
    %278 = arith.addf %276, %277 : vector<1x10xf32>
    %c1_192 = arith.constant 1 : index
    %c0_193 = arith.constant 0 : index
    %279 = vector.load %arg11[%c1_192, %c0_193] : memref<2x10xf32, #tpu.memory_space<vmem>>, vector<1x10xf32>
    tpu.vector_store %arg11[%c1_192, %c0_193], %278 {strides = array<i32>} : memref<2x10xf32, #tpu.memory_space<vmem>>, vector<1x10xf32>,
    return
  }
}

</mosaic_0001>

<bundles_post_ra>
// kernel: forward.1
= control target key start
LH: loop header
LB: loop body
LE: loop exit
PB: predicated region body
PF: predicated region fallthrough
CT: control target
= control target key end

     0   :  { %16 = vsyncpa [#allocation6], 0  ;;  %v39_v0 = vlaneseq  ;;  %v14926_v7 = vmov 0.0   ;;  %s10771_s17 = smov 0   ;;  %s14912_s0 = inlined_call_operand.vmem [shape: f32[64,32,3], index: 0, kind: input, shape index: {}]   ;;  %s14913_s1 = inlined_call_operand.vmem [shape: f32[75,6], index: 1, kind: input, shape index: {}]   ;;  %s14914_s2 = inlined_call_operand.vmem [shape: f32[1,6], index: 2, kind: input, shape index: {}]   ;;  %s14915_s3 = inlined_call_operand.vmem [shape: f32[150,16], index: 3, kind: input, shape index: {}]   ;;  %s14916_s4 = inlined_call_operand.vmem [shape: f32[1,16], index: 4, kind: input, shape index: {}]   ;;  %s14917_s5 = inlined_call_operand.vmem [shape: f32[400,120], index: 5, kind: input, shape index: {}]   ;;  %s14918_s6 = inlined_call_operand.vmem [shape: f32[1,120], index: 6, kind: input, shape index: {}]   ;;  %s14919_s7 = inlined_call_operand.vmem [shape: f32[120,84], index: 7, kind: input, shape index: {}]   ;;  %s14920_s8 = inlined_call_operand.vmem [shape: f32[1,84], index: 8, kind: input, shape index: {}]   ;;  %s14921_s9 = inlined_call_operand.vmem [shape: f32[84,10], index: 9, kind: input, shape index: {}]   ;;  %s14922_s10 = inlined_call_operand.vmem [shape: f32[1,10], index: 10, kind: input, shape index: {}]   ;;  %s14923_s11 = inlined_call_operand.hbm [shape: f32[2,10], index: 11, kind: output, shape index: {}]  }
   0x2   :  { %v40_v1 = vshrl.u32 %v39_v0, 7  ;;  %v43_v2 = vand.u32 127, %v39_v0 }
   0x4   :  { %v41_v3 = vadd.s32 8, %v40_v1  ;;  %v44_v4 = vmul.u32 2, %v40_v1 }
   0x6   :  { %v45_v5 = vmul.u32 2, %v41_v3  ;;  %vm46_vm0 = vcmp.eq.s32.totalorder %v43_v2, %v44_v4  ;;  %v52_v6 = vadd.s32 1, %v44_v4 }
   0x7   :  { %v10760_v8 = vsel %vm46_vm0, 1.0, %v14926_v7 }
   0x8   :  { %15170 = vst [vmem:[#allocation8_spill] sm:$0xff] %v10760_v8  ;;  %vm47_vm1 = vcmp.eq.s32.totalorder %v43_v2, %v45_v5  ;;  %v53_v9 = vadd.s32 1, %v45_v5  ;;  %vm54_vm2 = vcmp.eq.s32.totalorder %v43_v2, %v52_v6 }
   0x9   :  { %v10763_v10 = vsel %vm47_vm1, 1.0, %v14926_v7  ;;  %v10766_v11 = vsel %vm54_vm2, 1.0, %v14926_v7 }
   0xa   :  { %15171 = vst [vmem:[#allocation9_spill] sm:$0xff] %v10763_v10  ;;  %15172 = vst [vmem:[#allocation10_spill] sm:$0xff] %v10766_v11  ;;  %vm55_vm3 = vcmp.eq.s32.totalorder %v43_v2, %v53_v9 }
   0xb   :  { %v10769_v12 = vsel %vm55_vm3, 1.0, %v14926_v7 }
   0xc   :  { %15173 = vst [vmem:[#allocation11_spill] sm:$0xff] %v10769_v12 }
   0xd LB: > { %s9443_s18 = sshll.u32 %s10582_s17, 6  ;;  %vm15069_vm4 = vcmask 23552   ;;  %vm14978_vm5 = vcmask 1046528   ;;  %vm14983_vm6 = vcmask 1045504   ;;  %s10597_s22 = smov 3   ;;  %vm15011_vm7 = vcmask 1044480   ;;  %s10582_s17 = sphi %s10771_s17, %s65_s17  }
   0xe   : > { %s10780_s21 = scalar_lea.vmem %s14912_s0, %s9443_s18  ;;  %s10598_s23 = smov 6   ;;  %vm14986_vm8 = vcmask 1043456   ;;  %vm15015_vm9 = vcmask 19456   ;;  %vm15016_vm10 = vcmask 48152   ;;  %vm15017_vm11 = vcmask 72752  }
   0xf   : > { %v69_v13 = vld [vmem:[%s10780_s21] sm:$0xff]  ;;  %v70_v14 = vld [vmem:[%s10780_s21 + $0x8] sm:$0xff]  ;;  %v10785_v15 = vld [vmem:[%s10780_s21 + $0x10] sm:$0xff]  ;;  %s10599_s24 = smov 9   ;;  %s10600_s25 = smov 12   ;;  %vm15019_vm12 = vcmask 97352  }
  0x10   : > { %v130_v16 = vrot.slane %v69_v13, 1  ;;  %v131_v17 = vrot.slane %v70_v14, 1  ;;  %v156_v18 = vrot.slane %v69_v13, 2  ;;  %v157_v19 = vrot.slane %v70_v14, 2  ;;  %120 = vst.msk [vmem:[#allocation4] sm:$0xff] %vm15069_vm4, %v69_v13  ;;  %121 = vst.msk [vmem:[#allocation4 + $0x10] sm:$0xff] %vm15069_vm4, %v70_v14 }
  0x11   : > { %122 = vst.msk [vmem:[#allocation4 + $0x20] sm:$0xff] %vm15069_vm4, %v10785_v15  ;;  %v133_v20 = vrot.slane %v10785_v15, 1  ;;  %v159_v21 = vrot.slane %v10785_v15, 2  ;;  %v182_v24 = vrot.slane %v69_v13, 3  ;;  %v183_v27 = vrot.slane %v70_v14, 3  ;;  %v10801_v29 = vld [vmem:[%s10780_s21 + $0x18] sm:$0xff] }
  0x12   : > { %v132_v22 = vsel %vm14978_vm5, %v130_v16, %v131_v17  ;;  %v158_v23 = vsel %vm14983_vm6, %v156_v18, %v157_v19  ;;  %v185_v28 = vrot.slane %v10785_v15, 3  ;;  %v208_v30 = vrot.slane %v69_v13, 4  ;;  %v10817_v39 = vld [vmem:[%s10780_s21 + $0x20] sm:$0xff]  ;;  %v10821_v41 = vld [vmem:[%s10780_s21 + $0x28] sm:$0xff]  ;;  %s10601_s26 = smov 15   ;;  %v10836_v47 = vld [vmem:[%s10780_s21 + $0x30] sm:$0xff] }
  0x13   : > { %137 = vrot.lane.b32.xlu0 %v132_v22, %s10597_s22  ;;  %163 = vrot.lane.b32.xlu1 %v158_v23, %s10598_s23  ;;  %v134_v25 = vsel %vm14978_vm5, %v131_v17, %v133_v20  ;;  %v160_v26 = vsel %vm14983_vm6, %v157_v19, %v159_v21  ;;  %v184_v31 = vsel %vm15011_vm7, %v182_v24, %v183_v27  ;;  %v209_v33 = vrot.slane %v70_v14, 4  ;;  %s10602_s27 = smov 18   ;;  %s10603_s28 = smov 21   ;;  %v10881_v0 = vld [vmem:[%s10780_s21 + $0x38] sm:$0xff]  ;;  %v10912_v9 = vld [vmem:[%s10780_s21 + $0x40] sm:$0xff] }
  0x14   : > { %v186_v32 = vsel %vm15011_vm7, %v183_v27, %v185_v28  ;;  %v135_v34 = vrot.slane %v10801_v29, 1  ;;  %v211_v37 = vrot.slane %v10785_v15, 4  ;;  %15174 = vst [vmem:[#allocation12_spill] sm:$0xff] %v10817_v39  ;;  %v161_v40 = vrot.slane %v10801_v29, 2  ;;  %15175 = vst [vmem:[#allocation13_spill] sm:$0xff] %v10821_v41  ;;  %s10604_s29 = smov 24  }
  0x15   : > { %v210_v35 = vsel %vm14986_vm8, %v208_v30, %v209_v33  ;;  %v255_v43 = vrot.slane %v10817_v39, 1  ;;  %v256_v44 = vrot.slane %v10821_v41, 1  ;;  %v187_v46 = vrot.slane %v10801_v29, 3  ;;  %15176 = vst [vmem:[#allocation14_spill] sm:$0xff] %v10836_v47  ;;  %124 = vst.msk [vmem:[#allocation4 + $0x30] sm:$0xf] %vm15015_vm9, %v10801_v29 }
  0x16   : > { %v136_v36 = vsel %vm14978_vm5, %v133_v20, %v135_v34  ;;  %v212_v38 = vsel %vm14986_vm8, %v209_v33, %v211_v37  ;;  %v162_v42 = vsel %vm14983_vm6, %v159_v21, %v161_v40  ;;  %v258_v49 = vrot.slane %v10836_v47, 1  ;;  %15177 = vst [vmem:[#allocation15_spill] sm:$0xff] %v10881_v0  ;;  %s14961_s30 = smov 27   ;;  %v10918_v14 = vld [vmem:[%s10780_s21 + $0x48] sm:$0xff]  ;;  %s14953_s12 = smov 30   ;;  %v10941_v20 = vld [vmem:[%s10780_s21 + $0x50] sm:$0xff] }
  0x17   : > { %139 = vrot.lane.b32.xlu0 %v134_v25, %s10597_s22  ;;  %165 = vrot.lane.b32.xlu1 %v160_v26, %s10598_s23  ;;  %v10832_v45 = vsel %vm14978_vm5, %v255_v43, %v256_v44  ;;  %v188_v48 = vsel %vm15011_vm7, %v185_v28, %v187_v46  ;;  %v280_v50 = vrot.slane %v10817_v39, 2  ;;  %v281_v51 = vrot.slane %v10821_v41, 2  ;;  %s14946_s13 = smov 33   ;;  %s14944_s14 = smov 36  }
  0x18   : > { %v10851_v52 = vsel %vm14978_vm5, %v256_v44, %v258_v49  ;;  %v213_v54 = vrot.slane %v10801_v29, 4  ;;  %v283_v56 = vrot.slane %v10836_v47, 2  ;;  %v305_v57 = vrot.slane %v10817_v39, 3  ;;  %s14924_s15 = smov 39   ;;  %s14928_s16 = smov 42  }
  0x19   : > { %v10854_v53 = vsel %vm14983_vm6, %v280_v50, %v281_v51  ;;  %v306_v58 = vrot.slane %v10821_v41, 3  ;;  %v308_v61 = vrot.slane %v10836_v47, 3  ;;  %v330_v62 = vrot.slane %v10817_v39, 4  ;;  %v11034_v50 = vld [vmem:[%s10780_s21 + $0x68] sm:$0xff]  ;;  %s14932_s18 = smov 45   ;;  %s14938_s19 = smov 48  }
  0x1a   : > { %v214_v55 = vsel %vm14986_vm8, %v211_v37, %v213_v54  ;;  %v10868_v59 = vsel %vm14983_vm6, %v281_v51, %v283_v56  ;;  %v331_v63 = vrot.slane %v10821_v41, 4  ;;  %v10893_v3 = vrot.slane %v10881_v0, 1  ;;  %v10996_v37 = vld [vmem:[%s10780_s21 + $0x58] sm:$0xff]  ;;  %s14950_s20 = smov 51  }
  0x1b   : > { %189 = vrot.lane.b32.xlu0 %v184_v31, %s10599_s24  ;;  %191 = vrot.lane.b32.xlu1 %v186_v32, %s10599_s24  ;;  %v10871_v60 = vsel %vm15011_vm7, %v305_v57, %v306_v58  ;;  %v10887_v1 = vsel %vm15011_vm7, %v306_v58, %v308_v61  ;;  %v333_v5 = vrot.slane %v10836_v47, 4  ;;  %v10915_v13 = vrot.slane %v10881_v0, 2  ;;  %v11057_v58 = vld [vmem:[%s10780_s21 + $0x70] sm:$0xff] }
  0x1c   : > { %v10890_v2 = vsel %vm14986_vm8, %v330_v62, %v331_v63  ;;  %v10901_v4 = vsel %vm14978_vm5, %v258_v49, %v10893_v3  ;;  %v377_v16 = vrot.slane %v10912_v9, 1  ;;  %v378_v17 = vrot.slane %v10918_v14, 1 }
  0x1d   : > { %v10909_v6 = vsel %vm14986_vm8, %v331_v63, %v333_v5  ;;  %v10926_v15 = vsel %vm14983_vm6, %v283_v56, %v10915_v13  ;;  %v10938_v19 = vrot.slane %v10881_v0, 3  ;;  %v380_v22 = vrot.slane %v10941_v20, 1 }
  0x1e   : > { %v10935_v18 = vsel %vm14978_vm5, %v377_v16, %v378_v17  ;;  %v402_v23 = vrot.slane %v10912_v9, 2  ;;  %v403_v24 = vrot.slane %v10918_v14, 2  ;;  %v10965_v27 = vrot.slane %v10881_v0, 4 }
  0x1f   : > { %215 = vrot.lane.b32.xlu0 %v210_v35, %s10600_s25  ;;  %141 = vrot.lane.b32.xlu1 %v136_v36, %s10597_s22  ;;  %v10949_v21 = vsel %vm15011_vm7, %v308_v61, %v10938_v19  ;;  %v10959_v25 = vsel %vm14978_vm5, %v378_v17, %v380_v22  ;;  %v405_v29 = vrot.slane %v10941_v20, 2  ;;  %v427_v30 = vrot.slane %v10912_v9, 3 }
  0x20   : > { %v10962_v26 = vsel %vm14983_vm6, %v402_v23, %v403_v24  ;;  %v10973_v28 = vsel %vm14986_vm8, %v333_v5, %v10965_v27  ;;  %v428_v31 = vrot.slane %v10918_v14, 3  ;;  %v452_v35 = vrot.slane %v10912_v9, 4 }
  0x21   : > { %v10983_v32 = vsel %vm14983_vm6, %v403_v24, %v405_v29  ;;  %v453_v36 = vrot.slane %v10918_v14, 4  ;;  %v455_v44 = vrot.slane %v10941_v20, 4  ;;  %v11031_v49 = vrot.slane %v10996_v37, 2 }
  0x22   : > { %v10986_v33 = vsel %vm15011_vm7, %v427_v30, %v428_v31  ;;  %v11054_v57 = vrot.slane %v10996_v37, 3  ;;  %v502_v62 = vrot.slane %v11057_v58, 1  ;;  %v525_v5 = vrot.slane %v11034_v50, 2 }
  0x23   : > { %217 = vrot.lane.b32.xlu0 %v212_v38, %s10600_s25  ;;  %237 = vrot.lane.b32.xlu1 %v10817_v39, %s10601_s26  ;;  %v11042_v51 = vsel %vm14983_vm6, %v405_v29, %v11031_v49  ;;  %v14931_v24 = vrot.slane %v11057_v58, 2  ;;  %v550_v30 = vrot.slane %v11034_v50, 3  ;;  %vm15018_vm13 = vcmask 121952  }
  0x24   : > { %vm14972_vm14 = vcmask 146552   ;;  %vm14952_vm15 = vcmask 44056   ;;  %vm15022_vm0 = vcmask 171152   ;;  %vm14949_vm1 = vcmask 68656  }
  0x25   : > { %vm15021_vm2 = vcmask 195752   ;;  %vm14963_vm3 = vcmask 93256  }
  0x27   : > { %143 = vrot.lane.b32.xlu0 %v135_v34, %s10597_s22  ;;  %167 = vrot.lane.b32.xlu1 %v162_v42, %s10598_s23  ;;  %v430_v34 = vrot.slane %v10941_v20, 3  ;;  %v11009_v42 = vrot.slane %v10996_v37, 1 }
  0x29   : > { %v11003_v38 = vsel %vm15011_vm7, %v428_v31, %v430_v34  ;;  %v11017_v43 = vsel %vm14978_vm5, %v380_v22, %v11009_v42  ;;  %v11065_v61 = vsel %vm15011_vm7, %v430_v34, %v11054_v57  ;;  %v11081_v22 = vrot.slane %v10996_v37, 4 }
  0x2b   : > { %239 = vrot.lane.b32.xlu0 %v10821_v41, %s10601_s26  ;;  %262 = vrot.lane.b32.xlu1 %v10832_v45, %s10602_s27  ;;  %v11089_v23 = vsel %vm14986_vm8, %v455_v44, %v11081_v22  ;;  %v11195_v41 = vld [vmem:[%s10780_s21 + $0x90] sm:$0xff] }
  0x2f   : > { %169 = vrot.lane.b32.xlu0 %v161_v40, %s10598_s23  ;;  %193 = vrot.lane.b32.xlu1 %v188_v48, %s10599_s24  ;;  %v11006_v40 = vsel %vm14986_vm8, %v452_v35, %v453_v36  ;;  %v11028_v48 = vld [vmem:[%s10780_s21 + $0x60] sm:$0xff]  ;;  %v11103_v35 = vsel %vm14983_vm6, %v525_v5, %v14931_v24 }
  0x30   : > { %v524_v63 = vrot.slane %v11028_v48, 2  ;;  %v549_v29 = vrot.slane %v11028_v48, 3 }
  0x32   : > { %v11078_v17 = vsel %vm14983_vm6, %v524_v63, %v525_v5  ;;  %v574_v63 = vrot.slane %v11028_v48, 4  ;;  %v575_v5 = vrot.slane %v11034_v50, 4 }
  0x33   : > { %264 = vrot.lane.b32.xlu0 %v10851_v52, %s10602_s27  ;;  %287 = vrot.lane.b32.xlu1 %v10854_v53, %s10603_s28 }
  0x37   : > { %195 = vrot.lane.b32.xlu0 %v187_v46, %s10599_s24  ;;  %219 = vrot.lane.b32.xlu1 %v214_v55, %s10600_s25  ;;  %v11025_v46 = vsel %vm14986_vm8, %v453_v36, %v455_v44  ;;  %v500_v55 = vrot.slane %v11034_v50, 1  ;;  %v11106_v36 = vsel %vm15011_vm7, %v549_v29, %v550_v30 }
  0x39   : > { %v11075_v16 = vsel %vm14978_vm5, %v500_v55, %v502_v62 }
  0x3b   : > { %289 = vrot.lane.b32.xlu0 %v10868_v59, %s10603_s28  ;;  %312 = vrot.lane.b32.xlu1 %v10871_v60, %s10604_s29 }
  0x3f   : > { %221 = vrot.lane.b32.xlu0 %v213_v54, %s10600_s25  ;;  %241 = vrot.lane.b32.xlu1 %v10836_v47, %s10601_s26  ;;  %v499_v54 = vrot.slane %v11028_v48, 1 }
  0x41   : > { %v11051_v56 = vsel %vm14978_vm5, %v499_v54, %v500_v55  ;;  %v14930_v55 = vrot.slane %v11057_v58, 3 }
  0x43   : > { %314 = vrot.lane.b32.xlu0 %v10887_v1, %s10604_s29  ;;  %337 = vrot.lane.b32.xlu1 %v10890_v2, %s14961_s30 }
  0x47   : > { %243 = vrot.lane.b32.xlu0 %v10881_v0, %s10601_s26  ;;  %266 = vrot.lane.b32.xlu1 %v10901_v4, %s10602_s27 }
  0x4b   : > { %339 = vrot.lane.b32.xlu0 %v10909_v6, %s14961_s30  ;;  %359 = vrot.lane.b32.xlu1 %v10912_v9, %s14953_s12 }
  0x4f   : > { %268 = vrot.lane.b32.xlu0 %v10893_v3, %s10602_s27  ;;  %291 = vrot.lane.b32.xlu1 %v10926_v15, %s10603_s28 }
  0x53   : > { %361 = vrot.lane.b32.xlu0 %v10918_v14, %s14953_s12  ;;  %384 = vrot.lane.b32.xlu1 %v10935_v18, %s14946_s13 }
  0x57   : > { %293 = vrot.lane.b32.xlu0 %v10915_v13, %s10603_s28  ;;  %316 = vrot.lane.b32.xlu1 %v10949_v21, %s10604_s29 }
  0x5b   : > { %386 = vrot.lane.b32.xlu0 %v10959_v25, %s14946_s13  ;;  %409 = vrot.lane.b32.xlu1 %v10962_v26, %s14944_s14 }
  0x5f   : > { %318 = vrot.lane.b32.xlu0 %v10938_v19, %s10604_s29  ;;  %341 = vrot.lane.b32.xlu1 %v10973_v28, %s14961_s30 }
  0x63   : > { %411 = vrot.lane.b32.xlu0 %v10983_v32, %s14944_s14  ;;  %434 = vrot.lane.b32.xlu1 %v10986_v33, %s14924_s15 }
  0x67   : > { %343 = vrot.lane.b32.xlu0 %v10965_v27, %s14961_s30  ;;  %363 = vrot.lane.b32.xlu1 %v10941_v20, %s14953_s12  ;;  %s10620_s30 = smov 72  }
  0x6b   : > { %436 = vrot.lane.b32.xlu0 %v11003_v38, %s14924_s15  ;;  %459 = vrot.lane.b32.xlu1 %v11006_v40, %s14928_s16 }
  0x6f   : > { %365 = vrot.lane.b32.xlu0 %v10996_v37, %s14953_s12  ;;  %388 = vrot.lane.b32.xlu1 %v11017_v43, %s14946_s13  ;;  %s15224_s12 = smov 54  }
  0x73   : > { %461 = vrot.lane.b32.xlu0 %v11025_v46, %s14928_s16  ;;  %481 = vrot.lane.b32.xlu1 %v11028_v48, %s14932_s18 }
  0x77   : > { %390 = vrot.lane.b32.xlu0 %v11009_v42, %s14946_s13  ;;  %413 = vrot.lane.b32.xlu1 %v11042_v51, %s14944_s14 }
  0x7b   : > { %483 = vrot.lane.b32.xlu0 %v11034_v50, %s14932_s18  ;;  %506 = vrot.lane.b32.xlu1 %v11051_v56, %s14938_s19 }
  0x7f   : > { %415 = vrot.lane.b32.xlu0 %v11031_v49, %s14944_s14  ;;  %438 = vrot.lane.b32.xlu1 %v11065_v61, %s14924_s15  ;;  %s10619_s14 = smov 69  }
  0x83   : > { %508 = vrot.lane.b32.xlu0 %v11075_v16, %s14938_s19  ;;  %531 = vrot.lane.b32.xlu1 %v11078_v17, %s14950_s20 }
  0x85   : > { %v138_v31 = vpop.permute.xlu0 %137  ;;  %v164_v34 = vpop.permute.xlu1 %163 }
  0x86   : > { %150 = vst.msk [vmem:[#allocation4] sm:$0xff] %vm15016_vm10, %v138_v31 }
  0x87   : > { %176 = vst.msk [vmem:[#allocation4] sm:$0xff] %vm15017_vm11, %v164_v34  ;;  %440 = vrot.lane.b32.xlu0 %v11054_v57, %s14924_s15  ;;  %463 = vrot.lane.b32.xlu1 %v11089_v23, %s14928_s16  ;;  %s14968_s15 = smov 54   ;;  %v11118_v34 = vld [vmem:[%s10780_s21 + $0x78] sm:$0xff] }
  0x88   : > { %v11135_v7 = vrot.slane %v11118_v34, 1  ;;  %v11163_v24 = vrot.slane %v11118_v34, 2  ;;  %v11192_v8 = vrot.slane %v11118_v34, 3  ;;  %v11227_v39 = vrot.slane %v11118_v34, 4 }
  0x89   : > { %v140_v44 = vpop.permute.xlu0 %139  ;;  %v166_v54 = vpop.permute.xlu1 %165 }
  0x8a   : > { %151 = vst.msk [vmem:[#allocation4 + $0x10] sm:$0xff] %vm15016_vm10, %v140_v44  ;;  %v11129_v44 = vsel %vm15011_vm7, %v550_v30, %v14930_v55  ;;  %15178 = vst [vmem:[#allocation16_spill] sm:$0xff] %v11135_v7  ;;  %v11145_v30 = vsel %vm14978_vm5, %v502_v62, %v11135_v7 }
  0x8b   : > { %177 = vst.msk [vmem:[#allocation4 + $0x10] sm:$0xff] %vm15017_vm11, %v166_v54  ;;  %533 = vrot.lane.b32.xlu0 %v11103_v35, %s14950_s20  ;;  %556 = vrot.lane.b32.xlu1 %v11106_v36, %s14968_s15  ;;  %v11132_v54 = vsel %vm14986_vm8, %v574_v63, %v575_v5  ;;  %v14934_v63 = vrot.slane %v11057_v58, 4  ;;  %15180 = vst [vmem:[#allocation18_spill] sm:$0xff] %v11163_v24 }
  0x8c   : > { %15188 = vst [vmem:[#allocation24_spill] sm:$0xff] %v11227_v39 }
  0x8d   : > { %v190_v29 = vpop.permute.xlu0 %189  ;;  %v192_v31 = vpop.permute.xlu1 %191  ;;  %v11157_v62 = vsel %vm14986_vm8, %v575_v5, %v14934_v63  ;;  %v15181_v5 = vrot.slane %v11057_v58, 2 }
  0x8e   : > { %202 = vst.msk [vmem:[#allocation4] sm:$0xff] %vm15019_vm12, %v190_v29  ;;  %203 = vst.msk [vmem:[#allocation4 + $0x10] sm:$0xff] %vm15019_vm12, %v192_v31 }
  0x8f   : > { %465 = vrot.lane.b32.xlu0 %v11081_v22, %s14928_s16  ;;  %485 = vrot.lane.b32.xlu1 %v11057_v58, %s14932_s18  ;;  %s14976_s16 = smov 57   ;;  %15179 = vst [vmem:[#allocation17_spill] sm:$0xff] %v11157_v62  ;;  %v11178_v63 = vsel %vm14983_vm6, %v15181_v5, %v11163_v24 }
  0x90   : > { %15182 = vst [vmem:[#allocation19_spill] sm:$0xff] %v11178_v63 }
  0x91   : > { %v216_v29 = vpop.permute.xlu0 %215  ;;  %v142_v31 = vpop.permute.xlu1 %141 }
  0x92   : > { %228 = vst.msk [vmem:[#allocation4] sm:$0xff] %vm15018_vm13, %v216_v29 }
  0x93   : > { %152 = vst.msk [vmem:[#allocation4 + $0x20] sm:$0xff] %vm15016_vm10, %v142_v31  ;;  %558 = vrot.lane.b32.xlu0 %v11129_v44, %s14968_s15  ;;  %581 = vrot.lane.b32.xlu1 %v11132_v54, %s14976_s16  ;;  %v11160_v31 = vld [vmem:[%s10780_s21 + $0x80] sm:$0xff] }
  0x94   : > { %v621_v10 = vrot.slane %v11160_v31, 1 }
  0x95   : > { %v218_v55 = vpop.permute.xlu0 %217  ;;  %v238_v29 = vpop.permute.xlu1 %237 }
  0x96   : > { %229 = vst.msk [vmem:[#allocation4 + $0x10] sm:$0xff] %vm15018_vm13, %v218_v55 }
  0x97   : > { %250 = vst.msk [vmem:[#allocation4] sm:$0xff] %vm14972_vm14, %v238_v29  ;;  %487 = vrot.lane.b32.xlu0 %v11118_v34, %s14932_s18  ;;  %510 = vrot.lane.b32.xlu1 %v11145_v30, %s14938_s19  ;;  %v11166_v29 = vld [vmem:[%s10780_s21 + $0x88] sm:$0xff]  ;;  %s10616_s18 = smov 60  }
  0x99   : > { %v144_v55 = vpop.permute.xlu0 %143  ;;  %v168_v12 = vpop.permute.xlu1 %167 }
  0x9a   : > { %154 = vst.msk [vmem:[#allocation4 + $0x30] sm:$0xf] %vm14952_vm15, %v144_v55  ;;  %v622_v55 = vrot.slane %v11166_v29, 1  ;;  %vm15020_vm15 = vcmask 220352  }
  0x9b   : > { %178 = vst.msk [vmem:[#allocation4 + $0x20] sm:$0xff] %vm15017_vm11, %v168_v12  ;;  %583 = vrot.lane.b32.xlu0 %v11157_v62, %s14976_s16  ;;  %603 = vrot.lane.b32.xlu1 %v11160_v31, %s10616_s18  ;;  %v115_v62 = vld [vmem:[%s14913_s1 + $0x38] sm:$0xff] }
  0x9c   : > { %v11189_v5 = vsel %vm14978_vm5, %v621_v10, %v622_v55  ;;  %v15184_v10 = vrot.slane %v11057_v58, 3 }
  0x9d   : > { %v240_v12 = vpop.permute.xlu0 %239  ;;  %v263_v11 = vpop.permute.xlu1 %262  ;;  %15183 = vst [vmem:[#allocation20_spill] sm:$0xff] %v11189_v5 }
  0x9e   : > { %251 = vst.msk [vmem:[#allocation4 + $0x10] sm:$0xff] %vm14972_vm14, %v240_v12  ;;  %v14955_v12 = vrot.slane %v11195_v41, 1 }
  0x9f   : > { %275 = vst.msk [vmem:[#allocation4] sm:$0xff] %vm15022_vm0, %v263_v11  ;;  %512 = vrot.lane.b32.xlu0 %v11135_v7, %s14938_s19  ;;  %535 = vrot.lane.b32.xlu1 %v11178_v63, %s14950_s20  ;;  %s10617_s19 = smov 63   ;;  %v11207_v11 = vsel %vm15011_vm7, %v15184_v10, %v11192_v8 }
  0xa0   : > { %15185 = vst [vmem:[#allocation21_spill] sm:$0xff] %v11207_v11  ;;  %v11221_v10 = vsel %vm14978_vm5, %v622_v55, %v14955_v12  ;;  %v116_v55 = vld [vmem:[%s14913_s1 + $0x40] sm:$0xff]  ;;  %v671_v12 = vrot.slane %v11160_v31, 3 }
  0xa1   : > { %v170_v47 = vpop.permute.xlu0 %169  ;;  %v194_v0 = vpop.permute.xlu1 %193  ;;  %15186 = vst [vmem:[#allocation22_spill] sm:$0xff] %v11221_v10 }
  0xa2   : > { %180 = vst.msk [vmem:[#allocation4 + $0x30] sm:$0xf] %vm14949_vm1, %v170_v47  ;;  %v646_v47 = vrot.slane %v11160_v31, 2  ;;  %vm14960_vm1 = vcmask 1042432  }
  0xa3   : > { %204 = vst.msk [vmem:[#allocation4 + $0x20] sm:$0xff] %vm15019_vm12, %v194_v0  ;;  %605 = vrot.lane.b32.xlu0 %v11166_v29, %s10616_s18  ;;  %628 = vrot.lane.b32.xlu1 %v11189_v5, %s10617_s19  ;;  %v647_v0 = vrot.slane %v11166_v29, 2 }
  0xa5   : > { %v265_v63 = vpop.permute.xlu0 %264  ;;  %v288_v7 = vpop.permute.xlu1 %287  ;;  %v11224_v5 = vsel %vm14983_vm6, %v646_v47, %v647_v0  ;;  %v15189_v47 = vrot.slane %v11057_v58, 4 }
  0xa6   : > { %276 = vst.msk [vmem:[#allocation4 + $0x10] sm:$0xff] %vm15022_vm0, %v265_v63  ;;  %15187 = vst [vmem:[#allocation23_spill] sm:$0xff] %v11224_v5 }
  0xa7   : > { %300 = vst.msk [vmem:[#allocation4] sm:$0xff] %vm15021_vm2, %v288_v7  ;;  %537 = vrot.lane.b32.xlu0 %v11163_v24, %s14950_s20  ;;  %560 = vrot.lane.b32.xlu1 %v11207_v11, %s14968_s15  ;;  %v117_v24 = vld [vmem:[%s14913_s1 + $0x48] sm:$0x7]  ;;  %s10618_s20 = smov 66  }
  0xa8   : > { %9765 = vmatprep.subr.msk.mxu0 %vm14960_vm1, %v117_v24  ;;  %9791 = vmatprep.subr.msk.mxu1 %vm14960_vm1, %v117_v24 }
  0xa9   : > { %v196_v63 = vpop.permute.xlu0 %195  ;;  %v220_v7 = vpop.permute.xlu1 %219  ;;  %9766 = vmatpush3.msk.msra.mxu0 %vm14960_vm1, %v117_v24  ;;  %9792 = vmatpush3.msk.msra.mxu1 %vm14960_vm1, %v117_v24  ;;  %vm14967_vm1 = vcmask 117856   ;;  %v114_v24 = vld [vmem:[%s14913_s1 + $0x30] sm:$0xff] }
  0xaa   : > { %206 = vst.msk [vmem:[#allocation4 + $0x30] sm:$0xf] %vm14963_vm3, %v196_v63  ;;  %v11247_v63 = vsel %vm14986_vm8, %v15189_v47, %v11227_v39  ;;  %9767 = vmatprep.subr.mxu0 %v116_v55  ;;  %9793 = vmatprep.subr.mxu1 %v116_v55  ;;  %vm14988_vm3 = vcmask 244952  }
  0xab   : > { %230 = vst.msk [vmem:[#allocation4 + $0x20] sm:$0xff] %vm15018_vm13, %v220_v7  ;;  %630 = vrot.lane.b32.xlu0 %v11221_v10, %s10617_s19  ;;  %653 = vrot.lane.b32.xlu1 %v11224_v5, %s10618_s20  ;;  %15190 = vst [vmem:[#allocation25_spill] sm:$0xff] %v11247_v63  ;;  %v14964_v7 = vrot.slane %v11195_v41, 2  ;;  %v672_v10 = vrot.slane %v11166_v29, 3 }
  0xac   : > { %9768 = vmatpush3.msra.mxu0 %v116_v55  ;;  %9794 = vmatpush3.msra.mxu1 %v116_v55 }
  0xad   : > { %v290_v5 = vpop.permute.xlu0 %289  ;;  %v313_v11 = vpop.permute.xlu1 %312  ;;  %v11269_v47 = vsel %vm14983_vm6, %v647_v0, %v14964_v7  ;;  %9769 = vmatprep.subr.mxu0 %v115_v62  ;;  %9795 = vmatprep.subr.mxu1 %v115_v62  ;;  %v113_v0 = vld [vmem:[%s14913_s1 + $0x28] sm:$0xff] }
  0xae   : > { %301 = vst.msk [vmem:[#allocation4 + $0x10] sm:$0xff] %vm15021_vm2, %v290_v5  ;;  %15191 = vst [vmem:[#allocation26_spill] sm:$0xff] %v11269_v47  ;;  %v11272_v5 = vsel %vm15011_vm7, %v671_v12, %v672_v10  ;;  %9770 = vmatpush3.msra.mxu0 %v115_v62  ;;  %9796 = vmatpush3.msra.mxu1 %v115_v62  ;;  %v14973_v62 = vrot.slane %v11195_v41, 3  ;;  %v696_v12 = vrot.slane %v11160_v31, 4 }
  0xaf   : > { %325 = vst.msk [vmem:[#allocation4] sm:$0xff] %vm15020_vm15, %v313_v11  ;;  %562 = vrot.lane.b32.xlu0 %v11192_v8, %s14968_s15  ;;  %585 = vrot.lane.b32.xlu1 %v11247_v63, %s14976_s16  ;;  %15192 = vst [vmem:[#allocation27_spill] sm:$0xff] %v11272_v5  ;;  %v11287_v63 = vld [vmem:[%s10780_s21 + $0x98] sm:$0xff]  ;;  %s15228_s15 = smov 57  }
  0xb0   : > { %9771 = vmatprep.subr.mxu0 %v114_v24  ;;  %9797 = vmatprep.subr.mxu1 %v114_v24 }
  0xb1   : > { %v222_v11 = vpop.permute.xlu0 %221  ;;  %v242_v55 = vpop.permute.xlu1 %241  ;;  %9772 = vmatpush3.msra.mxu0 %v114_v24  ;;  %9798 = vmatpush3.msra.mxu1 %v114_v24  ;;  %v111_v24 = vld [vmem:[%s14913_s1 + $0x18] sm:$0xff] }
  0xb2   : > { %232 = vst.msk [vmem:[#allocation4 + $0x30] sm:$0xf] %vm14967_vm1, %v222_v11  ;;  %v697_v11 = vrot.slane %v11166_v29, 4  ;;  %9773 = vmatprep.subr.mxu0 %v113_v0  ;;  %9799 = vmatprep.subr.mxu1 %v113_v0  ;;  %vm14975_vm1 = vcmask 142456  }
  0xb3   : > { %252 = vst.msk [vmem:[#allocation4 + $0x20] sm:$0xff] %vm14972_vm14, %v242_v55  ;;  %655 = vrot.lane.b32.xlu0 %v11269_v47, %s10618_s20  ;;  %678 = vrot.lane.b32.xlu1 %v11272_v5, %s10619_s14  ;;  %v112_v47 = vld [vmem:[%s14913_s1 + $0x20] sm:$0xff]  ;;  %v11304_v5 = vsel %vm15011_vm7, %v672_v10, %v14973_v62  ;;  %v110_v10 = vld [vmem:[%s14913_s1 + $0x10] sm:$0xff]  ;;  %vm14990_vm14 = vcmask 269552  }
  0xb4   : > { %9774 = vmatpush3.msra.mxu0 %v113_v0  ;;  %9800 = vmatpush3.msra.mxu1 %v113_v0  ;;  %15193 = vst [vmem:[#allocation28_spill] sm:$0xff] %v11304_v5  ;;  %v11310_v0 = vrot.slane %v11287_v63, 1 }
  0xb5   : > { %v315_v55 = vpop.permute.xlu0 %314  ;;  %v338_v7 = vpop.permute.xlu1 %337  ;;  %9775 = vmatprep.subr.mxu0 %v112_v47  ;;  %9801 = vmatprep.subr.mxu1 %v112_v47 }
  0xb6   : > { %326 = vst.msk [vmem:[#allocation4 + $0x10] sm:$0xff] %vm15020_vm15, %v315_v55  ;;  %15194 = vst [vmem:[#allocation29_spill] sm:$0xff] %v11310_v0  ;;  %9776 = vmatpush3.msra.mxu0 %v112_v47  ;;  %9802 = vmatpush3.msra.mxu1 %v112_v47  ;;  %v15195_v47 = vrot.slane %v11195_v41, 1 }
  0xb7   : > { %350 = vst.msk [vmem:[#allocation4] sm:$0xff] %vm14988_vm3, %v338_v7  ;;  %587 = vrot.lane.b32.xlu0 %v11227_v39, %s14976_s16  ;;  %607 = vrot.lane.b32.xlu1 %v11195_v41, %s10616_s18  ;;  %v11307_v7 = vsel %vm14986_vm8, %v696_v12, %v697_v11  ;;  %s15218_s16 = smov 51  }
  0xb8   : > { %9777 = vmatprep.subr.mxu0 %v111_v24  ;;  %9803 = vmatprep.subr.mxu1 %v111_v24  ;;  %v11325_v12 = vsel %vm14978_vm5, %v15195_v47, %v11310_v0  ;;  %vm14992_vm5 = vcmask 294152  }
  0xb9   : > { %v244_v55 = vpop.permute.xlu0 %243  ;;  %v267_v39 = vpop.permute.xlu1 %266  ;;  %15196 = vst [vmem:[#allocation30_spill] sm:$0xff] %v11325_v12  ;;  %9778 = vmatpush3.msra.mxu0 %v111_v24  ;;  %9804 = vmatpush3.msra.mxu1 %v111_v24  ;;  %v108_v24 = vld [vmem:[%s14913_s1] sm:$0xff] }
  0xba   : > { %254 = vst.msk [vmem:[#allocation4 + $0x30] sm:$0xf] %vm14975_vm1, %v244_v55  ;;  %9779 = vmatprep.subr.mxu0 %v110_v10  ;;  %9805 = vmatprep.subr.mxu1 %v110_v10  ;;  %vm14980_vm1 = vcmask 167056  }
  0xbb   : > { %277 = vst.msk [vmem:[#allocation4 + $0x20] sm:$0xff] %vm15022_vm0, %v267_v39  ;;  %680 = vrot.lane.b32.xlu0 %v11304_v5, %s10619_s14  ;;  %703 = vrot.lane.b32.xlu1 %v11307_v7, %s10620_s30  ;;  %v699_v39 = vrot.slane %v11195_v41, 4  ;;  %v109_v5 = vld [vmem:[%s14913_s1 + $0x8] sm:$0xff] }
  0xbc   : > { %9780 = vmatpush3.msra.mxu0 %v110_v10  ;;  %9806 = vmatpush3.msra.mxu1 %v110_v10 }
  0xbd   : > { %v340_v55 = vpop.permute.xlu0 %339  ;;  %v360_v62 = vpop.permute.xlu1 %359  ;;  %v11341_v47 = vsel %vm14986_vm8, %v697_v11, %v699_v39  ;;  %9781 = vmatprep.subr.mxu0 %v109_v5  ;;  %9807 = vmatprep.subr.mxu1 %v109_v5  ;;  %v15199_v11 = vrot.slane %v11195_v41, 2 }
  0xbe   : > { %351 = vst.msk [vmem:[#allocation4 + $0x10] sm:$0xff] %vm14988_vm3, %v340_v55  ;;  %15197 = vst [vmem:[#allocation31_spill] sm:$0xff] %v11341_v47  ;;  %v11344_v55 = vrot.slane %v11287_v63, 2  ;;  %9782 = vmatpush3.msra.mxu0 %v109_v5  ;;  %9808 = vmatpush3.msra.mxu1 %v109_v5  ;;  %v11359_v5 = vrot.slane %v11287_v63, 3 }
  0xbf   : > { %372 = vst.msk [vmem:[#allocation4] sm:$0xff] %vm14990_vm14, %v360_v62  ;;  %609 = vrot.lane.b32.xlu0 %v11287_v63, %s10616_s18  ;;  %632 = vrot.lane.b32.xlu1 %v11325_v12, %s10617_s19 }
  0xc0   : > { %15198 = vst [vmem:[#allocation32_spill] sm:$0xff] %v11344_v55  ;;  %9783 = vmatprep.subr.mxu0 %v108_v24  ;;  %9809 = vmatprep.subr.mxu1 %v108_v24  ;;  %v11356_v12 = vsel %vm14983_vm6, %v15199_v11, %v11344_v55  ;;  %v15200_v11 = vrot.slane %v11195_v41, 3  ;;  %vm14994_vm6 = vcmask 318752  }
  0xc1   : > { %v269_v62 = vpop.permute.xlu0 %268  ;;  %v292_v10 = vpop.permute.xlu1 %291  ;;  %9784 = vmatpush3.msra.mxu0 %v108_v24  ;;  %9810 = vmatpush3.msra.mxu1 %v108_v24  ;;  %v11374_v24 = vrot.slane %v11287_v63, 4 }
  0xc2   : > { %279 = vst.msk [vmem:[#allocation4 + $0x30] sm:$0xf] %vm14980_vm1, %v269_v62  ;;  %vm14985_vm1 = vcmask 191656  }
  0xc3   : > { %302 = vst.msk [vmem:[#allocation4 + $0x20] sm:$0xff] %vm15021_vm2, %v292_v10  ;;  %705 = vrot.lane.b32.xlu0 %v11341_v47, %s10620_s30  ;;  %634 = vrot.lane.b32.xlu1 %v11310_v0, %s10617_s19  ;;  %v11371_v0 = vsel %vm15011_vm7, %v15200_v11, %v11359_v5  ;;  %vm731_vm7 = vcmask 613376  }
  0xc5   : > { %v362_v62 = vpop.permute.xlu0 %361  ;;  %v385_v10 = vpop.permute.xlu1 %384 }
  0xc6   : > { %373 = vst.msk [vmem:[#allocation4 + $0x10] sm:$0xff] %vm14990_vm14, %v362_v62 }
  0xc7   : > { %397 = vst.msk [vmem:[#allocation4] sm:$0xff] %vm14992_vm5, %v385_v10  ;;  %657 = vrot.lane.b32.xlu0 %v11356_v12, %s10618_s20  ;;  %659 = vrot.lane.b32.xlu1 %v11344_v55, %s10618_s20  ;;  %v11384_v10 = vsel %vm14986_vm8, %v699_v39, %v11374_v24  ;;  %vm14996_vm8 = vcmask 343352  }
  0xc9   : > { %v294_v47 = vpop.permute.xlu0 %293  ;;  %v317_v62 = vpop.permute.xlu1 %316 }
  0xca   : > { %304 = vst.msk [vmem:[#allocation4 + $0x30] sm:$0xf] %vm14985_vm1, %v294_v47  ;;  %vm14987_vm1 = vcmask 216256  }
  0xcb   : > { %327 = vst.msk [vmem:[#allocation4 + $0x20] sm:$0xff] %vm15020_vm15, %v317_v62  ;;  %682 = vrot.lane.b32.xlu0 %v11371_v0, %s10619_s14  ;;  %684 = vrot.lane.b32.xlu1 %v11359_v5, %s10619_s14 }
  0xcd   : > { %v387_v11 = vpop.permute.xlu0 %386  ;;  %v410_v55 = vpop.permute.xlu1 %409 }
  0xce   : > { %398 = vst.msk [vmem:[#allocation4 + $0x10] sm:$0xff] %vm14992_vm5, %v387_v11 }
  0xcf   : > { %422 = vst.msk [vmem:[#allocation4] sm:$0xff] %vm14994_vm6, %v410_v55  ;;  %707 = vrot.lane.b32.xlu0 %v11384_v10, %s10620_s30  ;;  %709 = vrot.lane.b32.xlu1 %v11374_v24, %s10620_s30 }
  0xd1   : > { %v319_v47 = vpop.permute.xlu0 %318  ;;  %v342_v62 = vpop.permute.xlu1 %341 }
  0xd2   : > { %329 = vst.msk [vmem:[#allocation4 + $0x30] sm:$0xf] %vm14987_vm1, %v319_v47  ;;  %vm14989_vm1 = vcmask 240856  }
  0xd3   : > { %352 = vst.msk [vmem:[#allocation4 + $0x20] sm:$0xff] %vm14988_vm3, %v342_v62  ;;  %841 = vrot.lane.b32.xlu0 %v10832_v45, %s10597_s22  ;;  %843 = vrot.lane.b32.xlu1 %v10851_v52, %s10597_s22  ;;  %vm14998_vm3 = vcmask 367952  }
  0xd5   : > { %v412_v39 = vpop.permute.xlu0 %411  ;;  %v435_v55 = vpop.permute.xlu1 %434 }
  0xd6   : > { %423 = vst.msk [vmem:[#allocation4 + $0x10] sm:$0xff] %vm14994_vm6, %v412_v39  ;;  %v15210_v39 = vld [vmem:[#allocation16_spill] sm:$0xff] }
  0xd7   : > { %447 = vst.msk [vmem:[#allocation4] sm:$0xff] %vm14996_vm8, %v435_v55  ;;  %857 = vrot.lane.b32.xlu0 %v10854_v53, %s10598_s23  ;;  %859 = vrot.lane.b32.xlu1 %v10868_v59, %s10598_s23  ;;  %v15211_v55 = vld [vmem:[#allocation19_spill] sm:$0xff] }
  0xd9   : > { %v344_v11 = vpop.permute.xlu0 %343  ;;  %v364_v47 = vpop.permute.xlu1 %363 }
  0xda   : > { %354 = vst.msk [vmem:[#allocation4 + $0x30] sm:$0xf] %vm14989_vm1, %v344_v11  ;;  %vm14991_vm1 = vcmask 265456  }
  0xdb   : > { %374 = vst.msk [vmem:[#allocation4 + $0x20] sm:$0xff] %vm14990_vm14, %v364_v47  ;;  %873 = vrot.lane.b32.xlu0 %v10871_v60, %s10599_s24  ;;  %875 = vrot.lane.b32.xlu1 %v10887_v1, %s10599_s24  ;;  %vm15000_vm14 = vcmask 392552   ;;  %v15213_v47 = vld [vmem:[#allocation20_spill] sm:$0xff] }
  0xdd   : > { %v437_v45 = vpop.permute.xlu0 %436  ;;  %v460_v52 = vpop.permute.xlu1 %459 }
  0xde   : > { %448 = vst.msk [vmem:[#allocation4 + $0x10] sm:$0xff] %vm14996_vm8, %v437_v45 }
  0xdf   : > { %472 = vst.msk [vmem:[#allocation4] sm:$0xff] %vm14998_vm3, %v460_v52  ;;  %889 = vrot.lane.b32.xlu0 %v10890_v2, %s10600_s25  ;;  %845 = vrot.lane.b32.xlu1 %v10901_v4, %s10597_s22 }
  0xe1   : > { %v366_v53 = vpop.permute.xlu0 %365  ;;  %v389_v59 = vpop.permute.xlu1 %388 }
  0xe2   : > { %376 = vst.msk [vmem:[#allocation4 + $0x30] sm:$0xf] %vm14991_vm1, %v366_v53  ;;  %vm14993_vm1 = vcmask 290056  }
  0xe3   : > { %399 = vst.msk [vmem:[#allocation4 + $0x20] sm:$0xff] %vm14992_vm5, %v389_v59  ;;  %891 = vrot.lane.b32.xlu0 %v10909_v6, %s10600_s25  ;;  %905 = vrot.lane.b32.xlu1 %v10912_v9, %s10601_s26  ;;  %vm15002_vm5 = vcmask 417152   ;;  %v15214_v59 = vld [vmem:[#allocation13_spill] sm:$0xff] }
  0xe5   : > { %v462_v60 = vpop.permute.xlu0 %461  ;;  %v482_v1 = vpop.permute.xlu1 %481 }
  0xe6   : > { %473 = vst.msk [vmem:[#allocation4 + $0x10] sm:$0xff] %vm14998_vm3, %v462_v60  ;;  %v15215_v60 = vld [vmem:[#allocation18_spill] sm:$0xff] }
  0xe7   : > { %494 = vst.msk [vmem:[#allocation4] sm:$0xff] %vm15000_vm14, %v482_v1  ;;  %847 = vrot.lane.b32.xlu0 %v10893_v3, %s10597_s22  ;;  %861 = vrot.lane.b32.xlu1 %v10926_v15, %s10598_s23  ;;  %s15201_s22 = smov 27  }
  0xe9   : > { %v391_v2 = vpop.permute.xlu0 %390  ;;  %v414_v4 = vpop.permute.xlu1 %413 }
  0xea   : > { %401 = vst.msk [vmem:[#allocation4 + $0x30] sm:$0xf] %vm14993_vm1, %v391_v2  ;;  %vm14995_vm1 = vcmask 314656  }
  0xeb   : > { %424 = vst.msk [vmem:[#allocation4 + $0x20] sm:$0xff] %vm14994_vm6, %v414_v4  ;;  %907 = vrot.lane.b32.xlu0 %v10918_v14, %s10601_s26  ;;  %921 = vrot.lane.b32.xlu1 %v10935_v18, %s10602_s27  ;;  %vm15004_vm6 = vcmask 441752   ;;  %v15217_v4 = vld [vmem:[#allocation22_spill] sm:$0xff] }
  0xed   : > { %v484_v6 = vpop.permute.xlu0 %483  ;;  %v507_v9 = vpop.permute.xlu1 %506 }
  0xee   : > { %495 = vst.msk [vmem:[#allocation4 + $0x10] sm:$0xff] %vm15000_vm14, %v484_v6  ;;  %v15219_v6 = vld [vmem:[#allocation23_spill] sm:$0xff] }
  0xef   : > { %519 = vst.msk [vmem:[#allocation4] sm:$0xff] %vm15002_vm5, %v507_v9  ;;  %863 = vrot.lane.b32.xlu0 %v10915_v13, %s10598_s23  ;;  %877 = vrot.lane.b32.xlu1 %v10949_v21, %s10599_s24  ;;  %s15202_s23 = smov 30  }
  0xf1   : > { %v416_v3 = vpop.permute.xlu0 %415  ;;  %v439_v15 = vpop.permute.xlu1 %438 }
  0xf2   : > { %426 = vst.msk [vmem:[#allocation4 + $0x30] sm:$0xf] %vm14995_vm1, %v416_v3  ;;  %vm14997_vm1 = vcmask 339256  }
  0xf3   : > { %449 = vst.msk [vmem:[#allocation4 + $0x20] sm:$0xff] %vm14996_vm8, %v439_v15  ;;  %923 = vrot.lane.b32.xlu0 %v10959_v25, %s10602_s27  ;;  %937 = vrot.lane.b32.xlu1 %v10962_v26, %s10603_s28  ;;  %vm15006_vm8 = vcmask 466352   ;;  %v15220_v15 = vld [vmem:[#allocation25_spill] sm:$0xff] }
  0xf5   : > { %v509_v14 = vpop.permute.xlu0 %508  ;;  %v532_v18 = vpop.permute.xlu1 %531 }
  0xf6   : > { %520 = vst.msk [vmem:[#allocation4 + $0x10] sm:$0xff] %vm15002_vm5, %v509_v14 }
  0xf7   : > { %544 = vst.msk [vmem:[#allocation4] sm:$0xff] %vm15004_vm6, %v532_v18  ;;  %879 = vrot.lane.b32.xlu0 %v10938_v19, %s10599_s24  ;;  %893 = vrot.lane.b32.xlu1 %v10973_v28, %s10600_s25  ;;  %s15203_s24 = smov 33  }
  0xf9   : > { %v441_v13 = vpop.permute.xlu0 %440  ;;  %v464_v21 = vpop.permute.xlu1 %463 }
  0xfa   : > { %451 = vst.msk [vmem:[#allocation4 + $0x30] sm:$0xf] %vm14997_vm1, %v441_v13  ;;  %vm14999_vm1 = vcmask 363856  }
  0xfb   : > { %474 = vst.msk [vmem:[#allocation4 + $0x20] sm:$0xff] %vm14998_vm3, %v464_v21  ;;  %939 = vrot.lane.b32.xlu0 %v10983_v32, %s10603_s28  ;;  %953 = vrot.lane.b32.xlu1 %v10986_v33, %s10604_s29  ;;  %vm15008_vm3 = vcmask 490952  }
  0xfd   : > { %v534_v25 = vpop.permute.xlu0 %533  ;;  %v557_v26 = vpop.permute.xlu1 %556 }
  0xfe   : > { %545 = vst.msk [vmem:[#allocation4 + $0x10] sm:$0xff] %vm15004_vm6, %v534_v25  ;;  %v15221_v25 = vld [vmem:[#allocation15_spill] sm:$0xff] }
  0xff   : > { %569 = vst.msk [vmem:[#allocation4] sm:$0xff] %vm15006_vm8, %v557_v26  ;;  %895 = vrot.lane.b32.xlu0 %v10965_v27, %s10600_s25  ;;  %909 = vrot.lane.b32.xlu1 %v10941_v20, %s10601_s26  ;;  %s15204_s25 = smov 36   ;;  %v15222_v26 = vld [vmem:[#allocation14_spill] sm:$0xff] }
 0x101   : > { %v466_v19 = vpop.permute.xlu0 %465  ;;  %v486_v28 = vpop.permute.xlu1 %485 }
 0x102   : > { %476 = vst.msk [vmem:[#allocation4 + $0x30] sm:$0xf] %vm14999_vm1, %v466_v19  ;;  %vm15001_vm1 = vcmask 388456   ;;  %v15225_v19 = vld [vmem:[#allocation27_spill] sm:$0xff] }
 0x103   : > { %496 = vst.msk [vmem:[#allocation4 + $0x20] sm:$0xff] %vm15000_vm14, %v486_v28  ;;  %955 = vrot.lane.b32.xlu0 %v11003_v38, %s10604_s29  ;;  %969 = vrot.lane.b32.xlu1 %v11006_v40, %s15201_s22  ;;  %vm15010_vm14 = vcmask 515552  }
 0x105   : > { %v559_v32 = vpop.permute.xlu0 %558  ;;  %v582_v33 = vpop.permute.xlu1 %581 }
 0x106   : > { %570 = vst.msk [vmem:[#allocation4 + $0x10] sm:$0xff] %vm15006_vm8, %v559_v32 }
 0x107   : > { %594 = vst.msk [vmem:[#allocation4] sm:$0xff] %vm15008_vm3, %v582_v33  ;;  %911 = vrot.lane.b32.xlu0 %v10996_v37, %s10601_s26  ;;  %925 = vrot.lane.b32.xlu1 %v11017_v43, %s10602_s27  ;;  %s15205_s26 = smov 39   ;;  %v15226_v33 = vld [vmem:[#allocation24_spill] sm:$0xff] }
 0x109   : > { %v488_v20 = vpop.permute.xlu0 %487  ;;  %v511_v27 = vpop.permute.xlu1 %510 }
 0x10a   : > { %498 = vst.msk [vmem:[#allocation4 + $0x30] sm:$0xf] %vm15001_vm1, %v488_v20  ;;  %vm15003_vm1 = vcmask 413056  }
 0x10b   : > { %521 = vst.msk [vmem:[#allocation4 + $0x20] sm:$0xff] %vm15002_vm5, %v511_v27  ;;  %971 = vrot.lane.b32.xlu0 %v11025_v46, %s15201_s22  ;;  %985 = vrot.lane.b32.xlu1 %v11028_v48, %s15202_s23  ;;  %vm640_vm5 = vcmask 540152  }
 0x10d   : > { %v584_v38 = vpop.permute.xlu0 %583  ;;  %v604_v40 = vpop.permute.xlu1 %603 }
 0x10e   : > { %595 = vst.msk [vmem:[#allocation4 + $0x10] sm:$0xff] %vm15008_vm3, %v584_v38  ;;  %v15227_v38 = vld [vmem:[#allocation28_spill] sm:$0xff] }
 0x10f   : > { %616 = vst.msk [vmem:[#allocation4] sm:$0xff] %vm15010_vm14, %v604_v40  ;;  %927 = vrot.lane.b32.xlu0 %v11009_v42, %s10602_s27  ;;  %941 = vrot.lane.b32.xlu1 %v11042_v51, %s10603_s28  ;;  %s15206_s27 = smov 42  }
 0x111   : > { %v513_v37 = vpop.permute.xlu0 %512  ;;  %v536_v43 = vpop.permute.xlu1 %535 }
 0x112   : > { %523 = vst.msk [vmem:[#allocation4 + $0x30] sm:$0xf] %vm15003_vm1, %v513_v37  ;;  %vm15005_vm1 = vcmask 437656  }
 0x113   : > { %546 = vst.msk [vmem:[#allocation4 + $0x20] sm:$0xff] %vm15004_vm6, %v536_v43  ;;  %987 = vrot.lane.b32.xlu0 %v11034_v50, %s15202_s23  ;;  %1001 = vrot.lane.b32.xlu1 %v11051_v56, %s15203_s24  ;;  %vm665_vm6 = vcmask 564752  }
 0x115   : > { %v606_v46 = vpop.permute.xlu0 %605  ;;  %v629_v48 = vpop.permute.xlu1 %628 }
 0x116   : > { %617 = vst.msk [vmem:[#allocation4 + $0x10] sm:$0xff] %vm15010_vm14, %v606_v46 }
 0x117   : > { %641 = vst.msk [vmem:[#allocation4] sm:$0xff] %vm640_vm5, %v629_v48  ;;  %943 = vrot.lane.b32.xlu0 %v11031_v49, %s10603_s28  ;;  %957 = vrot.lane.b32.xlu1 %v11065_v61, %s10604_s29  ;;  %s15208_s28 = smov 45   ;;  %v11609_v48 = vld [vmem:[%s10780_s21 + $0xa0] sm:$0xff] }
 0x119   : > { %v538_v42 = vpop.permute.xlu0 %537  ;;  %v561_v51 = vpop.permute.xlu1 %560 }
 0x11a   : > { %548 = vst.msk [vmem:[#allocation4 + $0x30] sm:$0xf] %vm15005_vm1, %v538_v42  ;;  %vm15007_vm1 = vcmask 462256   ;;  %v15232_v42 = vld [vmem:[#allocation31_spill] sm:$0xff] }
 0x11b   : > { %571 = vst.msk [vmem:[#allocation4 + $0x20] sm:$0xff] %vm15006_vm8, %v561_v51  ;;  %1003 = vrot.lane.b32.xlu0 %v11075_v16, %s15203_s24  ;;  %1017 = vrot.lane.b32.xlu1 %v11078_v17, %s15204_s25  ;;  %vm690_vm8 = vcmask 589352  }
 0x11d   : > { %v631_v50 = vpop.permute.xlu0 %630  ;;  %v654_v56 = vpop.permute.xlu1 %653 }
 0x11e   : > { %642 = vst.msk [vmem:[#allocation4 + $0x10] sm:$0xff] %vm640_vm5, %v631_v50  ;;  %v1165_v50 = vrot.slane %v11609_v48, 1 }
 0x11f   : > { %666 = vst.msk [vmem:[#allocation4] sm:$0xff] %vm665_vm6, %v654_v56  ;;  %959 = vrot.lane.b32.xlu0 %v11054_v57, %s10604_s29  ;;  %973 = vrot.lane.b32.xlu1 %v11089_v23, %s15201_s22  ;;  %s15212_s29 = smov 48  }
 0x121   : > { %v563_v49 = vpop.permute.xlu0 %562  ;;  %v586_v61 = vpop.permute.xlu1 %585 }
 0x122   : > { %573 = vst.msk [vmem:[#allocation4 + $0x30] sm:$0xf] %vm15007_vm1, %v563_v49  ;;  %vm15009_vm1 = vcmask 486856   ;;  %v15233_v49 = vld [vmem:[#allocation29_spill] sm:$0xff] }
 0x123   : > { %596 = vst.msk [vmem:[#allocation4 + $0x20] sm:$0xff] %vm15008_vm3, %v586_v61  ;;  %1019 = vrot.lane.b32.xlu0 %v11103_v35, %s15204_s25  ;;  %1033 = vrot.lane.b32.xlu1 %v11106_v36, %s15205_s26  ;;  %vm715_vm3 = vcmask 613952  }
 0x125   : > { %v656_v16 = vpop.permute.xlu0 %655  ;;  %v679_v17 = vpop.permute.xlu1 %678 }
 0x126   : > { %667 = vst.msk [vmem:[#allocation4 + $0x10] sm:$0xff] %vm665_vm6, %v656_v16 }
 0x127   : > { %691 = vst.msk [vmem:[#allocation4] sm:$0xff] %vm690_vm8, %v679_v17  ;;  %975 = vrot.lane.b32.xlu0 %v11081_v22, %s15201_s22  ;;  %989 = vrot.lane.b32.xlu1 %v11057_v58, %s15202_s23 }
 0x129   : > { %v588_v57 = vpop.permute.xlu0 %587  ;;  %v608_v23 = vpop.permute.xlu1 %607 }
 0x12a   : > { %598 = vst.msk [vmem:[#allocation4 + $0x30] sm:$0xf] %vm15009_vm1, %v588_v57  ;;  %vm15012_vm1 = vcmask 511456   ;;  %v11630_v57 = vld [vmem:[%s10780_s21 + $0xb0] sm:$0xff] }
 0x12b   : > { %618 = vst.msk [vmem:[#allocation4 + $0x20] sm:$0xff] %vm15010_vm14, %v608_v23  ;;  %1035 = vrot.lane.b32.xlu0 %v11129_v44, %s15205_s26  ;;  %1049 = vrot.lane.b32.xlu1 %v11132_v54, %s15206_s27  ;;  %v15207_v44 = vld [vmem:[#allocation17_spill] sm:$0xff]  ;;  %vm15013_vm14 = vcmask 536056   ;;  %v1168_v23 = vrot.slane %v11630_v57, 1 }
 0x12d   : > { %v681_v35 = vpop.permute.xlu0 %680  ;;  %v704_v36 = vpop.permute.xlu1 %703 }
 0x12e   : > { %692 = vst.msk [vmem:[#allocation4 + $0x10] sm:$0xff] %vm690_vm8, %v681_v35 }
 0x12f   : > { %716 = vst.msk [vmem:[#allocation4] sm:$0xff] %vm715_vm3, %v704_v36  ;;  %991 = vrot.lane.b32.xlu0 %v11118_v34, %s15202_s23  ;;  %1005 = vrot.lane.b32.xlu1 %v11145_v30, %s15203_s24  ;;  %v15209_v30 = vld [vmem:[#allocation12_spill] sm:$0xff] }
 0x131   : > { %v610_v58 = vpop.permute.xlu0 %609  ;;  %v633_v22 = vpop.permute.xlu1 %632 }
 0x132   : > { %620 = vst.msk [vmem:[#allocation4 + $0x30] sm:$0xf] %vm15012_vm1, %v610_v58  ;;  %vm15014_vm1 = vcmask 560656  }
 0x133   : > { %643 = vst.msk [vmem:[#allocation4 + $0x20] sm:$0xff] %vm640_vm5, %v633_v22  ;;  %1051 = vrot.lane.b32.xlu0 %v15207_v44, %s15206_s27  ;;  %1065 = vrot.lane.b32.xlu1 %v11160_v31, %s15208_s28  ;;  %v15236_v22 = vld [vmem:[#allocation32_spill] sm:$0xff] }
 0x135   : > { %v706_v54 = vpop.permute.xlu0 %705  ;;  %v635_v34 = vpop.permute.xlu1 %634 }
 0x136   : > { %v721_v62 = vld [vmem:[#allocation4] sm:$0xff]  ;;  %717 = vst.msk [vmem:[#allocation4 + $0x10] sm:$0xff] %vm715_vm3, %v706_v54 }
 0x137   : > { %645 = vst.msk [vmem:[#allocation4 + $0x30] sm:$0xf] %vm15013_vm14, %v635_v34  ;;  %9785 = vmatprep.mubr.msk.f32.mxu0 %vm731_vm7, %v721_v62  ;;  %1007 = vrot.lane.b32.xlu0 %v15210_v39, %s15203_s24  ;;  %vm694_vm14 = vcmask 585256  }
 0x138   : > { %837 = vst.msk [vmem:[#allocation4] sm:$0xff] %vm15069_vm4, %v15209_v30  ;;  %1021 = vrot.lane.b32.xlu1 %v15211_v55, %s15204_s25  ;;  %v1191_v30 = vrot.slane %v11630_v57, 2 }
 0x139   : > { %v658_v31 = vpop.permute.xlu0 %657  ;;  %v660_v11 = vpop.permute.xlu1 %659 }
 0x13a   : > { %668 = vst.msk [vmem:[#allocation4 + $0x20] sm:$0xff] %vm665_vm6, %v658_v31 }
 0x13b   : > { %670 = vst.msk [vmem:[#allocation4 + $0x30] sm:$0xf] %vm15014_vm1, %v660_v11  ;;  %1067 = vrot.lane.b32.xlu0 %v11166_v29, %s15208_s28  ;;  %v15216_v29 = vld [vmem:[#allocation21_spill] sm:$0xff]  ;;  %vm719_vm1 = vcmask 609856  }
 0x13c   : > { %1081 = vrot.lane.b32.xlu1 %v15213_v47, %s15212_s29 }
 0x13d   : > { %v683_v45 = vpop.permute.xlu0 %682  ;;  %v685_v52 = vpop.permute.xlu1 %684  ;;  %v722_v53 = vld [vmem:[#allocation4 + $0x10] sm:$0xff] }
 0x13e   : > { %693 = vst.msk [vmem:[#allocation4 + $0x20] sm:$0xff] %vm690_vm8, %v683_v45  ;;  %9786 = vmatmul.mubr.msk.f32.vlgmr.msra.gmra.mxu0 %vm731_vm7, %v722_v53 }
 0x13f   : > { %695 = vst.msk [vmem:[#allocation4 + $0x30] sm:$0xf] %vm694_vm14, %v685_v52  ;;  %1023 = vrot.lane.b32.xlu0 %v15215_v60, %s15204_s25 }
 0x140   : > { %838 = vst.msk [vmem:[#allocation4 + $0x10] sm:$0xff] %vm15069_vm4, %v15214_v59  ;;  %1037 = vrot.lane.b32.xlu1 %v15216_v29, %s15205_s26  ;;  %v9241_v29 = vld [vmem:[%s10780_s21 + $0xb8] sm:$0xff] }
 0x141   : > { %v708_v1 = vpop.permute.xlu0 %707  ;;  %v710_v2 = vpop.permute.xlu1 %709 }
 0x142   : > { %718 = vst.msk [vmem:[#allocation4 + $0x20] sm:$0xff] %vm715_vm3, %v708_v1 }
 0x143   : > { %720 = vst.msk [vmem:[#allocation4 + $0x30] sm:$0xf] %vm719_vm1, %v710_v2  ;;  %1083 = vrot.lane.b32.xlu0 %v15217_v4, %s15212_s29 }
 0x144   : > { %1097 = vrot.lane.b32.xlu1 %v15219_v6, %s15218_s16 }
 0x145   : > { %v842_v9 = vpop.permute.xlu0 %841  ;;  %v844_v3 = vpop.permute.xlu1 %843 }
 0x146   : > { %853 = vst.msk [vmem:[#allocation4] sm:$0xff] %vm15016_vm10, %v842_v9  ;;  %854 = vst.msk [vmem:[#allocation4 + $0x10] sm:$0xff] %vm15016_vm10, %v844_v3  ;;  %v1170_v9 = vrot.slane %v9241_v29, 1 }
 0x147   : > { %1039 = vrot.lane.b32.xlu0 %v11192_v8, %s15205_s26  ;;  %v15223_v8 = vld [vmem:[#allocation26_spill] sm:$0xff] }
 0x148   : > { %1053 = vrot.lane.b32.xlu1 %v15220_v15, %s15206_s27 }
 0x149   : > { %v858_v18 = vpop.permute.xlu0 %857  ;;  %v860_v13 = vpop.permute.xlu1 %859  ;;  %v723_v21 = vld [vmem:[#allocation4 + $0x20] sm:$0xff] }
 0x14a   : > { %v724_v14 = vld [vmem:[#allocation4 + $0x30] sm:$0xf]  ;;  %869 = vst.msk [vmem:[#allocation4] sm:$0xff] %vm15017_vm11, %v858_v18  ;;  %870 = vst.msk [vmem:[#allocation4 + $0x10] sm:$0xff] %vm15017_vm11, %v860_v13  ;;  %9788 = vmatprep.mubr.msk.f32.mxu0 %vm731_vm7, %v723_v21  ;;  %v1193_v13 = vrot.slane %v9241_v29, 2 }
 0x14b   : > { %840 = vst.msk [vmem:[#allocation4 + $0x30] sm:$0xf] %vm15015_vm9, %v15221_v25  ;;  %1099 = vrot.lane.b32.xlu0 %v15223_v8, %s15218_s16  ;;  %9789 = vmatmul.mubr.msk.f32.gmra.mxu0 %vm731_vm7, %v724_v14  ;;  %vm15229_vm9 = vcmask 146552   ;;  %v1216_v8 = vrot.slane %v9241_v29, 3 }
 0x14c   : > { %839 = vst.msk [vmem:[#allocation4 + $0x20] sm:$0xff] %vm15069_vm4, %v15222_v26  ;;  %1113 = vrot.lane.b32.xlu1 %v15225_v19, %s15224_s12 }
 0x14d   : > { %v874_v28 = vpop.permute.xlu0 %873  ;;  %v876_v32 = vpop.permute.xlu1 %875 }
 0x14e   : > { %885 = vst.msk [vmem:[#allocation4] sm:$0xff] %vm15019_vm12, %v874_v28  ;;  %886 = vst.msk [vmem:[#allocation4 + $0x10] sm:$0xff] %vm15019_vm12, %v876_v32 }
 0x14f   : > { %1055 = vrot.lane.b32.xlu0 %v15226_v33, %s15206_s27  ;;  %v1239_v33 = vrot.slane %v9241_v29, 4 }
 0x150   : > { %1069 = vrot.lane.b32.xlu1 %v11195_v41, %s15208_s28  ;;  %v15230_v41 = vld [vmem:[#allocation30_spill] sm:$0xff] }
 0x151   : > { %v890_v20 = vpop.permute.xlu0 %889  ;;  %v846_v27 = vpop.permute.xlu1 %845 }
 0x152   : > { %901 = vst.msk [vmem:[#allocation4] sm:$0xff] %vm15018_vm13, %v890_v20 }
 0x153   : > { %855 = vst.msk [vmem:[#allocation4 + $0x20] sm:$0xff] %vm15016_vm10, %v846_v27  ;;  %1115 = vrot.lane.b32.xlu0 %v15227_v38, %s15224_s12  ;;  %vm15231_vm10 = vcmask 44056  }
 0x154   : > { %1129 = vrot.lane.b32.xlu1 %v11307_v7, %s15228_s15  ;;  %v11614_v7 = vld [vmem:[%s10780_s21 + $0xa8] sm:$0xff] }
 0x155   : > { %v892_v40 = vpop.permute.xlu0 %891  ;;  %v906_v37 = vpop.permute.xlu1 %905  ;;  %v1166_v56 = vrot.slane %v11614_v7, 1  ;;  %v1189_v58 = vrot.slane %v11614_v7, 2  ;;  %v1212_v31 = vrot.slane %v11614_v7, 3  ;;  %v1235_v60 = vrot.slane %v11614_v7, 4 }
 0x156   : > { %902 = vst.msk [vmem:[#allocation4 + $0x10] sm:$0xff] %vm15018_vm13, %v892_v40 }
 0x157   : > { %917 = vst.msk [vmem:[#allocation4] sm:$0xff] %vm15229_vm9, %v906_v37  ;;  %1071 = vrot.lane.b32.xlu0 %v11287_v63, %s15208_s28 }
 0x158   : > { %1085 = vrot.lane.b32.xlu1 %v15230_v41, %s15212_s29 }
 0x159   : > { %v848_v43 = vpop.permute.xlu0 %847  ;;  %v862_v46 = vpop.permute.xlu1 %861 }
 0x15a   : > { %856 = vst.msk [vmem:[#allocation4 + $0x30] sm:$0xf] %vm15231_vm10, %v848_v43  ;;  %vm15234_vm10 = vcmask 1046528  }
 0x15b   : > { %871 = vst.msk [vmem:[#allocation4 + $0x20] sm:$0xff] %vm15017_vm11, %v862_v46  ;;  %1131 = vrot.lane.b32.xlu0 %v15232_v42, %s15228_s15  ;;  %v1167_v17 = vsel %vm15234_vm10, %v1165_v50, %v1166_v56  ;;  %vm15235_vm11 = vcmask 68656  }
 0x15c   : > { %1149 = vrot.lane.b32.xlu1 %v11609_v48, %s10616_s18 }
 0x15d   : > { %v908_v63 = vpop.permute.xlu0 %907  ;;  %v922_v51 = vpop.permute.xlu1 %921 }
 0x15e   : > { %918 = vst.msk [vmem:[#allocation4 + $0x10] sm:$0xff] %vm15229_vm9, %v908_v63  ;;  %vm15238_vm9 = vcmask 1045504  }
 0x15f   : > { %933 = vst.msk [vmem:[#allocation4] sm:$0xff] %vm15022_vm0, %v922_v51  ;;  %1087 = vrot.lane.b32.xlu0 %v15233_v49, %s15212_s29 }
 0x160   : > { %1101 = vrot.lane.b32.xlu1 %v11356_v12, %s15218_s16  ;;  %v1188_v12 = vrot.slane %v11609_v48, 2 }
 0x161   : > { %v864_v61 = vpop.permute.xlu0 %863  ;;  %v878_v16 = vpop.permute.xlu1 %877 }
 0x162   : > { %872 = vst.msk [vmem:[#allocation4 + $0x30] sm:$0xf] %vm15235_vm11, %v864_v61  ;;  %vm15237_vm11 = vmmov %vm15234_vm10  ;;  %v1190_v62 = vsel %vm15238_vm9, %v1188_v12, %v1189_v58  ;;  %vm15239_vm10 = vcmask 93256  }
 0x163   : > { %887 = vst.msk [vmem:[#allocation4 + $0x20] sm:$0xff] %vm15019_vm12, %v878_v16  ;;  %1151 = vrot.lane.b32.xlu0 %v11614_v7, %s10616_s18  ;;  %v1169_v44 = vsel %vm15237_vm11, %v1166_v56, %v1168_v23  ;;  %vm15240_vm11 = vmmov %vm15238_vm9  ;;  %vm15241_vm9 = vcmask 1044480   ;;  %vm15250_vm12 = vcmask 269552  }
 0x164   : > { %1172 = vrot.lane.b32.xlu1 %v1167_v17, %s10617_s19  ;;  %v1192_v11 = vsel %vm15240_vm11, %v1189_v58, %v1191_v30  ;;  %vm15244_vm11 = vcmask 244952  }
 0x165   : > { %v924_v35 = vpop.permute.xlu0 %923  ;;  %v938_v36 = vpop.permute.xlu1 %937 }
 0x166   : > { %934 = vst.msk [vmem:[#allocation4 + $0x10] sm:$0xff] %vm15022_vm0, %v924_v35 }
 0x167   : > { %949 = vst.msk [vmem:[#allocation4] sm:$0xff] %vm15021_vm2, %v938_v36  ;;  %1103 = vrot.lane.b32.xlu0 %v15236_v22, %s15218_s16 }
 0x168   : > { %1117 = vrot.lane.b32.xlu1 %v11371_v0, %s15224_s12  ;;  %v1211_v0 = vrot.slane %v11609_v48, 3 }
 0x169   : > { %v880_v54 = vpop.permute.xlu0 %879  ;;  %v894_v34 = vpop.permute.xlu1 %893 }
 0x16a   : > { %888 = vst.msk [vmem:[#allocation4 + $0x30] sm:$0xf] %vm15239_vm10, %v880_v54  ;;  %v1213_v52 = vsel %vm15241_vm9, %v1211_v0, %v1212_v31  ;;  %vm15242_vm10 = vcmask 117856  }
 0x16b   : > { %903 = vst.msk [vmem:[#allocation4 + $0x20] sm:$0xff] %vm15018_vm13, %v894_v34  ;;  %1174 = vrot.lane.b32.xlu0 %v1169_v44, %s10617_s19  ;;  %vm15243_vm13 = vcmask 146552  }
 0x16c   : > { %1195 = vrot.lane.b32.xlu1 %v1190_v62, %s10618_s20 }
 0x16d   : > { %v940_v39 = vpop.permute.xlu0 %939  ;;  %v954_v55 = vpop.permute.xlu1 %953 }
 0x16e   : > { %950 = vst.msk [vmem:[#allocation4 + $0x10] sm:$0xff] %vm15021_vm2, %v940_v39 }
 0x16f   : > { %965 = vst.msk [vmem:[#allocation4] sm:$0xff] %vm15020_vm15, %v954_v55  ;;  %1119 = vrot.lane.b32.xlu0 %v11359_v5, %s15224_s12  ;;  %v1214_v5 = vrot.slane %v11630_v57, 3 }
 0x170   : > { %1133 = vrot.lane.b32.xlu1 %v11384_v10, %s15228_s15  ;;  %v1234_v10 = vrot.slane %v11609_v48, 4 }
 0x171   : > { %v896_v47 = vpop.permute.xlu0 %895  ;;  %v910_v45 = vpop.permute.xlu1 %909 }
 0x172   : > { %904 = vst.msk [vmem:[#allocation4 + $0x30] sm:$0xf] %vm15242_vm10, %v896_v47  ;;  %vm15247_vm10 = vcmask 142456  }
 0x173   : > { %919 = vst.msk [vmem:[#allocation4 + $0x20] sm:$0xff] %vm15243_vm13, %v910_v45  ;;  %1197 = vrot.lane.b32.xlu0 %v1192_v11, %s10618_s20  ;;  %vm15245_vm13 = vmmov %vm15241_vm9  ;;  %vm15246_vm9 = vcmask 1043456  }
 0x174   : > { %1218 = vrot.lane.b32.xlu1 %v1213_v52, %s10619_s14  ;;  %v1215_v1 = vsel %vm15245_vm13, %v1212_v31, %v1214_v5  ;;  %v1236_v6 = vsel %vm15246_vm9, %v1234_v10, %v1235_v60  ;;  %vm15249_vm13 = vcmask 244952  }
 0x175   : > { %v956_v53 = vpop.permute.xlu0 %955  ;;  %v970_v59 = vpop.permute.xlu1 %969 }
 0x176   : > { %966 = vst.msk [vmem:[#allocation4 + $0x10] sm:$0xff] %vm15020_vm15, %v956_v53 }
 0x177   : > { %981 = vst.msk [vmem:[#allocation4] sm:$0xff] %vm15244_vm11, %v970_v59  ;;  %1135 = vrot.lane.b32.xlu0 %v11374_v24, %s15228_s15  ;;  %v1237_v24 = vrot.slane %v11630_v57, 4  ;;  %vm15248_vm11 = vcmask 1046528  }
 0x178   : > { %1153 = vrot.lane.b32.xlu1 %v11630_v57, %s10616_s18  ;;  %v1171_v14 = vsel %vm15248_vm11, %v1168_v23, %v1170_v9  ;;  %vm15252_vm11 = vcmask 1045504  }
 0x179   : > { %v912_v2 = vpop.permute.xlu0 %911  ;;  %v926_v4 = vpop.permute.xlu1 %925  ;;  %v1238_v18 = vsel %vm15246_vm9, %v1235_v60, %v1237_v24  ;;  %v1194_v26 = vsel %vm15252_vm11, %v1191_v30, %v1193_v13  ;;  %vm15254_vm9 = vcmask 1044480   ;;  %vm15256_vm11 = vcmask 1043456  }
 0x17a   : > { %920 = vst.msk [vmem:[#allocation4 + $0x30] sm:$0xf] %vm15247_vm10, %v912_v2  ;;  %vm15251_vm10 = vcmask 167056   ;;  %v1217_v32 = vsel %vm15254_vm9, %v1214_v5, %v1216_v8  ;;  %v1240_v38 = vsel %vm15256_vm11, %v1237_v24, %v1239_v33  ;;  %vm15259_vm9 = vcmask 216256  }
 0x17b   : > { %935 = vst.msk [vmem:[#allocation4 + $0x20] sm:$0xff] %vm15022_vm0, %v926_v4  ;;  %1220 = vrot.lane.b32.xlu0 %v1215_v1, %s10619_s14  ;;  %vm15262_vm11 = vcmask 343352   ;;  %vm15266_vm0 = vcmask 367952  }
 0x17c   : > { %1241 = vrot.lane.b32.xlu1 %v1236_v6, %s10620_s30 }
 0x17d   : > { %v972_v3 = vpop.permute.xlu0 %971  ;;  %v986_v15 = vpop.permute.xlu1 %985 }
 0x17e   : > { %982 = vst.msk [vmem:[#allocation4 + $0x10] sm:$0xff] %vm15249_vm13, %v972_v3  ;;  %vm15253_vm13 = vcmask 294152  }
 0x17f   : > { %997 = vst.msk [vmem:[#allocation4] sm:$0xff] %vm15250_vm12, %v986_v15  ;;  %1155 = vrot.lane.b32.xlu0 %v9241_v29, %s10616_s18 }
 0x180   : > { %1176 = vrot.lane.b32.xlu1 %v1171_v14, %s10617_s19 }
 0x181   : > { %v928_v21 = vpop.permute.xlu0 %927  ;;  %v942_v25 = vpop.permute.xlu1 %941 }
 0x182   : > { %936 = vst.msk [vmem:[#allocation4 + $0x30] sm:$0xf] %vm15251_vm10, %v928_v21  ;;  %vm15255_vm10 = vcmask 191656  }
 0x183   : > { %951 = vst.msk [vmem:[#allocation4 + $0x20] sm:$0xff] %vm15021_vm2, %v942_v25  ;;  %1243 = vrot.lane.b32.xlu0 %v1238_v18, %s10620_s30  ;;  %vm15265_vm2 = vmmov %vm15262_vm11 }
 0x184   : > { %1178 = vrot.lane.b32.xlu1 %v1170_v9, %s10617_s19  ;;  %s9259_s19 = sshll.u32 %s10582_s17, 4  ;;  %s65_s17 = sadd.s32 1, %s10582_s17  }
 0x185   : > { %v988_v19 = vpop.permute.xlu0 %987  ;;  %v1002_v28 = vpop.permute.xlu1 %1001  ;;  %p62_p0 = scmp.ge.s32.totalorder %s65_s17, 14  }
 0x186   : > { %998 = vst.msk [vmem:[#allocation4 + $0x10] sm:$0xff] %vm15250_vm12, %v988_v19  ;;  %vm15257_vm12 = vmmov %vm15253_vm13 }
 0x187   : > { %1013 = vst.msk [vmem:[#allocation4] sm:$0xff] %vm15253_vm13, %v1002_v28  ;;  %1199 = vrot.lane.b32.xlu0 %v1194_v26, %s10618_s20  ;;  %vm15258_vm13 = vcmask 318752  }
 0x188   : > { %1201 = vrot.lane.b32.xlu1 %v1193_v13, %s10618_s20  ;;  %s1535_s20 = scalar_lea.vmem [#allocation2], %s9259_s19 }
 0x189   : > { %v944_v20 = vpop.permute.xlu0 %943  ;;  %v958_v27 = vpop.permute.xlu1 %957 }
 0x18a   : > { %952 = vst.msk [vmem:[#allocation4 + $0x30] sm:$0xf] %vm15255_vm10, %v944_v20  ;;  %vm15260_vm10 = vcmask 244952  }
 0x18b   : > { %967 = vst.msk [vmem:[#allocation4 + $0x20] sm:$0xff] %vm15020_vm15, %v958_v27  ;;  %1222 = vrot.lane.b32.xlu0 %v1217_v32, %s10619_s14  ;;  %vm15261_vm15 = vmmov %vm15258_vm13 }
 0x18c   : > { %1224 = vrot.lane.b32.xlu1 %v1216_v8, %s10619_s14  ;;  %s11792_s14 = smov (%p62_p0), 0  }
 0x18d   : > { %v1004_v40 = vpop.permute.xlu0 %1003  ;;  %v1018_v37 = vpop.permute.xlu1 %1017 }
 0x18e   : > { %1014 = vst.msk [vmem:[#allocation4 + $0x10] sm:$0xff] %vm15257_vm12, %v1004_v40  ;;  %vm15263_vm12 = vcmask 240856   ;;  %v15302_v40 = vld [vmem:[#allocation8_spill] sm:$0xff] }
 0x18f   : > { %1029 = vst.msk [vmem:[#allocation4] sm:$0xff] %vm15258_vm13, %v1018_v37  ;;  %1245 = vrot.lane.b32.xlu0 %v1240_v38, %s10620_s30  ;;  %vm15264_vm13 = vcmask 269552   ;;  %v15303_v37 = vld [vmem:[#allocation10_spill] sm:$0xff] }
 0x190   : > { %1247 = vrot.lane.b32.xlu1 %v1239_v33, %s10620_s30 }
 0x191   : > { %v960_v41 = vpop.permute.xlu0 %959  ;;  %v974_v43 = vpop.permute.xlu1 %973 }
 0x192   : > { %968 = vst.msk [vmem:[#allocation4 + $0x30] sm:$0xf] %vm15259_vm9, %v960_v41  ;;  %vm15267_vm9 = vcmask 265456  }
 0x193   : > { %983 = vst.msk [vmem:[#allocation4 + $0x20] sm:$0xff] %vm15260_vm10, %v974_v43  ;;  %vm15268_vm10 = vcmask 294152  }
 0x195   : > { %v1020_v46 = vpop.permute.xlu0 %1019  ;;  %v1034_v48 = vpop.permute.xlu1 %1033 }
 0x196   : > { %1030 = vst.msk [vmem:[#allocation4 + $0x10] sm:$0xff] %vm15261_vm15, %v1020_v46  ;;  %vm15269_vm15 = vmmov %vm15266_vm0 }
 0x197   : > { %1045 = vst.msk [vmem:[#allocation4] sm:$0xff] %vm15262_vm11, %v1034_v48  ;;  %vm15270_vm11 = vcmask 392552  }
 0x199   : > { %v976_v7 = vpop.permute.xlu0 %975  ;;  %v990_v42 = vpop.permute.xlu1 %989 }
 0x19a   : > { %984 = vst.msk [vmem:[#allocation4 + $0x30] sm:$0xf] %vm15263_vm12, %v976_v7  ;;  %vm15271_vm12 = vcmask 290056   ;;  %v9242_v7 = vld [vmem:[%s14914_s2] ss:$0 sm:$0xff] }
 0x19b   : > { %999 = vst.msk [vmem:[#allocation4 + $0x20] sm:$0xff] %vm15264_vm13, %v990_v42  ;;  %vm15272_vm13 = vcmask 318752  }
 0x19d   : > { %v1036_v63 = vpop.permute.xlu0 %1035  ;;  %v1050_v51 = vpop.permute.xlu1 %1049 }
 0x19e   : > { %1046 = vst.msk [vmem:[#allocation4 + $0x10] sm:$0xff] %vm15265_vm2, %v1036_v63  ;;  %vm15274_vm2 = vcmask 417152  }
 0x19f   : > { %1061 = vst.msk [vmem:[#allocation4] sm:$0xff] %vm15266_vm0, %v1050_v51  ;;  %vm15273_vm0 = vmmov %vm15270_vm11 }
 0x1a1   : > { %v992_v50 = vpop.permute.xlu0 %991  ;;  %v1006_v56 = vpop.permute.xlu1 %1005 }
 0x1a2   : > { %1000 = vst.msk [vmem:[#allocation4 + $0x30] sm:$0xf] %vm15267_vm9, %v992_v50  ;;  %vm15275_vm9 = vcmask 314656  }
 0x1a3   : > { %1015 = vst.msk [vmem:[#allocation4 + $0x20] sm:$0xff] %vm15268_vm10, %v1006_v56  ;;  %vm15276_vm10 = vcmask 343352  }
 0x1a5   : > { %v1052_v49 = vpop.permute.xlu0 %1051  ;;  %v1066_v61 = vpop.permute.xlu1 %1065 }
 0x1a6   : > { %1062 = vst.msk [vmem:[#allocation4 + $0x10] sm:$0xff] %vm15269_vm15, %v1052_v49  ;;  %vm15277_vm15 = vmmov %vm15274_vm2 }
 0x1a7   : > { %1077 = vst.msk [vmem:[#allocation4] sm:$0xff] %vm15270_vm11, %v1066_v61  ;;  %vm15278_vm11 = vcmask 441752  }
 0x1a9   : > { %v1008_v16 = vpop.permute.xlu0 %1007 }
 0x1aa   : > { %v1022_v17 = vpop.permute.xlu1 %1021  ;;  %1016 = vst.msk [vmem:[#allocation4 + $0x30] sm:$0xf] %vm15271_vm12, %v1008_v16  ;;  %vm15279_vm12 = vcmask 339256  }
 0x1ab   : > { %1031 = vst.msk [vmem:[#allocation4 + $0x20] sm:$0xff] %vm15272_vm13, %v1022_v17  ;;  %vm15280_vm13 = vcmask 367952  }
 0x1ad   : > { %v1068_v57 = vpop.permute.xlu0 %1067 }
 0x1ae   : > { %v1082_v23 = vpop.permute.xlu1 %1081  ;;  %1078 = vst.msk [vmem:[#allocation4 + $0x10] sm:$0xff] %vm15273_vm0, %v1068_v57  ;;  %vm15281_vm0 = vmmov %vm15278_vm11 }
 0x1af   : > { %1093 = vst.msk [vmem:[#allocation4] sm:$0xff] %vm15274_vm2, %v1082_v23  ;;  %vm15282_vm2 = vcmask 466352  }
 0x1b1   : > { %v1024_v35 = vpop.permute.xlu0 %1023 }
 0x1b2   : > { %v1038_v36 = vpop.permute.xlu1 %1037  ;;  %1032 = vst.msk [vmem:[#allocation4 + $0x30] sm:$0xf] %vm15275_vm9, %v1024_v35  ;;  %vm15283_vm9 = vcmask 363856  }
 0x1b3   : > { %1047 = vst.msk [vmem:[#allocation4 + $0x20] sm:$0xff] %vm15276_vm10, %v1038_v36  ;;  %vm15284_vm10 = vcmask 392552  }
 0x1b5   : > { %v1084_v12 = vpop.permute.xlu0 %1083 }
 0x1b6   : > { %v1098_v58 = vpop.permute.xlu1 %1097  ;;  %1094 = vst.msk [vmem:[#allocation4 + $0x10] sm:$0xff] %vm15277_vm15, %v1084_v12  ;;  %vm15285_vm15 = vmmov %vm15282_vm2 }
 0x1b7   : > { %1109 = vst.msk [vmem:[#allocation4] sm:$0xff] %vm15278_vm11, %v1098_v58  ;;  %vm15286_vm11 = vcmask 490952  }
 0x1b9   : > { %v1040_v22 = vpop.permute.xlu0 %1039 }
 0x1ba   : > { %v1054_v44 = vpop.permute.xlu1 %1053  ;;  %1048 = vst.msk [vmem:[#allocation4 + $0x30] sm:$0xf] %vm15279_vm12, %v1040_v22  ;;  %vm15287_vm12 = vcmask 388456  }
 0x1bb   : > { %1063 = vst.msk [vmem:[#allocation4 + $0x20] sm:$0xff] %vm15280_vm13, %v1054_v44  ;;  %vm15288_vm13 = vcmask 417152  }
 0x1bd   : > { %v1100_v54 = vpop.permute.xlu0 %1099 }
 0x1be   : > { %1110 = vst.msk [vmem:[#allocation4 + $0x10] sm:$0xff] %vm15281_vm0, %v1100_v54  ;;  %v1114_v34 = vpop.permute.xlu1 %1113  ;;  %vm15289_vm0 = vmmov %vm15286_vm11 }
 0x1bf   : > { %1125 = vst.msk [vmem:[#allocation4] sm:$0xff] %vm15282_vm2, %v1114_v34  ;;  %vm15290_vm2 = vcmask 515552  }
 0x1c1   : > { %v1056_v62 = vpop.permute.xlu0 %1055 }
 0x1c2   : > { %1064 = vst.msk [vmem:[#allocation4 + $0x30] sm:$0xf] %vm15283_vm9, %v1056_v62  ;;  %v1070_v30 = vpop.permute.xlu1 %1069  ;;  %vm15291_vm9 = vcmask 413056  }
 0x1c3   : > { %1079 = vst.msk [vmem:[#allocation4 + $0x20] sm:$0xff] %vm15284_vm10, %v1070_v30  ;;  %vm15292_vm10 = vcmask 441752  }
 0x1c5   : > { %v1116_v39 = vpop.permute.xlu0 %1115 }
 0x1c6   : > { %1126 = vst.msk [vmem:[#allocation4 + $0x10] sm:$0xff] %vm15285_vm15, %v1116_v39  ;;  %v1130_v55 = vpop.permute.xlu1 %1129  ;;  %vm15293_vm15 = vmmov %vm15290_vm2 }
 0x1c7   : > { %1141 = vst.msk [vmem:[#allocation4] sm:$0xff] %vm15286_vm11, %v1130_v55  ;;  %vm15294_vm11 = vcmask 437656  }
 0x1c9   : > { %v1072_v0 = vpop.permute.xlu0 %1071 }
 0x1ca   : > { %1080 = vst.msk [vmem:[#allocation4 + $0x30] sm:$0xf] %vm15287_vm12, %v1072_v0  ;;  %v1086_v31 = vpop.permute.xlu1 %1085  ;;  %vm15295_vm12 = vcmask 466352  }
 0x1cb   : > { %1095 = vst.msk [vmem:[#allocation4 + $0x20] sm:$0xff] %vm15288_vm13, %v1086_v31  ;;  %vm15296_vm13 = vcmask 462256   ;;  %v15308_v31 = vld [vmem:[#allocation9_spill] sm:$0xff] }
 0x1cd   : > { %v1132_v11 = vpop.permute.xlu0 %1131 }
 0x1ce   : > { %1142 = vst.msk [vmem:[#allocation4 + $0x10] sm:$0xff] %vm15289_vm0, %v1132_v11  ;;  %v1150_v47 = vpop.permute.xlu1 %1149  ;;  %v15309_v11 = vld [vmem:[#allocation11_spill] sm:$0xff] }
 0x1cf   : > { %1161 = vst.msk [vmem:[#allocation4] sm:$0xff] %vm15290_vm2, %v1150_v47  ;;  %vm15297_vm2 = vcmask 486856  }
 0x1d1   : > { %v1088_v45 = vpop.permute.xlu0 %1087 }
 0x1d2   : > { %1096 = vst.msk [vmem:[#allocation4 + $0x30] sm:$0xf] %vm15291_vm9, %v1088_v45  ;;  %v1102_v52 = vpop.permute.xlu1 %1101  ;;  %vm15298_vm9 = vmmov %vm15293_vm15 }
 0x1d3   : > { %1111 = vst.msk [vmem:[#allocation4 + $0x20] sm:$0xff] %vm15292_vm10, %v1102_v52  ;;  %vm15299_vm10 = vcmask 511456  }
 0x1d5   : > { %v1152_v5 = vpop.permute.xlu0 %1151 }
 0x1d6   : > { %1162 = vst.msk [vmem:[#allocation4 + $0x10] sm:$0xff] %vm15293_vm15, %v1152_v5  ;;  %v1173_v53 = vpop.permute.xlu1 %1172  ;;  %vm15300_vm15 = vcmask 536056  }
 0x1d7   : > { %1184 = vst.msk [vmem:[#allocation4] sm:$0xff] %vm640_vm5, %v1173_v53 }
 0x1d9   : > { %v1104_v59 = vpop.permute.xlu0 %1103 }
 0x1da   : > { %1112 = vst.msk [vmem:[#allocation4 + $0x30] sm:$0xf] %vm15294_vm11, %v1104_v59  ;;  %v1118_v10 = vpop.permute.xlu1 %1117  ;;  %vm15301_vm11 = vcmask 560656  }
 0x1db   : > { %1127 = vst.msk [vmem:[#allocation4 + $0x20] sm:$0xff] %vm15295_vm12, %v1118_v10  ;;  %vm1366_vm12 = vcmask 228352  }
 0x1dc   : > { %9825 = vmatprep.mubr.msk.f32.mxu0 %vm1366_vm12, %v15302_v40 }
 0x1dd   : > { %v1175_v60 = vpop.permute.xlu0 %1174 }
 0x1de   : > { %1185 = vst.msk [vmem:[#allocation4 + $0x10] sm:$0xff] %vm640_vm5, %v1175_v60  ;;  %v1196_v29 = vpop.permute.xlu1 %1195 }
 0x1df   : > { %1207 = vst.msk [vmem:[#allocation4] sm:$0xff] %vm665_vm6, %v1196_v29 }
 0x1e1   : > { %v1120_v1 = vpop.permute.xlu0 %1119 }
 0x1e2   : > { %1128 = vst.msk [vmem:[#allocation4 + $0x30] sm:$0xf] %vm15296_vm13, %v1120_v1  ;;  %v1134_v2 = vpop.permute.xlu1 %1133  ;;  %vm15304_vm13 = vcmask 1043456  }
 0x1e3   : > { %1143 = vst.msk [vmem:[#allocation4 + $0x20] sm:$0xff] %vm15289_vm0, %v1134_v2  ;;  %vm15305_vm0 = vmmov %vm15304_vm13 }
 0x1e5   : > { %v1198_v4 = vpop.permute.xlu0 %1197 }
 0x1e6   : > { %1208 = vst.msk [vmem:[#allocation4 + $0x10] sm:$0xff] %vm665_vm6, %v1198_v4  ;;  %v1219_v6 = vpop.permute.xlu1 %1218 }
 0x1e7   : > { %1230 = vst.msk [vmem:[#allocation4] sm:$0xff] %vm690_vm8, %v1219_v6 }
 0x1e9   : > { %v1136_v9 = vpop.permute.xlu0 %1135 }
 0x1ea   : > { %1144 = vst.msk [vmem:[#allocation4 + $0x30] sm:$0xf] %vm15297_vm2, %v1136_v9  ;;  %v1154_v24 = vpop.permute.xlu1 %1153  ;;  %vm15306_vm2 = vmmov %vm15305_vm0 }
 0x1eb   : > { %1163 = vst.msk [vmem:[#allocation4 + $0x20] sm:$0xff] %vm15298_vm9, %v1154_v24  ;;  %vm15307_vm9 = vmmov %vm15305_vm0 }
 0x1ed   : > { %v1221_v3 = vpop.permute.xlu0 %1220 }
 0x1ee   : > { %1231 = vst.msk [vmem:[#allocation4 + $0x10] sm:$0xff] %vm690_vm8, %v1221_v3  ;;  %v1242_v15 = vpop.permute.xlu1 %1241 }
 0x1ef   : > { %1253 = vst.msk [vmem:[#allocation4] sm:$0xff] %vm715_vm3, %v1242_v15 }
 0x1f1   : > { %v1156_v14 = vpop.permute.xlu0 %1155 }
 0x1f2   : > { %1164 = vst.msk [vmem:[#allocation4 + $0x30] sm:$0xf] %vm15299_vm10, %v1156_v14  ;;  %v1177_v18 = vpop.permute.xlu1 %1176  ;;  %vm15071_vm10 = vcmask 46080  }
 0x1f3   : > { %1186 = vst.msk [vmem:[#allocation4 + $0x20] sm:$0xff] %vm640_vm5, %v1177_v18 }
 0x1f5   : > { %v1244_v13 = vpop.permute.xlu0 %1243 }
 0x1f6   : > { %1254 = vst.msk [vmem:[#allocation4 + $0x10] sm:$0xff] %vm715_vm3, %v1244_v13  ;;  %v1179_v21 = vpop.permute.xlu1 %1178  ;;  %v1257_v25 = vld [vmem:[#allocation4] sm:$0xff] }
 0x1f7   : > { %1187 = vst.msk [vmem:[#allocation4 + $0x30] sm:$0xf] %vm15300_vm15, %v1179_v21  ;;  %9811 = vmatprep.mubr.msk.f32.mxu1 %vm731_vm7, %v1257_v25  ;;  %vm15070_vm15 = vcmask 48128  }
 0x1f9   : > { %v1200_v26 = vpop.permute.xlu0 %1199 }
 0x1fa   : > { %1209 = vst.msk [vmem:[#allocation4 + $0x20] sm:$0xff] %vm665_vm6, %v1200_v26  ;;  %v1202_v8 = vpop.permute.xlu1 %1201 }
 0x1fb   : > { %1210 = vst.msk [vmem:[#allocation4 + $0x30] sm:$0xf] %vm15301_vm11, %v1202_v8 }
 0x1fd   : > { %v1223_v19 = vpop.permute.xlu0 %1222  ;;  %v1258_v28 = vld [vmem:[#allocation4 + $0x10] sm:$0xff] }
 0x1fe   : > { %1232 = vst.msk [vmem:[#allocation4 + $0x20] sm:$0xff] %vm690_vm8, %v1223_v19  ;;  %v1225_v32 = vpop.permute.xlu1 %1224  ;;  %9812 = vmatmul.mubr.msk.f32.vlgmr.msra.gmra.mxu1 %vm731_vm7, %v1258_v28  ;;  %v9787_v41 = vpop.f32.mrf.mxu0 }
 0x1ff   : > { %1233 = vst.msk [vmem:[#allocation4 + $0x30] sm:$0xf] %vm694_vm14, %v1225_v32  ;;  %v820_v16 = vadd.f32 %v9787_v41, %v9242_v7 }
 0x200   : > { %v814_v43 = vpop.f32.mrf.mxu0 }
 0x201   : > { %v1246_v33 = vpop.permute.xlu0 %1245  ;;  %v815_v12 = vadd.f32 %v9242_v7, %v814_v43  ;;  %v834_v34 = vmax.f32 %v820_v16, 0.0 }
 0x202   : > { %1255 = vst.msk [vmem:[#allocation4 + $0x20] sm:$0xff] %vm715_vm3, %v1246_v33  ;;  %v1248_v20 = vpop.permute.xlu1 %1247 }
 0x203   : > { %1256 = vst.msk [vmem:[#allocation4 + $0x30] sm:$0xf] %vm719_vm1, %v1248_v20  ;;  %v833_v39 = vmax.f32 %v815_v12, 0.0 }
 0x209   : > { %v1259_v27 = vld [vmem:[#allocation4 + $0x20] sm:$0xff] }
 0x20a   : > { %9814 = vmatprep.mubr.msk.f32.mxu1 %vm731_vm7, %v1259_v27  ;;  %v1260_v38 = vld [vmem:[#allocation4 + $0x30] sm:$0xf] }
 0x20b   : > { %9815 = vmatmul.mubr.msk.f32.gmra.mxu1 %vm731_vm7, %v1260_v38  ;;  %v9790_v46 = vpop.f32.mrf.mxu0 }
 0x20c   : > { %9836 = vmatprep.mubr.msk.f32.mxu1 %vm1366_vm12, %v15303_v37  ;;  %v830_v51 = vadd.f32 %v9790_v46, %v9242_v7 }
 0x20d   : > { %v824_v42 = vpop.f32.mrf.mxu0 }
 0x20e   : > { %v825_v56 = vadd.f32 %v9242_v7, %v824_v42  ;;  %v836_v57 = vmax.f32 %v830_v51, 0.0 }
 0x210   : > { %v835_v58 = vmax.f32 %v825_v56, 0.0 }
 0x2be   : > { %v9813_v48 = vpop.f32.mrf.mxu1 }
 0x2bf   : > { %v1345_v49 = vadd.f32 %v9813_v48, %v9242_v7 }
 0x2c0   : > { %v1339_v63 = vpop.f32.mrf.mxu1 }
 0x2c1   : > { %v1340_v23 = vadd.f32 %v9242_v7, %v1339_v63  ;;  %v1359_v22 = vmax.f32 %v1345_v49, 0.0 }
 0x2c3   : > { %v1358_v62 = vmax.f32 %v1340_v23, 0.0  ;;  %v1363_v55 = vmax.f32 %v834_v34, %v1359_v22 }
 0x2c5   : > { %v1362_v0 = vmax.f32 %v833_v39, %v1358_v62 }
 0x2cb   : > { %v9816_v50 = vpop.f32.mrf.mxu1 }
 0x2cc   : > { %v1355_v61 = vadd.f32 %v9816_v50, %v9242_v7 }
 0x2cd   : > { %v1349_v17 = vpop.f32.mrf.mxu1 }
 0x2ce   : > { %v1361_v35 = vmax.f32 %v1355_v61, 0.0  ;;  %v1350_v36 = vadd.f32 %v9242_v7, %v1349_v17 }
 0x2d0   : > { %v1365_v44 = vmax.f32 %v836_v57, %v1361_v35  ;;  %v1360_v54 = vmax.f32 %v1350_v36, 0.0 }
 0x2d2   : > { %v1364_v30 = vmax.f32 %v835_v58, %v1360_v54  ;;  %9817 = vmatprep.subr.msk.mxu0 %vm15304_vm13, %v1365_v44  ;;  %9828 = vmatprep.subr.msk.mxu1 %vm15305_vm0, %v1365_v44 }
 0x2d3   : > { %9818 = vmatpush3.msk.msra.mxu0 %vm15306_vm2, %v1365_v44  ;;  %9829 = vmatpush3.msk.msra.mxu1 %vm15307_vm9, %v1365_v44 }
 0x2d4   : > { %9819 = vmatprep.subr.mxu0 %v1364_v30  ;;  %9830 = vmatprep.subr.mxu1 %v1364_v30 }
 0x2d5   : > { %9820 = vmatpush3.msra.mxu0 %v1364_v30  ;;  %9831 = vmatpush3.msra.mxu1 %v1364_v30 }
 0x2d6   : > { %9821 = vmatprep.subr.mxu0 %v1363_v55  ;;  %9832 = vmatprep.subr.mxu1 %v1363_v55 }
 0x2d7   : > { %9822 = vmatpush3.msra.mxu0 %v1363_v55  ;;  %9833 = vmatpush3.msra.mxu1 %v1363_v55 }
 0x2d8   : > { %9823 = vmatprep.subr.mxu0 %v1362_v0  ;;  %9834 = vmatprep.subr.mxu1 %v1362_v0 }
 0x2d9   : > { %9824 = vmatpush3.msra.mxu0 %v1362_v0  ;;  %9835 = vmatpush3.msra.mxu1 %v1362_v0 }
 0x2da   : > { %9826 = vmatmul.mubr.msk.f32.vlgmr.msra.gmra.mxu0 %vm1366_vm12, %v15308_v31  ;;  %9837 = vmatmul.mubr.msk.f32.vlgmr.msra.gmra.mxu1 %vm1366_vm12, %v15309_v11 }
 0x39a   : > { %v9827_v47 = vpop.f32.mrf.mxu0  ;;  %v9838_v45 = vpop.f32.mrf.mxu1 }
 0x39b   : > { %v1533_v52 = vmax.f32 %v9827_v47, %v9838_v45  ;;  %64 = sbr.rel (!%p62_p0) target bundleno = 13 (0xd), region = 129 }
 0x39c   : > { %v1442_v5 = vpop.f32.mrf.mxu0  ;;  %v1523_v53 = vpop.f32.mrf.mxu1 }
 0x39d   : > { %1539 = vst.msk [vmem:[%s1535_s20 + $0x8] sm:$0x3f] %vm15071_vm10, %v1533_v52  ;;  %v1532_v59 = vmax.f32 %v1442_v5, %v1523_v53 }
 0x39f   : > { %1537 = vst.msk [vmem:[%s1535_s20] sm:$0xff] %vm15070_vm15, %v1532_v59 }
 0x3a0 LB: > { %s9449_s30 = sshll.u32 %s10586_s14, 6  ;;  %vm15310_vm4 = vcmask 23552   ;;  %vm15311_vm11 = vcmask 19456   ;;  %vm15312_vm13 = vcmask 1046528   ;;  %vm15313_vm0 = vcmask 1045504   ;;  %s10621_s17 = smov 3   ;;  %s10586_s14 = sphi %s11792_s14, %s1545_s14  }
 0x3a1   : > { %s11801_s23 = scalar_lea.vmem %s14912_s0, %s9449_s30  ;;  %s10622_s24 = smov 6   ;;  %vm15314_vm2 = vmmov %vm15312_vm13  ;;  %vm15558_vm10 = vcmask 367952  }
 0x3a2   : > { %v9262_v10 = vld [vmem:[%s11801_s23 + $0x400] sm:$0xff]  ;;  %v9263_v60 = vld [vmem:[%s11801_s23 + $0x408] sm:$0xff]  ;;  %v11806_v29 = vld [vmem:[%s11801_s23 + $0x410] sm:$0xff]  ;;  %s10623_s25 = smov 9   ;;  %s10624_s26 = smov 12  }
 0x3a3   : > { %v1611_v1 = vrot.slane %v9262_v10, 1  ;;  %v1612_v2 = vrot.slane %v9263_v60, 1  ;;  %1601 = vst.msk [vmem:[#allocation4] sm:$0xff] %vm15310_vm4, %v9262_v10  ;;  %1602 = vst.msk [vmem:[#allocation4 + $0x10] sm:$0xff] %vm15310_vm4, %v9263_v60  ;;  %v1637_v4 = vrot.slane %v9262_v10, 2  ;;  %v1638_v6 = vrot.slane %v9263_v60, 2 }
 0x3a4   : > { %1603 = vst.msk [vmem:[#allocation4 + $0x20] sm:$0xff] %vm15310_vm4, %v11806_v29  ;;  %v11813_v9 = vld [vmem:[%s11801_s23 + $0x418] sm:$0xff]  ;;  %v1614_v24 = vrot.slane %v11806_v29, 1  ;;  %v1640_v3 = vrot.slane %v11806_v29, 2  ;;  %v1663_v18 = vrot.slane %v9262_v10, 3  ;;  %vm15315_vm9 = vmmov %vm15313_vm0  ;;  %v1664_v25 = vrot.slane %v9263_v60, 3 }
 0x3a5   : > { %1605 = vst.msk [vmem:[#allocation4 + $0x30] sm:$0xf] %vm15311_vm11, %v11813_v9  ;;  %v1613_v15 = vsel %vm15312_vm13, %v1611_v1, %v1612_v2  ;;  %v1639_v14 = vsel %vm15313_vm0, %v1637_v4, %v1638_v6  ;;  %v1666_v26 = vrot.slane %v11806_v29, 3  ;;  %v1689_v8 = vrot.slane %v9262_v10, 4  ;;  %v11840_v37 = vld [vmem:[%s11801_s23 + $0x420] sm:$0xff]  ;;  %v11844_v43 = vld [vmem:[%s11801_s23 + $0x428] sm:$0xff] }
 0x3a6   : > { %1618 = vrot.lane.b32.xlu0 %v1613_v15, %s10621_s17  ;;  %1644 = vrot.lane.b32.xlu1 %v1639_v14, %s10622_s24  ;;  %v1615_v13 = vsel %vm15314_vm2, %v1612_v2, %v1614_v24  ;;  %v1641_v21 = vsel %vm15315_vm9, %v1638_v6, %v1640_v3  ;;  %vm15316_vm11 = vcmask 1044480   ;;  %v1690_v32 = vrot.slane %v9263_v60, 4  ;;  %15320 = vst [vmem:[#allocation33_spill] sm:$0xff] %v11840_v37  ;;  %15321 = vst [vmem:[#allocation34_spill] sm:$0xff] %v11844_v43  ;;  %s10625_s27 = smov 15   ;;  %v11859_v51 = vld [vmem:[%s11801_s23 + $0x430] sm:$0xff] }
 0x3a7   : > { %v1665_v19 = vsel %vm15316_vm11, %v1663_v18, %v1664_v25  ;;  %vm15317_vm13 = vmmov %vm15316_vm11  ;;  %v1616_v33 = vrot.slane %v11813_v9, 1  ;;  %vm15318_vm0 = vcmask 1043456   ;;  %v1692_v38 = vrot.slane %v11806_v29, 4  ;;  %15324 = vst [vmem:[#allocation35_spill] sm:$0xff] %v11859_v51  ;;  %s10626_s28 = smov 18   ;;  %s10627_s29 = smov 21  }
 0x3a8   : > { %v1667_v28 = vsel %vm15317_vm13, %v1664_v25, %v1666_v26  ;;  %v1691_v20 = vsel %vm15318_vm0, %v1689_v8, %v1690_v32  ;;  %vm15319_vm9 = vmmov %vm15318_vm0  ;;  %v1642_v41 = vrot.slane %v11813_v9, 2  ;;  %vm15322_vm11 = vcmask 1045504   ;;  %s10628_s16 = smov 24   ;;  %v11902_v62 = vld [vmem:[%s11801_s23 + $0x438] sm:$0xff]  ;;  %s15048_s12 = smov 27   ;;  %v11933_v47 = vld [vmem:[%s11801_s23 + $0x440] sm:$0xff] }
 0x3a9   : > { %v1617_v27 = vsel %vm15314_vm2, %v1614_v24, %v1616_v33  ;;  %v1693_v40 = vsel %vm15319_vm9, %v1690_v32, %v1692_v38  ;;  %v1736_v48 = vrot.slane %v11840_v37, 1  ;;  %v1737_v7 = vrot.slane %v11844_v43, 1  ;;  %vm15323_vm13 = vmmov %vm15314_vm2  ;;  %15329 = vst [vmem:[#allocation36_spill] sm:$0xff] %v11902_v62  ;;  %v11939_v52 = vld [vmem:[%s11801_s23 + $0x448] sm:$0xff]  ;;  %s15046_s15 = smov 30   ;;  %v11962_v29 = vld [vmem:[%s11801_s23 + $0x450] sm:$0xff] }
 0x3aa   : > { %1620 = vrot.lane.b32.xlu0 %v1615_v13, %s10621_s17  ;;  %1646 = vrot.lane.b32.xlu1 %v1641_v21, %s10622_s24  ;;  %v1643_v46 = vsel %vm15322_vm11, %v1640_v3, %v1642_v41  ;;  %v1668_v63 = vrot.slane %v11813_v9, 3  ;;  %vm15325_vm0 = vcmask 1044480   ;;  %v1739_v56 = vrot.slane %v11859_v51, 1  ;;  %vm15326_vm9 = vmmov %vm15322_vm11  ;;  %s15042_s21 = smov 33   ;;  %s15040_s18 = smov 36  }
 0x3ab   : > { %v11855_v42 = vsel %vm15323_vm13, %v1736_v48, %v1737_v7  ;;  %v1761_v49 = vrot.slane %v11840_v37, 2  ;;  %v1762_v61 = vrot.slane %v11844_v43, 2  ;;  %v1694_v57 = vrot.slane %v11813_v9, 4  ;;  %vm15328_vm13 = vmmov %vm15326_vm9  ;;  %s15023_s19 = smov 39   ;;  %s15025_s20 = smov 42   ;;  %v12055_v48 = vld [vmem:[%s11801_s23 + $0x468] sm:$0xff] }
 0x3ac   : > { %v1669_v50 = vsel %vm15325_vm0, %v1666_v26, %v1668_v63  ;;  %v11872_v16 = vsel %vm15314_vm2, %v1737_v7, %v1739_v56  ;;  %vm15327_vm11 = vcmask 1043456   ;;  %v1764_v35 = vrot.slane %v11859_v51, 2  ;;  %vm15330_vm2 = vmmov %vm15325_vm0  ;;  %s15028_s30 = smov 45   ;;  %s15034_s13 = smov 48  }
 0x3ad   : > { %v11875_v17 = vsel %vm15326_vm9, %v1761_v49, %v1762_v61  ;;  %v1695_v23 = vsel %vm15327_vm11, %v1692_v38, %v1694_v57  ;;  %v1786_v36 = vrot.slane %v11840_v37, 3  ;;  %v1787_v12 = vrot.slane %v11844_v43, 3  ;;  %vm15331_vm9 = vmmov %vm15327_vm11  ;;  %s15044_s22 = smov 51  }
 0x3ae   : > { %1670 = vrot.lane.b32.xlu0 %v1665_v19, %s10623_s25  ;;  %1672 = vrot.lane.b32.xlu1 %v1667_v28, %s10623_s25  ;;  %v11889_v58 = vsel %vm15328_vm13, %v1762_v61, %v1764_v35  ;;  %v1789_v44 = vrot.slane %v11859_v51, 3  ;;  %v1811_v54 = vrot.slane %v11840_v37, 4  ;;  %v1812_v34 = vrot.slane %v11844_v43, 4  ;;  %vm15333_vm13 = vmmov %vm15331_vm9  ;;  %v12017_v28 = vld [vmem:[%s11801_s23 + $0x458] sm:$0xff]  ;;  %v12078_v61 = vld [vmem:[%s11801_s23 + $0x470] sm:$0xff] }
 0x3af   : > { %v11892_v22 = vsel %vm15325_vm0, %v1786_v36, %v1787_v12  ;;  %v11914_v55 = vrot.slane %v11902_v62, 1  ;;  %vm15332_vm11 = vcmask 1046528   ;;  %v1814_v31 = vrot.slane %v11859_v51, 4 }
 0x3b0   : > { %v11908_v30 = vsel %vm15330_vm2, %v1787_v12, %v1789_v44  ;;  %v11911_v39 = vsel %vm15331_vm9, %v1811_v54, %v1812_v34  ;;  %v11936_v45 = vrot.slane %v11902_v62, 2  ;;  %vm15334_vm0 = vcmask 1045504   ;;  %vm15335_vm2 = vmmov %vm15332_vm11 }
 0x3b1   : > { %v11922_v0 = vsel %vm15332_vm11, %v1739_v56, %v11914_v55  ;;  %v11930_v11 = vsel %vm15333_vm13, %v1812_v34, %v1814_v31  ;;  %v1858_v53 = vrot.slane %v11933_v47, 1  ;;  %v1859_v59 = vrot.slane %v11939_v52, 1  ;;  %vm15337_vm11 = vmmov %vm15335_vm2 }
 0x3b2   : > { %1696 = vrot.lane.b32.xlu0 %v1691_v20, %s10624_s26  ;;  %1622 = vrot.lane.b32.xlu1 %v1617_v27, %s10621_s17  ;;  %v11947_v5 = vsel %vm15334_vm0, %v1764_v35, %v11936_v45  ;;  %v11959_v60 = vrot.slane %v11902_v62, 3  ;;  %vm15336_vm9 = vcmask 1044480   ;;  %v1861_v2 = vrot.slane %v11962_v29, 1  ;;  %vm15338_vm13 = vmmov %vm15334_vm0 }
 0x3b3   : > { %v11956_v10 = vsel %vm15335_vm2, %v1858_v53, %v1859_v59  ;;  %v1883_v4 = vrot.slane %v11933_v47, 2  ;;  %v1884_v6 = vrot.slane %v11939_v52, 2  ;;  %v11986_v3 = vrot.slane %v11902_v62, 4  ;;  %vm15340_vm2 = vmmov %vm15338_vm13 }
 0x3b4   : > { %v11970_v1 = vsel %vm15336_vm9, %v1789_v44, %v11959_v60  ;;  %v11980_v9 = vsel %vm15337_vm11, %v1859_v59, %v1861_v2  ;;  %vm15339_vm0 = vcmask 1043456   ;;  %v1886_v14 = vrot.slane %v11962_v29, 2  ;;  %vm15341_vm11 = vmmov %vm15336_vm9 }
 0x3b5   : > { %v11983_v24 = vsel %vm15338_vm13, %v1883_v4, %v1884_v6  ;;  %v11994_v15 = vsel %vm15339_vm0, %v1814_v31, %v11986_v3  ;;  %v1908_v18 = vrot.slane %v11933_v47, 3  ;;  %v1909_v13 = vrot.slane %v11939_v52, 3  ;;  %vm15342_vm13 = vmmov %vm15339_vm0 }
 0x3b6   : > { %1698 = vrot.lane.b32.xlu0 %v1693_v40, %s10624_s26  ;;  %1718 = vrot.lane.b32.xlu1 %v11840_v37, %s10625_s27  ;;  %v12004_v21 = vsel %vm15340_vm2, %v1884_v6, %v1886_v14  ;;  %v1911_v26 = vrot.slane %v11962_v29, 3  ;;  %v1933_v8 = vrot.slane %v11933_v47, 4  ;;  %v1934_v19 = vrot.slane %v11939_v52, 4  ;;  %vm15344_vm2 = vmmov %vm15342_vm13 }
 0x3b7   : > { %v12007_v25 = vsel %vm15336_vm9, %v1908_v18, %v1909_v13  ;;  %v12030_v20 = vrot.slane %v12017_v28, 1  ;;  %vm15343_vm0 = vcmask 1046528   ;;  %v1936_v38 = vrot.slane %v11962_v29, 4 }
 0x3b8   : > { %v12024_v32 = vsel %vm15341_vm11, %v1909_v13, %v1911_v26  ;;  %vm15345_vm9 = vcmask 1045504   ;;  %vm15346_vm11 = vmmov %vm15343_vm0  ;;  %v12075_v49 = vrot.slane %v12017_v28, 3  ;;  %v2006_v36 = vrot.slane %v12055_v48, 2 }
 0x3b9   : > { %v12038_v27 = vsel %vm15343_vm0, %v1861_v2, %v12030_v20  ;;  %v12046_v40 = vsel %vm15344_vm2, %v1934_v19, %v1936_v38  ;;  %vm15348_vm2 = vmmov %vm15345_vm9  ;;  %v12102_v54 = vrot.slane %v12017_v28, 4  ;;  %v2008_v31 = vrot.slane %v12078_v61, 2 }
 0x3ba   : > { %1624 = vrot.lane.b32.xlu0 %v1616_v33, %s10621_s17  ;;  %1648 = vrot.lane.b32.xlu1 %v1643_v46, %s10622_s24  ;;  %v12027_v33 = vsel %vm15342_vm13, %v1933_v8, %v1934_v19  ;;  %v12052_v46 = vrot.slane %v12017_v28, 2  ;;  %vm15347_vm13 = vcmask 1044480   ;;  %v2031_v59 = vrot.slane %v12055_v48, 3 }
 0x3bb   : > { %v2056_v19 = vrot.slane %v12055_v48, 4 }
 0x3bc   : > { %v12063_v7 = vsel %vm15345_vm9, %v1886_v14, %v12052_v46  ;;  %vm15349_vm9 = vcmask 1043456  }
 0x3bd   : > { %v12110_v34 = vsel %vm15349_vm9, %v1936_v38, %v12102_v54 }
 0x3be   : > { %1720 = vrot.lane.b32.xlu0 %v11844_v43, %s10625_s27  ;;  %1743 = vrot.lane.b32.xlu1 %v11855_v42, %s10626_s28 }
 0x3c2   : > { %1650 = vrot.lane.b32.xlu0 %v1642_v41, %s10622_s24  ;;  %1674 = vrot.lane.b32.xlu1 %v1669_v50, %s10623_s25  ;;  %v12049_v41 = vld [vmem:[%s11801_s23 + $0x460] sm:$0xff]  ;;  %v1981_v50 = vrot.slane %v12055_v48, 1 }
 0x3c3   : > { %v2005_v35 = vrot.slane %v12049_v41, 2  ;;  %v2030_v53 = vrot.slane %v12049_v41, 3  ;;  %v2055_v8 = vrot.slane %v12049_v41, 4 }
 0x3c5   : > { %v12099_v44 = vsel %vm15348_vm2, %v2005_v35, %v2006_v36 }
 0x3c6   : > { %1745 = vrot.lane.b32.xlu0 %v11872_v16, %s10626_s28  ;;  %1768 = vrot.lane.b32.xlu1 %v11875_v17, %s10627_s29 }
 0x3ca   : > { %1676 = vrot.lane.b32.xlu0 %v1668_v63, %s10623_s25  ;;  %1700 = vrot.lane.b32.xlu1 %v1695_v23, %s10624_s26  ;;  %v1980_v63 = vrot.slane %v12049_v41, 1  ;;  %v1983_v23 = vrot.slane %v12078_v61, 1 }
 0x3cc   : > { %v12072_v56 = vsel %vm15346_vm11, %v1980_v63, %v1981_v50  ;;  %v12096_v12 = vsel %vm15343_vm0, %v1981_v50, %v1983_v23  ;;  %vm15350_vm11 = vcmask 48152   ;;  %vm15352_vm0 = vmmov %vm15348_vm2  ;;  %vm15353_vm2 = vcmask 1044480   ;;  %v12137_v50 = vld [vmem:[%s11801_s23 + $0x478] sm:$0xff] }
 0x3cd   : > { %v12122_v6 = vsel %vm15352_vm0, %v2006_v36, %v2008_v31  ;;  %v12125_v14 = vsel %vm15353_vm2, %v2030_v53, %v2031_v59  ;;  %vm15354_vm9 = vmmov %vm15350_vm11  ;;  %v12152_v53 = vrot.slane %v12137_v50, 1 }
 0x3ce   : > { %1770 = vrot.lane.b32.xlu0 %v11889_v58, %s10627_s29  ;;  %1793 = vrot.lane.b32.xlu1 %v11892_v22, %s10628_s16 }
 0x3cf   : > { %15359 = vst [vmem:[#allocation37_spill] sm:$0xff] %v12152_v53 }
 0x3d2   : > { %1702 = vrot.lane.b32.xlu0 %v1694_v57, %s10624_s26  ;;  %1722 = vrot.lane.b32.xlu1 %v11859_v51, %s10625_s27  ;;  %v12086_v57 = vsel %vm15347_vm13, %v1911_v26, %v12075_v49  ;;  %vm15351_vm13 = vcmask 72752   ;;  %v2033_v26 = vrot.slane %v12078_v61, 3  ;;  %v12181_v51 = vld [vmem:[%s11801_s23 + $0x488] sm:$0xff] }
 0x3d4   : > { %v12146_v35 = vsel %vm15353_vm2, %v2031_v59, %v2033_v26 }
 0x3d6   : > { %1795 = vrot.lane.b32.xlu0 %v11908_v30, %s10628_s16  ;;  %1818 = vrot.lane.b32.xlu1 %v11911_v39, %s15048_s12 }
 0x3da   : > { %1724 = vrot.lane.b32.xlu0 %v11902_v62, %s10625_s27  ;;  %1747 = vrot.lane.b32.xlu1 %v11922_v0, %s10626_s28 }
 0x3de   : > { %1820 = vrot.lane.b32.xlu0 %v11930_v11, %s15048_s12  ;;  %1840 = vrot.lane.b32.xlu1 %v11933_v47, %s15046_s15 }
 0x3e2   : > { %1749 = vrot.lane.b32.xlu0 %v11914_v55, %s10626_s28  ;;  %1772 = vrot.lane.b32.xlu1 %v11947_v5, %s10627_s29 }
 0x3e6   : > { %1842 = vrot.lane.b32.xlu0 %v11939_v52, %s15046_s15  ;;  %1865 = vrot.lane.b32.xlu1 %v11956_v10, %s15042_s21 }
 0x3ea   : > { %1774 = vrot.lane.b32.xlu0 %v11936_v45, %s10627_s29  ;;  %1797 = vrot.lane.b32.xlu1 %v11970_v1, %s10628_s16 }
 0x3ee   : > { %1867 = vrot.lane.b32.xlu0 %v11980_v9, %s15042_s21  ;;  %1890 = vrot.lane.b32.xlu1 %v11983_v24, %s15040_s18 }
 0x3f2   : > { %1799 = vrot.lane.b32.xlu0 %v11959_v60, %s10628_s16  ;;  %1822 = vrot.lane.b32.xlu1 %v11994_v15, %s15048_s12 }
 0x3f6   : > { %1892 = vrot.lane.b32.xlu0 %v12004_v21, %s15040_s18  ;;  %1915 = vrot.lane.b32.xlu1 %v12007_v25, %s15023_s19 }
 0x3fa   : > { %1824 = vrot.lane.b32.xlu0 %v11986_v3, %s15048_s12  ;;  %1844 = vrot.lane.b32.xlu1 %v11962_v29, %s15046_s15  ;;  %s15498_s12 = smov 54  }
 0x3fe   : > { %1917 = vrot.lane.b32.xlu0 %v12024_v32, %s15023_s19  ;;  %1940 = vrot.lane.b32.xlu1 %v12027_v33, %s15025_s20 }
 0x402   : > { %1846 = vrot.lane.b32.xlu0 %v12017_v28, %s15046_s15  ;;  %1869 = vrot.lane.b32.xlu1 %v12038_v27, %s15042_s21  ;;  %s10643_s15 = smov 69  }
 0x406   : > { %1942 = vrot.lane.b32.xlu0 %v12046_v40, %s15025_s20  ;;  %1962 = vrot.lane.b32.xlu1 %v12049_v41, %s15028_s30 }
 0x40a   : > { %1871 = vrot.lane.b32.xlu0 %v12030_v20, %s15042_s21  ;;  %1894 = vrot.lane.b32.xlu1 %v12063_v7, %s15040_s18  ;;  %s10644_s21 = smov 72  }
 0x40e   : > { %1964 = vrot.lane.b32.xlu0 %v12055_v48, %s15028_s30  ;;  %1987 = vrot.lane.b32.xlu1 %v12072_v56, %s15034_s13 }
 0x412   : > { %1896 = vrot.lane.b32.xlu0 %v12052_v46, %s15040_s18  ;;  %1919 = vrot.lane.b32.xlu1 %v12086_v57, %s15023_s19 }
 0x416   : > { %1989 = vrot.lane.b32.xlu0 %v12096_v12, %s15034_s13  ;;  %2012 = vrot.lane.b32.xlu1 %v12099_v44, %s15044_s22 }
 0x418   : > { %v1619_v2 = vpop.permute.xlu0 %1618  ;;  %v1645_v4 = vpop.permute.xlu1 %1644 }
 0x419   : > { %1631 = vst.msk [vmem:[#allocation4] sm:$0xff] %vm15350_vm11, %v1619_v2  ;;  %vm15355_vm11 = vmmov %vm15351_vm13 }
 0x41a   : > { %1657 = vst.msk [vmem:[#allocation4] sm:$0xff] %vm15351_vm13, %v1645_v4  ;;  %1921 = vrot.lane.b32.xlu0 %v12075_v49, %s15023_s19  ;;  %1944 = vrot.lane.b32.xlu1 %v12110_v34, %s15025_s20  ;;  %s15057_s19 = smov 54   ;;  %vm15356_vm13 = vcmask 97352  }
 0x41b   : > { %vm15357_vm0 = vmmov %vm15356_vm13 }
 0x41c   : > { %v1621_v18 = vpop.permute.xlu0 %1620  ;;  %v1647_v13 = vpop.permute.xlu1 %1646 }
 0x41d   : > { %1632 = vst.msk [vmem:[#allocation4 + $0x10] sm:$0xff] %vm15354_vm9, %v1621_v18  ;;  %vm15358_vm9 = vcmask 1043456   ;;  %v2058_v18 = vrot.slane %v12078_v61, 4 }
 0x41e   : > { %1658 = vst.msk [vmem:[#allocation4 + $0x10] sm:$0xff] %vm15355_vm11, %v1647_v13  ;;  %2014 = vrot.lane.b32.xlu0 %v12122_v6, %s15044_s22  ;;  %2037 = vrot.lane.b32.xlu1 %v12125_v14, %s15057_s19  ;;  %v12149_v36 = vsel %vm15358_vm9, %v2055_v8, %v2056_v19  ;;  %vm15360_vm11 = vcmask 121952   ;;  %vm15365_vm9 = vcmask 146552  }
 0x41f   : > { %vm15364_vm2 = vmmov %vm15360_vm11 }
 0x420   : > { %v1671_v38 = vpop.permute.xlu0 %1670  ;;  %v1673_v63 = vpop.permute.xlu1 %1672 }
 0x421   : > { %1683 = vst.msk [vmem:[#allocation4] sm:$0xff] %vm15356_vm13, %v1671_v38  ;;  %vm15361_vm13 = vcmask 48152  }
 0x422   : > { %1684 = vst.msk [vmem:[#allocation4 + $0x10] sm:$0xff] %vm15357_vm0, %v1673_v63  ;;  %1946 = vrot.lane.b32.xlu0 %v12102_v54, %s15025_s20  ;;  %1966 = vrot.lane.b32.xlu1 %v12078_v61, %s15028_s30  ;;  %s15063_s20 = smov 57   ;;  %vm15362_vm0 = vcmask 1046528   ;;  %v12175_v63 = vld [vmem:[%s11801_s23 + $0x480] sm:$0xff] }
 0x423   : > { %v12162_v59 = vsel %vm15362_vm0, %v1983_v23, %v12152_v53  ;;  %v12178_v23 = vrot.slane %v12137_v50, 2  ;;  %vm15369_vm0 = vcmask 72752  }
 0x424   : > { %v1697_v2 = vpop.permute.xlu0 %1696  ;;  %v1623_v4 = vpop.permute.xlu1 %1622  ;;  %15363 = vst [vmem:[#allocation38_spill] sm:$0xff] %v12162_v59 }
 0x425   : > { %1709 = vst.msk [vmem:[#allocation4] sm:$0xff] %vm15360_vm11, %v1697_v2  ;;  %vm15366_vm11 = vcmask 1043456  }
 0x426   : > { %1633 = vst.msk [vmem:[#allocation4 + $0x20] sm:$0xff] %vm15361_vm13, %v1623_v4  ;;  %2039 = vrot.lane.b32.xlu0 %v12146_v35, %s15057_s19  ;;  %2062 = vrot.lane.b32.xlu1 %v12149_v36, %s15063_s20  ;;  %v12172_v38 = vsel %vm15366_vm11, %v2056_v19, %v2058_v18  ;;  %vm15368_vm13 = vcmask 44056   ;;  %vm15372_vm11 = vcmask 171152  }
 0x427   : > { %15367 = vst [vmem:[#allocation39_spill] sm:$0xff] %v12172_v38 }
 0x428   : > { %v1699_v13 = vpop.permute.xlu0 %1698  ;;  %v1719_v8 = vpop.permute.xlu1 %1718 }
 0x429   : > { %1710 = vst.msk [vmem:[#allocation4 + $0x10] sm:$0xff] %vm15364_vm2, %v1699_v13  ;;  %vm15370_vm2 = vcmask 1045504   ;;  %v2102_v13 = vrot.slane %v12175_v63, 1 }
 0x42a   : > { %1731 = vst.msk [vmem:[#allocation4] sm:$0xff] %vm15365_vm9, %v1719_v8  ;;  %1968 = vrot.lane.b32.xlu0 %v12137_v50, %s15028_s30  ;;  %1991 = vrot.lane.b32.xlu1 %v12162_v59, %s15034_s13  ;;  %s10640_s30 = smov 60   ;;  %v12191_v19 = vsel %vm15370_vm2, %v2008_v31, %v12178_v23  ;;  %v2103_v8 = vrot.slane %v12181_v51, 1  ;;  %v12205_v31 = vrot.slane %v12137_v50, 3  ;;  %vm15376_vm2 = vcmask 97352  }
 0x42b   : > { %15371 = vst [vmem:[#allocation40_spill] sm:$0xff] %v12191_v19 }
 0x42c   : > { %v1625_v2 = vpop.permute.xlu0 %1624  ;;  %v1649_v4 = vpop.permute.xlu1 %1648 }
 0x42d   : > { %1635 = vst.msk [vmem:[#allocation4 + $0x30] sm:$0xf] %vm15368_vm13, %v1625_v2  ;;  %vm15373_vm13 = vcmask 1046528  }
 0x42e   : > { %1659 = vst.msk [vmem:[#allocation4 + $0x20] sm:$0xff] %vm15369_vm0, %v1649_v4  ;;  %2064 = vrot.lane.b32.xlu0 %v12172_v38, %s15063_s20  ;;  %2084 = vrot.lane.b32.xlu1 %v12175_v63, %s10640_s30  ;;  %v12202_v4 = vsel %vm15373_vm13, %v2102_v13, %v2103_v8  ;;  %v12208_v38 = vld [vmem:[%s11801_s23 + $0x490] sm:$0xff]  ;;  %vm15375_vm0 = vcmask 68656   ;;  %vm15379_vm13 = vcmask 195752  }
 0x42f   : > { %15374 = vst [vmem:[#allocation41_spill] sm:$0xff] %v12202_v4  ;;  %v15050_v13 = vrot.slane %v12208_v38, 1 }
 0x430   : > { %v1721_v62 = vpop.permute.xlu0 %1720  ;;  %v1744_v2 = vpop.permute.xlu1 %1743 }
 0x431   : > { %1732 = vst.msk [vmem:[#allocation4 + $0x10] sm:$0xff] %vm15365_vm9, %v1721_v62  ;;  %vm15377_vm9 = vcmask 1044480  }
 0x432   : > { %1756 = vst.msk [vmem:[#allocation4] sm:$0xff] %vm15372_vm11, %v1744_v2  ;;  %1993 = vrot.lane.b32.xlu0 %v12152_v53, %s15034_s13  ;;  %2016 = vrot.lane.b32.xlu1 %v12191_v19, %s15044_s22  ;;  %s10641_s13 = smov 63   ;;  %v12218_v62 = vsel %vm15377_vm9, %v2033_v26, %v12205_v31  ;;  %v2127_v2 = vrot.slane %v12175_v63, 2  ;;  %v2128_v19 = vrot.slane %v12181_v51, 2  ;;  %vm15385_vm9 = vcmask 93256  }
 0x433   : > { %15378 = vst [vmem:[#allocation42_spill] sm:$0xff] %v12218_v62 }
 0x434   : > { %v1651_v43 = vpop.permute.xlu0 %1650  ;;  %v1675_v37 = vpop.permute.xlu1 %1674 }
 0x435   : > { %1661 = vst.msk [vmem:[#allocation4 + $0x30] sm:$0xf] %vm15375_vm0, %v1651_v43  ;;  %vm15380_vm0 = vcmask 1046528  }
 0x436   : > { %1685 = vst.msk [vmem:[#allocation4 + $0x20] sm:$0xff] %vm15376_vm2, %v1675_v37  ;;  %2086 = vrot.lane.b32.xlu0 %v12181_v51, %s10640_s30  ;;  %2109 = vrot.lane.b32.xlu1 %v12202_v4, %s10641_s13  ;;  %v12232_v37 = vsel %vm15380_vm0, %v2103_v8, %v15050_v13  ;;  %vm15382_vm2 = vcmask 1045504   ;;  %v12238_v4 = vrot.slane %v12137_v50, 4  ;;  %v1597_v8 = vld [vmem:[%s14913_s1 + $0x40] sm:$0xff]  ;;  %v2153_v13 = vrot.slane %v12181_v51, 3 }
 0x437   : > { %15381 = vst [vmem:[#allocation43_spill] sm:$0xff] %v12232_v37  ;;  %v12235_v26 = vsel %vm15382_vm2, %v2127_v2, %v2128_v19  ;;  %vm15389_vm2 = vcmask 1043456  }
 0x438   : > { %v1746_v43 = vpop.permute.xlu0 %1745  ;;  %v1769_v53 = vpop.permute.xlu1 %1768  ;;  %15383 = vst [vmem:[#allocation44_spill] sm:$0xff] %v12235_v26  ;;  %15384 = vst [vmem:[#allocation45_spill] sm:$0xff] %v12238_v4  ;;  %v12256_v2 = vsel %vm15389_vm2, %v2058_v18, %v12238_v4  ;;  %v1595_v18 = vld [vmem:[%s14913_s1 + $0x30] sm:$0xff]  ;;  %vm15395_vm2 = vcmask 1045504  }
 0x439   : > { %1757 = vst.msk [vmem:[#allocation4 + $0x10] sm:$0xff] %vm15372_vm11, %v1746_v43  ;;  %vm15386_vm11 = vcmask 121952   ;;  %15390 = vst [vmem:[#allocation46_spill] sm:$0xff] %v12256_v2 }
 0x43a   : > { %1781 = vst.msk [vmem:[#allocation4] sm:$0xff] %vm15379_vm13, %v1769_v53  ;;  %2018 = vrot.lane.b32.xlu0 %v12178_v23, %s15044_s22  ;;  %2041 = vrot.lane.b32.xlu1 %v12218_v62, %s15057_s19  ;;  %v1598_v53 = vld [vmem:[%s14913_s1 + $0x48] sm:$0x7]  ;;  %vm15387_vm13 = vcmask 1042432   ;;  %s10642_s22 = smov 66   ;;  %v1596_v62 = vld [vmem:[%s14913_s1 + $0x38] sm:$0xff] }
 0x43b   : > { %9839 = vmatprep.subr.msk.mxu0 %vm15387_vm13, %v1598_v53  ;;  %vm15388_vm0 = vmmov %vm15387_vm13  ;;  %vm15393_vm13 = vcmask 195752  }
 0x43c   : > { %v1677_v43 = vpop.permute.xlu0 %1676  ;;  %v1701_v59 = vpop.permute.xlu1 %1700  ;;  %9865 = vmatprep.subr.msk.mxu1 %vm15388_vm0, %v1598_v53 }
 0x43d   : > { %1687 = vst.msk [vmem:[#allocation4 + $0x30] sm:$0xf] %vm15385_vm9, %v1677_v43  ;;  %v2152_v43 = vrot.slane %v12175_v63, 3  ;;  %vm15391_vm9 = vmmov %vm15388_vm0 }
 0x43e   : > { %1711 = vst.msk [vmem:[#allocation4 + $0x20] sm:$0xff] %vm15386_vm11, %v1701_v59  ;;  %2111 = vrot.lane.b32.xlu0 %v12232_v37, %s10641_s13  ;;  %2134 = vrot.lane.b32.xlu1 %v12235_v26, %s10642_s22  ;;  %v15054_v59 = vrot.slane %v12208_v38, 2  ;;  %vm15392_vm11 = vmmov %vm15388_vm0  ;;  %vm15394_vm0 = vcmask 220352  }
 0x43f   : > { %9840 = vmatpush3.msk.msra.mxu0 %vm15391_vm9, %v1598_v53  ;;  %9866 = vmatpush3.msk.msra.mxu1 %vm15392_vm11, %v1598_v53  ;;  %vm15397_vm9 = vcmask 1044480   ;;  %vm15399_vm11 = vcmask 117856  }
 0x440   : > { %v1771_v37 = vpop.permute.xlu0 %1770  ;;  %v1794_v26 = vpop.permute.xlu1 %1793  ;;  %9841 = vmatprep.subr.mxu0 %v1597_v8  ;;  %9867 = vmatprep.subr.mxu1 %v1597_v8  ;;  %v12278_v53 = vsel %vm15395_vm2, %v2128_v19, %v15054_v59  ;;  %v1594_v19 = vld [vmem:[%s14913_s1 + $0x28] sm:$0xff]  ;;  %vm15401_vm2 = vcmask 244952  }
 0x441   : > { %1782 = vst.msk [vmem:[#allocation4 + $0x10] sm:$0xff] %vm15393_vm13, %v1771_v37  ;;  %9842 = vmatpush3.msra.mxu0 %v1597_v8  ;;  %9868 = vmatpush3.msra.mxu1 %v1597_v8  ;;  %15396 = vst [vmem:[#allocation47_spill] sm:$0xff] %v12278_v53  ;;  %v12281_v37 = vsel %vm15397_vm9, %v2152_v43, %v2153_v13  ;;  %vm15400_vm13 = vcmask 146552   ;;  %v2177_v43 = vrot.slane %v12175_v63, 4 }
 0x442   : > { %1806 = vst.msk [vmem:[#allocation4] sm:$0xff] %vm15394_vm0, %v1794_v26  ;;  %2043 = vrot.lane.b32.xlu0 %v12205_v31, %s15057_s19  ;;  %2066 = vrot.lane.b32.xlu1 %v12256_v2, %s15063_s20  ;;  %15398 = vst [vmem:[#allocation48_spill] sm:$0xff] %v12281_v37  ;;  %v12296_v2 = vld [vmem:[%s11801_s23 + $0x498] sm:$0xff]  ;;  %s15507_s19 = smov 57  }
 0x443   : > { %9843 = vmatprep.subr.mxu0 %v1596_v62  ;;  %9869 = vmatprep.subr.mxu1 %v1596_v62 }
 0x444   : > { %v1703_v26 = vpop.permute.xlu0 %1702  ;;  %v1723_v8 = vpop.permute.xlu1 %1722  ;;  %9844 = vmatpush3.msra.mxu0 %v1596_v62  ;;  %9870 = vmatpush3.msra.mxu1 %v1596_v62  ;;  %v15061_v62 = vrot.slane %v12208_v38, 3 }
 0x445   : > { %1713 = vst.msk [vmem:[#allocation4 + $0x30] sm:$0xf] %vm15399_vm11, %v1703_v26  ;;  %9845 = vmatprep.subr.mxu0 %v1595_v18  ;;  %9871 = vmatprep.subr.mxu1 %v1595_v18  ;;  %v2178_v26 = vrot.slane %v12181_v51, 4  ;;  %vm15403_vm11 = vcmask 1043456  }
 0x446   : > { %1733 = vst.msk [vmem:[#allocation4 + $0x20] sm:$0xff] %vm15400_vm13, %v1723_v8  ;;  %2136 = vrot.lane.b32.xlu0 %v12278_v53, %s10642_s22  ;;  %2159 = vrot.lane.b32.xlu1 %v12281_v37, %s10643_s15  ;;  %v1593_v53 = vld [vmem:[%s14913_s1 + $0x20] sm:$0xff]  ;;  %v12313_v37 = vsel %vm15397_vm9, %v2153_v13, %v15061_v62  ;;  %vm15406_vm13 = vcmask 142456   ;;  %v1591_v13 = vld [vmem:[%s14913_s1 + $0x10] sm:$0xff]  ;;  %vm15411_vm9 = vcmask 244952  }
 0x447   : > { %9846 = vmatpush3.msra.mxu0 %v1595_v18  ;;  %9872 = vmatpush3.msra.mxu1 %v1595_v18  ;;  %v1592_v18 = vld [vmem:[%s14913_s1 + $0x18] sm:$0xff]  ;;  %15402 = vst [vmem:[#allocation49_spill] sm:$0xff] %v12313_v37 }
 0x448   : > { %v1796_v8 = vpop.permute.xlu0 %1795  ;;  %v1819_v59 = vpop.permute.xlu1 %1818  ;;  %9847 = vmatprep.subr.mxu0 %v1594_v19  ;;  %9873 = vmatprep.subr.mxu1 %v1594_v19 }
 0x449   : > { %1807 = vst.msk [vmem:[#allocation4 + $0x10] sm:$0xff] %vm15394_vm0, %v1796_v8  ;;  %9848 = vmatpush3.msra.mxu0 %v1594_v19  ;;  %9874 = vmatpush3.msra.mxu1 %v1594_v19  ;;  %v12316_v8 = vsel %vm15403_vm11, %v2177_v43, %v2178_v26  ;;  %vm15407_vm0 = vcmask 171152   ;;  %vm15412_vm11 = vcmask 269552  }
 0x44a   : > { %1831 = vst.msk [vmem:[#allocation4] sm:$0xff] %vm15401_vm2, %v1819_v59  ;;  %2068 = vrot.lane.b32.xlu0 %v12238_v4, %s15063_s20  ;;  %2088 = vrot.lane.b32.xlu1 %v12208_v38, %s10640_s30  ;;  %15404 = vst [vmem:[#allocation50_spill] sm:$0xff] %v12316_v8  ;;  %v12319_v59 = vrot.slane %v12296_v2, 1  ;;  %vm15409_vm2 = vcmask 1046528   ;;  %s15487_s20 = smov 51  }
 0x44b   : > { %9849 = vmatprep.subr.mxu0 %v1593_v53  ;;  %9875 = vmatprep.subr.mxu1 %v1593_v53 }
 0x44c   : > { %15405 = vst [vmem:[#allocation51_spill] sm:$0xff] %v12319_v59  ;;  %v1725_v19 = vpop.permute.xlu0 %1724  ;;  %v1748_v4 = vpop.permute.xlu1 %1747  ;;  %9850 = vmatpush3.msra.mxu0 %v1593_v53  ;;  %9876 = vmatpush3.msra.mxu1 %v1593_v53  ;;  %v15408_v53 = vrot.slane %v12208_v38, 1 }
 0x44d   : > { %1735 = vst.msk [vmem:[#allocation4 + $0x30] sm:$0xf] %vm15406_vm13, %v1725_v19  ;;  %9851 = vmatprep.subr.mxu0 %v1592_v18  ;;  %9877 = vmatprep.subr.mxu1 %v1592_v18  ;;  %vm15413_vm13 = vcmask 1043456  }
 0x44e   : > { %1758 = vst.msk [vmem:[#allocation4 + $0x20] sm:$0xff] %vm15407_vm0, %v1748_v4  ;;  %2161 = vrot.lane.b32.xlu0 %v12313_v37, %s10643_s15  ;;  %2184 = vrot.lane.b32.xlu1 %v12316_v8, %s10644_s21  ;;  %v12334_v43 = vsel %vm15409_vm2, %v15408_v53, %v12319_v59  ;;  %v2180_v4 = vrot.slane %v12208_v38, 4  ;;  %v1590_v37 = vld [vmem:[%s14913_s1 + $0x8] sm:$0xff]  ;;  %v12353_v8 = vrot.slane %v12296_v2, 2  ;;  %vm15415_vm0 = vcmask 167056  }
 0x44f   : > { %15410 = vst [vmem:[#allocation52_spill] sm:$0xff] %v12334_v43  ;;  %9852 = vmatpush3.msra.mxu0 %v1592_v18  ;;  %9878 = vmatpush3.msra.mxu1 %v1592_v18  ;;  %v1589_v18 = vld [vmem:[%s14913_s1] sm:$0xff]  ;;  %vm15416_vm2 = vcmask 195752  }
 0x450   : > { %v1821_v19 = vpop.permute.xlu0 %1820  ;;  %v1841_v62 = vpop.permute.xlu1 %1840  ;;  %9853 = vmatprep.subr.mxu0 %v1591_v13  ;;  %9879 = vmatprep.subr.mxu1 %v1591_v13  ;;  %v12350_v53 = vsel %vm15413_vm13, %v2178_v26, %v2180_v4  ;;  %v15417_v26 = vrot.slane %v12208_v38, 2  ;;  %vm15419_vm13 = vcmask 294152  }
 0x451   : > { %1832 = vst.msk [vmem:[#allocation4 + $0x10] sm:$0xff] %vm15411_vm9, %v1821_v19  ;;  %9854 = vmatpush3.msra.mxu0 %v1591_v13  ;;  %9880 = vmatpush3.msra.mxu1 %v1591_v13  ;;  %15414 = vst [vmem:[#allocation53_spill] sm:$0xff] %v12350_v53  ;;  %vm15418_vm9 = vcmask 1045504  }
 0x452   : > { %1853 = vst.msk [vmem:[#allocation4] sm:$0xff] %vm15412_vm11, %v1841_v62  ;;  %2090 = vrot.lane.b32.xlu0 %v12296_v2, %s10640_s30  ;;  %2113 = vrot.lane.b32.xlu1 %v12334_v43, %s10641_s13  ;;  %v12365_v19 = vsel %vm15418_vm9, %v15417_v26, %v12353_v8  ;;  %v15420_v26 = vrot.slane %v12208_v38, 3  ;;  %vm15423_vm9 = vcmask 220352  }
 0x453   : > { %9855 = vmatprep.subr.mxu0 %v1590_v37  ;;  %9881 = vmatprep.subr.mxu1 %v1590_v37 }
 0x454   : > { %v1750_v62 = vpop.permute.xlu0 %1749  ;;  %v1773_v13 = vpop.permute.xlu1 %1772  ;;  %9856 = vmatpush3.msra.mxu0 %v1590_v37  ;;  %9882 = vmatpush3.msra.mxu1 %v1590_v37  ;;  %v12368_v37 = vrot.slane %v12296_v2, 3 }
 0x455   : > { %1760 = vst.msk [vmem:[#allocation4 + $0x30] sm:$0xf] %vm15415_vm0, %v1750_v62  ;;  %9857 = vmatprep.subr.mxu0 %v1589_v18  ;;  %9883 = vmatprep.subr.mxu1 %v1589_v18  ;;  %vm15421_vm0 = vcmask 1044480  }
 0x456   : > { %1783 = vst.msk [vmem:[#allocation4 + $0x20] sm:$0xff] %vm15416_vm2, %v1773_v13  ;;  %2186 = vrot.lane.b32.xlu0 %v12350_v53, %s10644_s21  ;;  %2115 = vrot.lane.b32.xlu1 %v12319_v59, %s10641_s13  ;;  %v12380_v59 = vsel %vm15421_vm0, %v15420_v26, %v12368_v37  ;;  %vm15422_vm2 = vcmask 191656   ;;  %vm15425_vm0 = vcmask 318752  }
 0x457   : > { %9858 = vmatpush3.msra.mxu0 %v1589_v18  ;;  %9884 = vmatpush3.msra.mxu1 %v1589_v18  ;;  %v12383_v18 = vrot.slane %v12296_v2, 4 }
 0x458   : > { %v1843_v62 = vpop.permute.xlu0 %1842  ;;  %v1866_v13 = vpop.permute.xlu1 %1865 }
 0x459   : > { %1854 = vst.msk [vmem:[#allocation4 + $0x10] sm:$0xff] %vm15412_vm11, %v1843_v62  ;;  %vm15424_vm11 = vcmask 1043456  }
 0x45a   : > { %1878 = vst.msk [vmem:[#allocation4] sm:$0xff] %vm15419_vm13, %v1866_v13  ;;  %2138 = vrot.lane.b32.xlu0 %v12365_v19, %s10642_s22  ;;  %2140 = vrot.lane.b32.xlu1 %v12353_v8, %s10642_s22  ;;  %v12393_v62 = vsel %vm15424_vm11, %v2180_v4, %v12383_v18  ;;  %vm15428_vm11 = vmmov %vm15425_vm0 }
 0x45c   : > { %v1775_v53 = vpop.permute.xlu0 %1774  ;;  %v1798_v43 = vpop.permute.xlu1 %1797 }
 0x45d   : > { %1785 = vst.msk [vmem:[#allocation4 + $0x30] sm:$0xf] %vm15422_vm2, %v1775_v53  ;;  %vm15426_vm2 = vcmask 216256  }
 0x45e   : > { %1808 = vst.msk [vmem:[#allocation4 + $0x20] sm:$0xff] %vm15423_vm9, %v1798_v43  ;;  %2163 = vrot.lane.b32.xlu0 %v12380_v59, %s10643_s15  ;;  %2165 = vrot.lane.b32.xlu1 %v12368_v37, %s10643_s15  ;;  %vm15427_vm9 = vcmask 244952  }
 0x460   : > { %v1868_v13 = vpop.permute.xlu0 %1867  ;;  %v1891_v26 = vpop.permute.xlu1 %1890 }
 0x461   : > { %1879 = vst.msk [vmem:[#allocation4 + $0x10] sm:$0xff] %vm15419_vm13, %v1868_v13  ;;  %vm15429_vm13 = vcmask 343352  }
 0x462   : > { %1903 = vst.msk [vmem:[#allocation4] sm:$0xff] %vm15425_vm0, %v1891_v26  ;;  %2188 = vrot.lane.b32.xlu0 %v12393_v62, %s10644_s21  ;;  %2190 = vrot.lane.b32.xlu1 %v12383_v18, %s10644_s21  ;;  %vm15430_vm0 = vcmask 240856  }
 0x464   : > { %v1800_v43 = vpop.permute.xlu0 %1799  ;;  %v1823_v53 = vpop.permute.xlu1 %1822 }
 0x465   : > { %1810 = vst.msk [vmem:[#allocation4 + $0x30] sm:$0xf] %vm15426_vm2, %v1800_v43  ;;  %vm15431_vm2 = vcmask 269552  }
 0x466   : > { %1833 = vst.msk [vmem:[#allocation4 + $0x20] sm:$0xff] %vm15427_vm9, %v1823_v53  ;;  %2322 = vrot.lane.b32.xlu0 %v11855_v42, %s10621_s17  ;;  %2324 = vrot.lane.b32.xlu1 %v11872_v16, %s10621_s17  ;;  %vm15432_vm9 = vmmov %vm15429_vm13 }
 0x468   : > { %v1893_v4 = vpop.permute.xlu0 %1892  ;;  %v1916_v13 = vpop.permute.xlu1 %1915 }
 0x469   : > { %1904 = vst.msk [vmem:[#allocation4 + $0x10] sm:$0xff] %vm15428_vm11, %v1893_v4  ;;  %vm15433_vm11 = vcmask 367952  }
 0x46a   : > { %1928 = vst.msk [vmem:[#allocation4] sm:$0xff] %vm15429_vm13, %v1916_v13  ;;  %2338 = vrot.lane.b32.xlu0 %v11875_v17, %s10622_s24  ;;  %2340 = vrot.lane.b32.xlu1 %v11889_v58, %s10622_s24  ;;  %vm15434_vm13 = vcmask 265456  }
 0x46c   : > { %v1825_v26 = vpop.permute.xlu0 %1824  ;;  %v1845_v43 = vpop.permute.xlu1 %1844 }
 0x46d   : > { %1835 = vst.msk [vmem:[#allocation4 + $0x30] sm:$0xf] %vm15430_vm0, %v1825_v26  ;;  %vm15435_vm0 = vcmask 294152   ;;  %v15479_v26 = vld [vmem:[#allocation37_spill] sm:$0xff] }
 0x46e   : > { %1855 = vst.msk [vmem:[#allocation4 + $0x20] sm:$0xff] %vm15431_vm2, %v1845_v43  ;;  %2354 = vrot.lane.b32.xlu0 %v11892_v22, %s10623_s25  ;;  %2356 = vrot.lane.b32.xlu1 %v11908_v30, %s10623_s25  ;;  %vm15436_vm2 = vmmov %vm15433_vm11  ;;  %v15480_v43 = vld [vmem:[#allocation40_spill] sm:$0xff] }
 0x470   : > { %v1918_v42 = vpop.permute.xlu0 %1917  ;;  %v1941_v16 = vpop.permute.xlu1 %1940 }
 0x471   : > { %1929 = vst.msk [vmem:[#allocation4 + $0x10] sm:$0xff] %vm15432_vm9, %v1918_v42  ;;  %vm15437_vm9 = vcmask 392552  }
 0x472   : > { %1953 = vst.msk [vmem:[#allocation4] sm:$0xff] %vm15433_vm11, %v1941_v16  ;;  %2370 = vrot.lane.b32.xlu0 %v11911_v39, %s10624_s26  ;;  %2326 = vrot.lane.b32.xlu1 %v11922_v0, %s10621_s17  ;;  %vm15438_vm11 = vcmask 290056   ;;  %v15483_v16 = vld [vmem:[#allocation41_spill] sm:$0xff] }
 0x474   : > { %v1847_v17 = vpop.permute.xlu0 %1846  ;;  %v1870_v58 = vpop.permute.xlu1 %1869 }
 0x475   : > { %1857 = vst.msk [vmem:[#allocation4 + $0x30] sm:$0xf] %vm15434_vm13, %v1847_v17  ;;  %vm15439_vm13 = vcmask 318752  }
 0x476   : > { %1880 = vst.msk [vmem:[#allocation4 + $0x20] sm:$0xff] %vm15435_vm0, %v1870_v58  ;;  %2372 = vrot.lane.b32.xlu0 %v11930_v11, %s10624_s26  ;;  %2386 = vrot.lane.b32.xlu1 %v11933_v47, %s10625_s27  ;;  %vm15440_vm0 = vmmov %vm15437_vm9 }
 0x478   : > { %v1943_v22 = vpop.permute.xlu0 %1942  ;;  %v1963_v30 = vpop.permute.xlu1 %1962 }
 0x479   : > { %1954 = vst.msk [vmem:[#allocation4 + $0x10] sm:$0xff] %vm15436_vm2, %v1943_v22  ;;  %vm15441_vm2 = vcmask 417152  }
 0x47a   : > { %1975 = vst.msk [vmem:[#allocation4] sm:$0xff] %vm15437_vm9, %v1963_v30  ;;  %2328 = vrot.lane.b32.xlu0 %v11914_v55, %s10621_s17  ;;  %2342 = vrot.lane.b32.xlu1 %v11947_v5, %s10622_s24  ;;  %vm15442_vm9 = vcmask 314656   ;;  %s15452_s17 = smov 27   ;;  %v15484_v30 = vld [vmem:[#allocation34_spill] sm:$0xff] }
 0x47c   : > { %v1872_v39 = vpop.permute.xlu0 %1871  ;;  %v1895_v0 = vpop.permute.xlu1 %1894 }
 0x47d   : > { %1882 = vst.msk [vmem:[#allocation4 + $0x30] sm:$0xf] %vm15438_vm11, %v1872_v39  ;;  %vm15443_vm11 = vcmask 343352  }
 0x47e   : > { %1905 = vst.msk [vmem:[#allocation4 + $0x20] sm:$0xff] %vm15439_vm13, %v1895_v0  ;;  %2388 = vrot.lane.b32.xlu0 %v11939_v52, %s10625_s27  ;;  %2402 = vrot.lane.b32.xlu1 %v11956_v10, %s10626_s28  ;;  %vm15444_vm13 = vmmov %vm15441_vm2 }
 0x480   : > { %v1965_v11 = vpop.permute.xlu0 %1964  ;;  %v1988_v47 = vpop.permute.xlu1 %1987 }
 0x481   : > { %1976 = vst.msk [vmem:[#allocation4 + $0x10] sm:$0xff] %vm15440_vm0, %v1965_v11  ;;  %vm15445_vm0 = vcmask 441752   ;;  %v15486_v11 = vld [vmem:[#allocation43_spill] sm:$0xff] }
 0x482   : > { %2000 = vst.msk [vmem:[#allocation4] sm:$0xff] %vm15441_vm2, %v1988_v47  ;;  %2344 = vrot.lane.b32.xlu0 %v11936_v45, %s10622_s24  ;;  %2358 = vrot.lane.b32.xlu1 %v11970_v1, %s10623_s25  ;;  %vm15446_vm2 = vcmask 339256   ;;  %s15457_s24 = smov 30   ;;  %v15488_v47 = vld [vmem:[#allocation44_spill] sm:$0xff] }
 0x484   : > { %v1897_v55 = vpop.permute.xlu0 %1896  ;;  %v1920_v5 = vpop.permute.xlu1 %1919 }
 0x485   : > { %1907 = vst.msk [vmem:[#allocation4 + $0x30] sm:$0xf] %vm15442_vm9, %v1897_v55  ;;  %vm15447_vm9 = vcmask 367952  }
 0x486   : > { %1930 = vst.msk [vmem:[#allocation4 + $0x20] sm:$0xff] %vm15443_vm11, %v1920_v5  ;;  %2404 = vrot.lane.b32.xlu0 %v11980_v9, %s10626_s28  ;;  %2418 = vrot.lane.b32.xlu1 %v11983_v24, %s10627_s29  ;;  %vm15448_vm11 = vmmov %vm15445_vm0 }
 0x488   : > { %v1990_v52 = vpop.permute.xlu0 %1989  ;;  %v2013_v10 = vpop.permute.xlu1 %2012 }
 0x489   : > { %2001 = vst.msk [vmem:[#allocation4 + $0x10] sm:$0xff] %vm15444_vm13, %v1990_v52  ;;  %vm15449_vm13 = vcmask 466352  }
 0x48a   : > { %2025 = vst.msk [vmem:[#allocation4] sm:$0xff] %vm15445_vm0, %v2013_v10  ;;  %2360 = vrot.lane.b32.xlu0 %v11959_v60, %s10623_s25  ;;  %2374 = vrot.lane.b32.xlu1 %v11994_v15, %s10624_s26  ;;  %vm15450_vm0 = vcmask 363856   ;;  %s15462_s25 = smov 33  }
 0x48c   : > { %v1922_v45 = vpop.permute.xlu0 %1921  ;;  %v1945_v1 = vpop.permute.xlu1 %1944 }
 0x48d   : > { %1932 = vst.msk [vmem:[#allocation4 + $0x30] sm:$0xf] %vm15446_vm2, %v1922_v45  ;;  %vm15451_vm2 = vcmask 392552  }
 0x48e   : > { %1955 = vst.msk [vmem:[#allocation4 + $0x20] sm:$0xff] %vm15447_vm9, %v1945_v1  ;;  %2420 = vrot.lane.b32.xlu0 %v12004_v21, %s10627_s29  ;;  %2434 = vrot.lane.b32.xlu1 %v12007_v25, %s10628_s16  ;;  %vm15453_vm9 = vmmov %vm15449_vm13 }
 0x490   : > { %v2015_v9 = vpop.permute.xlu0 %2014  ;;  %v2038_v24 = vpop.permute.xlu1 %2037 }
 0x491   : > { %2026 = vst.msk [vmem:[#allocation4 + $0x10] sm:$0xff] %vm15448_vm11, %v2015_v9  ;;  %vm15454_vm11 = vcmask 490952   ;;  %v15492_v9 = vld [vmem:[#allocation36_spill] sm:$0xff] }
 0x492   : > { %2050 = vst.msk [vmem:[#allocation4] sm:$0xff] %vm15449_vm13, %v2038_v24  ;;  %2376 = vrot.lane.b32.xlu0 %v11986_v3, %s10624_s26  ;;  %2390 = vrot.lane.b32.xlu1 %v11962_v29, %s10625_s27  ;;  %vm15455_vm13 = vcmask 388456   ;;  %s15466_s26 = smov 36   ;;  %v15496_v24 = vld [vmem:[#allocation35_spill] sm:$0xff] }
 0x494   : > { %v1947_v60 = vpop.permute.xlu0 %1946  ;;  %v1967_v15 = vpop.permute.xlu1 %1966 }
 0x495   : > { %1957 = vst.msk [vmem:[#allocation4 + $0x30] sm:$0xf] %vm15450_vm0, %v1947_v60  ;;  %vm15456_vm0 = vcmask 417152   ;;  %v15499_v60 = vld [vmem:[#allocation48_spill] sm:$0xff] }
 0x496   : > { %1977 = vst.msk [vmem:[#allocation4 + $0x20] sm:$0xff] %vm15451_vm2, %v1967_v15  ;;  %2436 = vrot.lane.b32.xlu0 %v12024_v32, %s10628_s16  ;;  %2450 = vrot.lane.b32.xlu1 %v12027_v33, %s15452_s17  ;;  %vm15458_vm2 = vmmov %vm15454_vm11  ;;  %v15500_v15 = vld [vmem:[#allocation8_spill] sm:$0xff] }
 0x498   : > { %v2040_v21 = vpop.permute.xlu0 %2039  ;;  %v2063_v25 = vpop.permute.xlu1 %2062 }
 0x499   : > { %2051 = vst.msk [vmem:[#allocation4 + $0x10] sm:$0xff] %vm15453_vm9, %v2040_v21  ;;  %vm15459_vm9 = vcmask 515552  }
 0x49a   : > { %2075 = vst.msk [vmem:[#allocation4] sm:$0xff] %vm15454_vm11, %v2063_v25  ;;  %2392 = vrot.lane.b32.xlu0 %v12017_v28, %s10625_s27  ;;  %2406 = vrot.lane.b32.xlu1 %v12038_v27, %s10626_s28  ;;  %vm15460_vm11 = vcmask 413056   ;;  %s15469_s27 = smov 39  }
 0x49c   : > { %v1969_v29 = vpop.permute.xlu0 %1968  ;;  %v1992_v3 = vpop.permute.xlu1 %1991 }
 0x49d   : > { %1979 = vst.msk [vmem:[#allocation4 + $0x30] sm:$0xf] %vm15455_vm13, %v1969_v29  ;;  %vm15461_vm13 = vcmask 441752   ;;  %v15503_v29 = vld [vmem:[#allocation45_spill] sm:$0xff] }
 0x49e   : > { %2002 = vst.msk [vmem:[#allocation4 + $0x20] sm:$0xff] %vm15456_vm0, %v1992_v3  ;;  %2452 = vrot.lane.b32.xlu0 %v12046_v40, %s15452_s17  ;;  %2466 = vrot.lane.b32.xlu1 %v12049_v41, %s15457_s24  ;;  %vm15463_vm0 = vmmov %vm15459_vm9 }
 0x4a0   : > { %v2065_v32 = vpop.permute.xlu0 %2064  ;;  %v2085_v33 = vpop.permute.xlu1 %2084 }
 0x4a1   : > { %2076 = vst.msk [vmem:[#allocation4 + $0x10] sm:$0xff] %vm15458_vm2, %v2065_v32  ;;  %vm15464_vm2 = vcmask 437656  }
 0x4a2   : > { %2097 = vst.msk [vmem:[#allocation4] sm:$0xff] %vm15459_vm9, %v2085_v33  ;;  %2408 = vrot.lane.b32.xlu0 %v12030_v20, %s10626_s28  ;;  %2422 = vrot.lane.b32.xlu1 %v12063_v7, %s10627_s29  ;;  %vm15465_vm9 = vcmask 466352   ;;  %s15472_s28 = smov 42   ;;  %v15506_v33 = vld [vmem:[#allocation49_spill] sm:$0xff] }
 0x4a4   : > { %v1994_v28 = vpop.permute.xlu0 %1993  ;;  %v2017_v27 = vpop.permute.xlu1 %2016 }
 0x4a5   : > { %2004 = vst.msk [vmem:[#allocation4 + $0x30] sm:$0xf] %vm15460_vm11, %v1994_v28  ;;  %vm15467_vm11 = vcmask 462256   ;;  %v15508_v28 = vld [vmem:[#allocation50_spill] sm:$0xff] }
 0x4a6   : > { %2027 = vst.msk [vmem:[#allocation4 + $0x20] sm:$0xff] %vm15461_vm13, %v2017_v27  ;;  %2468 = vrot.lane.b32.xlu0 %v12055_v48, %s15457_s24  ;;  %2482 = vrot.lane.b32.xlu1 %v12072_v56, %s15462_s25  ;;  %vm15468_vm13 = vcmask 490952  }
 0x4a8   : > { %v2087_v40 = vpop.permute.xlu0 %2086  ;;  %v2110_v41 = vpop.permute.xlu1 %2109 }
 0x4a9   : > { %2098 = vst.msk [vmem:[#allocation4 + $0x10] sm:$0xff] %vm15463_vm0, %v2087_v40  ;;  %vm15470_vm0 = vcmask 486856  }
 0x4aa   : > { %2122 = vst.msk [vmem:[#allocation4] sm:$0xff] %vm640_vm5, %v2110_v41  ;;  %2424 = vrot.lane.b32.xlu0 %v12052_v46, %s10627_s29  ;;  %2438 = vrot.lane.b32.xlu1 %v12086_v57, %s10628_s16  ;;  %s15476_s29 = smov 45  }
 0x4ac   : > { %v2019_v20 = vpop.permute.xlu0 %2018  ;;  %v2042_v7 = vpop.permute.xlu1 %2041 }
 0x4ad   : > { %2029 = vst.msk [vmem:[#allocation4 + $0x30] sm:$0xf] %vm15464_vm2, %v2019_v20  ;;  %vm15471_vm2 = vcmask 515552  }
 0x4ae   : > { %2052 = vst.msk [vmem:[#allocation4 + $0x20] sm:$0xff] %vm15465_vm9, %v2042_v7  ;;  %2484 = vrot.lane.b32.xlu0 %v12096_v12, %s15462_s25  ;;  %2498 = vrot.lane.b32.xlu1 %v12099_v44, %s15466_s26  ;;  %vm15474_vm9 = vcmask 511456   ;;  %v12620_v7 = vld [vmem:[%s11801_s23 + $0x4a0] sm:$0xff] }
 0x4b0   : > { %v2112_v48 = vpop.permute.xlu0 %2111  ;;  %v2135_v56 = vpop.permute.xlu1 %2134 }
 0x4b1   : > { %2123 = vst.msk [vmem:[#allocation4 + $0x10] sm:$0xff] %vm640_vm5, %v2112_v48  ;;  %v12625_v48 = vld [vmem:[%s11801_s23 + $0x4a8] sm:$0xff] }
 0x4b2   : > { %2147 = vst.msk [vmem:[#allocation4] sm:$0xff] %vm665_vm6, %v2135_v56  ;;  %2440 = vrot.lane.b32.xlu0 %v12075_v49, %s10628_s16  ;;  %2454 = vrot.lane.b32.xlu1 %v12110_v34, %s15452_s17  ;;  %s15482_s16 = smov 48   ;;  %v15514_v56 = vld [vmem:[#allocation53_spill] sm:$0xff] }
 0x4b4   : > { %v2044_v46 = vpop.permute.xlu0 %2043  ;;  %v2067_v57 = vpop.permute.xlu1 %2066 }
 0x4b5   : > { %2054 = vst.msk [vmem:[#allocation4 + $0x30] sm:$0xf] %vm15467_vm11, %v2044_v46  ;;  %vm15477_vm11 = vcmask 536056  }
 0x4b6   : > { %2077 = vst.msk [vmem:[#allocation4 + $0x20] sm:$0xff] %vm15468_vm13, %v2067_v57  ;;  %2500 = vrot.lane.b32.xlu0 %v12122_v6, %s15466_s26  ;;  %2514 = vrot.lane.b32.xlu1 %v12125_v14, %s15469_s27  ;;  %vm15481_vm13 = vcmask 560656   ;;  %v2646_v57 = vrot.slane %v12620_v7, 1 }
 0x4b8   : > { %v2137_v12 = vpop.permute.xlu0 %2136  ;;  %v2160_v44 = vpop.permute.xlu1 %2159 }
 0x4b9   : > { %2148 = vst.msk [vmem:[#allocation4 + $0x10] sm:$0xff] %vm665_vm6, %v2137_v12  ;;  %v2647_v12 = vrot.slane %v12625_v48, 1 }
 0x4ba   : > { %2172 = vst.msk [vmem:[#allocation4] sm:$0xff] %vm690_vm8, %v2160_v44  ;;  %2456 = vrot.lane.b32.xlu0 %v12102_v54, %s15452_s17  ;;  %2470 = vrot.lane.b32.xlu1 %v12078_v61, %s15457_s24  ;;  %v15473_v61 = vld [vmem:[#allocation38_spill] sm:$0xff]  ;;  %v15517_v44 = vld [vmem:[#allocation51_spill] sm:$0xff] }
 0x4bc   : > { %v2069_v49 = vpop.permute.xlu0 %2068  ;;  %v2089_v34 = vpop.permute.xlu1 %2088 }
 0x4bd   : > { %2079 = vst.msk [vmem:[#allocation4 + $0x30] sm:$0xf] %vm15470_vm0, %v2069_v49  ;;  %vm15489_vm0 = vcmask 48152  }
 0x4be   : > { %2099 = vst.msk [vmem:[#allocation4 + $0x20] sm:$0xff] %vm15471_vm2, %v2089_v34  ;;  %2516 = vrot.lane.b32.xlu0 %v12146_v35, %s15469_s27  ;;  %2530 = vrot.lane.b32.xlu1 %v12149_v36, %s15472_s28  ;;  %v15475_v35 = vld [vmem:[#allocation39_spill] sm:$0xff]  ;;  %vm15490_vm2 = vmmov %vm15489_vm0 }
 0x4c0   : > { %v2162_v6 = vpop.permute.xlu0 %2161  ;;  %v2185_v14 = vpop.permute.xlu1 %2184 }
 0x4c1   : > { %2173 = vst.msk [vmem:[#allocation4 + $0x10] sm:$0xff] %vm690_vm8, %v2162_v6 }
 0x4c2   : > { %2197 = vst.msk [vmem:[#allocation4] sm:$0xff] %vm715_vm3, %v2185_v14  ;;  %2472 = vrot.lane.b32.xlu0 %v12137_v50, %s15457_s24  ;;  %2486 = vrot.lane.b32.xlu1 %v15473_v61, %s15462_s25  ;;  %v15478_v50 = vld [vmem:[#allocation33_spill] sm:$0xff] }
 0x4c3   : > { %v12641_v14 = vld [vmem:[%s11801_s23 + $0x4b0] sm:$0xff] }
 0x4c4   : > { %v2091_v54 = vpop.permute.xlu0 %2090  ;;  %v2114_v53 = vpop.permute.xlu1 %2113  ;;  %v2649_v61 = vrot.slane %v12641_v14, 1 }
 0x4c5   : > { %2101 = vst.msk [vmem:[#allocation4 + $0x30] sm:$0xf] %vm15474_vm9, %v2091_v54  ;;  %vm15493_vm9 = vcmask 19456  }
 0x4c6   : > { %2124 = vst.msk [vmem:[#allocation4 + $0x20] sm:$0xff] %vm640_vm5, %v2114_v53  ;;  %2532 = vrot.lane.b32.xlu0 %v15475_v35, %s15472_s28  ;;  %2546 = vrot.lane.b32.xlu1 %v12175_v63, %s15476_s29  ;;  %v2670_v35 = vrot.slane %v12625_v48, 2 }
 0x4c8   : > { %v2187_v36 = vpop.permute.xlu0 %2186  ;;  %v2116_v4 = vpop.permute.xlu1 %2115 }
 0x4c9   : > { %v2202_v13 = vld [vmem:[#allocation4] sm:$0xff]  ;;  %2198 = vst.msk [vmem:[#allocation4 + $0x10] sm:$0xff] %vm715_vm3, %v2187_v36 }
 0x4ca   : > { %2126 = vst.msk [vmem:[#allocation4 + $0x30] sm:$0xf] %vm15477_vm11, %v2116_v4  ;;  %9859 = vmatprep.mubr.msk.f32.mxu0 %vm731_vm7, %v2202_v13  ;;  %2488 = vrot.lane.b32.xlu0 %v15479_v26, %s15462_s25  ;;  %vm15494_vm11 = vcmask 72752   ;;  %v2672_v26 = vrot.slane %v12641_v14, 2 }
 0x4cb   : > { %2318 = vst.msk [vmem:[#allocation4] sm:$0xff] %vm15310_vm4, %v15478_v50  ;;  %2502 = vrot.lane.b32.xlu1 %v15480_v43, %s15466_s26 }
 0x4cc   : > { %v2139_v42 = vpop.permute.xlu0 %2138  ;;  %v2141_v63 = vpop.permute.xlu1 %2140 }
 0x4cd   : > { %2149 = vst.msk [vmem:[#allocation4 + $0x20] sm:$0xff] %vm665_vm6, %v2139_v42  ;;  %v2693_v42 = vrot.slane %v12625_v48, 3 }
 0x4ce   : > { %2151 = vst.msk [vmem:[#allocation4 + $0x30] sm:$0xf] %vm15481_vm13, %v2141_v63  ;;  %2548 = vrot.lane.b32.xlu0 %v12181_v51, %s15476_s29  ;;  %v15485_v51 = vld [vmem:[#allocation42_spill] sm:$0xff]  ;;  %vm15495_vm13 = vmmov %vm15494_vm11 }
 0x4cf   : > { %2562 = vrot.lane.b32.xlu1 %v15483_v16, %s15482_s16 }
 0x4d0   : > { %v2164_v17 = vpop.permute.xlu0 %2163  ;;  %v2166_v58 = vpop.permute.xlu1 %2165  ;;  %v2203_v22 = vld [vmem:[#allocation4 + $0x10] sm:$0xff] }
 0x4d1   : > { %2174 = vst.msk [vmem:[#allocation4 + $0x20] sm:$0xff] %vm690_vm8, %v2164_v17  ;;  %9860 = vmatmul.mubr.msk.f32.vlgmr.msra.gmra.mxu0 %vm731_vm7, %v2203_v22 }
 0x4d2   : > { %2176 = vst.msk [vmem:[#allocation4 + $0x30] sm:$0xf] %vm694_vm14, %v2166_v58  ;;  %2504 = vrot.lane.b32.xlu0 %v12178_v23, %s15466_s26  ;;  %v15491_v23 = vld [vmem:[#allocation46_spill] sm:$0xff] }
 0x4d3   : > { %2319 = vst.msk [vmem:[#allocation4 + $0x10] sm:$0xff] %vm15310_vm4, %v15484_v30  ;;  %2518 = vrot.lane.b32.xlu1 %v15485_v51, %s15469_s27  ;;  %v2716_v51 = vrot.slane %v12625_v48, 4 }
 0x4d4   : > { %v2189_v39 = vpop.permute.xlu0 %2188  ;;  %v2191_v0 = vpop.permute.xlu1 %2190 }
 0x4d5   : > { %2199 = vst.msk [vmem:[#allocation4 + $0x20] sm:$0xff] %vm715_vm3, %v2189_v39  ;;  %v9295_v39 = vld [vmem:[%s11801_s23 + $0x4b8] sm:$0xff] }
 0x4d6   : > { %2201 = vst.msk [vmem:[#allocation4 + $0x30] sm:$0xf] %vm719_vm1, %v2191_v0  ;;  %2564 = vrot.lane.b32.xlu0 %v15486_v11, %s15482_s16 }
 0x4d7   : > { %2578 = vrot.lane.b32.xlu1 %v15488_v47, %s15487_s20 }
 0x4d8   : > { %v2323_v55 = vpop.permute.xlu0 %2322  ;;  %v2325_v5 = vpop.permute.xlu1 %2324 }
 0x4d9   : > { %2334 = vst.msk [vmem:[#allocation4] sm:$0xff] %vm15489_vm0, %v2323_v55  ;;  %vm15501_vm0 = vcmask 97352  }
 0x4da   : > { %2335 = vst.msk [vmem:[#allocation4 + $0x10] sm:$0xff] %vm15490_vm2, %v2325_v5  ;;  %2520 = vrot.lane.b32.xlu0 %v12205_v31, %s15469_s27  ;;  %v15497_v31 = vld [vmem:[#allocation47_spill] sm:$0xff]  ;;  %vm15502_vm2 = vmmov %vm15501_vm0  ;;  %v2651_v5 = vrot.slane %v9295_v39, 1 }
 0x4db   : > { %2534 = vrot.lane.b32.xlu1 %v15491_v23, %s15472_s28 }
 0x4dc   : > { %v2339_v10 = vpop.permute.xlu0 %2338  ;;  %v2341_v45 = vpop.permute.xlu1 %2340  ;;  %v2204_v1 = vld [vmem:[#allocation4 + $0x20] sm:$0xff] }
 0x4dd   : > { %v2205_v52 = vld [vmem:[#allocation4 + $0x30] sm:$0xf]  ;;  %2350 = vst.msk [vmem:[#allocation4] sm:$0xff] %vm15494_vm11, %v2339_v10  ;;  %9862 = vmatprep.mubr.msk.f32.mxu0 %vm731_vm7, %v2204_v1  ;;  %vm15505_vm11 = vcmask 48152   ;;  %v2674_v1 = vrot.slane %v9295_v39, 2 }
 0x4de   : > { %2321 = vst.msk [vmem:[#allocation4 + $0x30] sm:$0xf] %vm15493_vm9, %v15492_v9  ;;  %2580 = vrot.lane.b32.xlu0 %v15497_v31, %s15487_s20  ;;  %9863 = vmatmul.mubr.msk.f32.gmra.mxu0 %vm731_vm7, %v2205_v52  ;;  %vm15504_vm9 = vcmask 121952  }
 0x4df   : > { %2351 = vst.msk [vmem:[#allocation4 + $0x10] sm:$0xff] %vm15495_vm13, %v2341_v45  ;;  %2594 = vrot.lane.b32.xlu1 %v15499_v60, %s15498_s12  ;;  %9899 = vmatprep.mubr.msk.f32.mxu0 %vm1366_vm12, %v15500_v15  ;;  %vm15509_vm13 = vmmov %vm15504_vm9  ;;  %v2697_v60 = vrot.slane %v9295_v39, 3 }
 0x4e0   : > { %2320 = vst.msk [vmem:[#allocation4 + $0x20] sm:$0xff] %vm15310_vm4, %v15496_v24  ;;  %v2355_v21 = vpop.permute.xlu0 %2354  ;;  %v2357_v25 = vpop.permute.xlu1 %2356  ;;  %vm15525_vm4 = vcmask 121952  }
 0x4e1   : > { %2366 = vst.msk [vmem:[#allocation4] sm:$0xff] %vm15501_vm0, %v2355_v21  ;;  %vm15510_vm0 = vcmask 146552  }
 0x4e2   : > { %2367 = vst.msk [vmem:[#allocation4 + $0x10] sm:$0xff] %vm15502_vm2, %v2357_v25  ;;  %2536 = vrot.lane.b32.xlu0 %v15503_v29, %s15472_s28  ;;  %vm15512_vm2 = vcmask 44056   ;;  %v2720_v29 = vrot.slane %v9295_v39, 4 }
 0x4e3   : > { %2550 = vrot.lane.b32.xlu1 %v12208_v38, %s15476_s29  ;;  %v15511_v38 = vld [vmem:[#allocation52_spill] sm:$0xff] }
 0x4e4   : > { %v2371_v3 = vpop.permute.xlu0 %2370  ;;  %v2327_v32 = vpop.permute.xlu1 %2326 }
 0x4e5   : > { %2382 = vst.msk [vmem:[#allocation4] sm:$0xff] %vm15504_vm9, %v2371_v3  ;;  %vm15513_vm9 = vcmask 72752  }
 0x4e6   : > { %2336 = vst.msk [vmem:[#allocation4 + $0x20] sm:$0xff] %vm15505_vm11, %v2327_v32  ;;  %2596 = vrot.lane.b32.xlu0 %v15506_v33, %s15498_s12  ;;  %vm15515_vm11 = vmmov %vm15510_vm0 }
 0x4e7   : > { %2610 = vrot.lane.b32.xlu1 %v15508_v28, %s15507_s19 }
 0x4e8   : > { %v2373_v27 = vpop.permute.xlu0 %2372  ;;  %v2387_v40 = vpop.permute.xlu1 %2386 }
 0x4e9   : > { %2383 = vst.msk [vmem:[#allocation4 + $0x10] sm:$0xff] %vm15509_vm13, %v2373_v27  ;;  %vm15516_vm13 = vcmask 171152  }
 0x4ea   : > { %2398 = vst.msk [vmem:[#allocation4] sm:$0xff] %vm15510_vm0, %v2387_v40  ;;  %2552 = vrot.lane.b32.xlu0 %v12296_v2, %s15476_s29  ;;  %vm15518_vm0 = vcmask 1046528  }
 0x4eb   : > { %2566 = vrot.lane.b32.xlu1 %v15511_v38, %s15482_s16  ;;  %v2648_v6 = vsel %vm15518_vm0, %v2646_v57, %v2647_v12  ;;  %v2650_v36 = vsel %vm15518_vm0, %v2647_v12, %v2649_v61  ;;  %vm15529_vm0 = vcmask 1044480  }
 0x4ec   : > { %v2329_v41 = vpop.permute.xlu0 %2328  ;;  %v2343_v20 = vpop.permute.xlu1 %2342 }
 0x4ed   : > { %2337 = vst.msk [vmem:[#allocation4 + $0x30] sm:$0xf] %vm15512_vm2, %v2329_v41  ;;  %vm15519_vm2 = vcmask 68656  }
 0x4ee   : > { %2352 = vst.msk [vmem:[#allocation4 + $0x20] sm:$0xff] %vm15513_vm9, %v2343_v20  ;;  %2612 = vrot.lane.b32.xlu0 %v15514_v56, %s15507_s19  ;;  %vm15520_vm9 = vcmask 97352  }
 0x4ef   : > { %2630 = vrot.lane.b32.xlu1 %v12620_v7, %s10640_s30 }
 0x4f0   : > { %v2389_v2 = vpop.permute.xlu0 %2388  ;;  %v2403_v46 = vpop.permute.xlu1 %2402 }
 0x4f1   : > { %2399 = vst.msk [vmem:[#allocation4 + $0x10] sm:$0xff] %vm15515_vm11, %v2389_v2  ;;  %vm15521_vm11 = vmmov %vm15516_vm13 }
 0x4f2   : > { %2414 = vst.msk [vmem:[#allocation4] sm:$0xff] %vm15516_vm13, %v2403_v46  ;;  %2568 = vrot.lane.b32.xlu0 %v15517_v44, %s15482_s16  ;;  %vm15522_vm13 = vcmask 195752  }
 0x4f3   : > { %2582 = vrot.lane.b32.xlu1 %v12365_v19, %s15487_s20  ;;  %v2669_v19 = vrot.slane %v12620_v7, 2 }
 0x4f4   : > { %v2345_v49 = vpop.permute.xlu0 %2344  ;;  %v2359_v34 = vpop.permute.xlu1 %2358 }
 0x4f5   : > { %2353 = vst.msk [vmem:[#allocation4 + $0x30] sm:$0xf] %vm15519_vm2, %v2345_v49  ;;  %vm15523_vm2 = vcmask 1045504  }
 0x4f6   : > { %2368 = vst.msk [vmem:[#allocation4 + $0x20] sm:$0xff] %vm15520_vm9, %v2359_v34  ;;  %2632 = vrot.lane.b32.xlu0 %v12625_v48, %s10640_s30  ;;  %v2671_v50 = vsel %vm15523_vm2, %v2669_v19, %v2670_v35  ;;  %vm15524_vm9 = vcmask 93256  }
 0x4f7   : > { %2653 = vrot.lane.b32.xlu1 %v2648_v6, %s10641_s13 }
 0x4f8   : > { %v2405_v54 = vpop.permute.xlu0 %2404  ;;  %v2419_v53 = vpop.permute.xlu1 %2418 }
 0x4f9   : > { %2415 = vst.msk [vmem:[#allocation4 + $0x10] sm:$0xff] %vm15521_vm11, %v2405_v54  ;;  %vm15526_vm11 = vmmov %vm15522_vm13 }
 0x4fa   : > { %2430 = vst.msk [vmem:[#allocation4] sm:$0xff] %vm15522_vm13, %v2419_v53  ;;  %2584 = vrot.lane.b32.xlu0 %v12353_v8, %s15487_s20  ;;  %vm15527_vm13 = vcmask 220352  }
 0x4fb   : > { %2598 = vrot.lane.b32.xlu1 %v12380_v59, %s15498_s12  ;;  %v2692_v59 = vrot.slane %v12620_v7, 3 }
 0x4fc   : > { %v2361_v4 = vpop.permute.xlu0 %2360  ;;  %v2375_v13 = vpop.permute.xlu1 %2374 }
 0x4fd   : > { %2369 = vst.msk [vmem:[#allocation4 + $0x30] sm:$0xf] %vm15524_vm9, %v2361_v4  ;;  %v2694_v58 = vsel %vm15529_vm0, %v2692_v59, %v2693_v42  ;;  %vm15531_vm9 = vcmask 146552  }
 0x4fe   : > { %2384 = vst.msk [vmem:[#allocation4 + $0x20] sm:$0xff] %vm15525_vm4, %v2375_v13  ;;  %2655 = vrot.lane.b32.xlu0 %v2650_v36, %s10641_s13  ;;  %vm15528_vm4 = vmmov %vm15523_vm2  ;;  %vm15530_vm2 = vcmask 117856  }
 0x4ff   : > { %2676 = vrot.lane.b32.xlu1 %v2671_v50, %s10642_s22  ;;  %v2673_v63 = vsel %vm15528_vm4, %v2670_v35, %v2672_v26  ;;  %vm15534_vm4 = vmmov %vm15529_vm0  ;;  %vm15535_vm0 = vcmask 1043456  }
 0x500   : > { %v2421_v8 = vpop.permute.xlu0 %2420  ;;  %v2435_v43 = vpop.permute.xlu1 %2434 }
 0x501   : > { %2431 = vst.msk [vmem:[#allocation4 + $0x10] sm:$0xff] %vm15526_vm11, %v2421_v8  ;;  %vm15532_vm11 = vmmov %vm15527_vm13 }
 0x502   : > { %2446 = vst.msk [vmem:[#allocation4] sm:$0xff] %vm15527_vm13, %v2435_v43  ;;  %2600 = vrot.lane.b32.xlu0 %v12368_v37, %s15498_s12  ;;  %v2695_v37 = vrot.slane %v12641_v14, 3  ;;  %vm15533_vm13 = vcmask 244952  }
 0x503   : > { %2614 = vrot.lane.b32.xlu1 %v12393_v62, %s15507_s19  ;;  %v2715_v62 = vrot.slane %v12620_v7, 4 }
 0x504   : > { %v2377_v16 = vpop.permute.xlu0 %2376  ;;  %v2391_v17 = vpop.permute.xlu1 %2390  ;;  %v2696_v0 = vsel %vm15534_vm4, %v2693_v42, %v2695_v37  ;;  %vm15539_vm4 = vcmask 269552  }
 0x505   : > { %2385 = vst.msk [vmem:[#allocation4 + $0x30] sm:$0xf] %vm15530_vm2, %v2377_v16  ;;  %v2717_v55 = vsel %vm15535_vm0, %v2715_v62, %v2716_v51  ;;  %vm15536_vm2 = vcmask 142456  }
 0x506   : > { %2400 = vst.msk [vmem:[#allocation4 + $0x20] sm:$0xff] %vm15531_vm9, %v2391_v17  ;;  %2678 = vrot.lane.b32.xlu0 %v2673_v63, %s10642_s22  ;;  %vm15537_vm9 = vcmask 171152  }
 0x507   : > { %2699 = vrot.lane.b32.xlu1 %v2694_v58, %s10643_s15 }
 0x508   : > { %v2437_v22 = vpop.permute.xlu0 %2436  ;;  %v2451_v30 = vpop.permute.xlu1 %2450 }
 0x509   : > { %2447 = vst.msk [vmem:[#allocation4 + $0x10] sm:$0xff] %vm15532_vm11, %v2437_v22  ;;  %vm15538_vm11 = vcmask 1046528  }
 0x50a   : > { %2462 = vst.msk [vmem:[#allocation4] sm:$0xff] %vm15533_vm13, %v2451_v30  ;;  %2616 = vrot.lane.b32.xlu0 %v12383_v18, %s15507_s19  ;;  %v2718_v18 = vrot.slane %v12641_v14, 4  ;;  %v2652_v10 = vsel %vm15538_vm11, %v2649_v61, %v2651_v5  ;;  %vm15542_vm11 = vcmask 1045504  }
 0x50b   : > { %2634 = vrot.lane.b32.xlu1 %v12641_v14, %s10640_s30  ;;  %v2675_v31 = vsel %vm15542_vm11, %v2672_v26, %v2674_v1  ;;  %vm15548_vm11 = vcmask 1043456  }
 0x50c   : > { %v2393_v11 = vpop.permute.xlu0 %2392  ;;  %v2407_v47 = vpop.permute.xlu1 %2406  ;;  %v2719_v45 = vsel %vm15535_vm0, %v2716_v51, %v2718_v18  ;;  %vm15545_vm0 = vcmask 1044480   ;;  %v2721_v33 = vsel %vm15548_vm11, %v2718_v18, %v2720_v29  ;;  %vm15554_vm11 = vcmask 343352  }
 0x50d   : > { %2401 = vst.msk [vmem:[#allocation4 + $0x30] sm:$0xf] %vm15536_vm2, %v2393_v11  ;;  %vm15540_vm2 = vcmask 167056   ;;  %v2698_v25 = vsel %vm15545_vm0, %v2695_v37, %v2697_v60  ;;  %vm15551_vm0 = vcmask 216256   ;;  %vm15557_vm15 = vmmov %vm15554_vm11 }
 0x50e   : > { %2416 = vst.msk [vmem:[#allocation4 + $0x20] sm:$0xff] %vm15537_vm9, %v2407_v47  ;;  %2701 = vrot.lane.b32.xlu0 %v2696_v0, %s10643_s15  ;;  %vm15541_vm9 = vcmask 195752  }
 0x50f   : > { %2722 = vrot.lane.b32.xlu1 %v2717_v55, %s10644_s21 }
 0x510   : > { %v2453_v23 = vpop.permute.xlu0 %2452  ;;  %v2467_v52 = vpop.permute.xlu1 %2466 }
 0x511   : > { %2463 = vst.msk [vmem:[#allocation4 + $0x10] sm:$0xff] %vm15533_vm13, %v2453_v23  ;;  %vm15543_vm13 = vmmov %vm15539_vm4 }
 0x512   : > { %2478 = vst.msk [vmem:[#allocation4] sm:$0xff] %vm15539_vm4, %v2467_v52  ;;  %2636 = vrot.lane.b32.xlu0 %v9295_v39, %s10640_s30  ;;  %vm15544_vm4 = vcmask 294152  }
 0x513   : > { %2657 = vrot.lane.b32.xlu1 %v2652_v10, %s10641_s13 }
 0x514   : > { %v2409_v9 = vpop.permute.xlu0 %2408  ;;  %v2423_v24 = vpop.permute.xlu1 %2422 }
 0x515   : > { %2417 = vst.msk [vmem:[#allocation4 + $0x30] sm:$0xf] %vm15540_vm2, %v2409_v9  ;;  %vm15546_vm2 = vcmask 191656  }
 0x516   : > { %2432 = vst.msk [vmem:[#allocation4 + $0x20] sm:$0xff] %vm15541_vm9, %v2423_v24  ;;  %2724 = vrot.lane.b32.xlu0 %v2719_v45, %s10644_s21  ;;  %vm15547_vm9 = vcmask 220352  }
 0x517   : > { %2659 = vrot.lane.b32.xlu1 %v2651_v5, %s10641_s13  ;;  %s9313_s13 = sshll.u32 %s10586_s14, 4  ;;  %s1545_s14 = sadd.s32 1, %s10586_s14  }
 0x518   : > { %v2469_v15 = vpop.permute.xlu0 %2468  ;;  %v2483_v21 = vpop.permute.xlu1 %2482  ;;  %p1542_p1 = scmp.ge.s32.totalorder %s1545_s14, 14  }
 0x519   : > { %2479 = vst.msk [vmem:[#allocation4 + $0x10] sm:$0xff] %vm15543_vm13, %v2469_v15  ;;  %vm15549_vm13 = vmmov %vm15544_vm4 }
 0x51a   : > { %2494 = vst.msk [vmem:[#allocation4] sm:$0xff] %vm15544_vm4, %v2483_v21  ;;  %2680 = vrot.lane.b32.xlu0 %v2675_v31, %s10642_s22  ;;  %vm15550_vm4 = vcmask 318752  }
 0x51b   : > { %2682 = vrot.lane.b32.xlu1 %v2674_v1, %s10642_s22  ;;  %s9133_s22 = scalar_lea.vmem [#allocation2], %s9313_s13 }
 0x51c   : > { %v2425_v3 = vpop.permute.xlu0 %2424  ;;  %v2439_v32 = vpop.permute.xlu1 %2438 }
 0x51d   : > { %2433 = vst.msk [vmem:[#allocation4 + $0x30] sm:$0xf] %vm15546_vm2, %v2425_v3  ;;  %vm15552_vm2 = vcmask 244952  }
 0x51e   : > { %2448 = vst.msk [vmem:[#allocation4 + $0x20] sm:$0xff] %vm15547_vm9, %v2439_v32  ;;  %2703 = vrot.lane.b32.xlu0 %v2698_v25, %s10643_s15  ;;  %vm15553_vm9 = vmmov %vm15550_vm4 }
 0x51f   : > { %2705 = vrot.lane.b32.xlu1 %v2697_v60, %s10643_s15  ;;  %s12801_s15 = smov (%p1542_p1), 0  }
 0x520   : > { %v2485_v28 = vpop.permute.xlu0 %2484  ;;  %v2499_v27 = vpop.permute.xlu1 %2498 }
 0x521   : > { %2495 = vst.msk [vmem:[#allocation4 + $0x10] sm:$0xff] %vm15549_vm13, %v2485_v28  ;;  %vm15555_vm13 = vcmask 240856   ;;  %v15594_v28 = vld [vmem:[#allocation10_spill] sm:$0xff] }
 0x522   : > { %2510 = vst.msk [vmem:[#allocation4] sm:$0xff] %vm15550_vm4, %v2499_v27  ;;  %2726 = vrot.lane.b32.xlu0 %v2721_v33, %s10644_s21  ;;  %vm15556_vm4 = vcmask 269552  }
 0x523   : > { %2728 = vrot.lane.b32.xlu1 %v2720_v29, %s10644_s21 }
 0x524   : > { %v2441_v40 = vpop.permute.xlu0 %2440  ;;  %v2455_v38 = vpop.permute.xlu1 %2454 }
 0x525   : > { %2449 = vst.msk [vmem:[#allocation4 + $0x30] sm:$0xf] %vm15551_vm0, %v2441_v40  ;;  %vm15559_vm0 = vcmask 265456  }
 0x526   : > { %2464 = vst.msk [vmem:[#allocation4 + $0x20] sm:$0xff] %vm15552_vm2, %v2455_v38  ;;  %vm15560_vm2 = vcmask 294152  }
 0x528   : > { %v2501_v41 = vpop.permute.xlu0 %2500  ;;  %v2515_v20 = vpop.permute.xlu1 %2514 }
 0x529   : > { %2511 = vst.msk [vmem:[#allocation4 + $0x10] sm:$0xff] %vm15553_vm9, %v2501_v41  ;;  %vm15561_vm9 = vmmov %vm15558_vm10 }
 0x52a   : > { %2526 = vst.msk [vmem:[#allocation4] sm:$0xff] %vm15554_vm11, %v2515_v20  ;;  %vm15562_vm11 = vcmask 392552   ;;  %v9296_v20 = vld [vmem:[%s14914_s2] ss:$0 sm:$0xff] }
 0x52c   : > { %v2457_v7 = vpop.permute.xlu0 %2456  ;;  %v2471_v48 = vpop.permute.xlu1 %2470 }
 0x52d   : > { %2465 = vst.msk [vmem:[#allocation4 + $0x30] sm:$0xf] %vm15555_vm13, %v2457_v7  ;;  %vm15563_vm13 = vcmask 290056  }
 0x52e   : > { %2480 = vst.msk [vmem:[#allocation4 + $0x20] sm:$0xff] %vm15556_vm4, %v2471_v48  ;;  %vm15564_vm4 = vcmask 318752  }
 0x530   : > { %v2517_v56 = vpop.permute.xlu0 %2516  ;;  %v2531_v2 = vpop.permute.xlu1 %2530 }
 0x531   : > { %2527 = vst.msk [vmem:[#allocation4 + $0x10] sm:$0xff] %vm15557_vm15, %v2517_v56  ;;  %vm15566_vm15 = vcmask 417152  }
 0x532   : > { %2542 = vst.msk [vmem:[#allocation4] sm:$0xff] %vm15558_vm10, %v2531_v2  ;;  %vm15565_vm10 = vmmov %vm15562_vm11 }
 0x534   : > { %v2473_v46 = vpop.permute.xlu0 %2472  ;;  %v2487_v57 = vpop.permute.xlu1 %2486 }
 0x535   : > { %2481 = vst.msk [vmem:[#allocation4 + $0x30] sm:$0xf] %vm15559_vm0, %v2473_v46  ;;  %vm15567_vm0 = vcmask 314656  }
 0x536   : > { %2496 = vst.msk [vmem:[#allocation4 + $0x20] sm:$0xff] %vm15560_vm2, %v2487_v57  ;;  %vm15568_vm2 = vcmask 343352  }
 0x538   : > { %v2533_v12 = vpop.permute.xlu0 %2532  ;;  %v2547_v44 = vpop.permute.xlu1 %2546 }
 0x539   : > { %2543 = vst.msk [vmem:[#allocation4 + $0x10] sm:$0xff] %vm15561_vm9, %v2533_v12  ;;  %vm15569_vm9 = vmmov %vm15566_vm15 }
 0x53a   : > { %2558 = vst.msk [vmem:[#allocation4] sm:$0xff] %vm15562_vm11, %v2547_v44  ;;  %vm15570_vm11 = vcmask 441752  }
 0x53c   : > { %v2489_v49 = vpop.permute.xlu0 %2488 }
 0x53d   : > { %v2503_v34 = vpop.permute.xlu1 %2502  ;;  %2497 = vst.msk [vmem:[#allocation4 + $0x30] sm:$0xf] %vm15563_vm13, %v2489_v49  ;;  %vm15571_vm13 = vcmask 339256  }
 0x53e   : > { %2512 = vst.msk [vmem:[#allocation4 + $0x20] sm:$0xff] %vm15564_vm4, %v2503_v34  ;;  %vm15572_vm4 = vcmask 367952  }
 0x540   : > { %v2549_v6 = vpop.permute.xlu0 %2548 }
 0x541   : > { %v2563_v14 = vpop.permute.xlu1 %2562  ;;  %2559 = vst.msk [vmem:[#allocation4 + $0x10] sm:$0xff] %vm15565_vm10, %v2549_v6  ;;  %vm15573_vm10 = vmmov %vm15570_vm11 }
 0x542   : > { %2574 = vst.msk [vmem:[#allocation4] sm:$0xff] %vm15566_vm15, %v2563_v14  ;;  %vm15574_vm15 = vcmask 466352  }
 0x544   : > { %v2505_v61 = vpop.permute.xlu0 %2504 }
 0x545   : > { %v2519_v54 = vpop.permute.xlu1 %2518  ;;  %2513 = vst.msk [vmem:[#allocation4 + $0x30] sm:$0xf] %vm15567_vm0, %v2505_v61  ;;  %vm15575_vm0 = vcmask 363856  }
 0x546   : > { %2528 = vst.msk [vmem:[#allocation4 + $0x20] sm:$0xff] %vm15568_vm2, %v2519_v54  ;;  %vm15576_vm2 = vcmask 392552  }
 0x548   : > { %v2565_v53 = vpop.permute.xlu0 %2564 }
 0x549   : > { %v2579_v19 = vpop.permute.xlu1 %2578  ;;  %2575 = vst.msk [vmem:[#allocation4 + $0x10] sm:$0xff] %vm15569_vm9, %v2565_v53  ;;  %vm15577_vm9 = vmmov %vm15574_vm15 }
 0x54a   : > { %2590 = vst.msk [vmem:[#allocation4] sm:$0xff] %vm15570_vm11, %v2579_v19  ;;  %vm15578_vm11 = vcmask 490952  }
 0x54c   : > { %v2521_v35 = vpop.permute.xlu0 %2520 }
 0x54d   : > { %v2535_v36 = vpop.permute.xlu1 %2534  ;;  %2529 = vst.msk [vmem:[#allocation4 + $0x30] sm:$0xf] %vm15571_vm13, %v2521_v35  ;;  %vm15579_vm13 = vcmask 388456  }
 0x54e   : > { %2544 = vst.msk [vmem:[#allocation4 + $0x20] sm:$0xff] %vm15572_vm4, %v2535_v36  ;;  %vm15580_vm4 = vcmask 417152  }
 0x550   : > { %v2581_v4 = vpop.permute.xlu0 %2580 }
 0x551   : > { %2591 = vst.msk [vmem:[#allocation4 + $0x10] sm:$0xff] %vm15573_vm10, %v2581_v4  ;;  %v2595_v13 = vpop.permute.xlu1 %2594  ;;  %vm15581_vm10 = vmmov %vm15578_vm11 }
 0x552   : > { %2606 = vst.msk [vmem:[#allocation4] sm:$0xff] %vm15574_vm15, %v2595_v13  ;;  %vm15582_vm15 = vcmask 515552  }
 0x554   : > { %v2537_v50 = vpop.permute.xlu0 %2536 }
 0x555   : > { %2545 = vst.msk [vmem:[#allocation4 + $0x30] sm:$0xf] %vm15575_vm0, %v2537_v50  ;;  %v2551_v26 = vpop.permute.xlu1 %2550  ;;  %vm15583_vm0 = vcmask 413056  }
 0x556   : > { %2560 = vst.msk [vmem:[#allocation4 + $0x20] sm:$0xff] %vm15576_vm2, %v2551_v26  ;;  %vm15584_vm2 = vcmask 441752  }
 0x558   : > { %v2597_v8 = vpop.permute.xlu0 %2596 }
 0x559   : > { %2607 = vst.msk [vmem:[#allocation4 + $0x10] sm:$0xff] %vm15577_vm9, %v2597_v8  ;;  %v2611_v43 = vpop.permute.xlu1 %2610  ;;  %vm15585_vm9 = vmmov %vm15582_vm15 }
 0x55a   : > { %2622 = vst.msk [vmem:[#allocation4] sm:$0xff] %vm15578_vm11, %v2611_v43  ;;  %vm15586_vm11 = vcmask 437656  }
 0x55c   : > { %v2553_v59 = vpop.permute.xlu0 %2552 }
 0x55d   : > { %2561 = vst.msk [vmem:[#allocation4 + $0x30] sm:$0xf] %vm15579_vm13, %v2553_v59  ;;  %v2567_v42 = vpop.permute.xlu1 %2566  ;;  %vm15587_vm13 = vcmask 466352   ;;  %v15599_v59 = vld [vmem:[#allocation9_spill] sm:$0xff] }
 0x55e   : > { %2576 = vst.msk [vmem:[#allocation4 + $0x20] sm:$0xff] %vm15580_vm4, %v2567_v42  ;;  %vm15588_vm4 = vcmask 462256   ;;  %v15600_v42 = vld [vmem:[#allocation11_spill] sm:$0xff] }
 0x560   : > { %v2613_v63 = vpop.permute.xlu0 %2612 }
 0x561   : > { %2623 = vst.msk [vmem:[#allocation4 + $0x10] sm:$0xff] %vm15581_vm10, %v2613_v63  ;;  %v2631_v16 = vpop.permute.xlu1 %2630 }
 0x562   : > { %2642 = vst.msk [vmem:[#allocation4] sm:$0xff] %vm15582_vm15, %v2631_v16  ;;  %vm15589_vm15 = vcmask 486856  }
 0x564   : > { %v2569_v17 = vpop.permute.xlu0 %2568 }
 0x565   : > { %2577 = vst.msk [vmem:[#allocation4 + $0x30] sm:$0xf] %vm15583_vm0, %v2569_v17  ;;  %v2583_v58 = vpop.permute.xlu1 %2582  ;;  %vm15590_vm0 = vmmov %vm15585_vm9 }
 0x566   : > { %2592 = vst.msk [vmem:[#allocation4 + $0x20] sm:$0xff] %vm15584_vm2, %v2583_v58  ;;  %vm15591_vm2 = vcmask 511456  }
 0x568   : > { %v2633_v37 = vpop.permute.xlu0 %2632 }
 0x569   : > { %2643 = vst.msk [vmem:[#allocation4 + $0x10] sm:$0xff] %vm15585_vm9, %v2633_v37  ;;  %v2654_v22 = vpop.permute.xlu1 %2653  ;;  %vm15592_vm9 = vcmask 536056  }
 0x56a   : > { %2665 = vst.msk [vmem:[#allocation4] sm:$0xff] %vm640_vm5, %v2654_v22 }
 0x56c   : > { %v2585_v30 = vpop.permute.xlu0 %2584 }
 0x56d   : > { %2593 = vst.msk [vmem:[#allocation4 + $0x30] sm:$0xf] %vm15586_vm11, %v2585_v30  ;;  %v2599_v62 = vpop.permute.xlu1 %2598  ;;  %vm15593_vm11 = vcmask 560656  }
 0x56e   : > { %2608 = vst.msk [vmem:[#allocation4 + $0x20] sm:$0xff] %vm15587_vm13, %v2599_v62  ;;  %vm15595_vm13 = vcmask 1043456  }
 0x570   : > { %v2656_v51 = vpop.permute.xlu0 %2655 }
 0x571   : > { %2666 = vst.msk [vmem:[#allocation4 + $0x10] sm:$0xff] %vm640_vm5, %v2656_v51  ;;  %v2677_v39 = vpop.permute.xlu1 %2676 }
 0x572   : > { %2688 = vst.msk [vmem:[#allocation4] sm:$0xff] %vm665_vm6, %v2677_v39 }
 0x574   : > { %v2601_v0 = vpop.permute.xlu0 %2600 }
 0x575   : > { %2609 = vst.msk [vmem:[#allocation4 + $0x30] sm:$0xf] %vm15588_vm4, %v2601_v0  ;;  %v2615_v11 = vpop.permute.xlu1 %2614  ;;  %vm15596_vm4 = vmmov %vm15595_vm13 }
 0x576   : > { %2624 = vst.msk [vmem:[#allocation4 + $0x20] sm:$0xff] %vm15581_vm10, %v2615_v11  ;;  %vm15597_vm10 = vmmov %vm15596_vm4 }
 0x578   : > { %v2679_v47 = vpop.permute.xlu0 %2678 }
 0x579   : > { %2689 = vst.msk [vmem:[#allocation4 + $0x10] sm:$0xff] %vm665_vm6, %v2679_v47  ;;  %v2700_v55 = vpop.permute.xlu1 %2699 }
 0x57a   : > { %2711 = vst.msk [vmem:[#allocation4] sm:$0xff] %vm690_vm8, %v2700_v55 }
 0x57c   : > { %v2617_v5 = vpop.permute.xlu0 %2616 }
 0x57d   : > { %2625 = vst.msk [vmem:[#allocation4 + $0x30] sm:$0xf] %vm15589_vm15, %v2617_v5  ;;  %v2635_v18 = vpop.permute.xlu1 %2634  ;;  %vm15598_vm15 = vmmov %vm15596_vm4 }
 0x57e   : > { %2644 = vst.msk [vmem:[#allocation4 + $0x20] sm:$0xff] %vm15590_vm0, %v2635_v18  ;;  %vm15601_vm0 = vcmask 46080  }
 0x580   : > { %v2702_v23 = vpop.permute.xlu0 %2701 }
 0x581   : > { %2712 = vst.msk [vmem:[#allocation4 + $0x10] sm:$0xff] %vm690_vm8, %v2702_v23  ;;  %v2723_v52 = vpop.permute.xlu1 %2722 }
 0x582   : > { %2734 = vst.msk [vmem:[#allocation4] sm:$0xff] %vm715_vm3, %v2723_v52 }
 0x584   : > { %v2637_v10 = vpop.permute.xlu0 %2636 }
 0x585   : > { %2645 = vst.msk [vmem:[#allocation4 + $0x30] sm:$0xf] %vm15591_vm2, %v2637_v10  ;;  %v2658_v45 = vpop.permute.xlu1 %2657  ;;  %vm15602_vm2 = vcmask 48128  }
 0x586   : > { %2667 = vst.msk [vmem:[#allocation4 + $0x20] sm:$0xff] %vm640_vm5, %v2658_v45 }
 0x588   : > { %v2725_v1 = vpop.permute.xlu0 %2724 }
 0x589   : > { %2735 = vst.msk [vmem:[#allocation4 + $0x10] sm:$0xff] %vm715_vm3, %v2725_v1  ;;  %v2660_v9 = vpop.permute.xlu1 %2659  ;;  %v2738_v24 = vld [vmem:[#allocation4] sm:$0xff] }
 0x58a   : > { %2668 = vst.msk [vmem:[#allocation4 + $0x30] sm:$0xf] %vm15592_vm9, %v2660_v9  ;;  %9885 = vmatprep.mubr.msk.f32.mxu1 %vm731_vm7, %v2738_v24 }
 0x58c   : > { %v2681_v31 = vpop.permute.xlu0 %2680 }
 0x58d   : > { %2690 = vst.msk [vmem:[#allocation4 + $0x20] sm:$0xff] %vm665_vm6, %v2681_v31  ;;  %v2683_v60 = vpop.permute.xlu1 %2682 }
 0x58e   : > { %2691 = vst.msk [vmem:[#allocation4 + $0x30] sm:$0xf] %vm15593_vm11, %v2683_v60 }
 0x590   : > { %v2704_v15 = vpop.permute.xlu0 %2703  ;;  %v2739_v21 = vld [vmem:[#allocation4 + $0x10] sm:$0xff] }
 0x591   : > { %2713 = vst.msk [vmem:[#allocation4 + $0x20] sm:$0xff] %vm690_vm8, %v2704_v15  ;;  %v2706_v25 = vpop.permute.xlu1 %2705  ;;  %9886 = vmatmul.mubr.msk.f32.vlgmr.msra.gmra.mxu1 %vm731_vm7, %v2739_v21  ;;  %v9861_v27 = vpop.f32.mrf.mxu0 }
 0x592   : > { %2714 = vst.msk [vmem:[#allocation4 + $0x30] sm:$0xf] %vm694_vm14, %v2706_v25  ;;  %v2301_v44 = vadd.f32 %v9861_v27, %v9296_v20 }
 0x593   : > { %v2295_v40 = vpop.f32.mrf.mxu0 }
 0x594   : > { %v2727_v29 = vpop.permute.xlu0 %2726  ;;  %v2296_v54 = vadd.f32 %v9296_v20, %v2295_v40  ;;  %v2315_v4 = vmax.f32 %v2301_v44, 0.0 }
 0x595   : > { %2736 = vst.msk [vmem:[#allocation4 + $0x20] sm:$0xff] %vm715_vm3, %v2727_v29  ;;  %v2729_v3 = vpop.permute.xlu1 %2728 }
 0x596   : > { %2737 = vst.msk [vmem:[#allocation4 + $0x30] sm:$0xf] %vm719_vm1, %v2729_v3  ;;  %v2314_v26 = vmax.f32 %v2296_v54, 0.0 }
 0x59c   : > { %v2740_v32 = vld [vmem:[#allocation4 + $0x20] sm:$0xff] }
 0x59d   : > { %9888 = vmatprep.mubr.msk.f32.mxu1 %vm731_vm7, %v2740_v32  ;;  %v2741_v33 = vld [vmem:[#allocation4 + $0x30] sm:$0xf] }
 0x59e   : > { %9889 = vmatmul.mubr.msk.f32.gmra.mxu1 %vm731_vm7, %v2741_v33  ;;  %v9864_v38 = vpop.f32.mrf.mxu0 }
 0x59f   : > { %9910 = vmatprep.mubr.msk.f32.mxu1 %vm1366_vm12, %v15594_v28  ;;  %v2311_v56 = vadd.f32 %v9864_v38, %v9296_v20 }
 0x5a0   : > { %v2305_v7 = vpop.f32.mrf.mxu0 }
 0x5a1   : > { %v2306_v46 = vadd.f32 %v9296_v20, %v2305_v7  ;;  %v2317_v34 = vmax.f32 %v2311_v56, 0.0 }
 0x5a3   : > { %v2316_v53 = vmax.f32 %v2306_v46, 0.0 }
 0x651   : > { %v9887_v41 = vpop.f32.mrf.mxu1 }
 0x652   : > { %v2826_v57 = vadd.f32 %v9887_v41, %v9296_v20 }
 0x653   : > { %v2820_v48 = vpop.f32.mrf.mxu1 }
 0x654   : > { %v2821_v6 = vadd.f32 %v9296_v20, %v2820_v48  ;;  %v2840_v19 = vmax.f32 %v2826_v57, 0.0 }
 0x656   : > { %v2839_v13 = vmax.f32 %v2821_v6, 0.0  ;;  %v2844_v8 = vmax.f32 %v2315_v4, %v2840_v19 }
 0x658   : > { %v2843_v43 = vmax.f32 %v2314_v26, %v2839_v13 }
 0x65e   : > { %v9890_v2 = vpop.f32.mrf.mxu1 }
 0x65f   : > { %v2836_v12 = vadd.f32 %v9890_v2, %v9296_v20 }
 0x660   : > { %v2830_v49 = vpop.f32.mrf.mxu1 }
 0x661   : > { %v2842_v14 = vmax.f32 %v2836_v12, 0.0  ;;  %v2831_v61 = vadd.f32 %v9296_v20, %v2830_v49 }
 0x663   : > { %v2846_v35 = vmax.f32 %v2317_v34, %v2842_v14  ;;  %v2841_v36 = vmax.f32 %v2831_v61, 0.0 }
 0x665   : > { %v2845_v50 = vmax.f32 %v2316_v53, %v2841_v36  ;;  %9891 = vmatprep.subr.msk.mxu0 %vm15595_vm13, %v2846_v35  ;;  %9902 = vmatprep.subr.msk.mxu1 %vm15596_vm4, %v2846_v35 }
 0x666   : > { %9892 = vmatpush3.msk.msra.mxu0 %vm15597_vm10, %v2846_v35  ;;  %9903 = vmatpush3.msk.msra.mxu1 %vm15598_vm15, %v2846_v35 }
 0x667   : > { %9893 = vmatprep.subr.mxu0 %v2845_v50  ;;  %9904 = vmatprep.subr.mxu1 %v2845_v50 }
 0x668   : > { %9894 = vmatpush3.msra.mxu0 %v2845_v50  ;;  %9905 = vmatpush3.msra.mxu1 %v2845_v50 }
 0x669   : > { %9895 = vmatprep.subr.mxu0 %v2844_v8  ;;  %9906 = vmatprep.subr.mxu1 %v2844_v8 }
 0x66a   : > { %9896 = vmatpush3.msra.mxu0 %v2844_v8  ;;  %9907 = vmatpush3.msra.mxu1 %v2844_v8 }
 0x66b   : > { %9897 = vmatprep.subr.mxu0 %v2843_v43  ;;  %9908 = vmatprep.subr.mxu1 %v2843_v43 }
 0x66c   : > { %9898 = vmatpush3.msra.mxu0 %v2843_v43  ;;  %9909 = vmatpush3.msra.mxu1 %v2843_v43 }
 0x66d   : > { %9900 = vmatmul.mubr.msk.f32.vlgmr.msra.gmra.mxu0 %vm1366_vm12, %v15599_v59  ;;  %9911 = vmatmul.mubr.msk.f32.vlgmr.msra.gmra.mxu1 %vm1366_vm12, %v15600_v42 }
 0x72d   : > { %v9901_v63 = vpop.f32.mrf.mxu0  ;;  %v9912_v16 = vpop.f32.mrf.mxu1 }
 0x72e   : > { %v3014_v17 = vmax.f32 %v9901_v63, %v9912_v16  ;;  %1544 = sbr.rel (!%p1542_p1) target bundleno = 928 (0x3a0), region = 140 }
 0x72f   : > { %v2923_v58 = vpop.f32.mrf.mxu0  ;;  %v3004_v37 = vpop.f32.mrf.mxu1 }
 0x730   : > { %9315 = vst.msk [vmem:[%s9133_s22 + $0xe8] sm:$0x3f] %vm15601_vm0, %v3014_v17  ;;  %v3013_v22 = vmax.f32 %v2923_v58, %v3004_v37 }
 0x732   : > { %9314 = vst.msk [vmem:[%s9133_s22 + $0xe0] sm:$0xff] %vm15602_vm2, %v3013_v22 }
 0x733 LB: > { %s9455_s21 = sshll.u32 %s10590_s15, 5  ;;  %vm15121_vm9 = vcmask 41984   ;;  %s10645_s0 = smov 30   ;;  %vm15603_vm5 = vcmask 48128   ;;  %vm15604_vm6 = vcmask 1044480   ;;  %vm15605_vm7 = vcmask 1046528   ;;  %s10590_s15 = sphi %s12801_s15, %s3027_s15  }
 0x734   : > { %s12807_s18 = scalar_lea.vmem [#allocation2], %s9455_s21  ;;  %s10646_s1 = smov 6   ;;  %vm15606_vm8 = vcmask 1043456   ;;  %vm15607_vm14 = vcmask 1045504   ;;  %vm15608_vm1 = vmmov %vm15605_vm7  ;;  %v10666_v58 = vmov 0.0   ;;  %v3073_v37 = vld [vmem:[%s14915_s3 + $0x78] sm:$0xff] }
 0x735   : > { %s10647_s2 = smov 18   ;;  %s10648_s14 = smov 24   ;;  %vm15609_vm3 = vmmov %vm15607_vm14  ;;  %3420 = vmatprep.subr.mxu0 %v10666_v58  ;;  %3717 = vmatprep.subr.mxu1 %v10666_v58  ;;  %v3072_v22 = vld [vmem:[%s14915_s3 + $0x70] sm:$0xff] }
 0x736   : > { %s10649_s17 = smov 12   ;;  %s10650_s24 = smov 36   ;;  %vm15610_vm12 = vmmov %vm15604_vm6  ;;  %3421 = vmatpush1.msra.mxu0 %v3073_v37  ;;  %3718 = vmatpush1.msra.mxu1 %v3073_v37 }
 0x737   : > { %s10651_s25 = smov 42   ;;  %s10652_s26 = smov 48   ;;  %vm15611_vm11 = vmmov %vm15606_vm8  ;;  %3422 = vmatprep.subr.mxu0 %v10666_v58  ;;  %3719 = vmatprep.subr.mxu1 %v10666_v58 }
 0x738   : > { %s10653_s27 = smov 54   ;;  %s10654_s28 = smov 60   ;;  %vm15612_vm13 = vmmov %vm15608_vm1  ;;  %3423 = vmatpush1.msra.mxu0 %v3072_v22  ;;  %3720 = vmatpush1.msra.mxu1 %v3072_v22 }
 0x739   : > { %v12810_v30 = vld [vmem:[%s12807_s18 + $0x10] sm:$0xff]  ;;  %v3032_v62 = vld [vmem:[%s12807_s18 + $0x8] sm:$0x3f]  ;;  %v3031_v51 = vld [vmem:[%s12807_s18] sm:$0xff]  ;;  %s10655_s29 = smov 66   ;;  %s15080_s16 = smov 72   ;;  %3424 = vmatprep.subr.mxu0 %v10666_v58  ;;  %3721 = vmatprep.subr.mxu1 %v10666_v58 }
 0x73a   : > { %3142 = vrot.lane.b32.xlu1 %v12810_v30, %s10645_s0  ;;  %v3086_v39 = vrot.slane %v3032_v62, 1  ;;  %v3113_v0 = vrot.slane %v3031_v51, 3  ;;  %v3114_v11 = vrot.slane %v3032_v62, 3  ;;  %3079 = vst.msk [vmem:[#allocation4] sm:$0xff] %vm15603_vm5, %v3031_v51  ;;  %v3085_v47 = vrot.slane %v3031_v51, 1  ;;  %v12872_v40 = vld [vmem:[%s12807_s18 + $0x20] sm:$0xff]  ;;  %vm15613_vm4 = vmmov %vm15609_vm3 }
 0x73b   : > { %3081 = vst.msk [vmem:[#allocation4 + $0x10] sm:$0x3] %vm15121_vm9, %v3032_v62  ;;  %v3127_v55 = vrot.slane %v3031_v51, 4  ;;  %v3128_v5 = vrot.slane %v3032_v62, 4  ;;  %v12821_v23 = vld [vmem:[%s12807_s18 + $0x18] sm:$0x3f]  ;;  %vm15614_vm10 = vmmov %vm15604_vm6 }
 0x73c   : > { %3090 = vrot.lane.b32.xlu0 %v3086_v39, %s10646_s1  ;;  %v3115_v18 = vsel %vm15604_vm6, %v3113_v0, %v3114_v11  ;;  %v3087_v52 = vsel %vm15605_vm7, %v3085_v47, %v3086_v39  ;;  %v3099_v10 = vrot.slane %v3031_v51, 2  ;;  %v3100_v45 = vrot.slane %v3032_v62, 2  ;;  %v12875_v38 = vld [vmem:[%s12807_s18 + $0x28] sm:$0x3f]  ;;  %s15074_s20 = smov 78   ;;  %vm15615_vm15 = vmmov %vm15606_vm8  ;;  %v12930_v6 = vld [vmem:[%s12807_s18 + $0x30] sm:$0xff] }
 0x73d   : > { %v3129_v1 = vsel %vm15606_vm8, %v3127_v55, %v3128_v5  ;;  %v3152_v9 = vrot.slane %v12810_v30, 1  ;;  %v12828_v24 = vrot.slane %v12821_v23, 1  ;;  %v3165_v15 = vrot.slane %v12810_v30, 2  ;;  %v12933_v14 = vld [vmem:[%s12807_s18 + $0x38] sm:$0x3f]  ;;  %s15072_s12 = smov 84   ;;  %vm15616_vm0 = vmmov %vm15608_vm1 }
 0x73e   : > { %3116 = vrot.lane.b32.xlu1 %v3115_v18, %s10647_s2  ;;  %v3101_v31 = vsel %vm15607_vm14, %v3099_v10, %v3100_v45  ;;  %v12839_v21 = vrot.slane %v12821_v23, 2  ;;  %v3178_v29 = vrot.slane %v12810_v30, 3  ;;  %v12850_v3 = vrot.slane %v12821_v23, 3  ;;  %s15076_s19 = smov 90   ;;  %s15078_s23 = smov 96   ;;  %vm15617_vm2 = vmmov %vm15609_vm3  ;;  %v12988_v59 = vld [vmem:[%s12807_s18 + $0x40] sm:$0xff] }
 0x73f   : > { %v12835_v60 = vsel %vm15608_vm1, %v3152_v9, %v12828_v24  ;;  %v3191_v33 = vrot.slane %v12810_v30, 4  ;;  %v12861_v28 = vrot.slane %v12821_v23, 4  ;;  %v3216_v41 = vrot.slane %v12872_v40, 1  ;;  %s10661_s30 = smov 102   ;;  %vm15618_vm5 = vmmov %vm15604_vm6  ;;  %s10662_s13 = smov 108   ;;  %v3071_v62 = vld [vmem:[%s14915_s3 + $0x68] sm:$0xff] }
 0x740   : > { %3088 = vrot.lane.b32.xlu0 %v3087_v52, %s10646_s1  ;;  %v12846_v25 = vsel %vm15609_vm3, %v3165_v15, %v12839_v21  ;;  %v12857_v32 = vsel %vm15610_vm12, %v3178_v29, %v12850_v3  ;;  %v12881_v20 = vrot.slane %v12875_v38, 1  ;;  %v3229_v48 = vrot.slane %v12872_v40, 2  ;;  %vm15619_vm6 = vmmov %vm15606_vm8  ;;  %v12991_v42 = vld [vmem:[%s12807_s18 + $0x48] sm:$0x3f]  ;;  %s10663_s22 = smov 114   ;;  %s10664_s21 = smov 120   ;;  %3425 = vmatpush1.msra.mxu0 %v3071_v62 }
 0x741   : > { %v12868_v27 = vsel %vm15611_vm11, %v3191_v33, %v12861_v28  ;;  %v12893_v56 = vrot.slane %v12875_v38, 2  ;;  %v3242_v46 = vrot.slane %v12872_v40, 3  ;;  %v12905_v57 = vrot.slane %v12875_v38, 3  ;;  %vm15620_vm7 = vmmov %vm15616_vm0  ;;  %3426 = vmatprep.subr.mxu0 %v10666_v58  ;;  %v3070_v51 = vld [vmem:[%s14915_s3 + $0x60] sm:$0xff]  ;;  %v3069_v39 = vld [vmem:[%s14915_s3 + $0x58] sm:$0xff]  ;;  %3722 = vmatpush1.msra.mxu1 %v3071_v62 }
 0x742   : > { %3130 = vrot.lane.b32.xlu1 %v3129_v1, %s10648_s14  ;;  %v12889_v7 = vsel %vm15612_vm13, %v3216_v41, %v12881_v20  ;;  %v3255_v44 = vrot.slane %v12872_v40, 4  ;;  %v12917_v49 = vrot.slane %v12875_v38, 4  ;;  %v3280_v61 = vrot.slane %v12930_v6, 1  ;;  %3427 = vmatpush1.msra.mxu0 %v3070_v51  ;;  %v3068_v0 = vld [vmem:[%s14915_s3 + $0x50] sm:$0xff]  ;;  %v3066_v47 = vld [vmem:[%s14915_s3 + $0x40] sm:$0xff]  ;;  %v3065_v55 = vld [vmem:[%s14915_s3 + $0x38] sm:$0xff] }
 0x743   : > { %v12901_v2 = vsel %vm15613_vm4, %v3229_v48, %v12893_v56  ;;  %v12913_v12 = vsel %vm15614_vm10, %v3242_v46, %v12905_v57  ;;  %v12939_v54 = vrot.slane %v12933_v14, 1  ;;  %v3293_v19 = vrot.slane %v12930_v6, 2  ;;  %3428 = vmatprep.subr.mxu0 %v10666_v58  ;;  %3723 = vmatprep.subr.mxu1 %v10666_v58  ;;  %v3063_v18 = vld [vmem:[%s14915_s3 + $0x28] sm:$0xff]  ;;  %v3062_v52 = vld [vmem:[%s14915_s3 + $0x20] sm:$0xff]  ;;  %v3061_v1 = vld [vmem:[%s14915_s3 + $0x18] sm:$0xff] }
 0x744   : > { %3102 = vrot.lane.b32.xlu0 %v3101_v31, %s10649_s17  ;;  %v12925_v34 = vsel %vm15615_vm15, %v3255_v44, %v12917_v49  ;;  %v12951_v35 = vrot.slane %v12933_v14, 2  ;;  %v3306_v4 = vrot.slane %v12930_v6, 3  ;;  %v12963_v13 = vrot.slane %v12933_v14, 3  ;;  %3429 = vmatpush1.msra.mxu0 %v3069_v39  ;;  %v3060_v31 = vld [vmem:[%s14915_s3 + $0x10] sm:$0xff]  ;;  %vm15621_vm8 = vmmov %vm15617_vm2  ;;  %v3059_v15 = vld [vmem:[%s14915_s3 + $0x8] sm:$0xff] }
 0x745   : > { %v12947_v53 = vsel %vm15616_vm0, %v3280_v61, %v12939_v54  ;;  %v3319_v26 = vrot.slane %v12930_v6, 4  ;;  %v12975_v8 = vrot.slane %v12933_v14, 4  ;;  %v3344_v63 = vrot.slane %v12988_v59, 1  ;;  %3430 = vmatprep.subr.mxu0 %v10666_v58  ;;  %3724 = vmatpush1.msra.mxu1 %v3070_v51  ;;  %vm15622_vm14 = vmmov %vm15618_vm5  ;;  %v3076_v29 = vld [vmem:[%s14915_s3 + $0x90] sm:$0x3f] }
 0x746   : > { %3155 = vrot.lane.b32.xlu1 %v12835_v60, %s10650_s24  ;;  %v12959_v36 = vsel %vm15617_vm2, %v3293_v19, %v12951_v35  ;;  %v12971_v50 = vsel %vm15618_vm5, %v3306_v4, %v12963_v13  ;;  %v12997_v16 = vrot.slane %v12991_v42, 1  ;;  %3431 = vmatpush1.msra.mxu0 %v3068_v0  ;;  %v3361_v10 = vrot.slane %v12988_v59, 2  ;;  %vm15623_vm1 = vmmov %vm15617_vm2 }
 0x747   : > { %v12983_v43 = vsel %vm15619_vm6, %v3319_v26, %v12975_v8  ;;  %3432 = vmatprep.subr.mxu0 %v10666_v58  ;;  %3725 = vmatprep.subr.mxu1 %v10666_v58  ;;  %v3374_v9 = vrot.slane %v12988_v59, 3  ;;  %v13145_v33 = vrot.slane %v12991_v42, 4  ;;  %vm15624_vm3 = vmmov %vm15619_vm6  ;;  %vm15120_vm12 = vcmask 91184  }
 0x748   : > { %3104 = vrot.lane.b32.xlu0 %v3100_v45, %s10649_s17  ;;  %v13005_v17 = vsel %vm15620_vm7, %v3344_v63, %v12997_v16  ;;  %3726 = vmatpush1.msra.mxu1 %v3069_v39  ;;  %v13089_v45 = vrot.slane %v12991_v42, 2  ;;  %vm15119_vm11 = vcmask 97328   ;;  %vm15117_vm13 = vcmask 146528   ;;  %vm15625_vm15 = vmmov %vm15623_vm1 }
 0x749   : > { %3727 = vmatprep.subr.mxu1 %v10666_v58  ;;  %vm15112_vm4 = vcmask 195728   ;;  %vm15114_vm10 = vcmask 244928   ;;  %vm15113_vm0 = vcmask 294128   ;;  %vm15115_vm2 = vcmask 343328  }
 0x74a   : > { %3168 = vrot.lane.b32.xlu1 %v12846_v25, %s10651_s25  ;;  %3728 = vmatpush1.msra.mxu1 %v3068_v0  ;;  %vm15116_vm5 = vcmask 140384   ;;  %vm15092_vm6 = vcmask 392528   ;;  %vm15118_vm7 = vcmask 189584  }
 0x74b   : > { %3729 = vmatprep.subr.mxu1 %v10666_v58 }
 0x74c   : > { %3118 = vrot.lane.b32.xlu0 %v3114_v11, %s10647_s2  ;;  %v3067_v11 = vld [vmem:[%s14915_s3 + $0x48] sm:$0xff] }
 0x74d   : > { %3433 = vmatpush1.msra.mxu0 %v3067_v11  ;;  %3730 = vmatpush1.msra.mxu1 %v3067_v11 }
 0x74e   : > { %3181 = vrot.lane.b32.xlu1 %v12857_v32, %s10652_s26  ;;  %3434 = vmatprep.subr.mxu0 %v10666_v58 }
 0x74f   : > { %3435 = vmatpush1.msra.mxu0 %v3066_v47  ;;  %3731 = vmatprep.subr.mxu1 %v10666_v58 }
 0x750   : > { %3132 = vrot.lane.b32.xlu0 %v3128_v5, %s10648_s14  ;;  %3436 = vmatprep.subr.mxu0 %v10666_v58  ;;  %v3064_v5 = vld [vmem:[%s14915_s3 + $0x30] sm:$0xff] }
 0x751   : > { %3437 = vmatpush1.msra.mxu0 %v3065_v55  ;;  %3732 = vmatpush1.msra.mxu1 %v3066_v47 }
 0x752   : > { %3194 = vrot.lane.b32.xlu1 %v12868_v27, %s10653_s27  ;;  %3438 = vmatprep.subr.mxu0 %v10666_v58 }
 0x753   : > { %3439 = vmatpush1.msra.mxu0 %v3064_v5  ;;  %3733 = vmatprep.subr.mxu1 %v10666_v58 }
 0x754   : > { %3144 = vrot.lane.b32.xlu0 %v12821_v23, %s10645_s0  ;;  %3440 = vmatprep.subr.mxu0 %v10666_v58 }
 0x755   : > { %3441 = vmatpush1.msra.mxu0 %v3063_v18  ;;  %3734 = vmatpush1.msra.mxu1 %v3065_v55 }
 0x756   : > { %3206 = vrot.lane.b32.xlu1 %v12872_v40, %s10654_s28  ;;  %3442 = vmatprep.subr.mxu0 %v10666_v58 }
 0x757   : > { %3443 = vmatpush1.msra.mxu0 %v3062_v52  ;;  %3735 = vmatprep.subr.mxu1 %v10666_v58 }
 0x758   : > { %3157 = vrot.lane.b32.xlu0 %v12828_v24, %s10650_s24  ;;  %3444 = vmatprep.subr.mxu0 %v10666_v58 }
 0x759   : > { %3445 = vmatpush1.msra.mxu0 %v3061_v1  ;;  %3736 = vmatpush1.msra.mxu1 %v3064_v5 }
 0x75a   : > { %3219 = vrot.lane.b32.xlu1 %v12889_v7, %s10655_s29  ;;  %3446 = vmatprep.subr.mxu0 %v10666_v58 }
 0x75b   : > { %3447 = vmatpush1.msra.mxu0 %v3060_v31  ;;  %3737 = vmatprep.subr.mxu1 %v10666_v58 }
 0x75c   : > { %3170 = vrot.lane.b32.xlu0 %v12839_v21, %s10651_s25  ;;  %3448 = vmatprep.subr.mxu0 %v10666_v58 }
 0x75d   : > { %3449 = vmatpush1.msra.mxu0 %v3059_v15  ;;  %3738 = vmatpush1.msra.mxu1 %v3063_v18 }
 0x75e   : > { %3232 = vrot.lane.b32.xlu1 %v12901_v2, %s15080_s16  ;;  %3450 = vmatprep.subr.mxu0 %v10666_v58 }
 0x75f   : > { %3739 = vmatprep.subr.mxu1 %v10666_v58 }
 0x760   : > { %3183 = vrot.lane.b32.xlu0 %v12850_v3, %s10652_s26  ;;  %3740 = vmatpush1.msra.mxu1 %v3062_v52 }
 0x761   : > { %3741 = vmatprep.subr.mxu1 %v10666_v58 }
 0x762   : > { %3245 = vrot.lane.b32.xlu1 %v12913_v12, %s15074_s20  ;;  %3742 = vmatpush1.msra.mxu1 %v3061_v1 }
 0x763   : > { %3743 = vmatprep.subr.mxu1 %v10666_v58 }
 0x764   : > { %3196 = vrot.lane.b32.xlu0 %v12861_v28, %s10653_s27  ;;  %3744 = vmatpush1.msra.mxu1 %v3060_v31 }
 0x765   : > { %3745 = vmatprep.subr.mxu1 %v10666_v58 }
 0x766   : > { %3258 = vrot.lane.b32.xlu1 %v12925_v34, %s15072_s12  ;;  %3746 = vmatpush1.msra.mxu1 %v3059_v15 }
 0x767   : > { %3747 = vmatprep.subr.mxu1 %v10666_v58 }
 0x768   : > { %3208 = vrot.lane.b32.xlu0 %v12875_v38, %s10654_s28 }
 0x76a   : > { %3270 = vrot.lane.b32.xlu1 %v12930_v6, %s15076_s19 }
 0x76c   : > { %3221 = vrot.lane.b32.xlu0 %v12881_v20, %s10655_s29 }
 0x76e   : > { %3283 = vrot.lane.b32.xlu1 %v12947_v53, %s15078_s23 }
 0x770   : > { %3234 = vrot.lane.b32.xlu0 %v12893_v56, %s15080_s16 }
 0x772   : > { %3296 = vrot.lane.b32.xlu1 %v12959_v36, %s10661_s30 }
 0x774   : > { %3247 = vrot.lane.b32.xlu0 %v12905_v57, %s15074_s20 }
 0x776   : > { %3309 = vrot.lane.b32.xlu1 %v12971_v50, %s10662_s13 }
 0x778   : > { %3260 = vrot.lane.b32.xlu0 %v12917_v49, %s15072_s12  ;;  %s10665_s12 = smov 126  }
 0x77a   : > { %3322 = vrot.lane.b32.xlu1 %v12983_v43, %s10663_s22 }
 0x77c   : > { %3272 = vrot.lane.b32.xlu0 %v12933_v14, %s15076_s19  ;;  %s10668_s19 = smov 10  }
 0x77e   : > { %3334 = vrot.lane.b32.xlu1 %v12988_v59, %s10664_s21 }
 0x780   : > { %3285 = vrot.lane.b32.xlu0 %v12939_v54, %s15078_s23  ;;  %s10669_s23 = smov 16  }
 0x782   : > { %3347 = vrot.lane.b32.xlu1 %v13005_v17, %s10665_s12 }
 0x784   : > { %3298 = vrot.lane.b32.xlu0 %v12951_v35, %s10661_s30 }
 0x786   : > { %3324 = vrot.lane.b32.xlu1 %v12975_v8, %s10663_s22 }
 0x788   : > { %3311 = vrot.lane.b32.xlu0 %v12963_v13, %s10662_s13 }
 0x78a   : > { %3349 = vrot.lane.b32.xlu1 %v12997_v16, %s10665_s12 }
 0x78c   : > { %3336 = vrot.lane.b32.xlu0 %v12991_v42, %s10664_s21 }
 0x78e   : > { %3507 = vrot.lane.b32.xlu1 %v12846_v25, %s10649_s17  ;;  %v3058_v25 = vld [vmem:[%s14915_s3] sm:$0xff] }
 0x78f   : > { %3451 = vmatpush1.msra.mxu0 %v3058_v25  ;;  %3748 = vmatpush1.msra.mxu1 %v3058_v25 }
 0x790   : > { %3499 = vrot.lane.b32.xlu0 %v12835_v60, %s10646_s1  ;;  %v13110_v60 = vsel %vm15621_vm8, %v3361_v10, %v13089_v45  ;;  %3478 = vmatprep.subr.mxu0 %v10666_v58  ;;  %vm15085_vm8 = vcmask 441728  }
 0x791   : > { %9339 = vmatpush2.msk.msra.mxu0 %vm15623_vm1, %v3076_v29  ;;  %3775 = vmatprep.subr.mxu1 %v10666_v58  ;;  %vm15083_vm1 = vcmask 490928  }
 0x792   : > { %3523 = vrot.lane.b32.xlu1 %v12868_v27, %s10648_s14  ;;  %3480 = vmatprep.subr.mxu0 %v10666_v58  ;;  %v3074_v27 = vld [vmem:[%s14915_s3 + $0x80] sm:$0xff] }
 0x793   : > { %9342 = vmatpush2.msk.msra.mxu1 %vm15625_vm15, %v3076_v29  ;;  %vm15086_vm15 = vcmask 540128  }
 0x794   : > { %3515 = vrot.lane.b32.xlu0 %v12857_v32, %s10647_s2  ;;  %v3387_v32 = vrot.slane %v12988_v59, 4  ;;  %3777 = vmatprep.subr.mxu1 %v10666_v58 }
 0x796   : > { %3531 = vrot.lane.b32.xlu1 %v12872_v40, %s10645_s0  ;;  %v13158_v40 = vsel %vm15624_vm3, %v3387_v32, %v13145_v33  ;;  %vm15084_vm3 = vcmask 287984  }
 0x798   : > { %3501 = vrot.lane.b32.xlu0 %v12828_v24, %s10646_s1  ;;  %v13099_v24 = vrot.slane %v12991_v42, 3 }
 0x79a   : > { %3539 = vrot.lane.b32.xlu1 %v12889_v7, %s10650_s24 }
 0x79c   : > { %3509 = vrot.lane.b32.xlu0 %v12839_v21, %s10649_s17  ;;  %v13120_v21 = vsel %vm15622_vm14, %v3374_v9, %v13099_v24  ;;  %s10667_s17 = smov 4   ;;  %vm15082_vm14 = vcmask 238784  }
 0x79e   : > { %3517 = vrot.lane.b32.xlu1 %v12850_v3, %s10647_s2  ;;  %v3075_v3 = vld [vmem:[%s14915_s3 + $0x88] sm:$0xff] }
 0x79f   : > { %3481 = vmatpush2.msra.mxu0 %v3075_v3  ;;  %3778 = vmatpush2.msra.mxu1 %v3075_v3 }
 0x7a0   : > { %3364 = vrot.lane.b32.xlu0 %v13110_v60, %s10667_s17  ;;  %3482 = vmatprep.subr.mxu0 %v10666_v58 }
 0x7a1   : > { %3483 = vmatpush2.msra.mxu0 %v3074_v27  ;;  %3779 = vmatprep.subr.mxu1 %v10666_v58 }
 0x7a2   : > { %3377 = vrot.lane.b32.xlu1 %v13120_v21, %s10668_s19  ;;  %9913 = vmatprep.subr.mxu0 %v10666_v58 }
 0x7a3   : > { %3780 = vmatpush2.msra.mxu1 %v3074_v27 }
 0x7a4   : > { %3547 = vrot.lane.b32.xlu0 %v12901_v2, %s10651_s25  ;;  %9920 = vmatprep.subr.mxu1 %v10666_v58 }
 0x7a6   : > { %3555 = vrot.lane.b32.xlu1 %v12913_v12, %s10652_s26 }
 0x7a8   : > { %3525 = vrot.lane.b32.xlu0 %v12861_v28, %s10648_s14  ;;  %s15627_s14 = smov 78  }
 0x7aa   : > { %3533 = vrot.lane.b32.xlu1 %v12875_v38, %s10645_s0  ;;  %s15626_s0 = smov 72  }
 0x7ac   : > { %v3143_v41 = vpop.permute.xlu1 %3142  ;;  %3390 = vrot.lane.b32.xlu0 %v13158_v40, %s10669_s23 }
 0x7ae   : > { %v3091_v28 = vpop.permute.xlu0 %3090  ;;  %3541 = vrot.lane.b32.xlu1 %v12881_v20, %s10650_s24  ;;  %s15628_s24 = smov 84  }
 0x7af   : > { %3097 = vst.msk [vmem:[#allocation4 + $0x10] sm:$0x3] %vm15120_vm12, %v3091_v28 }
 0x7b0   : > { %v3117_v38 = vpop.permute.xlu1 %3116  ;;  %3563 = vrot.lane.b32.xlu0 %v12925_v34, %s10653_s27 }
 0x7b2   : > { %3366 = vrot.lane.b32.xlu1 %v13089_v45, %s10667_s17  ;;  %v3089_v7 = vpop.permute.xlu0 %3088 }
 0x7b3   : > { %3095 = vst.msk [vmem:[#allocation4] sm:$0xff] %vm15119_vm11, %v3089_v7 }
 0x7b4   : > { %v3131_v20 = vpop.permute.xlu1 %3130  ;;  %3571 = vrot.lane.b32.xlu0 %v12930_v6, %s10654_s28 }
 0x7b6   : > { %3579 = vrot.lane.b32.xlu1 %v12947_v53, %s10655_s29  ;;  %v3103_v48 = vpop.permute.xlu0 %3102 }
 0x7b7   : > { %3109 = vst.msk [vmem:[#allocation4] sm:$0xff] %vm15117_vm13, %v3103_v48 }
 0x7b8   : > { %3123 = vst.msk [vmem:[#allocation4] sm:$0xff] %vm15112_vm4, %v3117_v38  ;;  %v3156_v2 = vpop.permute.xlu1 %3155  ;;  %3549 = vrot.lane.b32.xlu0 %v12893_v56, %s10651_s25  ;;  %s15629_s25 = smov 90  }
 0x7b9   : > { %3137 = vst.msk [vmem:[#allocation4] sm:$0xff] %vm15114_vm10, %v3131_v20 }
 0x7ba   : > { %3149 = vst.msk [vmem:[#allocation4] sm:$0xff] %vm15113_vm0, %v3143_v41  ;;  %3557 = vrot.lane.b32.xlu1 %v12905_v57, %s10652_s26  ;;  %v3105_v46 = vpop.permute.xlu0 %3104  ;;  %s15630_s26 = smov 96  }
 0x7bb   : > { %3162 = vst.msk [vmem:[#allocation4] sm:$0xff] %vm15115_vm2, %v3156_v2 }
 0x7bc   : > { %3111 = vst.msk [vmem:[#allocation4 + $0x10] sm:$0x3] %vm15116_vm5, %v3105_v46  ;;  %v3169_v56 = vpop.permute.xlu1 %3168  ;;  %3379 = vrot.lane.b32.xlu0 %v13099_v24, %s10668_s19 }
 0x7bd   : > { %3175 = vst.msk [vmem:[#allocation4] sm:$0xff] %vm15092_vm6, %v3169_v56  ;;  %vm15095_vm6 = vcmask 533984  }
 0x7be   : > { %3392 = vrot.lane.b32.xlu1 %v13145_v33, %s10669_s23  ;;  %v3119_v57 = vpop.permute.xlu0 %3118 }
 0x7bf   : > { %3125 = vst.msk [vmem:[#allocation4 + $0x10] sm:$0x3] %vm15118_vm7, %v3119_v57 }
 0x7c0   : > { %v3182_v12 = vpop.permute.xlu1 %3181  ;;  %3587 = vrot.lane.b32.xlu0 %v12959_v36, %s15626_s0  ;;  %v13231_v36 = vld [vmem:[%s12807_s18 + $0x58] sm:$0x3f] }
 0x7c1   : > { %3188 = vst.msk [vmem:[#allocation4] sm:$0xff] %vm15085_vm8, %v3182_v12  ;;  %vm15088_vm8 = vcmask 638528   ;;  %v3686_v51 = vrot.slane %v13231_v36, 3  ;;  %v3697_v11 = vrot.slane %v13231_v36, 4 }
 0x7c2   : > { %v3133_v44 = vpop.permute.xlu0 %3132  ;;  %3595 = vrot.lane.b32.xlu1 %v12971_v50, %s15627_s14  ;;  %v3662_v50 = vrot.slane %v13231_v36, 1 }
 0x7c3   : > { %3139 = vst.msk [vmem:[#allocation4 + $0x10] sm:$0x3] %vm15082_vm14, %v3133_v44  ;;  %vm15090_vm14 = vcmask 337184  }
 0x7c4   : > { %v3195_v34 = vpop.permute.xlu1 %3194  ;;  %3565 = vrot.lane.b32.xlu0 %v12917_v49, %s10653_s27 }
 0x7c5   : > { %3201 = vst.msk [vmem:[#allocation4] sm:$0xff] %vm15083_vm1, %v3195_v34  ;;  %vm15087_vm1 = vcmask 589328  }
 0x7c6   : > { %v3145_v6 = vpop.permute.xlu0 %3144  ;;  %3603 = vrot.lane.b32.xlu1 %v12983_v43, %s15628_s24 }
 0x7c7   : > { %3151 = vst.msk [vmem:[#allocation4 + $0x10] sm:$0x3] %vm15084_vm3, %v3145_v6  ;;  %vm15089_vm3 = vcmask 386384  }
 0x7c8   : > { %v3207_v61 = vpop.permute.xlu1 %3206  ;;  %3573 = vrot.lane.b32.xlu0 %v12933_v14, %s10654_s28  ;;  %v13228_v14 = vld [vmem:[%s12807_s18 + $0x50] sm:$0xff]  ;;  %s9349_s28 = sshll.u32 %s10590_s15, 3  ;;  %s3027_s15 = sadd.s32 1, %s10590_s15  }
 0x7c9   : > { %3213 = vst.msk [vmem:[#allocation4] sm:$0xff] %vm15086_vm15, %v3207_v61  ;;  %vm15091_vm15 = vcmask 435584   ;;  %v3674_v43 = vrot.slane %v13228_v14, 2  ;;  %v3696_v0 = vrot.slane %v13228_v14, 4  ;;  %p3024_p2 = scmp.ge.s32.totalorder %s3027_s15, 5  }
 0x7ca   : > { %v3158_v49 = vpop.permute.xlu0 %3157  ;;  %3611 = vrot.lane.b32.xlu1 %v12988_v59, %s15629_s25  ;;  %v3675_v59 = vrot.slane %v13231_v36, 2 }
 0x7cb   : > { %3164 = vst.msk [vmem:[#allocation4 + $0x10] sm:$0x3] %vm15090_vm14, %v3158_v49  ;;  %vm15096_vm14 = vcmask 736928  }
 0x7cc   : > { %v3220_v53 = vpop.permute.xlu1 %3219  ;;  %3581 = vrot.lane.b32.xlu0 %v12939_v54, %s10655_s29  ;;  %v3661_v54 = vrot.slane %v13228_v14, 1  ;;  %s3949_s29 = scalar_lea.vmem [#allocation3], %s9349_s28 }
 0x7cd   : > { %3226 = vst.msk [vmem:[#allocation4] sm:$0xff] %vm15087_vm1, %v3220_v53  ;;  %vm15093_vm1 = vcmask 687728  }
 0x7ce   : > { %v3171_v19 = vpop.permute.xlu0 %3170  ;;  %3619 = vrot.lane.b32.xlu1 %v13005_v17, %s15630_s26 }
 0x7cf   : > { %3177 = vst.msk [vmem:[#allocation4 + $0x10] sm:$0x3] %vm15089_vm3, %v3171_v19  ;;  %vm15631_vm3 = vcmask 1046528  }
 0x7d0   : > { %v3233_v4 = vpop.permute.xlu1 %3232  ;;  %3589 = vrot.lane.b32.xlu0 %v12951_v35, %s15626_s0  ;;  %v3663_v35 = vsel %vm15631_vm3, %v3661_v54, %v3662_v50  ;;  %vm15097_vm3 = vcmask 583184  }
 0x7d1   : > { %3239 = vst.msk [vmem:[#allocation4] sm:$0xff] %vm15088_vm8, %v3233_v4  ;;  %vm15098_vm8 = vcmask 484784  }
 0x7d2   : > { %v3184_v26 = vpop.permute.xlu0 %3183  ;;  %3627 = vrot.lane.b32.xlu1 %v13110_v60, %s10661_s30 }
 0x7d3   : > { %3190 = vst.msk [vmem:[#allocation4 + $0x10] sm:$0x3] %vm15091_vm15, %v3184_v26  ;;  %vm15632_vm15 = vcmask 1045504  }
 0x7d4   : > { %v3246_v63 = vpop.permute.xlu1 %3245  ;;  %3597 = vrot.lane.b32.xlu0 %v12963_v13, %s15627_s14  ;;  %v3676_v37 = vsel %vm15632_vm15, %v3674_v43, %v3675_v59  ;;  %vm15099_vm15 = vcmask 835328  }
 0x7d5   : > { %3252 = vst.msk [vmem:[#allocation4] sm:$0xff] %vm15093_vm1, %v3246_v63  ;;  %vm15094_vm1 = vcmask 786128  }
 0x7d6   : > { %v3197_v17 = vpop.permute.xlu0 %3196  ;;  %3605 = vrot.lane.b32.xlu1 %v12975_v8, %s15628_s24  ;;  %v3685_v8 = vrot.slane %v13228_v14, 3 }
 0x7d7   : > { %3203 = vst.msk [vmem:[#allocation4 + $0x10] sm:$0x3] %vm15098_vm8, %v3197_v17  ;;  %vm15101_vm8 = vcmask 681584  }
 0x7d8   : > { %v3259_v22 = vpop.permute.xlu1 %3258  ;;  %3664 = vrot.lane.b32.xlu0 %v3663_v35, %s10665_s12 }
 0x7d9   : > { %3265 = vst.msk [vmem:[#allocation4] sm:$0xff] %vm15096_vm14, %v3259_v22  ;;  %vm15100_vm14 = vcmask 884528  }
 0x7da   : > { %v3209_v13 = vpop.permute.xlu0 %3208  ;;  %3677 = vrot.lane.b32.xlu1 %v3676_v37, %s10667_s17 }
 0x7db   : > { %3215 = vst.msk [vmem:[#allocation4 + $0x10] sm:$0x3] %vm15095_vm6, %v3209_v13  ;;  %vm15633_vm6 = vcmask 1044480  }
 0x7dc   : > { %v3271_v62 = vpop.permute.xlu1 %3270  ;;  %3635 = vrot.lane.b32.xlu0 %v13120_v21, %s10662_s13  ;;  %v3687_v55 = vsel %vm15633_vm6, %v3685_v8, %v3686_v51  ;;  %vm15103_vm6 = vcmask 730784  }
 0x7dd   : > { %3277 = vst.msk [vmem:[#allocation4] sm:$0xff] %vm15094_vm1, %v3271_v62  ;;  %vm15104_vm1 = vcmask 632384  }
 0x7de   : > { %v3222_v39 = vpop.permute.xlu0 %3221  ;;  %3643 = vrot.lane.b32.xlu1 %v13158_v40, %s10663_s22 }
 0x7df   : > { %3228 = vst.msk [vmem:[#allocation4 + $0x10] sm:$0x3] %vm15097_vm3, %v3222_v39  ;;  %vm15634_vm3 = vcmask 1043456  }
 0x7e0   : > { %v3284_v47 = vpop.permute.xlu1 %3283  ;;  %3613 = vrot.lane.b32.xlu0 %v12991_v42, %s15629_s25  ;;  %v3698_v18 = vsel %vm15634_vm3, %v3696_v0, %v3697_v11  ;;  %vm15105_vm3 = vcmask 982928  }
 0x7e1   : > { %3290 = vst.msk [vmem:[#allocation4] sm:$0xff] %vm15099_vm15, %v3284_v47  ;;  %vm15102_vm15 = vcmask 933728  }
 0x7e2   : > { %v3235_v5 = vpop.permute.xlu0 %3234  ;;  %3621 = vrot.lane.b32.xlu1 %v12997_v16, %s15630_s26 }
 0x7e3   : > { %3241 = vst.msk [vmem:[#allocation4 + $0x10] sm:$0x3] %vm15104_vm1, %v3235_v5  ;;  %vm15110_vm1 = vcmask 31744  }
 0x7e4   : > { %v3297_v52 = vpop.permute.xlu1 %3296  ;;  %3688 = vrot.lane.b32.xlu0 %v3687_v55, %s10668_s19 }
 0x7e5   : > { %3303 = vst.msk [vmem:[#allocation4] sm:$0xff] %vm15100_vm14, %v3297_v52  ;;  %vm15108_vm14 = vcmask 779984  }
 0x7e6   : > { %v3248_v42 = vpop.permute.xlu0 %3247  ;;  %3699 = vrot.lane.b32.xlu1 %v3698_v18, %s10669_s23 }
 0x7e7   : > { %3254 = vst.msk [vmem:[#allocation4 + $0x10] sm:$0x3] %vm15101_vm8, %v3248_v42  ;;  %vm15106_vm8 = vcmask 1032128  }
 0x7e8   : > { %v3310_v10 = vpop.permute.xlu1 %3309  ;;  %3653 = vrot.lane.b32.xlu0 %v13228_v14, %s10664_s21 }
 0x7e9   : > { %3316 = vst.msk [vmem:[#allocation4] sm:$0xff] %vm15102_vm15, %v3310_v10  ;;  %vm15107_vm15 = vcmask 829184  }
 0x7ea   : > { %v3261_v16 = vpop.permute.xlu0 %3260  ;;  %3666 = vrot.lane.b32.xlu1 %v3662_v50, %s10665_s12  ;;  %s13391_s12 = smov (%p3024_p2), 0  }
 0x7eb   : > { %3267 = vst.msk [vmem:[#allocation4 + $0x10] sm:$0x3] %vm15103_vm6, %v3261_v16  ;;  %vm15109_vm6 = vcmask 1048560  }
 0x7ec   : > { %v3323_v1 = vpop.permute.xlu1 %3322  ;;  %3629 = vrot.lane.b32.xlu0 %v13089_v45, %s10661_s30 }
 0x7ed   : > { %3329 = vst.msk [vmem:[#allocation4] sm:$0xff] %vm15105_vm3, %v3323_v1  ;;  %vm15111_vm3 = vcmask 878384  }
 0x7ee   : > { %v3273_v9 = vpop.permute.xlu0 %3272  ;;  %3679 = vrot.lane.b32.xlu1 %v3675_v59, %s10667_s17 }
 0x7ef   : > { %3279 = vst.msk [vmem:[#allocation4 + $0x10] sm:$0x3] %vm15108_vm14, %v3273_v9  ;;  %vm3359_vm14 = vcmask 25600  }
 0x7f0   : > { %v3335_v31 = vpop.permute.xlu1 %3334  ;;  %3637 = vrot.lane.b32.xlu0 %v13099_v24, %s10662_s13 }
 0x7f1   : > { %3341 = vst.msk [vmem:[#allocation4] sm:$0xff] %vm15106_vm8, %v3335_v31  ;;  %vm3317_vm8 = vcmask 927584  }
 0x7f2   : > { %v3286_v60 = vpop.permute.xlu0 %3285  ;;  %3690 = vrot.lane.b32.xlu1 %v3686_v51, %s10668_s19 }
 0x7f3   : > { %3292 = vst.msk [vmem:[#allocation4 + $0x10] sm:$0x3] %vm15107_vm15, %v3286_v60  ;;  %vm15138_vm15 = vcmask 976784  }
 0x7f4   : > { %v3348_v45 = vpop.permute.xlu1 %3347  ;;  %3645 = vrot.lane.b32.xlu0 %v13145_v33, %s10663_s22 }
 0x7f5   : > { %3354 = vst.msk [vmem:[#allocation4] sm:$0xff] %vm15109_vm6, %v3348_v45  ;;  %vm15123_vm6 = vcmask 1025984  }
 0x7f6   : > { %3356 = vst.msk [vmem:[#allocation4 + $0x8] sm:$0xff] %vm15110_vm1, %v3348_v45  ;;  %v3299_v24 = vpop.permute.xlu0 %3298  ;;  %3701 = vrot.lane.b32.xlu1 %v3697_v11, %s10669_s23  ;;  %vm15122_vm1 = vcmask 1042416  }
 0x7f7   : > { %3305 = vst.msk [vmem:[#allocation4 + $0x10] sm:$0x3] %vm15111_vm3, %v3299_v24  ;;  %vm15635_vm3 = vcmask 48128  }
 0x7f8   : > { %v3325_v15 = vpop.permute.xlu1 %3324  ;;  %3655 = vrot.lane.b32.xlu0 %v13231_v36, %s10664_s21 }
 0x7fa   : > { %v3312_v21 = vpop.permute.xlu0 %3311 }
 0x7fb   : > { %3318 = vst.msk [vmem:[#allocation4 + $0x10] sm:$0x3] %vm3317_vm8, %v3312_v21 }
 0x7fc   : > { %v3350_v25 = vpop.permute.xlu1 %3349  ;;  %3331 = vst.msk [vmem:[#allocation4 + $0x10] sm:$0x3] %vm15138_vm15, %v3325_v15  ;;  %v3400_v29 = vld [vmem:[#allocation4] sm:$0xff] }
 0x7fd   : > { %3360 = vst.msk [vmem:[#allocation4 + $0x18] sm:$0x3] %vm3359_vm14, %v3350_v25 }
 0x7fe   : > { %3497 = vst.msk [vmem:[#allocation4] sm:$0xff] %vm15635_vm3, %v12810_v30  ;;  %v3337_v3 = vpop.permute.xlu0 %3336  ;;  %vm3370_vm3 = vcmask 80928  }
 0x7ff   : > { %3343 = vst.msk [vmem:[#allocation4 + $0x10] sm:$0x3] %vm15123_vm6, %v3337_v3  ;;  %vm15651_vm6 = vcmask 786128  }
 0x800   : > { %3358 = vst.msk [vmem:[#allocation4 + $0x10] sm:$0x3] %vm15122_vm1, %v3350_v25  ;;  %v3508_v32 = vpop.permute.xlu1 %3507  ;;  %vm15647_vm1 = vcmask 687728  }
 0x802   : > { %v3500_v33 = vpop.permute.xlu0 %3499 }
 0x803   : > { %3505 = vst.msk [vmem:[#allocation4] sm:$0xff] %vm15119_vm11, %v3500_v33  ;;  %vm3372_vm11 = vcmask 74784  }
 0x804   : > { %3513 = vst.msk [vmem:[#allocation4] sm:$0xff] %vm15117_vm13, %v3508_v32  ;;  %v3524_v27 = vpop.permute.xlu1 %3523  ;;  %vm15639_vm13 = vcmask 287984  }
 0x806   : > { %v3516_v40 = vpop.permute.xlu0 %3515 }
 0x807   : > { %v13310_v41 = vld [vmem:[#allocation4 + $0x10] sm:$0x3]  ;;  %3521 = vst.msk [vmem:[#allocation4] sm:$0xff] %vm15112_vm4, %v3516_v40  ;;  %vm3383_vm4 = vcmask 130128  }
 0x808   : > { %3498 = vst.msk [vmem:[#allocation4 + $0x10] sm:$0x3] %vm15121_vm9, %v12821_v23  ;;  %v3532_v30 = vpop.permute.xlu1 %3531  ;;  %vm15124_vm9 = vcmask 173184  }
 0x809   : > { %3529 = vst.msk [vmem:[#allocation4] sm:$0xff] %vm15114_vm10, %v3524_v27  ;;  %vm15637_vm10 = vcmask 441728  }
 0x80a   : > { %3537 = vst.msk [vmem:[#allocation4] sm:$0xff] %vm15113_vm0, %v3532_v30  ;;  %v3502_v28 = vpop.permute.xlu0 %3501  ;;  %vm15636_vm0 = vcmask 392528  }
 0x80b   : > { %3506 = vst.msk [vmem:[#allocation4 + $0x10] sm:$0x3] %vm15120_vm12, %v3502_v28  ;;  %vm15641_vm12 = vcmask 490928  }
 0x80c   : > { %v3540_v38 = vpop.permute.xlu1 %3539 }
 0x80d   : > { %3545 = vst.msk [vmem:[#allocation4] sm:$0xff] %vm15115_vm2, %v3540_v38  ;;  %vm15638_vm2 = vcmask 238784  }
 0x80e   : > { %v3510_v7 = vpop.permute.xlu0 %3509 }
 0x80f   : > { %3514 = vst.msk [vmem:[#allocation4 + $0x10] sm:$0x3] %vm15116_vm5, %v3510_v7  ;;  %vm3396_vm5 = vcmask 179328  }
 0x810   : > { %v3518_v20 = vpop.permute.xlu1 %3517 }
 0x811   : > { %3522 = vst.msk [vmem:[#allocation4 + $0x10] sm:$0x3] %vm15118_vm7, %v3518_v20  ;;  %vm15640_vm7 = vcmask 337184  }
 0x812   : > { %v3365_v48 = vpop.permute.xlu0 %3364 }
 0x813   : > { %3371 = vst.msk [vmem:[#allocation4 + $0x8] sm:$0xff] %vm3370_vm3, %v3365_v48 }
 0x814   : > { %v3378_v23 = vpop.permute.xlu1 %3377 }
 0x815   : > { %3384 = vst.msk [vmem:[#allocation4 + $0x8] sm:$0xff] %vm3383_vm4, %v3378_v23 }
 0x816   : > { %v3548_v2 = vpop.permute.xlu0 %3547 }
 0x817   : > { %3553 = vst.msk [vmem:[#allocation4] sm:$0xff] %vm15636_vm0, %v3548_v2  ;;  %vm3410_vm0 = vcmask 179200  }
 0x818   : > { %v3556_v46 = vpop.permute.xlu1 %3555 }
 0x819   : > { %3561 = vst.msk [vmem:[#allocation4] sm:$0xff] %vm15637_vm10, %v3556_v46  ;;  %vm15642_vm10 = vcmask 540128  }
 0x81a   : > { %v3526_v56 = vpop.permute.xlu0 %3525 }
 0x81b   : > { %3530 = vst.msk [vmem:[#allocation4 + $0x10] sm:$0x3] %vm15638_vm2, %v3526_v56  ;;  %vm15644_vm2 = vcmask 386384  }
 0x81c   : > { %v3534_v57 = vpop.permute.xlu1 %3533 }
 0x81d   : > { %3538 = vst.msk [vmem:[#allocation4 + $0x10] sm:$0x3] %vm15639_vm13, %v3534_v57  ;;  %vm15643_vm13 = vcmask 589328  }
 0x81e   : > { %v3391_v12 = vpop.permute.xlu0 %3390 }
 0x81f   : > { %3397 = vst.msk [vmem:[#allocation4 + $0x8] sm:$0xff] %vm3396_vm5, %v3391_v12 }
 0x820   : > { %v3542_v44 = vpop.permute.xlu1 %3541 }
 0x821   : > { %3546 = vst.msk [vmem:[#allocation4 + $0x10] sm:$0x3] %vm15640_vm7, %v3542_v44  ;;  %vm3385_vm7 = vcmask 123984   ;;  %v15669_v44 = vld [vmem:[#allocation8_spill] sm:$0xff] }
 0x822   : > { %v3564_v34 = vpop.permute.xlu0 %3563 }
 0x823   : > { %3569 = vst.msk [vmem:[#allocation4] sm:$0xff] %vm15641_vm12, %v3564_v34  ;;  %vm15645_vm12 = vcmask 435584   ;;  %v15670_v34 = vld [vmem:[#allocation10_spill] sm:$0xff] }
 0x824   : > { %v3367_v6 = vpop.permute.xlu1 %3366 }
 0x825   : > { %3373 = vst.msk [vmem:[#allocation4 + $0x18] sm:$0x3] %vm3372_vm11, %v3367_v6 }
 0x826   : > { %v3572_v61 = vpop.permute.xlu0 %3571  ;;  %v3401_v49 = vld [vmem:[#allocation4 + $0x8] sm:$0xff] }
 0x827   : > { %3577 = vst.msk [vmem:[#allocation4] sm:$0xff] %vm15642_vm10, %v3572_v61  ;;  %9340 = vmatprep.mubr.msk.f32.mxu0 %vm3410_vm0, %v3401_v49  ;;  %vm15646_vm10 = vcmask 638528  }
 0x828   : > { %v3580_v53 = vpop.permute.xlu1 %3579  ;;  %3485 = vmatmul.mubr.f32.vlgmr.msra.gmra.mxu0 %v3400_v29 }
 0x829   : > { %3585 = vst.msk [vmem:[#allocation4] sm:$0xff] %vm15643_vm13, %v3580_v53  ;;  %vm15648_vm13 = vcmask 484784  }
 0x82a   : > { %v3550_v19 = vpop.permute.xlu0 %3549 }
 0x82b   : > { %3554 = vst.msk [vmem:[#allocation4 + $0x10] sm:$0x3] %vm15644_vm2, %v3550_v19  ;;  %vm15649_vm2 = vcmask 736928  }
 0x82c   : > { %v3558_v14 = vpop.permute.xlu1 %3557 }
 0x82d   : > { %3562 = vst.msk [vmem:[#allocation4 + $0x10] sm:$0x3] %vm15645_vm12, %v3558_v14  ;;  %vm15650_vm12 = vcmask 533984  }
 0x82e   : > { %v3380_v36 = vpop.permute.xlu0 %3379 }
 0x82f   : > { %3386 = vst.msk [vmem:[#allocation4 + $0x18] sm:$0x3] %vm3385_vm7, %v3380_v36 }
 0x830   : > { %v3393_v4 = vpop.permute.xlu1 %3392 }
 0x831   : > { %3399 = vst.msk [vmem:[#allocation4 + $0x18] sm:$0x3] %vm15124_vm9, %v3393_v4  ;;  %vm15655_vm9 = vcmask 884528  }
 0x832   : > { %v3588_v54 = vpop.permute.xlu0 %3587 }
 0x833   : > { %3593 = vst.msk [vmem:[#allocation4] sm:$0xff] %vm15646_vm10, %v3588_v54  ;;  %vm15652_vm10 = vcmask 583184  }
 0x834   : > { %v3596_v50 = vpop.permute.xlu1 %3595 }
 0x835   : > { %3601 = vst.msk [vmem:[#allocation4] sm:$0xff] %vm15647_vm1, %v3596_v50  ;;  %vm15653_vm1 = vcmask 835328  }
 0x836   : > { %v3566_v26 = vpop.permute.xlu0 %3565 }
 0x837   : > { %3570 = vst.msk [vmem:[#allocation4 + $0x10] sm:$0x3] %vm15648_vm13, %v3566_v26  ;;  %vm15654_vm13 = vcmask 632384  }
 0x838   : > { %v3403_v43 = vld [vmem:[#allocation4 + $0x18] sm:$0x3]  ;;  %v3604_v59 = vpop.permute.xlu1 %3603 }
 0x839   : > { %9341 = vmatprep.mubr.msk.f32.mxu0 %vm3410_vm0, %v3403_v43  ;;  %3609 = vst.msk [vmem:[#allocation4] sm:$0xff] %vm15649_vm2, %v3604_v59  ;;  %vm15656_vm2 = vcmask 681584  }
 0x83a   : > { %v3574_v63 = vpop.permute.xlu0 %3573  ;;  %3490 = vmatmul.mubr.f32.gmra.mxu0 %v13310_v41  ;;  %v9338_v41 = vld [vmem:[%s14916_s4] ss:$0 sm:$0xff] }
 0x83b   : > { %3578 = vst.msk [vmem:[#allocation4 + $0x10] sm:$0x3] %vm15650_vm12, %v3574_v63  ;;  %vm15657_vm12 = vcmask 730784  }
 0x83c   : > { %v3612_v35 = vpop.permute.xlu1 %3611 }
 0x83d   : > { %3617 = vst.msk [vmem:[#allocation4] sm:$0xff] %vm15651_vm6, %v3612_v35  ;;  %vm15658_vm6 = vcmask 31744  }
 0x83e   : > { %v3582_v17 = vpop.permute.xlu0 %3581 }
 0x83f   : > { %3586 = vst.msk [vmem:[#allocation4 + $0x10] sm:$0x3] %vm15652_vm10, %v3582_v17  ;;  %vm15659_vm10 = vcmask 933728  }
 0x840   : > { %v3620_v37 = vpop.permute.xlu1 %3619 }
 0x841   : > { %3625 = vst.msk [vmem:[#allocation4] sm:$0xff] %vm15653_vm1, %v3620_v37  ;;  %vm15660_vm1 = vcmask 982928  }
 0x842   : > { %v3590_v22 = vpop.permute.xlu0 %3589 }
 0x843   : > { %3594 = vst.msk [vmem:[#allocation4 + $0x10] sm:$0x3] %vm15654_vm13, %v3590_v22  ;;  %vm15662_vm13 = vcmask 829184  }
 0x844   : > { %v3628_v13 = vpop.permute.xlu1 %3627 }
 0x845   : > { %3633 = vst.msk [vmem:[#allocation4] sm:$0xff] %vm15655_vm9, %v3628_v13  ;;  %vm15661_vm9 = vcmask 779984  }
 0x846   : > { %v3598_v62 = vpop.permute.xlu0 %3597 }
 0x847   : > { %3602 = vst.msk [vmem:[#allocation4 + $0x10] sm:$0x3] %vm15656_vm2, %v3598_v62  ;;  %vm15663_vm2 = vcmask 1032128  }
 0x848   : > { %v3606_v8 = vpop.permute.xlu1 %3605 }
 0x849   : > { %3610 = vst.msk [vmem:[#allocation4 + $0x10] sm:$0x3] %vm15657_vm12, %v3606_v8  ;;  %vm15664_vm12 = vcmask 1048560  }
 0x84a   : > { %v3665_v51 = vpop.permute.xlu0 %3664 }
 0x84b   : > { %3671 = vst.msk [vmem:[#allocation4 + $0x8] sm:$0xff] %vm15658_vm6, %v3665_v51  ;;  %vm15665_vm6 = vcmask 878384  }
 0x84c   : > { %v3678_v39 = vpop.permute.xlu1 %3677 }
 0x84d   : > { %3683 = vst.msk [vmem:[#allocation4 + $0x8] sm:$0xff] %vm3370_vm3, %v3678_v39 }
 0x84e   : > { %v3636_v0 = vpop.permute.xlu0 %3635 }
 0x84f   : > { %3641 = vst.msk [vmem:[#allocation4] sm:$0xff] %vm15659_vm10, %v3636_v0  ;;  %vm15666_vm10 = vcmask 173184  }
 0x850   : > { %v3644_v11 = vpop.permute.xlu1 %3643 }
 0x851   : > { %3649 = vst.msk [vmem:[#allocation4] sm:$0xff] %vm15660_vm1, %v3644_v11  ;;  %vm15667_vm1 = vcmask 1025984  }
 0x852   : > { %v3614_v47 = vpop.permute.xlu0 %3613 }
 0x853   : > { %3618 = vst.msk [vmem:[#allocation4 + $0x10] sm:$0x3] %vm15661_vm9, %v3614_v47  ;;  %vm15668_vm9 = vcmask 1042416  }
 0x854   : > { %v3622_v55 = vpop.permute.xlu1 %3621 }
 0x855   : > { %3626 = vst.msk [vmem:[#allocation4 + $0x10] sm:$0x3] %vm15662_vm13, %v3622_v55  ;;  %vm10670_vm13 = vmmov 0  }
 0x856   : > { %v3689_v5 = vpop.permute.xlu0 %3688  ;;  %9917 = vmatprep.mubr.msk.f32.mxu0 %vm10670_vm13, %v10666_v58 }
 0x857   : > { %3694 = vst.msk [vmem:[#allocation4 + $0x8] sm:$0xff] %vm3383_vm4, %v3689_v5 }
 0x858   : > { %v3700_v18 = vpop.permute.xlu1 %3699 }
 0x859   : > { %3705 = vst.msk [vmem:[#allocation4 + $0x8] sm:$0xff] %vm3396_vm5, %v3700_v18 }
 0x85a   : > { %v3654_v52 = vpop.permute.xlu0 %3653 }
 0x85b   : > { %3659 = vst.msk [vmem:[#allocation4] sm:$0xff] %vm15663_vm2, %v3654_v52  ;;  %vm15137_vm2 = vcmask 1041408  }
 0x85c   : > { %3670 = vst.msk [vmem:[#allocation4] sm:$0xff] %vm15664_vm12, %v3665_v51  ;;  %v3667_v42 = vpop.permute.xlu1 %3666  ;;  %vm15136_vm12 = vcmask 80896  }
 0x85d   : > { %3673 = vst.msk [vmem:[#allocation4 + $0x18] sm:$0x3] %vm3359_vm14, %v3667_v42 }
 0x85e   : > { %v3630_v10 = vpop.permute.xlu0 %3629 }
 0x85f   : > { %3634 = vst.msk [vmem:[#allocation4 + $0x10] sm:$0x3] %vm15665_vm6, %v3630_v10  ;;  %vm15135_vm6 = vcmask 126976  }
 0x860   : > { %v3680_v16 = vpop.permute.xlu1 %3679  ;;  %v3708_v1 = vld [vmem:[#allocation4 + $0x8] sm:$0xff] }
 0x861   : > { %3684 = vst.msk [vmem:[#allocation4 + $0x18] sm:$0x3] %vm3372_vm11, %v3680_v16  ;;  %9343 = vmatprep.mubr.msk.f32.mxu1 %vm3410_vm0, %v3708_v1 }
 0x862   : > { %v3638_v9 = vpop.permute.xlu0 %3637 }
 0x863   : > { %3642 = vst.msk [vmem:[#allocation4 + $0x10] sm:$0x3] %vm3317_vm8, %v3638_v9  ;;  %v3707_v31 = vld [vmem:[#allocation4] sm:$0xff] }
 0x864   : > { %3782 = vmatmul.mubr.f32.vlgmr.msra.gmra.mxu1 %v3707_v31  ;;  %v3691_v60 = vpop.permute.xlu1 %3690 }
 0x865   : > { %3695 = vst.msk [vmem:[#allocation4 + $0x18] sm:$0x3] %vm3385_vm7, %v3691_v60 }
 0x866   : > { %v3646_v45 = vpop.permute.xlu0 %3645 }
 0x867   : > { %3650 = vst.msk [vmem:[#allocation4 + $0x10] sm:$0x3] %vm15138_vm15, %v3646_v45 }
 0x868   : > { %v3702_v24 = vpop.permute.xlu1 %3701 }
 0x869   : > { %3706 = vst.msk [vmem:[#allocation4 + $0x18] sm:$0x3] %vm15666_vm10, %v3702_v24 }
 0x86a   : > { %v3656_v15 = vpop.permute.xlu0 %3655 }
 0x86b   : > { %3660 = vst.msk [vmem:[#allocation4 + $0x10] sm:$0x3] %vm15667_vm1, %v3656_v15 }
 0x86c   : > { %3672 = vst.msk [vmem:[#allocation4 + $0x10] sm:$0x3] %vm15668_vm9, %v3667_v42 }
 0x870   : > { %v3710_v21 = vld [vmem:[#allocation4 + $0x18] sm:$0x3] }
 0x871   : > { %9344 = vmatprep.mubr.msk.f32.mxu1 %vm3410_vm0, %v3710_v21 }
 0x873   : > { %v3709_v25 = vld [vmem:[#allocation4 + $0x10] sm:$0x3] }
 0x874   : > { %3787 = vmatmul.mubr.f32.gmra.mxu1 %v3709_v25 }
 0x875   : > { %9924 = vmatprep.mubr.msk.f32.mxu1 %vm10670_vm13, %v10666_v58 }
 0x8e8   : > { %v3486_v29 = vpop.f32.mrf.mxu0 }
 0x8e9   : > { %v3487_v7 = vadd.f32 %v9338_v41, %v3486_v29 }
 0x8ea   : > { %v3488_v3 = vpop.f32.mrf.mxu0 }
 0x8eb   : > { %v3495_v56 = vmax.f32 %v3487_v7, 0.0 }
 0x8fa   : > { %v3491_v32 = vpop.f32.mrf.mxu0 }
 0x8fb   : > { %v3492_v30 = vadd.f32 %v9338_v41, %v3491_v32 }
 0x8fc   : > { %v3493_v33 = vpop.f32.mrf.mxu0 }
 0x8fd   : > { %v3496_v23 = vmax.f32 %v3492_v30, 0.0 }
 0x924   : > { %v3783_v27 = vpop.f32.mrf.mxu1 }
 0x925   : > { %v3784_v28 = vadd.f32 %v9338_v41, %v3783_v27 }
 0x926   : > { %v3785_v40 = vpop.f32.mrf.mxu1 }
 0x927   : > { %v3792_v2 = vmax.f32 %v3784_v28, 0.0 }
 0x929   : > { %v3794_v12 = vmax.f32 %v3495_v56, %v3792_v2 }
 0x934   : > { %v3788_v38 = vpop.f32.mrf.mxu1 }
 0x935   : > { %v3789_v20 = vadd.f32 %v9338_v41, %v3788_v38 }
 0x936   : > { %v3790_v48 = vpop.f32.mrf.mxu1 }
 0x937   : > { %v3793_v46 = vmax.f32 %v3789_v20, 0.0 }
 0x939   : > { %v3795_v57 = vmax.f32 %v3496_v23, %v3793_v46 }
 0x93b   : > { %9914 = vmatpush3.msk.msra.mxu0 %vm15137_vm2, %v3795_v57  ;;  %9921 = vmatpush3.msk.msra.mxu1 %vm15137_vm2, %v3795_v57 }
 0x93c   : > { %9915 = vmatprep.subr.mxu0 %v10666_v58  ;;  %9922 = vmatprep.subr.mxu1 %v10666_v58 }
 0x93d   : > { %9916 = vmatpush3.msra.mxu0 %v3794_v12  ;;  %9923 = vmatpush3.msra.mxu1 %v3794_v12 }
 0x93e   : > { %9918 = vmatmul.mubr.msk.f32.vlgmr.msra.gmra.mxu0 %vm15136_vm12, %v15669_v44  ;;  %9925 = vmatmul.mubr.msk.f32.vlgmr.msra.gmra.mxu1 %vm15136_vm12, %v15670_v34 }
 0x9fd   :  { %3026 = sbr.rel (!%p3024_p2) target bundleno = 1843 (0x733), region = 151 }
 0x9fe   : > { %v3870_v6 = vpop.f32.mrf.mxu0  ;;  %v3943_v61 = vpop.f32.mrf.mxu1 }
 0x9ff   : > { %v3947_v49 = vmax.f32 %v3870_v6, %v3943_v61 }
 0xa00   : > { %v9919_v53 = vpop.f32.mrf.mxu0  ;;  %v9926_v19 = vpop.f32.mrf.mxu1 }
 0xa01   : > { %3951 = vst.msk [vmem:[%s3949_s29] sm:$0x1f] %vm15135_vm6, %v3947_v49 }
 0xa02 LB: > { %s9461_s30 = sshll.u32 %s10594_s12, 5  ;;  %s10671_s15 = smov 30   ;;  %vm15671_vm10 = vcmask 41984   ;;  %vm15672_vm1 = vcmask 48128   ;;  %vm15673_vm9 = vcmask 1044480   ;;  %vm15674_vm13 = vcmask 1046528   ;;  %s10594_s12 = sphi %s13391_s12, %s3957_s12  }
 0xa03   : > { %s13397_s13 = scalar_lea.vmem [#allocation2], %s9461_s30  ;;  %s10672_s22 = smov 6   ;;  %v10692_v49 = vmov 0.0   ;;  %v4004_v53 = vld [vmem:[%s14915_s3 + $0x78] sm:$0xff]  ;;  %v4003_v19 = vld [vmem:[%s14915_s3 + $0x70] sm:$0xff]  ;;  %vm15688_vm6 = vcmask 294128  }
 0xa04   : > { %v13400_v58 = vld [vmem:[%s13397_s13 + $0xf0] sm:$0xff]  ;;  %v9353_v14 = vld [vmem:[%s13397_s13 + $0xe8] sm:$0x3f]  ;;  %v9352_v36 = vld [vmem:[%s13397_s13 + $0xe0] sm:$0xff]  ;;  %s10673_s21 = smov 18   ;;  %s10674_s17 = smov 24   ;;  %4351 = vmatprep.subr.mxu0 %v10692_v49  ;;  %4648 = vmatprep.subr.mxu1 %v10692_v49 }
 0xa05   : > { %4073 = vrot.lane.b32.xlu1 %v13400_v58, %s10671_s15  ;;  %v4017_v4 = vrot.slane %v9353_v14, 1  ;;  %4012 = vst.msk [vmem:[#allocation4 + $0x10] sm:$0x3] %vm15671_vm10, %v9353_v14  ;;  %v4044_v54 = vrot.slane %v9352_v36, 3  ;;  %v4045_v50 = vrot.slane %v9353_v14, 3  ;;  %v4016_v26 = vrot.slane %v9352_v36, 1  ;;  %4352 = vmatpush1.msra.mxu0 %v4004_v53 }
 0xa06   : > { %4010 = vst.msk [vmem:[#allocation4] sm:$0xff] %vm15672_vm1, %v9352_v36  ;;  %v4058_v43 = vrot.slane %v9352_v36, 4  ;;  %v4059_v59 = vrot.slane %v9353_v14, 4  ;;  %v13411_v35 = vld [vmem:[%s13397_s13 + $0xf8] sm:$0x3f]  ;;  %v4030_v37 = vrot.slane %v9352_v36, 2  ;;  %4353 = vmatprep.subr.mxu0 %v10692_v49  ;;  %4649 = vmatpush1.msra.mxu1 %v4004_v53 }
 0xa07   : > { %4021 = vrot.lane.b32.xlu0 %v4017_v4, %s10672_s22  ;;  %v4046_v63 = vsel %vm15673_vm9, %v4044_v54, %v4045_v50  ;;  %v4018_v17 = vsel %vm15674_vm13, %v4016_v26, %v4017_v4  ;;  %v4031_v22 = vrot.slane %v9353_v14, 2  ;;  %vm15675_vm10 = vcmask 1043456   ;;  %vm15677_vm9 = vmmov %vm15674_vm13  ;;  %s10675_s19 = smov 12   ;;  %s10676_s20 = smov 36   ;;  %v13462_v16 = vld [vmem:[%s13397_s13 + $0x100] sm:$0xff]  ;;  %v13520_v27 = vld [vmem:[%s13397_s13 + $0x110] sm:$0xff]  ;;  %4354 = vmatpush1.msra.mxu0 %v4003_v19 }
 0xa08   : > { %v4060_v13 = vsel %vm15675_vm10, %v4058_v43, %v4059_v59  ;;  %v4083_v62 = vrot.slane %v13400_v58, 1  ;;  %v13418_v8 = vrot.slane %v13411_v35, 1  ;;  %vm15676_vm1 = vcmask 1045504   ;;  %s10677_s2 = smov 42   ;;  %s10678_s1 = smov 48   ;;  %v13578_v12 = vld [vmem:[%s13397_s13 + $0x120] sm:$0xff]  ;;  %4355 = vmatprep.subr.mxu0 %v10692_v49  ;;  %4650 = vmatprep.subr.mxu1 %v10692_v49 }
 0xa09   : > { %4047 = vrot.lane.b32.xlu1 %v4046_v63, %s10673_s21  ;;  %v4032_v51 = vsel %vm15676_vm1, %v4030_v37, %v4031_v22  ;;  %v4096_v0 = vrot.slane %v13400_v58, 2  ;;  %v13429_v11 = vrot.slane %v13411_v35, 2  ;;  %vm15678_vm13 = vmmov %vm15676_vm1  ;;  %v4109_v55 = vrot.slane %v13400_v58, 3  ;;  %v13465_v1 = vld [vmem:[%s13397_s13 + $0x108] sm:$0x3f]  ;;  %s10679_s16 = smov 54   ;;  %4651 = vmatpush1.msra.mxu1 %v4003_v19 }
 0xa0a   : > { %v13425_v39 = vsel %vm15677_vm9, %v4083_v62, %v13418_v8  ;;  %v13440_v5 = vrot.slane %v13411_v35, 3  ;;  %vm15679_vm10 = vcmask 1044480   ;;  %v4122_v52 = vrot.slane %v13400_v58, 4  ;;  %s10680_s23 = smov 60   ;;  %s10681_s0 = smov 66   ;;  %v4002_v14 = vld [vmem:[%s14915_s3 + $0x68] sm:$0xff]  ;;  %4652 = vmatprep.subr.mxu1 %v10692_v49 }
 0xa0b   : > { %4019 = vrot.lane.b32.xlu0 %v4018_v17, %s10672_s22  ;;  %v13436_v47 = vsel %vm15678_vm13, %v4096_v0, %v13429_v11  ;;  %v13451_v42 = vrot.slane %v13411_v35, 4  ;;  %vm15680_vm1 = vcmask 1043456   ;;  %v4147_v9 = vrot.slane %v13462_v16, 1  ;;  %s15133_s14 = smov 72   ;;  %s15127_s24 = smov 78   ;;  %4356 = vmatpush1.msra.mxu0 %v4002_v14  ;;  %v4001_v36 = vld [vmem:[%s14915_s3 + $0x60] sm:$0xff] }
 0xa0c   : > { %v13447_v18 = vsel %vm15679_vm10, %v4109_v55, %v13440_v5  ;;  %v13471_v31 = vrot.slane %v13465_v1, 1  ;;  %v4160_v45 = vrot.slane %v13462_v16, 2  ;;  %v13483_v24 = vrot.slane %v13465_v1, 2  ;;  %v13523_v40 = vld [vmem:[%s13397_s13 + $0x118] sm:$0x3f]  ;;  %s15125_s25 = smov 84   ;;  %4357 = vmatprep.subr.mxu0 %v10692_v49  ;;  %4653 = vmatpush1.msra.mxu1 %v4002_v14 }
 0xa0d   : > { %4061 = vrot.lane.b32.xlu1 %v4060_v13, %s10674_s17  ;;  %v13458_v10 = vsel %vm15680_vm1, %v4122_v52, %v13451_v42  ;;  %v4173_v21 = vrot.slane %v13462_v16, 3  ;;  %v13495_v25 = vrot.slane %v13465_v1, 3  ;;  %v4186_v3 = vrot.slane %v13462_v16, 4  ;;  %s15129_s26 = smov 90   ;;  %s15131_s18 = smov 96   ;;  %4358 = vmatpush1.msra.mxu0 %v4001_v36  ;;  %v4000_v4 = vld [vmem:[%s14915_s3 + $0x58] sm:$0xff] }
 0xa0e   : > { %v13479_v60 = vsel %vm15677_vm9, %v4147_v9, %v13471_v31  ;;  %v13491_v15 = vsel %vm15678_vm13, %v4160_v45, %v13483_v24  ;;  %v13507_v32 = vrot.slane %v13465_v1, 4  ;;  %v4211_v41 = vrot.slane %v13520_v27, 1  ;;  %s10687_s27 = smov 102   ;;  %s10688_s28 = smov 108   ;;  %v13581_v44 = vld [vmem:[%s13397_s13 + $0x128] sm:$0x3f]  ;;  %4359 = vmatprep.subr.mxu0 %v10692_v49  ;;  %4654 = vmatprep.subr.mxu1 %v10692_v49 }
 0xa0f   : > { %4033 = vrot.lane.b32.xlu0 %v4032_v51, %s10675_s19  ;;  %v13503_v29 = vsel %vm15679_vm10, %v4173_v21, %v13495_v25  ;;  %v13529_v30 = vrot.slane %v13523_v40, 1  ;;  %v4224_v38 = vrot.slane %v13520_v27, 2  ;;  %v13541_v7 = vrot.slane %v13523_v40, 2  ;;  %s10689_s29 = smov 114   ;;  %s10690_s30 = smov 120   ;;  %4360 = vmatpush1.msra.mxu0 %v4000_v4  ;;  %v3999_v54 = vld [vmem:[%s14915_s3 + $0x50] sm:$0xff] }
 0xa10   : > { %v13515_v33 = vsel %vm15680_vm1, %v4186_v3, %v13507_v32  ;;  %v4237_v48 = vrot.slane %v13520_v27, 3  ;;  %v13553_v23 = vrot.slane %v13523_v40, 3  ;;  %v4250_v46 = vrot.slane %v13520_v27, 4  ;;  %4361 = vmatprep.subr.mxu0 %v10692_v49  ;;  %v3997_v26 = vld [vmem:[%s14915_s3 + $0x40] sm:$0xff]  ;;  %4655 = vmatpush1.msra.mxu1 %v4001_v36  ;;  %v3996_v43 = vld [vmem:[%s14915_s3 + $0x38] sm:$0xff]  ;;  %v3994_v63 = vld [vmem:[%s14915_s3 + $0x28] sm:$0xff] }
 0xa11   : > { %4086 = vrot.lane.b32.xlu1 %v13425_v39, %s10676_s20  ;;  %v13537_v28 = vsel %vm15677_vm9, %v4211_v41, %v13529_v30  ;;  %v13549_v20 = vsel %vm15678_vm13, %v4224_v38, %v13541_v7  ;;  %v13565_v56 = vrot.slane %v13523_v40, 4  ;;  %v4275_v34 = vrot.slane %v13578_v12, 1  ;;  %4362 = vmatpush1.msra.mxu0 %v3999_v54  ;;  %v3993_v17 = vld [vmem:[%s14915_s3 + $0x20] sm:$0xff]  ;;  %v3992_v13 = vld [vmem:[%s14915_s3 + $0x18] sm:$0xff]  ;;  %v3991_v51 = vld [vmem:[%s14915_s3 + $0x10] sm:$0xff] }
 0xa12   : > { %v13561_v2 = vsel %vm15679_vm10, %v4237_v48, %v13553_v23  ;;  %v13587_v6 = vrot.slane %v13581_v44, 1  ;;  %4363 = vmatprep.subr.mxu0 %v10692_v49  ;;  %4656 = vmatprep.subr.mxu1 %v10692_v49  ;;  %v4292_v37 = vrot.slane %v13578_v12, 2  ;;  %v4305_v62 = vrot.slane %v13578_v12, 3  ;;  %v3990_v0 = vld [vmem:[%s14915_s3 + $0x8] sm:$0xff]  ;;  %v4007_v55 = vld [vmem:[%s14915_s3 + $0x90] sm:$0x3f] }
 0xa13   : > { %4035 = vrot.lane.b32.xlu0 %v4031_v22, %s10675_s19  ;;  %v13573_v57 = vsel %vm15680_vm1, %v4250_v46, %v13565_v56  ;;  %4657 = vmatpush1.msra.mxu1 %v4000_v4  ;;  %v13679_v22 = vrot.slane %v13581_v44, 2  ;;  %vm15681_vm1 = vmmov %vm15678_vm13  ;;  %v13735_v52 = vrot.slane %v13581_v44, 4  ;;  %vm15713_vm12 = vcmask 533984  }
 0xa14   : > { %v13595_v61 = vsel %vm15677_vm9, %v4275_v34, %v13587_v6  ;;  %4658 = vmatprep.subr.mxu1 %v10692_v49  ;;  %vm15682_vm9 = vcmask 1043456   ;;  %vm15731_vm15 = vcmask 976784   ;;  %vm15738_vm2 = vcmask 41984  }
 0xa15   : > { %4099 = vrot.lane.b32.xlu1 %v13436_v47, %s10677_s2  ;;  %4659 = vmatpush1.msra.mxu1 %v3999_v54 }
 0xa16   : > { %4660 = vmatprep.subr.mxu1 %v10692_v49 }
 0xa17   : > { %4049 = vrot.lane.b32.xlu0 %v4045_v50, %s10673_s21  ;;  %v3998_v50 = vld [vmem:[%s14915_s3 + $0x48] sm:$0xff] }
 0xa18   : > { %4364 = vmatpush1.msra.mxu0 %v3998_v50  ;;  %4661 = vmatpush1.msra.mxu1 %v3998_v50 }
 0xa19   : > { %4112 = vrot.lane.b32.xlu1 %v13447_v18, %s10678_s1  ;;  %4365 = vmatprep.subr.mxu0 %v10692_v49 }
 0xa1a   : > { %4366 = vmatpush1.msra.mxu0 %v3997_v26  ;;  %4662 = vmatprep.subr.mxu1 %v10692_v49 }
 0xa1b   : > { %4063 = vrot.lane.b32.xlu0 %v4059_v59, %s10674_s17  ;;  %4367 = vmatprep.subr.mxu0 %v10692_v49  ;;  %v3995_v59 = vld [vmem:[%s14915_s3 + $0x30] sm:$0xff] }
 0xa1c   : > { %4368 = vmatpush1.msra.mxu0 %v3996_v43  ;;  %4663 = vmatpush1.msra.mxu1 %v3997_v26 }
 0xa1d   : > { %4125 = vrot.lane.b32.xlu1 %v13458_v10, %s10679_s16  ;;  %4369 = vmatprep.subr.mxu0 %v10692_v49 }
 0xa1e   : > { %4370 = vmatpush1.msra.mxu0 %v3995_v59  ;;  %4664 = vmatprep.subr.mxu1 %v10692_v49 }
 0xa1f   : > { %4075 = vrot.lane.b32.xlu0 %v13411_v35, %s10671_s15  ;;  %4371 = vmatprep.subr.mxu0 %v10692_v49 }
 0xa20   : > { %4372 = vmatpush1.msra.mxu0 %v3994_v63  ;;  %4665 = vmatpush1.msra.mxu1 %v3996_v43 }
 0xa21   : > { %4137 = vrot.lane.b32.xlu1 %v13462_v16, %s10680_s23  ;;  %4373 = vmatprep.subr.mxu0 %v10692_v49 }
 0xa22   : > { %4374 = vmatpush1.msra.mxu0 %v3993_v17  ;;  %4666 = vmatprep.subr.mxu1 %v10692_v49 }
 0xa23   : > { %4088 = vrot.lane.b32.xlu0 %v13418_v8, %s10676_s20  ;;  %4375 = vmatprep.subr.mxu0 %v10692_v49 }
 0xa24   : > { %4376 = vmatpush1.msra.mxu0 %v3992_v13  ;;  %4667 = vmatpush1.msra.mxu1 %v3995_v59 }
 0xa25   : > { %4150 = vrot.lane.b32.xlu1 %v13479_v60, %s10681_s0  ;;  %4377 = vmatprep.subr.mxu0 %v10692_v49 }
 0xa26   : > { %4378 = vmatpush1.msra.mxu0 %v3991_v51  ;;  %4668 = vmatprep.subr.mxu1 %v10692_v49 }
 0xa27   : > { %4101 = vrot.lane.b32.xlu0 %v13429_v11, %s10677_s2  ;;  %4379 = vmatprep.subr.mxu0 %v10692_v49 }
 0xa28   : > { %4380 = vmatpush1.msra.mxu0 %v3990_v0  ;;  %4669 = vmatpush1.msra.mxu1 %v3994_v63 }
 0xa29   : > { %4163 = vrot.lane.b32.xlu1 %v13491_v15, %s15133_s14  ;;  %4381 = vmatprep.subr.mxu0 %v10692_v49 }
 0xa2a   : > { %4670 = vmatprep.subr.mxu1 %v10692_v49 }
 0xa2b   : > { %4114 = vrot.lane.b32.xlu0 %v13440_v5, %s10678_s1  ;;  %4671 = vmatpush1.msra.mxu1 %v3993_v17 }
 0xa2c   : > { %4672 = vmatprep.subr.mxu1 %v10692_v49 }
 0xa2d   : > { %4176 = vrot.lane.b32.xlu1 %v13503_v29, %s15127_s24  ;;  %4673 = vmatpush1.msra.mxu1 %v3992_v13 }
 0xa2e   : > { %4674 = vmatprep.subr.mxu1 %v10692_v49 }
 0xa2f   : > { %4127 = vrot.lane.b32.xlu0 %v13451_v42, %s10679_s16  ;;  %4675 = vmatpush1.msra.mxu1 %v3991_v51 }
 0xa30   : > { %4676 = vmatprep.subr.mxu1 %v10692_v49 }
 0xa31   : > { %4189 = vrot.lane.b32.xlu1 %v13515_v33, %s15125_s25  ;;  %4677 = vmatpush1.msra.mxu1 %v3990_v0 }
 0xa32   : > { %4678 = vmatprep.subr.mxu1 %v10692_v49 }
 0xa33   : > { %4139 = vrot.lane.b32.xlu0 %v13465_v1, %s10680_s23 }
 0xa35   : > { %4201 = vrot.lane.b32.xlu1 %v13520_v27, %s15129_s26 }
 0xa37   : > { %4152 = vrot.lane.b32.xlu0 %v13471_v31, %s10681_s0 }
 0xa39   : > { %4214 = vrot.lane.b32.xlu1 %v13537_v28, %s15131_s18 }
 0xa3b   : > { %4165 = vrot.lane.b32.xlu0 %v13483_v24, %s15133_s14 }
 0xa3d   : > { %4227 = vrot.lane.b32.xlu1 %v13549_v20, %s10687_s27 }
 0xa3f   : > { %4178 = vrot.lane.b32.xlu0 %v13495_v25, %s15127_s24 }
 0xa41   : > { %4240 = vrot.lane.b32.xlu1 %v13561_v2, %s10688_s28 }
 0xa43   : > { %4191 = vrot.lane.b32.xlu0 %v13507_v32, %s15125_s25  ;;  %s10691_s25 = smov 126  }
 0xa45   : > { %4253 = vrot.lane.b32.xlu1 %v13573_v57, %s10689_s29 }
 0xa47   : > { %4203 = vrot.lane.b32.xlu0 %v13523_v40, %s15129_s26  ;;  %s10694_s26 = smov 10  }
 0xa49   : > { %4265 = vrot.lane.b32.xlu1 %v13578_v12, %s10690_s30 }
 0xa4b   : > { %4216 = vrot.lane.b32.xlu0 %v13529_v30, %s15131_s18  ;;  %s10695_s18 = smov 16  }
 0xa4d   : > { %4278 = vrot.lane.b32.xlu1 %v13595_v61, %s10691_s25 }
 0xa4f   : > { %4229 = vrot.lane.b32.xlu0 %v13541_v7, %s10687_s27 }
 0xa51   : > { %4255 = vrot.lane.b32.xlu1 %v13565_v56, %s10689_s29 }
 0xa53   : > { %4242 = vrot.lane.b32.xlu0 %v13553_v23, %s10688_s28 }
 0xa55   : > { %4280 = vrot.lane.b32.xlu1 %v13587_v6, %s10691_s25 }
 0xa57   : > { %4267 = vrot.lane.b32.xlu0 %v13581_v44, %s10690_s30 }
 0xa59   : > { %4438 = vrot.lane.b32.xlu1 %v13436_v47, %s10675_s19  ;;  %v3989_v47 = vld [vmem:[%s14915_s3] sm:$0xff] }
 0xa5a   : > { %4382 = vmatpush1.msra.mxu0 %v3989_v47  ;;  %4679 = vmatpush1.msra.mxu1 %v3989_v47 }
 0xa5b   : > { %4430 = vrot.lane.b32.xlu0 %v13425_v39, %s10672_s22  ;;  %v13700_v39 = vsel %vm15678_vm13, %v4292_v37, %v13679_v22  ;;  %4409 = vmatprep.subr.mxu0 %v10692_v49  ;;  %vm15683_vm13 = vcmask 91184  }
 0xa5c   : > { %9375 = vmatpush2.msk.msra.mxu0 %vm15681_vm1, %v4007_v55  ;;  %4706 = vmatprep.subr.mxu1 %v10692_v49 }
 0xa5d   : > { %4454 = vrot.lane.b32.xlu1 %v13458_v10, %s10674_s17  ;;  %4411 = vmatprep.subr.mxu0 %v10692_v49  ;;  %v4005_v10 = vld [vmem:[%s14915_s3 + $0x80] sm:$0xff] }
 0xa5e   : > { %9378 = vmatpush2.msk.msra.mxu1 %vm15681_vm1, %v4007_v55  ;;  %vm15689_vm1 = vcmask 343328  }
 0xa5f   : > { %4446 = vrot.lane.b32.xlu0 %v13447_v18, %s10673_s21  ;;  %v4318_v18 = vrot.slane %v13578_v12, 4  ;;  %4708 = vmatprep.subr.mxu1 %v10692_v49 }
 0xa61   : > { %4462 = vrot.lane.b32.xlu1 %v13462_v16, %s10671_s15  ;;  %v13748_v16 = vsel %vm15682_vm9, %v4318_v18, %v13735_v52  ;;  %vm15685_vm9 = vcmask 146528  }
 0xa63   : > { %4432 = vrot.lane.b32.xlu0 %v13418_v8, %s10672_s22  ;;  %v13689_v8 = vrot.slane %v13581_v44, 3 }
 0xa65   : > { %4470 = vrot.lane.b32.xlu1 %v13479_v60, %s10676_s20 }
 0xa67   : > { %4440 = vrot.lane.b32.xlu0 %v13429_v11, %s10675_s19  ;;  %v13710_v11 = vsel %vm15679_vm10, %v4305_v62, %v13689_v8  ;;  %s10693_s19 = smov 4   ;;  %vm15684_vm10 = vcmask 97328  }
 0xa69   : > { %4448 = vrot.lane.b32.xlu1 %v13440_v5, %s10673_s21  ;;  %v4006_v5 = vld [vmem:[%s14915_s3 + $0x88] sm:$0xff] }
 0xa6a   : > { %4412 = vmatpush2.msra.mxu0 %v4006_v5  ;;  %4709 = vmatpush2.msra.mxu1 %v4006_v5 }
 0xa6b   : > { %4295 = vrot.lane.b32.xlu0 %v13700_v39, %s10693_s19  ;;  %4413 = vmatprep.subr.mxu0 %v10692_v49 }
 0xa6c   : > { %4414 = vmatpush2.msra.mxu0 %v4005_v10  ;;  %4710 = vmatprep.subr.mxu1 %v10692_v49 }
 0xa6d   : > { %4308 = vrot.lane.b32.xlu1 %v13710_v11, %s10694_s26  ;;  %9927 = vmatprep.subr.mxu0 %v10692_v49 }
 0xa6e   : > { %4711 = vmatpush2.msra.mxu1 %v4005_v10 }
 0xa6f   : > { %4478 = vrot.lane.b32.xlu0 %v13491_v15, %s10677_s2  ;;  %9934 = vmatprep.subr.mxu1 %v10692_v49 }
 0xa71   : > { %4486 = vrot.lane.b32.xlu1 %v13503_v29, %s10678_s1 }
 0xa73   : > { %4456 = vrot.lane.b32.xlu0 %v13451_v42, %s10674_s17  ;;  %s15695_s17 = smov 78  }
 0xa75   : > { %4464 = vrot.lane.b32.xlu1 %v13465_v1, %s10671_s15  ;;  %s15693_s15 = smov 72  }
 0xa77   : > { %v4074_v9 = vpop.permute.xlu1 %4073  ;;  %4321 = vrot.lane.b32.xlu0 %v13748_v16, %s10695_s18 }
 0xa79   : > { %v4022_v42 = vpop.permute.xlu0 %4021  ;;  %4472 = vrot.lane.b32.xlu1 %v13471_v31, %s10676_s20  ;;  %s15698_s20 = smov 84  }
 0xa7a   : > { %4028 = vst.msk [vmem:[#allocation4 + $0x10] sm:$0x3] %vm15683_vm13, %v4022_v42  ;;  %vm15686_vm13 = vcmask 195728  }
 0xa7b   : > { %v4048_v1 = vpop.permute.xlu1 %4047  ;;  %4494 = vrot.lane.b32.xlu0 %v13515_v33, %s10679_s16 }
 0xa7d   : > { %4297 = vrot.lane.b32.xlu1 %v13679_v22, %s10693_s19  ;;  %v4020_v60 = vpop.permute.xlu0 %4019 }
 0xa7e   : > { %4026 = vst.msk [vmem:[#allocation4] sm:$0xff] %vm15684_vm10, %v4020_v60  ;;  %vm15687_vm10 = vcmask 244928  }
 0xa7f   : > { %v4062_v31 = vpop.permute.xlu1 %4061  ;;  %4502 = vrot.lane.b32.xlu0 %v13520_v27, %s10680_s23 }
 0xa81   : > { %4510 = vrot.lane.b32.xlu1 %v13537_v28, %s10681_s0  ;;  %v4034_v45 = vpop.permute.xlu0 %4033 }
 0xa82   : > { %4040 = vst.msk [vmem:[#allocation4] sm:$0xff] %vm15685_vm9, %v4034_v45  ;;  %vm15690_vm9 = vcmask 140384  }
 0xa83   : > { %4054 = vst.msk [vmem:[#allocation4] sm:$0xff] %vm15686_vm13, %v4048_v1  ;;  %v4087_v15 = vpop.permute.xlu1 %4086  ;;  %4480 = vrot.lane.b32.xlu0 %v13483_v24, %s10677_s2  ;;  %vm15691_vm13 = vcmask 392528   ;;  %s15701_s2 = smov 90  }
 0xa84   : > { %4068 = vst.msk [vmem:[#allocation4] sm:$0xff] %vm15687_vm10, %v4062_v31  ;;  %vm15694_vm10 = vcmask 441728  }
 0xa85   : > { %4080 = vst.msk [vmem:[#allocation4] sm:$0xff] %vm15688_vm6, %v4074_v9  ;;  %4488 = vrot.lane.b32.xlu1 %v13495_v25, %s10678_s1  ;;  %v4036_v21 = vpop.permute.xlu0 %4035  ;;  %vm15692_vm6 = vcmask 189584   ;;  %s15704_s1 = smov 96  }
 0xa86   : > { %4093 = vst.msk [vmem:[#allocation4] sm:$0xff] %vm15689_vm1, %v4087_v15  ;;  %vm15696_vm1 = vcmask 238784  }
 0xa87   : > { %4042 = vst.msk [vmem:[#allocation4 + $0x10] sm:$0x3] %vm15690_vm9, %v4036_v21  ;;  %v4100_v29 = vpop.permute.xlu1 %4099  ;;  %4310 = vrot.lane.b32.xlu0 %v13689_v8, %s10694_s26  ;;  %vm15697_vm9 = vcmask 490928  }
 0xa88   : > { %4106 = vst.msk [vmem:[#allocation4] sm:$0xff] %vm15691_vm13, %v4100_v29  ;;  %vm15699_vm13 = vcmask 287984  }
 0xa89   : > { %4323 = vrot.lane.b32.xlu1 %v13735_v52, %s10695_s18  ;;  %v4050_v24 = vpop.permute.xlu0 %4049 }
 0xa8a   : > { %4056 = vst.msk [vmem:[#allocation4 + $0x10] sm:$0x3] %vm15692_vm6, %v4050_v24  ;;  %vm15700_vm6 = vcmask 540128  }
 0xa8b   : > { %v4113_v25 = vpop.permute.xlu1 %4112  ;;  %4518 = vrot.lane.b32.xlu0 %v13549_v20, %s15693_s15  ;;  %v9372_v20 = vld [vmem:[%s13397_s13 + $0x130] sm:$0xff] }
 0xa8c   : > { %4119 = vst.msk [vmem:[#allocation4] sm:$0xff] %vm15694_vm10, %v4113_v25  ;;  %vm15702_vm10 = vcmask 337184   ;;  %v4627_v54 = vrot.slane %v9372_v20, 4 }
 0xa8d   : > { %v4064_v3 = vpop.permute.xlu0 %4063  ;;  %4526 = vrot.lane.b32.xlu1 %v13561_v2, %s15695_s17  ;;  %v4592_v2 = vrot.slane %v9372_v20, 1 }
 0xa8e   : > { %4070 = vst.msk [vmem:[#allocation4 + $0x10] sm:$0x3] %vm15696_vm1, %v4064_v3  ;;  %vm15703_vm1 = vcmask 589328  }
 0xa8f   : > { %v4126_v33 = vpop.permute.xlu1 %4125  ;;  %4496 = vrot.lane.b32.xlu0 %v13507_v32, %s10679_s16 }
 0xa90   : > { %4132 = vst.msk [vmem:[#allocation4] sm:$0xff] %vm15697_vm9, %v4126_v33  ;;  %vm15705_vm9 = vcmask 386384  }
 0xa91   : > { %v4076_v27 = vpop.permute.xlu0 %4075  ;;  %4534 = vrot.lane.b32.xlu1 %v13573_v57, %s15698_s20  ;;  %v4605_v57 = vrot.slane %v9372_v20, 2 }
 0xa92   : > { %4082 = vst.msk [vmem:[#allocation4 + $0x10] sm:$0x3] %vm15699_vm13, %v4076_v27  ;;  %vm15706_vm13 = vcmask 638528  }
 0xa93   : > { %v4138_v41 = vpop.permute.xlu1 %4137  ;;  %4504 = vrot.lane.b32.xlu0 %v13523_v40, %s10680_s23  ;;  %v13819_v40 = vld [vmem:[%s13397_s13 + $0x138] sm:$0x3f]  ;;  %s9385_s23 = sshll.u32 %s10594_s12, 3  ;;  %s3957_s12 = sadd.s32 1, %s10594_s12  }
 0xa94   : > { %4144 = vst.msk [vmem:[#allocation4] sm:$0xff] %vm15700_vm6, %v4138_v41  ;;  %vm15707_vm6 = vcmask 435584   ;;  %v4617_v36 = vrot.slane %v13819_v40, 3  ;;  %v4628_v50 = vrot.slane %v13819_v40, 4  ;;  %p3954_p3 = scmp.ge.s32.totalorder %s3957_s12, 5  }
 0xa95   : > { %v4089_v28 = vpop.permute.xlu0 %4088  ;;  %4542 = vrot.lane.b32.xlu1 %v13578_v12, %s15701_s2  ;;  %v4606_v12 = vrot.slane %v13819_v40, 2 }
 0xa96   : > { %4095 = vst.msk [vmem:[#allocation4 + $0x10] sm:$0x3] %vm15702_vm10, %v4089_v28  ;;  %vm15708_vm10 = vcmask 687728  }
 0xa97   : > { %v4151_v32 = vpop.permute.xlu1 %4150  ;;  %4512 = vrot.lane.b32.xlu0 %v13529_v30, %s10681_s0  ;;  %v4593_v30 = vrot.slane %v13819_v40, 1  ;;  %s9184_s0 = scalar_lea.vmem [#allocation3], %s9385_s23 }
 0xa98   : > { %4157 = vst.msk [vmem:[#allocation4] sm:$0xff] %vm15703_vm1, %v4151_v32  ;;  %vm15709_vm1 = vcmask 1046528  }
 0xa99   : > { %v4102_v38 = vpop.permute.xlu0 %4101  ;;  %4550 = vrot.lane.b32.xlu1 %v13595_v61, %s15704_s1 }
 0xa9a   : > { %4108 = vst.msk [vmem:[#allocation4 + $0x10] sm:$0x3] %vm15705_vm9, %v4102_v38  ;;  %vm15710_vm9 = vcmask 484784  }
 0xa9b   : > { %v4164_v48 = vpop.permute.xlu1 %4163  ;;  %4520 = vrot.lane.b32.xlu0 %v13541_v7, %s15693_s15  ;;  %v4594_v7 = vsel %vm15709_vm1, %v4592_v2, %v4593_v30  ;;  %vm15715_vm1 = vcmask 583184   ;;  %s10698_s15 = smov (%p3954_p3), [#allocation5]  }
 0xa9c   : > { %4170 = vst.msk [vmem:[#allocation4] sm:$0xff] %vm15706_vm13, %v4164_v48  ;;  %vm15711_vm13 = vcmask 1045504  }
 0xa9d   : > { %v4115_v46 = vpop.permute.xlu0 %4114  ;;  %4558 = vrot.lane.b32.xlu1 %v13700_v39, %s10687_s27  ;;  %v4607_v53 = vsel %vm15711_vm13, %v4605_v57, %v4606_v12  ;;  %vm15718_vm13 = vcmask 632384  }
 0xa9e   : > { %4121 = vst.msk [vmem:[#allocation4 + $0x10] sm:$0x3] %vm15707_vm6, %v4115_v46  ;;  %vm15712_vm6 = vcmask 736928  }
 0xa9f   : > { %v4177_v34 = vpop.permute.xlu1 %4176  ;;  %4528 = vrot.lane.b32.xlu0 %v13553_v23, %s15695_s17  ;;  %s9076_s17 = sshll.u32 (%p3954_p3), %s10698_s15, 4  ;;  %s9077_s17 = int_to_ptr.vmem [resolvable:$true] %s9076_s17 }
 0xaa0   : > { %4183 = vst.msk [vmem:[#allocation4] sm:$0xff] %vm15708_vm10, %v4177_v34  ;;  %vm15714_vm10 = vcmask 786128   ;;  %p10547_p5 = scmp.lt.s32.totalorder (%p3954_p3), %s9077_s17, %s9077_s17 }
 0xaa1   : > { %v4128_v61 = vpop.permute.xlu0 %4127  ;;  %4536 = vrot.lane.b32.xlu1 %v13565_v56, %s15698_s20  ;;  %v4616_v56 = vrot.slane %v9372_v20, 3  ;;  %s10542_s20 = scalar_lea.vmem (%p3954_p3), %s9077_s17, 32 }
 0xaa2   : > { %4134 = vst.msk [vmem:[#allocation4 + $0x10] sm:$0x3] %vm15710_vm9, %v4128_v61  ;;  %vm15717_vm9 = vcmask 1044480   ;;  %p10543_p4 = scmp.ne.s32.totalorder (%p3954_p3), %s9077_s17, %s10542_s20  ;;  %p10548_p6 = scmp.lt.s32.totalorder (%p3954_p3), %s10542_s20, %s10542_s20 }
 0xaa3   : > { %v4190_v19 = vpop.permute.xlu1 %4189  ;;  %4595 = vrot.lane.b32.xlu0 %v4594_v7, %s10691_s25  ;;  %v4618_v43 = vsel %vm15717_vm9, %v4616_v56, %v4617_v36  ;;  %vm15723_vm9 = vcmask 730784  }
 0xaa4   : > { %4196 = vst.msk [vmem:[#allocation4] sm:$0xff] %vm15712_vm6, %v4190_v19  ;;  %vm15719_vm6 = vcmask 1043456   ;;  %p10549_p7 = por (%p3954_p3), %p10548_p6, %p10547_p5 }
 0xaa5   : > { %v4140_v14 = vpop.permute.xlu0 %4139  ;;  %4608 = vrot.lane.b32.xlu1 %v4607_v53, %s10693_s19  ;;  %v4629_v63 = vsel %vm15719_vm6, %v4627_v54, %v4628_v50  ;;  %vm15725_vm6 = vcmask 779984  }
 0xaa6   : > { %4146 = vst.msk [vmem:[#allocation4 + $0x10] sm:$0x3] %vm15713_vm12, %v4140_v14  ;;  %vm15716_vm12 = vcmask 835328   ;;  %p10550_p8 = pnand (%p3954_p3), %p10549_p7, %p10543_p4 }
 0xaa7   : > { %v4202_v23 = vpop.permute.xlu1 %4201  ;;  %4566 = vrot.lane.b32.xlu0 %v13710_v11, %s10688_s28 }
 0xaa8   : > { %4208 = vst.msk [vmem:[#allocation4] sm:$0xff] %vm15714_vm10, %v4202_v23  ;;  %vm15720_vm10 = vcmask 884528  }
 0xaa9   : > { %v4153_v4 = vpop.permute.xlu0 %4152  ;;  %4574 = vrot.lane.b32.xlu1 %v13748_v16, %s10689_s29 }
 0xaaa   : > { %4159 = vst.msk [vmem:[#allocation4 + $0x10] sm:$0x3] %vm15715_vm1, %v4153_v4  ;;  %vm15721_vm1 = vcmask 681584  }
 0xaab   : > { %v4215_v26 = vpop.permute.xlu1 %4214  ;;  %4544 = vrot.lane.b32.xlu0 %v13581_v44, %s15701_s2 }
 0xaac   : > { %4221 = vst.msk [vmem:[#allocation4] sm:$0xff] %vm15716_vm12, %v4215_v26  ;;  %vm15722_vm12 = vcmask 933728  }
 0xaad   : > { %v4166_v59 = vpop.permute.xlu0 %4165  ;;  %4552 = vrot.lane.b32.xlu1 %v13587_v6, %s15704_s1 }
 0xaae   : > { %4172 = vst.msk [vmem:[#allocation4 + $0x10] sm:$0x3] %vm15718_vm13, %v4166_v59  ;;  %vm15724_vm13 = vcmask 982928  }
 0xaaf   : > { %v4228_v17 = vpop.permute.xlu1 %4227  ;;  %4619 = vrot.lane.b32.xlu0 %v4618_v43, %s10694_s26 }
 0xab0   : > { %4234 = vst.msk [vmem:[#allocation4] sm:$0xff] %vm15720_vm10, %v4228_v17  ;;  %vm15726_vm10 = vcmask 1032128  }
 0xab1   : > { %v4179_v37 = vpop.permute.xlu0 %4178  ;;  %4630 = vrot.lane.b32.xlu1 %v4629_v63, %s10695_s18 }
 0xab2   : > { %4185 = vst.msk [vmem:[#allocation4 + $0x10] sm:$0x3] %vm15721_vm1, %v4179_v37  ;;  %vm15727_vm1 = vcmask 829184  }
 0xab3   : > { %v4241_v44 = vpop.permute.xlu1 %4240  ;;  %4584 = vrot.lane.b32.xlu0 %v9372_v20, %s10690_s30 }
 0xab4   : > { %4247 = vst.msk [vmem:[#allocation4] sm:$0xff] %vm15722_vm12, %v4241_v44  ;;  %vm15728_vm12 = vcmask 1048560  }
 0xab5   : > { %v4192_v6 = vpop.permute.xlu0 %4191  ;;  %4597 = vrot.lane.b32.xlu1 %v4593_v30, %s10691_s25 }
 0xab6   : > { %4198 = vst.msk [vmem:[#allocation4 + $0x10] sm:$0x3] %vm15723_vm9, %v4192_v6  ;;  %vm15729_vm9 = vcmask 31744  }
 0xab7   : > { %v4254_v13 = vpop.permute.xlu1 %4253  ;;  %4560 = vrot.lane.b32.xlu0 %v13679_v22, %s10687_s27 }
 0xab8   : > { %4260 = vst.msk [vmem:[#allocation4] sm:$0xff] %vm15724_vm13, %v4254_v13  ;;  %vm15730_vm13 = vcmask 878384  }
 0xab9   : > { %v4204_v62 = vpop.permute.xlu0 %4203  ;;  %4610 = vrot.lane.b32.xlu1 %v4606_v12, %s10693_s19 }
 0xaba   : > { %4210 = vst.msk [vmem:[#allocation4 + $0x10] sm:$0x3] %vm15725_vm6, %v4204_v62  ;;  %vm15732_vm6 = vcmask 48128  }
 0xabb   : > { %v4266_v51 = vpop.permute.xlu1 %4265  ;;  %4568 = vrot.lane.b32.xlu0 %v13689_v8, %s10688_s28 }
 0xabc   : > { %4272 = vst.msk [vmem:[#allocation4] sm:$0xff] %vm15726_vm10, %v4266_v51  ;;  %vm15733_vm10 = vcmask 1025984  }
 0xabd   : > { %v4217_v39 = vpop.permute.xlu0 %4216  ;;  %4621 = vrot.lane.b32.xlu1 %v4617_v36, %s10694_s26 }
 0xabe   : > { %4223 = vst.msk [vmem:[#allocation4 + $0x10] sm:$0x3] %vm15727_vm1, %v4217_v39  ;;  %vm15734_vm1 = vcmask 1042416  }
 0xabf   : > { %v4279_v0 = vpop.permute.xlu1 %4278  ;;  %4576 = vrot.lane.b32.xlu0 %v13735_v52, %s10689_s29 }
 0xac0   : > { %4285 = vst.msk [vmem:[#allocation4] sm:$0xff] %vm15728_vm12, %v4279_v0  ;;  %vm15735_vm12 = vcmask 97328  }
 0xac1   : > { %4287 = vst.msk [vmem:[#allocation4 + $0x8] sm:$0xff] %vm15729_vm9, %v4279_v0  ;;  %v4230_v22 = vpop.permute.xlu0 %4229  ;;  %4632 = vrot.lane.b32.xlu1 %v4628_v50, %s10695_s18  ;;  %vm15736_vm9 = vcmask 146528  }
 0xac2   : > { %4236 = vst.msk [vmem:[#allocation4 + $0x10] sm:$0x3] %vm15730_vm13, %v4230_v22  ;;  %vm15737_vm13 = vcmask 195728  }
 0xac3   : > { %v4256_v8 = vpop.permute.xlu1 %4255  ;;  %4586 = vrot.lane.b32.xlu0 %v13819_v40, %s10690_s30 }
 0xac5   : > { %v4243_v11 = vpop.permute.xlu0 %4242 }
 0xac6   : > { %4249 = vst.msk [vmem:[#allocation4 + $0x10] sm:$0x3] %vm3317_vm8, %v4243_v11 }
 0xac7   : > { %4262 = vst.msk [vmem:[#allocation4 + $0x10] sm:$0x3] %vm15731_vm15, %v4256_v8  ;;  %v4281_v47 = vpop.permute.xlu1 %4280  ;;  %v4331_v55 = vld [vmem:[#allocation4] sm:$0xff]  ;;  %vm15744_vm15 = vcmask 189584  }
 0xac8   : > { %4291 = vst.msk [vmem:[#allocation4 + $0x18] sm:$0x3] %vm3359_vm14, %v4281_v47 }
 0xac9   : > { %4428 = vst.msk [vmem:[#allocation4] sm:$0xff] %vm15732_vm6, %v13400_v58  ;;  %v4268_v5 = vpop.permute.xlu0 %4267  ;;  %vm15739_vm6 = vcmask 244928  }
 0xaca   : > { %4274 = vst.msk [vmem:[#allocation4 + $0x10] sm:$0x3] %vm15733_vm10, %v4268_v5  ;;  %vm15740_vm10 = vcmask 294128  }
 0xacb   : > { %4289 = vst.msk [vmem:[#allocation4 + $0x10] sm:$0x3] %vm15734_vm1, %v4281_v47  ;;  %v4439_v18 = vpop.permute.xlu1 %4438  ;;  %vm15741_vm1 = vcmask 91184  }
 0xacd   : > { %v4431_v52 = vpop.permute.xlu0 %4430 }
 0xace   : > { %4436 = vst.msk [vmem:[#allocation4] sm:$0xff] %vm15735_vm12, %v4431_v52  ;;  %vm15742_vm12 = vcmask 343328  }
 0xacf   : > { %4444 = vst.msk [vmem:[#allocation4] sm:$0xff] %vm15736_vm9, %v4439_v18  ;;  %v4455_v10 = vpop.permute.xlu1 %4454  ;;  %vm15743_vm9 = vcmask 140384  }
 0xad1   : > { %v4447_v16 = vpop.permute.xlu0 %4446 }
 0xad2   : > { %v4333_v9 = vld [vmem:[#allocation4 + $0x10] sm:$0x3]  ;;  %4452 = vst.msk [vmem:[#allocation4] sm:$0xff] %vm15737_vm13, %v4447_v16  ;;  %vm15746_vm13 = vcmask 441728  }
 0xad3   : > { %4429 = vst.msk [vmem:[#allocation4 + $0x10] sm:$0x3] %vm15738_vm2, %v13411_v35  ;;  %v4463_v58 = vpop.permute.xlu1 %4462  ;;  %vm15745_vm2 = vcmask 392528  }
 0xad4   : > { %4460 = vst.msk [vmem:[#allocation4] sm:$0xff] %vm15739_vm6, %v4455_v10  ;;  %vm15747_vm6 = vcmask 238784  }
 0xad5   : > { %4468 = vst.msk [vmem:[#allocation4] sm:$0xff] %vm15740_vm10, %v4463_v58  ;;  %v4433_v42 = vpop.permute.xlu0 %4432  ;;  %vm15748_vm10 = vcmask 287984  }
 0xad6   : > { %4437 = vst.msk [vmem:[#allocation4 + $0x10] sm:$0x3] %vm15741_vm1, %v4433_v42  ;;  %vm15750_vm1 = vcmask 490928  }
 0xad7   : > { %v4471_v1 = vpop.permute.xlu1 %4470 }
 0xad8   : > { %4476 = vst.msk [vmem:[#allocation4] sm:$0xff] %vm15742_vm12, %v4471_v1  ;;  %vm15751_vm12 = vcmask 540128  }
 0xad9   : > { %v4441_v60 = vpop.permute.xlu0 %4440 }
 0xada   : > { %4445 = vst.msk [vmem:[#allocation4 + $0x10] sm:$0x3] %vm15743_vm9, %v4441_v60  ;;  %vm15752_vm9 = vcmask 589328  }
 0xadb   : > { %v4449_v31 = vpop.permute.xlu1 %4448 }
 0xadc   : > { %4453 = vst.msk [vmem:[#allocation4 + $0x10] sm:$0x3] %vm15744_vm15, %v4449_v31  ;;  %vm15749_vm15 = vcmask 337184  }
 0xadd   : > { %v4296_v45 = vpop.permute.xlu0 %4295 }
 0xade   : > { %4302 = vst.msk [vmem:[#allocation4 + $0x8] sm:$0xff] %vm3370_vm3, %v4296_v45 }
 0xadf   : > { %v4309_v35 = vpop.permute.xlu1 %4308 }
 0xae0   : > { %4315 = vst.msk [vmem:[#allocation4 + $0x8] sm:$0xff] %vm3383_vm4, %v4309_v35 }
 0xae1   : > { %v4479_v15 = vpop.permute.xlu0 %4478 }
 0xae2   : > { %4484 = vst.msk [vmem:[#allocation4] sm:$0xff] %vm15745_vm2, %v4479_v15  ;;  %vm15753_vm2 = vcmask 386384  }
 0xae3   : > { %v4487_v21 = vpop.permute.xlu1 %4486 }
 0xae4   : > { %4492 = vst.msk [vmem:[#allocation4] sm:$0xff] %vm15746_vm13, %v4487_v21  ;;  %vm15754_vm13 = vcmask 435584  }
 0xae5   : > { %v4457_v29 = vpop.permute.xlu0 %4456 }
 0xae6   : > { %4461 = vst.msk [vmem:[#allocation4 + $0x10] sm:$0x3] %vm15747_vm6, %v4457_v29  ;;  %vm15755_vm6 = vcmask 173184  }
 0xae7   : > { %v4465_v24 = vpop.permute.xlu1 %4464 }
 0xae8   : > { %4469 = vst.msk [vmem:[#allocation4 + $0x10] sm:$0x3] %vm15748_vm10, %v4465_v24  ;;  %vm15756_vm10 = vcmask 638528  }
 0xae9   : > { %v4322_v25 = vpop.permute.xlu0 %4321 }
 0xaea   : > { %4328 = vst.msk [vmem:[#allocation4 + $0x8] sm:$0xff] %vm3396_vm5, %v4322_v25 }
 0xaeb   : > { %v4473_v3 = vpop.permute.xlu1 %4472 }
 0xaec   : > { %4477 = vst.msk [vmem:[#allocation4 + $0x10] sm:$0x3] %vm15749_vm15, %v4473_v3  ;;  %vm15757_vm15 = vcmask 687728   ;;  %v15782_v3 = vld [vmem:[#allocation8_spill] sm:$0xff] }
 0xaed   : > { %v4495_v33 = vpop.permute.xlu0 %4494 }
 0xaee   : > { %4500 = vst.msk [vmem:[#allocation4] sm:$0xff] %vm15750_vm1, %v4495_v33  ;;  %vm15758_vm1 = vcmask 484784   ;;  %v15784_v33 = vld [vmem:[#allocation10_spill] sm:$0xff] }
 0xaef   : > { %v4298_v27 = vpop.permute.xlu1 %4297 }
 0xaf0   : > { %4304 = vst.msk [vmem:[#allocation4 + $0x18] sm:$0x3] %vm3372_vm11, %v4298_v27 }
 0xaf1   : > { %v4503_v41 = vpop.permute.xlu0 %4502  ;;  %v4332_v28 = vld [vmem:[#allocation4 + $0x8] sm:$0xff] }
 0xaf2   : > { %4508 = vst.msk [vmem:[#allocation4] sm:$0xff] %vm15751_vm12, %v4503_v41  ;;  %9376 = vmatprep.mubr.msk.f32.mxu0 %vm3410_vm0, %v4332_v28  ;;  %vm15759_vm12 = vcmask 736928  }
 0xaf3   : > { %v4511_v32 = vpop.permute.xlu1 %4510  ;;  %4416 = vmatmul.mubr.f32.vlgmr.msra.gmra.mxu0 %v4331_v55 }
 0xaf4   : > { %4516 = vst.msk [vmem:[#allocation4] sm:$0xff] %vm15752_vm9, %v4511_v32  ;;  %vm15760_vm9 = vcmask 533984  }
 0xaf5   : > { %v4481_v38 = vpop.permute.xlu0 %4480 }
 0xaf6   : > { %4485 = vst.msk [vmem:[#allocation4 + $0x10] sm:$0x3] %vm15753_vm2, %v4481_v38  ;;  %vm15761_vm2 = vcmask 786128  }
 0xaf7   : > { %v4489_v20 = vpop.permute.xlu1 %4488 }
 0xaf8   : > { %4493 = vst.msk [vmem:[#allocation4 + $0x10] sm:$0x3] %vm15754_vm13, %v4489_v20  ;;  %vm15762_vm13 = vcmask 583184   ;;  %v13975_v20 = vld [vmem:[%s14917_s5 + $0x8] sm:$0xff] (%p3954_p3) }
 0xaf9   : > { %v4311_v40 = vpop.permute.xlu0 %4310 }
 0xafa   : > { %4317 = vst.msk [vmem:[#allocation4 + $0x18] sm:$0x3] %vm3385_vm7, %v4311_v40  ;;  %v13980_v40 = vld [vmem:[%s14917_s5] sm:$0xff] (%p3954_p3) }
 0xafb   : > { %v4324_v48 = vpop.permute.xlu1 %4323 }
 0xafc   : > { %4330 = vst.msk [vmem:[#allocation4 + $0x18] sm:$0x3] %vm15755_vm6, %v4324_v48  ;;  %vm15763_vm6 = vcmask 835328  }
 0xafd   : > { %v4519_v2 = vpop.permute.xlu0 %4518 }
 0xafe   : > { %4524 = vst.msk [vmem:[#allocation4] sm:$0xff] %vm15756_vm10, %v4519_v2  ;;  %vm15764_vm10 = vcmask 632384   ;;  %v13989_v2 = vld [vmem:[%s14917_s5 + $0x28] sm:$0xff] (%p3954_p3) }
 0xaff   : > { %v4527_v30 = vpop.permute.xlu1 %4526 }
 0xb00   : > { %4532 = vst.msk [vmem:[#allocation4] sm:$0xff] %vm15757_vm15, %v4527_v30  ;;  %vm15765_vm15 = vcmask 884528   ;;  %v13995_v30 = vld [vmem:[%s14917_s5 + $0x18] sm:$0xff] (%p3954_p3) }
 0xb01   : > { %v4497_v46 = vpop.permute.xlu0 %4496 }
 0xb02   : > { %4501 = vst.msk [vmem:[#allocation4 + $0x10] sm:$0x3] %vm15758_vm1, %v4497_v46  ;;  %vm15766_vm1 = vcmask 681584   ;;  %v14003_v46 = vld [vmem:[%s14917_s5 + $0x20] sm:$0xff] (%p3954_p3) }
 0xb03   : > { %v4334_v57 = vld [vmem:[#allocation4 + $0x18] sm:$0x3]  ;;  %v4535_v12 = vpop.permute.xlu1 %4534 }
 0xb04   : > { %9377 = vmatprep.mubr.msk.f32.mxu0 %vm3410_vm0, %v4334_v57  ;;  %4540 = vst.msk [vmem:[#allocation4] sm:$0xff] %vm15759_vm12, %v4535_v12  ;;  %vm15767_vm12 = vcmask 730784   ;;  %v14010_v57 = vld [vmem:[%s14917_s5 + $0x10] sm:$0xff] (%p3954_p3) }
 0xb05   : > { %v4505_v34 = vpop.permute.xlu0 %4504  ;;  %4421 = vmatmul.mubr.f32.gmra.mxu0 %v4333_v9  ;;  %v9374_v9 = vld [vmem:[%s14916_s4] ss:$0 sm:$0xff] }
 0xb06   : > { %4509 = vst.msk [vmem:[#allocation4 + $0x10] sm:$0x3] %vm15760_vm9, %v4505_v34  ;;  %vm15768_vm9 = vcmask 31744  }
 0xb07   : > { %v4543_v7 = vpop.permute.xlu1 %4542 }
 0xb08   : > { %4548 = vst.msk [vmem:[#allocation4] sm:$0xff] %vm15761_vm2, %v4543_v7  ;;  %vm15769_vm2 = vcmask 933728   ;;  %v14020_v7 = vld [vmem:[%s14917_s5 + $0x38] sm:$0xff] (%p3954_p3) }
 0xb09   : > { %v4513_v61 = vpop.permute.xlu0 %4512 }
 0xb0a   : > { %4517 = vst.msk [vmem:[#allocation4 + $0x10] sm:$0x3] %vm15762_vm13, %v4513_v61  ;;  %vm15770_vm13 = vcmask 982928   ;;  %v14030_v61 = vld [vmem:[%s14917_s5 + $0x48] sm:$0xff] (%p3954_p3) }
 0xb0b   : > { %v4551_v53 = vpop.permute.xlu1 %4550 }
 0xb0c   : > { %4556 = vst.msk [vmem:[#allocation4] sm:$0xff] %vm15763_vm6, %v4551_v53  ;;  %vm15771_vm6 = vcmask 779984   ;;  %v14035_v53 = vld [vmem:[%s14917_s5 + $0x30] sm:$0xff] (%p3954_p3) }
 0xb0d   : > { %v4521_v19 = vpop.permute.xlu0 %4520 }
 0xb0e   : > { %4525 = vst.msk [vmem:[#allocation4 + $0x10] sm:$0x3] %vm15764_vm10, %v4521_v19  ;;  %vm15772_vm10 = vcmask 829184  }
 0xb0f   : > { %v4559_v14 = vpop.permute.xlu1 %4558 }
 0xb10   : > { %4564 = vst.msk [vmem:[#allocation4] sm:$0xff] %vm15765_vm15, %v4559_v14  ;;  %vm15773_vm15 = vcmask 1032128   ;;  %v14044_v14 = vld [vmem:[%s14917_s5 + $0x40] sm:$0xff] (%p3954_p3) }
 0xb11   : > { %v4529_v23 = vpop.permute.xlu0 %4528 }
 0xb12   : > { %4533 = vst.msk [vmem:[#allocation4 + $0x10] sm:$0x3] %vm15766_vm1, %v4529_v23  ;;  %vm15774_vm1 = vcmask 1048560  }
 0xb13   : > { %v4537_v56 = vpop.permute.xlu1 %4536 }
 0xb14   : > { %4541 = vst.msk [vmem:[#allocation4 + $0x10] sm:$0x3] %vm15767_vm12, %v4537_v56  ;;  %vm15775_vm12 = vcmask 878384   ;;  %v14054_v56 = vld [vmem:[%s14917_s5 + $0x58] sm:$0xff] (%p3954_p3) }
 0xb15   : > { %v4596_v36 = vpop.permute.xlu0 %4595 }
 0xb16   : > { %4602 = vst.msk [vmem:[#allocation4 + $0x8] sm:$0xff] %vm15768_vm9, %v4596_v36  ;;  %vm15776_vm9 = vcmask 976784  }
 0xb17   : > { %v4609_v4 = vpop.permute.xlu1 %4608 }
 0xb18   : > { %4614 = vst.msk [vmem:[#allocation4 + $0x8] sm:$0xff] %vm3370_vm3, %v4609_v4  ;;  %v14069_v4 = vld [vmem:[%s14917_s5 + $0x50] sm:$0xff] (%p3954_p3)  ;;  %vm6977_vm3 = vcmask (%p3954_p3), 73728  }
 0xb19   : > { %v4567_v54 = vpop.permute.xlu0 %4566 }
 0xb1a   : > { %4572 = vst.msk [vmem:[#allocation4] sm:$0xff] %vm15769_vm2, %v4567_v54  ;;  %vm15777_vm2 = vcmask 173184  }
 0xb1b   : > { %v4575_v50 = vpop.permute.xlu1 %4574 }
 0xb1c   : > { %4580 = vst.msk [vmem:[#allocation4] sm:$0xff] %vm15770_vm13, %v4575_v50  ;;  %vm15778_vm13 = vcmask 1025984   ;;  %v14078_v50 = vld [vmem:[%s14917_s5 + $0x60] sm:$0xff] (%p3954_p3) }
 0xb1d   : > { %v4545_v26 = vpop.permute.xlu0 %4544 }
 0xb1e   : > { %4549 = vst.msk [vmem:[#allocation4 + $0x10] sm:$0x3] %vm15771_vm6, %v4545_v26  ;;  %vm15779_vm6 = vcmask 1042416  }
 0xb1f   : > { %v4553_v43 = vpop.permute.xlu1 %4552 }
 0xb20   : > { %4557 = vst.msk [vmem:[#allocation4 + $0x10] sm:$0x3] %vm15772_vm10, %v4553_v43  ;;  %vm10696_vm10 = vmmov 0   ;;  %v14088_v43 = vld [vmem:[%s14917_s5 + $0x78] sm:$0xff] (%p3954_p3) }
 0xb21   : > { %v4620_v59 = vpop.permute.xlu0 %4619  ;;  %9931 = vmatprep.mubr.msk.f32.mxu0 %vm10696_vm10, %v10692_v49 }
 0xb22   : > { %4625 = vst.msk [vmem:[#allocation4 + $0x8] sm:$0xff] %vm3383_vm4, %v4620_v59  ;;  %v14098_v59 = vld [vmem:[%s14917_s5 + $0x88] sm:$0xff] (%p3954_p3)  ;;  %vm15813_vm4 = vcmask (%p3954_p3), 1043456  }
 0xb23   : > { %v4631_v63 = vpop.permute.xlu1 %4630 }
 0xb24   : > { %4636 = vst.msk [vmem:[#allocation4 + $0x8] sm:$0xff] %vm3396_vm5, %v4631_v63  ;;  %v14103_v63 = vld [vmem:[%s14917_s5 + $0x70] sm:$0xff] (%p3954_p3)  ;;  %vm6812_vm5 = vcmask (%p3954_p3), 982016  }
 0xb25   : > { %v4585_v17 = vpop.permute.xlu0 %4584 }
 0xb26   : > { %4590 = vst.msk [vmem:[#allocation4] sm:$0xff] %vm15773_vm15, %v4585_v17  ;;  %vm15780_vm15 = vcmask 1041408  }
 0xb27   : > { %4601 = vst.msk [vmem:[#allocation4] sm:$0xff] %vm15774_vm1, %v4596_v36  ;;  %v4598_v37 = vpop.permute.xlu1 %4597  ;;  %vm15781_vm1 = vmmov %vm15780_vm15  ;;  %v14064_v36 = vld [vmem:[%s14917_s5 + $0x68] sm:$0xff] (%p3954_p3) }
 0xb28   : > { %4604 = vst.msk [vmem:[#allocation4 + $0x18] sm:$0x3] %vm3359_vm14, %v4598_v37  ;;  %vm15844_vm14 = vmmov (%p3954_p3), %vm15813_vm4 }
 0xb29   : > { %v4561_v44 = vpop.permute.xlu0 %4560 }
 0xb2a   : > { %4565 = vst.msk [vmem:[#allocation4 + $0x10] sm:$0x3] %vm15775_vm12, %v4561_v44  ;;  %vm15783_vm12 = vcmask 80896  }
 0xb2b   : > { %v4611_v6 = vpop.permute.xlu1 %4610  ;;  %v4639_v13 = vld [vmem:[#allocation4 + $0x8] sm:$0xff] }
 0xb2c   : > { %4615 = vst.msk [vmem:[#allocation4 + $0x18] sm:$0x3] %vm3372_vm11, %v4611_v6  ;;  %9379 = vmatprep.mubr.msk.f32.mxu1 %vm3410_vm0, %v4639_v13  ;;  %vm4888_vm11 = vcmask (%p3954_p3), 130048   ;;  %v14122_v6 = vld [vmem:[%s14917_s5 + $0x98] sm:$0xff] (%p3954_p3)  ;;  %v14132_v13 = vld [vmem:[%s14917_s5 + $0xa8] sm:$0xff] (%p3954_p3) }
 0xb2d   : > { %v4569_v62 = vpop.permute.xlu0 %4568 }
 0xb2e   : > { %4573 = vst.msk [vmem:[#allocation4 + $0x10] sm:$0x3] %vm3317_vm8, %v4569_v62  ;;  %v4638_v51 = vld [vmem:[#allocation4] sm:$0xff]  ;;  %vm6899_vm8 = vcmask (%p3954_p3), 687104  }
 0xb2f   : > { %4713 = vmatmul.mubr.f32.vlgmr.msra.gmra.mxu1 %v4638_v51  ;;  %v4622_v39 = vpop.permute.xlu1 %4621  ;;  %v14137_v62 = vld [vmem:[%s14917_s5 + $0x90] sm:$0xff] (%p3954_p3) }
 0xb30   : > { %4626 = vst.msk [vmem:[#allocation4 + $0x18] sm:$0x3] %vm3385_vm7, %v4622_v39  ;;  %v14146_v39 = vld [vmem:[%s14917_s5 + $0xa0] sm:$0xff] (%p3954_p3) }
 0xb31   : > { %v4577_v0 = vpop.permute.xlu0 %4576 }
 0xb32   : > { %4581 = vst.msk [vmem:[#allocation4 + $0x10] sm:$0x3] %vm15776_vm9, %v4577_v0  ;;  %vm15785_vm9 = vmmov %vm15783_vm12 }
 0xb33   : > { %v4633_v22 = vpop.permute.xlu1 %4632 }
 0xb34   : > { %4637 = vst.msk [vmem:[#allocation4 + $0x18] sm:$0x3] %vm15777_vm2, %v4633_v22  ;;  %vm15786_vm2 = vcmask 126976   ;;  %v14156_v22 = vld [vmem:[%s14917_s5 + $0xb8] sm:$0xff] (%p3954_p3) }
 0xb35   : > { %v4587_v8 = vpop.permute.xlu0 %4586 }
 0xb36   : > { %4591 = vst.msk [vmem:[#allocation4 + $0x10] sm:$0x3] %vm15778_vm13, %v4587_v8  ;;  %vm10697_vm13 = vmmov (%p3954_p3), 0   ;;  %v14166_v8 = vld [vmem:[%s14917_s5 + $0xc8] sm:$0xff] (%p3954_p3) }
 0xb37   : > { %4603 = vst.msk [vmem:[#allocation4 + $0x10] sm:$0x3] %vm15779_vm6, %v4598_v37  ;;  %v14112_v37 = vld [vmem:[%s14917_s5 + $0x80] sm:$0xff] (%p3954_p3) }
 0xb3b   : > { %v4641_v11 = vld [vmem:[#allocation4 + $0x18] sm:$0x3] }
 0xb3c   : > { %9380 = vmatprep.mubr.msk.f32.mxu1 %vm3410_vm0, %v4641_v11  ;;  %v14171_v11 = vld [vmem:[%s14917_s5 + $0xb0] sm:$0xff] (%p3954_p3) }
 0xb3e   : > { %v4640_v47 = vld [vmem:[#allocation4 + $0x10] sm:$0x3] }
 0xb3f   : > { %4718 = vmatmul.mubr.f32.gmra.mxu1 %v4640_v47 }
 0xb40   : > { %9938 = vmatprep.mubr.msk.f32.mxu1 %vm10696_vm10, %v10692_v49 }
 0xbb3   : > { %v4417_v55 = vpop.f32.mrf.mxu0 }
 0xbb4   : > { %v4418_v60 = vadd.f32 %v9374_v9, %v4417_v55  ;;  %v14180_v55 = vld [vmem:[%s14917_s5 + $0xc0] sm:$0xff] (%p3954_p3) }
 0xbb5   : > { %v4419_v5 = vpop.f32.mrf.mxu0 }
 0xbb6   : > { %v4426_v29 = vmax.f32 %v4418_v60, 0.0  ;;  %v14239_v60 = vld [vmem:[%s14917_s5 + $0xf0] sm:$0xff] (%p3954_p3) }
 0xbb7   :  { %15788 = vst [vmem:[#allocation9_spill] sm:$0xff] (%p3954_p3), %v14239_v60 }
 0xbc5   : > { %v4422_v18 = vpop.f32.mrf.mxu0 }
 0xbc6   : > { %v4423_v58 = vadd.f32 %v9374_v9, %v4422_v18  ;;  %v14190_v18 = vld [vmem:[%s14917_s5 + $0xd8] sm:$0xff] (%p3954_p3) }
 0xbc7   : > { %v4424_v52 = vpop.f32.mrf.mxu0 }
 0xbc8   : > { %v4427_v35 = vmax.f32 %v4423_v58, 0.0  ;;  %v14200_v52 = vld [vmem:[%s14917_s5 + $0xe8] sm:$0xff] (%p3954_p3) }
 0xbef   : > { %v4714_v10 = vpop.f32.mrf.mxu1 }
 0xbf0   : > { %v4715_v42 = vadd.f32 %v9374_v9, %v4714_v10  ;;  %v14205_v10 = vld [vmem:[%s14917_s5 + $0xd0] sm:$0xff] (%p3954_p3) }
 0xbf1   : > { %v4716_v16 = vpop.f32.mrf.mxu1 }
 0xbf2   : > { %v4723_v15 = vmax.f32 %v4715_v42, 0.0  ;;  %v14224_v42 = vld [vmem:[%s14917_s5 + $0xf8] sm:$0xff] (%p3954_p3) }
 0xbf4   : > { %v4725_v25 = vmax.f32 %v4426_v29, %v4723_v15  ;;  %v14258_v15 = vld [vmem:[%s14917_s5 + $0x118] sm:$0xff] (%p3954_p3)  ;;  %v14273_v29 = vld [vmem:[%s14917_s5 + $0x110] sm:$0xff] (%p3954_p3) }
 0xbf5   :  { %15789 = vst [vmem:[#allocation11_spill] sm:$0xff] (%p3954_p3), %v14258_v15  ;;  %15790 = vst [vmem:[#allocation8_spill] sm:$0xff] (%p3954_p3), %v14273_v29 }
 0xbff   : > { %v4719_v1 = vpop.f32.mrf.mxu1 }
 0xc00   : > { %v4720_v31 = vadd.f32 %v9374_v9, %v4719_v1  ;;  %v14214_v9 = vld [vmem:[%s14917_s5 + $0xe0] sm:$0xff] (%p3954_p3)  ;;  %v14234_v1 = vld [vmem:[%s14917_s5 + $0x108] sm:$0xff] (%p3954_p3) }
 0xc01   : > { %v4721_v45 = vpop.f32.mrf.mxu1 }
 0xc02   : > { %v4724_v21 = vmax.f32 %v4720_v31, 0.0  ;;  %v14248_v45 = vld [vmem:[%s14917_s5 + $0x100] sm:$0xff] (%p3954_p3) }
 0xc04   : > { %v4726_v24 = vmax.f32 %v4427_v35, %v4724_v21  ;;  %v14268_v21 = vld [vmem:[%s14917_s5 + $0x128] sm:$0xff] (%p3954_p3) }
 0xc06   : > { %9928 = vmatpush3.msk.msra.mxu0 %vm15780_vm15, %v4726_v24  ;;  %9935 = vmatpush3.msk.msra.mxu1 %vm15781_vm1, %v4726_v24 }
 0xc07   : > { %9929 = vmatprep.subr.mxu0 %v10692_v49  ;;  %9936 = vmatprep.subr.mxu1 %v10692_v49  ;;  %v15787_v49 = vmov (%p3954_p3), 0.0  }
 0xc08   : > { %9930 = vmatpush3.msra.mxu0 %v4725_v25  ;;  %9937 = vmatpush3.msra.mxu1 %v4725_v25  ;;  %v14282_v25 = vld [vmem:[%s14917_s5 + $0x120] sm:$0xff] (%p3954_p3) }
 0xc09   : > { %9932 = vmatmul.mubr.msk.f32.vlgmr.msra.gmra.mxu0 %vm15783_vm12, %v15782_v3  ;;  %9939 = vmatmul.mubr.msk.f32.vlgmr.msra.gmra.mxu1 %vm15785_vm9, %v15784_v33  ;;  %v14292_v33 = vld [vmem:[%s14917_s5 + $0x138] sm:$0xff] (%p3954_p3) }
 0xc0a   :  { %9941 = vmatprep.subr.mxu1 (%p3954_p3), %v15787_v49  ;;  %9955 = vmatprep.subr.mxu0 (%p3954_p3), %v15787_v49  ;;  %15791 = vst [vmem:[#allocation10_spill] sm:$0xff] (%p3954_p3), %v14292_v33 }
 0xc0b   :  { %9942 = vmatpush3.msra.mxu1 (%p3954_p3), %v13975_v20  ;;  %9945 = vmatprep.mubr.msk.f32.mxu1 (%p3954_p3), %vm10697_vm13, %v15787_v49 }
 0xc0c   :  { %9943 = vmatprep.subr.mxu1 (%p3954_p3), %v15787_v49  ;;  %9956 = vmatpush3.msra.mxu0 (%p3954_p3), %v13989_v2 }
 0xc0d   :  { %9944 = vmatpush3.msra.mxu1 (%p3954_p3), %v13980_v40  ;;  %9957 = vmatprep.subr.mxu0 (%p3954_p3), %v15787_v49 }
 0xc0e   :  { %9948 = vmatprep.subr.mxu1 (%p3954_p3), %v15787_v49  ;;  %9958 = vmatpush3.msra.mxu0 (%p3954_p3), %v14003_v46 }
 0xc0f   :  { %9959 = vmatprep.mubr.msk.f32.mxu0 (%p3954_p3), %vm10697_vm13, %v15787_v49  ;;  %9969 = vmatprep.subr.mxu0 (%p3954_p3), %v15787_v49 }
 0xcc8   :  { %3956 = sbr.rel (!%p3954_p3) target bundleno = 2562 (0xa02), region = 162 }
 0xcc9   : > { %v4801_v27 = vpop.f32.mrf.mxu0  ;;  %v4874_v41 = vpop.f32.mrf.mxu1 }
 0xcca   : > { %v4878_v28 = vmax.f32 %v4801_v27, %v4874_v41  ;;  %v14302_v27 = vld [vmem:[%s14917_s5 + $0x148] sm:$0xff] (%p3954_p3)  ;;  %v14307_v41 = vld [vmem:[%s14917_s5 + $0x130] sm:$0xff] (%p3954_p3) }
 0xccb   : > { %v9933_v32 = vpop.f32.mrf.mxu0  ;;  %v9940_v38 = vpop.f32.mrf.mxu1  ;;  %15792 = vst [vmem:[#allocation54_spill] sm:$0xff] (%p3954_p3), %v14307_v41 }
 0xccc   : > { %9386 = vst.msk [vmem:[%s9184_s0 + $0x28] sm:$0x1f] %vm15786_vm2, %v4878_v28  ;;  %v14316_v32 = vld [vmem:[%s14917_s5 + $0x140] sm:$0xff] (%p3954_p3) }
 0xcd3   :  { %v4885_v48 = vld [vmem:[#allocation3] sm:$0x1f]  ;;  %v5268_v54 = vld [vmem:[#allocation3 + $0x8] sm:$0x1f]  ;;  %v5650_v0 = vld [vmem:[#allocation3 + $0x10] sm:$0x1f] }
 0xcd4   :  { %9946 = vmatmul.mubr.msk.f32.vlgmr.msra.gmra.mxu1 %vm4888_vm11, %v4885_v48  ;;  %v4965_v12 = vrot.slane %v4885_v48, 1  ;;  %v5041_v34 = vrot.slane %v4885_v48, 2  ;;  %v5117_v19 = vrot.slane %v4885_v48, 3  ;;  %v5193_v23 = vrot.slane %v4885_v48, 4  ;;  %v6032_v31 = vld [vmem:[#allocation3 + $0x18] sm:$0x1f] }
 0xcd5   :  { %9949 = vmatpush3.msra.mxu1 %v13995_v30  ;;  %9952 = vmatprep.mubr.msk.f32.mxu1 %vm10697_vm13, %v15787_v49  ;;  %v5347_v26 = vrot.slane %v5268_v54, 1  ;;  %v5423_v17 = vrot.slane %v5268_v54, 2  ;;  %v5499_v44 = vrot.slane %v5268_v54, 3  ;;  %v5575_v51 = vrot.slane %v5268_v54, 4  ;;  %v6414_v38 = vld [vmem:[#allocation3 + $0x20] sm:$0x1f] }
 0xcd6   :  { %9950 = vmatprep.subr.mxu1 %v15787_v49  ;;  %9960 = vmatmul.mubr.msk.f32.vlgmr.msra.gmra.mxu0 %vm4888_vm11, %v5041_v34  ;;  %v5729_v47 = vrot.slane %v5650_v0, 1  ;;  %v5805_v5 = vrot.slane %v5650_v0, 2  ;;  %v5881_v16 = vrot.slane %v5650_v0, 3  ;;  %v5957_v58 = vrot.slane %v5650_v0, 4  ;;  %v14326_v48 = vld [vmem:[%s14917_s5 + $0x158] sm:$0xff]  ;;  %v14341_v34 = vld [vmem:[%s14917_s5 + $0x150] sm:$0xff] }
 0xcd7   :  { %9951 = vmatpush3.msra.mxu1 %v14010_v57  ;;  %9970 = vmatpush3.msra.mxu0 %v14030_v61  ;;  %v6111_v35 = vrot.slane %v6032_v31, 1  ;;  %v6187_v24 = vrot.slane %v6032_v31, 2  ;;  %v6263_v3 = vrot.slane %v6032_v31, 3  ;;  %v6339_v28 = vrot.slane %v6032_v31, 4  ;;  %15793 = vst [vmem:[#allocation55_spill] sm:$0xff] %v14326_v48  ;;  %15794 = vst [vmem:[#allocation56_spill] sm:$0xff] %v14341_v34 }
 0xcd8   :  { %9953 = vmatmul.mubr.msk.f32.vlgmr.msra.gmra.mxu1 %vm4888_vm11, %v4965_v12  ;;  %9962 = vmatprep.subr.mxu1 %v15787_v49  ;;  %v14336_v12 = vld [vmem:[%s14917_s5 + $0x168] sm:$0xff] }
 0xcd9   :  { %9963 = vmatpush3.msra.mxu1 %v14020_v7  ;;  %9966 = vmatprep.mubr.msk.f32.mxu1 %vm10697_vm13, %v15787_v49 }
 0xcda   :  { %9964 = vmatprep.subr.mxu1 %v15787_v49  ;;  %9971 = vmatprep.subr.mxu0 %v15787_v49 }
 0xcdb   :  { %9965 = vmatpush3.msra.mxu1 %v14035_v53  ;;  %9972 = vmatpush3.msra.mxu0 %v14044_v14 }
 0xcdc   :  { %9967 = vmatmul.mubr.msk.f32.vlgmr.msra.gmra.mxu1 %vm4888_vm11, %v5117_v19  ;;  %9973 = vmatprep.mubr.msk.f32.mxu0 %vm10697_vm13, %v15787_v49  ;;  %v6493_v19 = vrot.slane %v6414_v38, 1 }
 0xcdd   :  { %9976 = vmatprep.subr.mxu1 %v15787_v49  ;;  %9974 = vmatmul.mubr.msk.f32.vlgmr.msra.gmra.mxu0 %vm4888_vm11, %v5193_v23  ;;  %v14350_v23 = vld [vmem:[%s14917_s5 + $0x160] sm:$0xff] }
 0xcde   :  { %9977 = vmatpush3.msra.mxu1 %v14054_v56  ;;  %9983 = vmatprep.subr.mxu0 %v15787_v49 }
 0xcdf   :  { %9978 = vmatprep.subr.mxu1 %v15787_v49  ;;  %9984 = vmatpush3.msra.mxu0 %v14064_v36 }
 0xce0   :  { %9979 = vmatpush3.msra.mxu1 %v14069_v4  ;;  %9980 = vmatprep.mubr.msk.f32.mxu1 %vm10697_vm13, %v15787_v49 }
 0xce1   :  { %9985 = vmatprep.subr.mxu0 %v15787_v49  ;;  %9981 = vmatmul.mubr.msk.f32.vlgmr.msra.gmra.mxu1 %vm4888_vm11, %v5268_v54  ;;  %v6569_v54 = vrot.slane %v6414_v38, 2 }
 0xce2   :  { %9986 = vmatpush3.msra.mxu0 %v14078_v50  ;;  %9987 = vmatprep.mubr.msk.f32.mxu0 %vm10697_vm13, %v15787_v49 }
 0xce3   :  { %9990 = vmatprep.subr.mxu1 %v15787_v49  ;;  %9988 = vmatmul.mubr.msk.f32.vlgmr.msra.gmra.mxu0 %vm4888_vm11, %v5347_v26  ;;  %v14360_v26 = vld [vmem:[%s14917_s5 + $0x178] sm:$0xff] }
 0xce4   :  { %9991 = vmatpush3.msra.mxu1 %v14088_v43  ;;  %9997 = vmatprep.subr.mxu0 %v15787_v49  ;;  %15795 = vst [vmem:[#allocation57_spill] sm:$0xff] %v14360_v26 }
 0xce5   :  { %9992 = vmatprep.subr.mxu1 %v15787_v49  ;;  %9998 = vmatpush3.msra.mxu0 %v14098_v59 }
 0xce6   :  { %9993 = vmatpush3.msra.mxu1 %v14103_v63  ;;  %9994 = vmatprep.mubr.msk.f32.mxu1 %vm10697_vm13, %v15787_v49 }
 0xce7   :  { %9999 = vmatprep.subr.mxu0 %v15787_v49  ;;  %9995 = vmatmul.mubr.msk.f32.vlgmr.msra.gmra.mxu1 %vm4888_vm11, %v5423_v17  ;;  %v14370_v17 = vld [vmem:[%s14917_s5 + $0x188] sm:$0xff] }
 0xce8   :  { %10000 = vmatpush3.msra.mxu0 %v14112_v37  ;;  %10001 = vmatprep.mubr.msk.f32.mxu0 %vm10697_vm13, %v15787_v49 }
 0xce9   :  { %10004 = vmatprep.subr.mxu1 %v15787_v49  ;;  %10002 = vmatmul.mubr.msk.f32.vlgmr.msra.gmra.mxu0 %vm4888_vm11, %v5499_v44  ;;  %v14375_v44 = vld [vmem:[%s14917_s5 + $0x170] sm:$0xff] }
 0xcea   :  { %10005 = vmatpush3.msra.mxu1 %v14122_v6  ;;  %10011 = vmatprep.subr.mxu0 %v15787_v49  ;;  %15796 = vst [vmem:[#allocation58_spill] sm:$0xff] %v14375_v44 }
 0xceb   :  { %10006 = vmatprep.subr.mxu1 %v15787_v49  ;;  %10012 = vmatpush3.msra.mxu0 %v14132_v13 }
 0xcec   :  { %10007 = vmatpush3.msra.mxu1 %v14137_v62  ;;  %10008 = vmatprep.mubr.msk.f32.mxu1 %vm10697_vm13, %v15787_v49 }
 0xced   :  { %10013 = vmatprep.subr.mxu0 %v15787_v49  ;;  %10009 = vmatmul.mubr.msk.f32.vlgmr.msra.gmra.mxu1 %vm4888_vm11, %v5575_v51  ;;  %v6645_v51 = vrot.slane %v6414_v38, 3 }
 0xcee   :  { %10014 = vmatpush3.msra.mxu0 %v14146_v39  ;;  %10015 = vmatprep.mubr.msk.f32.mxu0 %vm10697_vm13, %v15787_v49 }
 0xcef   :  { %10018 = vmatprep.subr.mxu1 %v15787_v49  ;;  %10016 = vmatmul.mubr.msk.f32.vlgmr.msra.gmra.mxu0 %vm4888_vm11, %v5650_v0  ;;  %v14384_v0 = vld [vmem:[%s14917_s5 + $0x180] sm:$0xff] }
 0xcf0   :  { %10019 = vmatpush3.msra.mxu1 %v14156_v22  ;;  %10025 = vmatprep.subr.mxu0 %v15787_v49 }
 0xcf1   :  { %10020 = vmatprep.subr.mxu1 %v15787_v49  ;;  %10026 = vmatpush3.msra.mxu0 %v14166_v8 }
 0xcf2   :  { %10021 = vmatpush3.msra.mxu1 %v14171_v11  ;;  %10022 = vmatprep.mubr.msk.f32.mxu1 %vm10697_vm13, %v15787_v49 }
 0xcf3   :  { %10027 = vmatprep.subr.mxu0 %v15787_v49  ;;  %10023 = vmatmul.mubr.msk.f32.vlgmr.msra.gmra.mxu1 %vm4888_vm11, %v5729_v47  ;;  %v6721_v47 = vrot.slane %v6414_v38, 4 }
 0xcf4   :  { %10028 = vmatpush3.msra.mxu0 %v14180_v55  ;;  %10029 = vmatprep.mubr.msk.f32.mxu0 %vm10697_vm13, %v15787_v49 }
 0xcf5   :  { %10032 = vmatprep.subr.mxu1 %v15787_v49  ;;  %10030 = vmatmul.mubr.msk.f32.vlgmr.msra.gmra.mxu0 %vm4888_vm11, %v5805_v5  ;;  %v14405_v5 = vld [vmem:[%s14919_s7 + $0x70] sm:$0xff] }
 0xcf6   :  { %10033 = vmatpush3.msra.mxu1 %v14190_v18  ;;  %10039 = vmatprep.subr.mxu0 %v15787_v49  ;;  %15797 = vst [vmem:[#allocation59_spill] sm:$0xff] %v14405_v5 }
 0xcf7   :  { %10034 = vmatprep.subr.mxu1 %v15787_v49  ;;  %10040 = vmatpush3.msra.mxu0 %v14200_v52 }
 0xcf8   :  { %10035 = vmatpush3.msra.mxu1 %v14205_v10  ;;  %10036 = vmatprep.mubr.msk.f32.mxu1 %vm10697_vm13, %v15787_v49 }
 0xcf9   :  { %10041 = vmatprep.subr.mxu0 %v15787_v49  ;;  %10037 = vmatmul.mubr.msk.f32.vlgmr.msra.gmra.mxu1 %vm4888_vm11, %v5881_v16  ;;  %v14412_v16 = vld [vmem:[%s14919_s7 + $0x68] sm:$0xff] }
 0xcfa   :  { %10042 = vmatpush3.msra.mxu0 %v14214_v9  ;;  %10043 = vmatprep.mubr.msk.f32.mxu0 %vm10697_vm13, %v15787_v49  ;;  %15798 = vst [vmem:[#allocation60_spill] sm:$0xff] %v14412_v16 }
 0xcfb   :  { %10046 = vmatprep.subr.mxu1 %v15787_v49  ;;  %10044 = vmatmul.mubr.msk.f32.vlgmr.msra.gmra.mxu0 %vm4888_vm11, %v5957_v58  ;;  %v14419_v58 = vld [vmem:[%s14919_s7 + $0x60] sm:$0xff] }
 0xcfc   :  { %10047 = vmatpush3.msra.mxu1 %v14224_v42  ;;  %10053 = vmatprep.subr.mxu0 %v15787_v49  ;;  %15799 = vst [vmem:[#allocation61_spill] sm:$0xff] %v14419_v58 }
 0xcfd   :  { %10048 = vmatprep.subr.mxu1 %v15787_v49  ;;  %10054 = vmatpush3.msra.mxu0 %v14234_v1 }
 0xcfe   :  { %10049 = vmatpush3.msra.mxu1 %v14239_v60  ;;  %10050 = vmatprep.mubr.msk.f32.mxu1 %vm10697_vm13, %v15787_v49 }
 0xcff   :  { %10055 = vmatprep.subr.mxu0 %v15787_v49  ;;  %10051 = vmatmul.mubr.msk.f32.vlgmr.msra.gmra.mxu1 %vm4888_vm11, %v6032_v31  ;;  %v14426_v31 = vld [vmem:[%s14919_s7 + $0x58] sm:$0xff] }
 0xd00   :  { %10056 = vmatpush3.msra.mxu0 %v14248_v45  ;;  %10057 = vmatprep.mubr.msk.f32.mxu0 %vm10697_vm13, %v15787_v49  ;;  %15800 = vst [vmem:[#allocation62_spill] sm:$0xff] %v14426_v31 }
 0xd01   :  { %10060 = vmatprep.subr.mxu1 %v15787_v49  ;;  %10058 = vmatmul.mubr.msk.f32.vlgmr.msra.gmra.mxu0 %vm4888_vm11, %v6111_v35  ;;  %v14433_v35 = vld [vmem:[%s14919_s7 + $0x50] sm:$0xff] }
 0xd02   :  { %10061 = vmatpush3.msra.mxu1 %v14258_v15  ;;  %10067 = vmatprep.subr.mxu0 %v15787_v49  ;;  %15801 = vst [vmem:[#allocation63_spill] sm:$0xff] %v14433_v35 }
 0xd03   :  { %10062 = vmatprep.subr.mxu1 %v15787_v49  ;;  %10068 = vmatpush3.msra.mxu0 %v14268_v21 }
 0xd04   :  { %10063 = vmatpush3.msra.mxu1 %v14273_v29  ;;  %10064 = vmatprep.mubr.msk.f32.mxu1 %vm10697_vm13, %v15787_v49 }
 0xd05   :  { %10069 = vmatprep.subr.mxu0 %v15787_v49  ;;  %10065 = vmatmul.mubr.msk.f32.vlgmr.msra.gmra.mxu1 %vm4888_vm11, %v6187_v24  ;;  %v14440_v24 = vld [vmem:[%s14919_s7 + $0x48] sm:$0xff] }
 0xd06   :  { %10070 = vmatpush3.msra.mxu0 %v14282_v25  ;;  %10071 = vmatprep.mubr.msk.f32.mxu0 %vm10697_vm13, %v15787_v49  ;;  %15802 = vst [vmem:[#allocation64_spill] sm:$0xff] %v14440_v24 }
 0xd07   :  { %10074 = vmatprep.subr.mxu1 %v15787_v49  ;;  %10072 = vmatmul.mubr.msk.f32.vlgmr.msra.gmra.mxu0 %vm4888_vm11, %v6263_v3  ;;  %v14447_v3 = vld [vmem:[%s14919_s7 + $0x40] sm:$0xff] }
 0xd08   :  { %10075 = vmatpush3.msra.mxu1 %v14292_v33  ;;  %10081 = vmatprep.subr.mxu0 %v15787_v49  ;;  %15803 = vst [vmem:[#allocation65_spill] sm:$0xff] %v14447_v3 }
 0xd09   :  { %10076 = vmatprep.subr.mxu1 %v15787_v49  ;;  %10082 = vmatpush3.msra.mxu0 %v14302_v27 }
 0xd0a   :  { %10077 = vmatpush3.msra.mxu1 %v14307_v41  ;;  %10078 = vmatprep.mubr.msk.f32.mxu1 %vm10697_vm13, %v15787_v49 }
 0xd0b   :  { %10083 = vmatprep.subr.mxu0 %v15787_v49  ;;  %10079 = vmatmul.mubr.msk.f32.vlgmr.msra.gmra.mxu1 %vm4888_vm11, %v6339_v28  ;;  %v14454_v28 = vld [vmem:[%s14919_s7 + $0x38] sm:$0xff] }
 0xd0c   :  { %10084 = vmatpush3.msra.mxu0 %v14316_v32  ;;  %10085 = vmatprep.mubr.msk.f32.mxu0 %vm10697_vm13, %v15787_v49  ;;  %15804 = vst [vmem:[#allocation66_spill] sm:$0xff] %v14454_v28 }
 0xd0d   :  { %10088 = vmatprep.subr.mxu1 %v15787_v49  ;;  %10086 = vmatmul.mubr.msk.f32.vlgmr.msra.gmra.mxu0 %vm4888_vm11, %v6414_v38  ;;  %v14461_v38 = vld [vmem:[%s14919_s7 + $0x30] sm:$0xff] }
 0xd0e   :  { %10089 = vmatpush3.msra.mxu1 %v14326_v48  ;;  %10095 = vmatprep.subr.mxu0 %v15787_v49  ;;  %15805 = vst [vmem:[#allocation67_spill] sm:$0xff] %v14461_v38 }
 0xd0f   :  { %10090 = vmatprep.subr.mxu1 %v15787_v49  ;;  %10096 = vmatpush3.msra.mxu0 %v14336_v12 }
 0xd10   :  { %10091 = vmatpush3.msra.mxu1 %v14341_v34  ;;  %10092 = vmatprep.mubr.msk.f32.mxu1 %vm10697_vm13, %v15787_v49 }
 0xd11   :  { %10097 = vmatprep.subr.mxu0 %v15787_v49  ;;  %10093 = vmatmul.mubr.msk.f32.vlgmr.msra.gmra.mxu1 %vm4888_vm11, %v6493_v19  ;;  %v14468_v19 = vld [vmem:[%s14919_s7 + $0x28] sm:$0xff] }
 0xd12   :  { %10098 = vmatpush3.msra.mxu0 %v14350_v23  ;;  %10099 = vmatprep.mubr.msk.f32.mxu0 %vm10697_vm13, %v15787_v49  ;;  %15806 = vst [vmem:[#allocation68_spill] sm:$0xff] %v14468_v19 }
 0xd13   :  { %10102 = vmatprep.subr.mxu1 %v15787_v49  ;;  %10100 = vmatmul.mubr.msk.f32.vlgmr.msra.gmra.mxu0 %vm4888_vm11, %v6569_v54  ;;  %v14475_v54 = vld [vmem:[%s14919_s7 + $0x20] sm:$0xff] }
 0xd14   :  { %10103 = vmatpush3.msra.mxu1 %v14360_v26  ;;  %10109 = vmatprep.subr.mxu0 %v15787_v49  ;;  %15807 = vst [vmem:[#allocation69_spill] sm:$0xff] %v14475_v54 }
 0xd15   :  { %10104 = vmatprep.subr.mxu1 %v15787_v49  ;;  %10110 = vmatpush3.msra.mxu0 %v14370_v17 }
 0xd16   :  { %10105 = vmatpush3.msra.mxu1 %v14375_v44  ;;  %10106 = vmatprep.mubr.msk.f32.mxu1 %vm10697_vm13, %v15787_v49 }
 0xd17   :  { %10111 = vmatprep.subr.mxu0 %v15787_v49  ;;  %10107 = vmatmul.mubr.msk.f32.vlgmr.msra.gmra.mxu1 %vm4888_vm11, %v6645_v51  ;;  %v14482_v51 = vld [vmem:[%s14919_s7 + $0x18] sm:$0xff] }
 0xd18   :  { %10112 = vmatpush3.msra.mxu0 %v14384_v0  ;;  %10113 = vmatprep.mubr.msk.f32.mxu0 %vm10697_vm13, %v15787_v49  ;;  %15808 = vst [vmem:[#allocation70_spill] sm:$0xff] %v14482_v51 }
 0xd19   :  { %10116 = vmatprep.subr.mxu1 %v15787_v49  ;;  %10114 = vmatmul.mubr.msk.f32.vlgmr.msra.gmra.mxu0 %vm4888_vm11, %v6721_v47  ;;  %v14489_v47 = vld [vmem:[%s14919_s7 + $0x10] sm:$0xff] }
 0xd1a   :  { %10146 = vmatprep.mubr.msk.f32.mxu1 %vm10697_vm13, %v15787_v49  ;;  %10149 = vmatprep.subr.mxu0 %v15787_v49  ;;  %15809 = vst [vmem:[#allocation71_spill] sm:$0xff] %v14489_v47 }
 0xd1b   :  { %10171 = vmatprep.mubr.msk.f32.mxu0 %vm10697_vm13, %v15787_v49  ;;  %10117 = vmatpush3.msra.mxu1 %v14405_v5 }
 0xd1c   :  { %10118 = vmatprep.subr.mxu1 %v15787_v49 }
 0xd1d   :  { %10119 = vmatpush3.msra.mxu1 %v14412_v16 }
 0xd1e   :  { %10120 = vmatprep.subr.mxu1 %v15787_v49 }
 0xd1f   :  { %10121 = vmatpush3.msra.mxu1 %v14419_v58 }
 0xd20   :  { %10122 = vmatprep.subr.mxu1 %v15787_v49 }
 0xd21   :  { %10123 = vmatpush3.msra.mxu1 %v14426_v31 }
 0xd22   :  { %10124 = vmatprep.subr.mxu1 %v15787_v49 }
 0xd23   :  { %10125 = vmatpush3.msra.mxu1 %v14433_v35 }
 0xd24   :  { %10126 = vmatprep.subr.mxu1 %v15787_v49 }
 0xd25   :  { %10127 = vmatpush3.msra.mxu1 %v14440_v24 }
 0xd26   :  { %10128 = vmatprep.subr.mxu1 %v15787_v49 }
 0xd27   :  { %10129 = vmatpush3.msra.mxu1 %v14447_v3 }
 0xd28   :  { %10130 = vmatprep.subr.mxu1 %v15787_v49 }
 0xd29   :  { %10131 = vmatpush3.msra.mxu1 %v14454_v28 }
 0xd2a   :  { %10132 = vmatprep.subr.mxu1 %v15787_v49 }
 0xd2b   :  { %10133 = vmatpush3.msra.mxu1 %v14461_v38  ;;  %v14527_v38 = vld [vmem:[%s14921_s9 + $0x38] sm:$0xff] }
 0xd2c   :  { %10134 = vmatprep.subr.mxu1 %v15787_v49  ;;  %15815 = vst [vmem:[#allocation76_spill] sm:$0xff] %v14527_v38 }
 0xd2d   :  { %10135 = vmatpush3.msra.mxu1 %v14468_v19  ;;  %v14511_v19 = vld [vmem:[%s14921_s9 + $0x48] sm:$0xff] }
 0xd2e   :  { %10136 = vmatprep.subr.mxu1 %v15787_v49  ;;  %15812 = vst [vmem:[#allocation74_spill] sm:$0xff] %v14511_v19 }
 0xd2f   :  { %10137 = vmatpush3.msra.mxu1 %v14475_v54  ;;  %v14496_v54 = vld [vmem:[%s14919_s7 + $0x8] sm:$0xff] }
 0xd30   :  { %10138 = vmatprep.subr.mxu1 %v15787_v49  ;;  %15810 = vst [vmem:[#allocation72_spill] sm:$0xff] %v14496_v54 }
 0xd31   :  { %10139 = vmatpush3.msra.mxu1 %v14482_v51  ;;  %v14501_v51 = vld [vmem:[%s14919_s7] sm:$0xff] }
 0xd32   :  { %10140 = vmatprep.subr.mxu1 %v15787_v49  ;;  %15811 = vst [vmem:[#allocation73_spill] sm:$0xff] %v14501_v51 }
 0xd33   :  { %10141 = vmatpush3.msra.mxu1 %v14489_v47  ;;  %v6897_v47 = vld [vmem:[%s14921_s9 + $0x50] sm:$0xf] }
 0xd34   :  { %10142 = vmatprep.subr.mxu1 %v15787_v49  ;;  %10150 = vmatpush3.msk.msra.mxu0 %vm15813_vm4, %v6897_v47  ;;  %v14534_v47 = vld [vmem:[%s14921_s9 + $0x30] sm:$0xff] }
 0xd35   :  { %10143 = vmatpush3.msra.mxu1 %v14496_v54  ;;  %10151 = vmatprep.subr.mxu0 %v15787_v49  ;;  %v14519_v54 = vld [vmem:[%s14921_s9 + $0x40] sm:$0xff]  ;;  %15816 = vst [vmem:[#allocation77_spill] sm:$0xff] %v14534_v47 }
 0xd36   :  { %10144 = vmatprep.subr.mxu1 %v15787_v49  ;;  %15814 = vst [vmem:[#allocation75_spill] sm:$0xff] %v14519_v54  ;;  %10152 = vmatpush3.msra.mxu0 %v14511_v19  ;;  %v14541_v19 = vld [vmem:[%s14921_s9 + $0x28] sm:$0xff] }
 0xd37   :  { %10145 = vmatpush3.msra.mxu1 %v14501_v51  ;;  %10153 = vmatprep.subr.mxu0 %v15787_v49  ;;  %15817 = vst [vmem:[#allocation78_spill] sm:$0xff] %v14541_v19 }
 0xd38   :  { %10188 = vmatprep.subr.mxu1 %v15787_v49  ;;  %10154 = vmatpush3.msra.mxu0 %v14519_v54  ;;  %v14548_v54 = vld [vmem:[%s14921_s9 + $0x20] sm:$0xff] }
 0xd39   :  { %10155 = vmatprep.subr.mxu0 %v15787_v49  ;;  %15818 = vst [vmem:[#allocation79_spill] sm:$0xff] %v14548_v54 }
 0xd3a   :  { %10156 = vmatpush3.msra.mxu0 %v14527_v38  ;;  %v14555_v38 = vld [vmem:[%s14921_s9 + $0x18] sm:$0xff] }
 0xd3b   :  { %10157 = vmatprep.subr.mxu0 %v15787_v49  ;;  %15819 = vst [vmem:[#allocation80_spill] sm:$0xff] %v14555_v38 }
 0xd3c   :  { %10158 = vmatpush3.msra.mxu0 %v14534_v47  ;;  %v4884_v47 = vld [vmem:[%s14918_s6] sm:$0x1] }
 0xd3d   :  { %10159 = vmatprep.subr.mxu0 %v15787_v49 }
 0xd3e   :  { %10160 = vmatpush3.msra.mxu0 %v14541_v19 }
 0xd3f   :  { %10161 = vmatprep.subr.mxu0 %v15787_v49 }
 0xd40   :  { %10162 = vmatpush3.msra.mxu0 %v14548_v54 }
 0xd41   :  { %10163 = vmatprep.subr.mxu0 %v15787_v49 }
 0xd42   :  { %10164 = vmatpush3.msra.mxu0 %v14555_v38 }
 0xd43   :  { %10165 = vmatprep.subr.mxu0 %v15787_v49 }
 0xd94   :  { %v4958_v19 = vpop.f32.mrf.mxu1 }
 0xd95   :  { %v4962_v28 = vadd.f32 %v4958_v19, %v4884_v47 }
 0xd96   :  { %v9947_v51 = vpop.f32.mrf.mxu1  ;;  %v5110_v35 = vpop.f32.mrf.mxu0 }
 0xd98   :  { %v5034_v3 = vpop.f32.mrf.mxu1  ;;  %v9961_v16 = vpop.f32.mrf.mxu0 }
 0xd99   :  { %v5038_v24 = vadd.f32 %v5034_v3, %v4962_v28 }
 0xd9a   :  { %v9954_v31 = vpop.f32.mrf.mxu1 }
 0xd9b   :  { %v5114_v58 = vadd.f32 %v5110_v35, %v5038_v24 }
 0xd9c   :  { %v5186_v54 = vpop.f32.mrf.mxu1 }
 0xd9d   :  { %v5190_v5 = vadd.f32 %v5186_v54, %v5114_v58  ;;  %v5262_v44 = vpop.f32.mrf.mxu0 }
 0xd9e   :  { %v9968_v26 = vpop.f32.mrf.mxu1 }
 0xd9f   :  { %v5266_v38 = vadd.f32 %v5262_v44, %v5190_v5  ;;  %v9975_v34 = vpop.f32.mrf.mxu0 }
 0xda1   :  { %v5340_v48 = vpop.f32.mrf.mxu1 }
 0xda2   :  { %v5344_v41 = vadd.f32 %v5340_v48, %v5266_v38 }
 0xda3   :  { %v5416_v33 = vpop.f32.mrf.mxu0  ;;  %v9982_v29 = vpop.f32.mrf.mxu1 }
 0xda4   :  { %v5420_v15 = vadd.f32 %v5416_v33, %v5344_v41 }
 0xda5   :  { %v9989_v60 = vpop.f32.mrf.mxu0 }
 0xda7   :  { %v5492_v51 = vpop.f32.mrf.mxu1 }
 0xda8   :  { %v5496_v19 = vadd.f32 %v5492_v51, %v5420_v15 }
 0xda9   :  { %v5568_v47 = vpop.f32.mrf.mxu0  ;;  %v9996_v3 = vpop.f32.mrf.mxu1 }
 0xdaa   :  { %v5572_v28 = vadd.f32 %v5568_v47, %v5496_v19 }
 0xdab   :  { %v10003_v31 = vpop.f32.mrf.mxu0 }
 0xdad   :  { %v5644_v35 = vpop.f32.mrf.mxu1 }
 0xdae   :  { %v5648_v16 = vadd.f32 %v5644_v35, %v5572_v28 }
 0xdaf   :  { %v5722_v24 = vpop.f32.mrf.mxu0  ;;  %v10010_v58 = vpop.f32.mrf.mxu1 }
 0xdb0   :  { %v5726_v54 = vadd.f32 %v5722_v24, %v5648_v16 }
 0xdb1   :  { %v10017_v26 = vpop.f32.mrf.mxu0 }
 0xdb3   :  { %v5798_v44 = vpop.f32.mrf.mxu1 }
 0xdb4   :  { %v5802_v34 = vadd.f32 %v5798_v44, %v5726_v54 }
 0xdb5   :  { %v5874_v5 = vpop.f32.mrf.mxu0  ;;  %v10024_v48 = vpop.f32.mrf.mxu1 }
 0xdb6   :  { %v5878_v38 = vadd.f32 %v5874_v5, %v5802_v34 }
 0xdb7   :  { %v10031_v29 = vpop.f32.mrf.mxu0 }
 0xdb9   :  { %v5950_v33 = vpop.f32.mrf.mxu1 }
 0xdba   :  { %v5954_v60 = vadd.f32 %v5950_v33, %v5878_v38 }
 0xdbb   :  { %v6026_v41 = vpop.f32.mrf.mxu0  ;;  %v10038_v15 = vpop.f32.mrf.mxu1 }
 0xdbc   :  { %v6030_v51 = vadd.f32 %v6026_v41, %v5954_v60 }
 0xdbd   :  { %v10045_v3 = vpop.f32.mrf.mxu0 }
 0xdbf   :  { %v6104_v19 = vpop.f32.mrf.mxu1 }
 0xdc0   :  { %v6108_v47 = vadd.f32 %v6104_v19, %v6030_v51 }
 0xdc1   :  { %v6180_v31 = vpop.f32.mrf.mxu0  ;;  %v10052_v28 = vpop.f32.mrf.mxu1 }
 0xdc2   :  { %v6184_v35 = vadd.f32 %v6180_v31, %v6108_v47 }
 0xdc3   :  { %v10059_v58 = vpop.f32.mrf.mxu0 }
 0xdc5   :  { %v6256_v16 = vpop.f32.mrf.mxu1 }
 0xdc6   :  { %v6260_v24 = vadd.f32 %v6256_v16, %v6184_v35 }
 0xdc7   :  { %v6332_v26 = vpop.f32.mrf.mxu0  ;;  %v10066_v54 = vpop.f32.mrf.mxu1 }
 0xdc8   :  { %v6336_v44 = vadd.f32 %v6332_v26, %v6260_v24  ;;  %v14574_v26 = vld [vmem:[%s14921_s9 + $0x10] sm:$0xff] }
 0xdc9   :  { %v10073_v48 = vpop.f32.mrf.mxu0  ;;  %10166 = vmatpush3.msra.mxu0 %v14574_v26 }
 0xdca   :  { %10167 = vmatprep.subr.mxu0 %v15787_v49 }
 0xdcb   :  { %v6408_v34 = vpop.f32.mrf.mxu1 }
 0xdcc   :  { %v6412_v5 = vadd.f32 %v6408_v34, %v6336_v44  ;;  %v14592_v44 = vld [vmem:[#allocation3 + $0x28] sm:$0x1f] }
 0xdcd   :  { %v6486_v29 = vpop.f32.mrf.mxu0  ;;  %v10080_v38 = vpop.f32.mrf.mxu1  ;;  %v7136_v48 = vrot.slane %v14592_v44, 2  ;;  %v7288_v34 = vrot.slane %v14592_v44, 4 }
 0xdce   :  { %v6490_v33 = vadd.f32 %v6486_v29, %v6412_v5  ;;  %v14605_v5 = vld [vmem:[#allocation3 + $0x30] sm:$0x1f]  ;;  %v15833_v29 = vld [vmem:[#allocation63_spill] sm:$0xff]  ;;  %v15834_v38 = vld [vmem:[#allocation64_spill] sm:$0xff] }
 0xdcf   :  { %v10087_v15 = vpop.f32.mrf.mxu0 }
 0xdd0   :  { %v15836_v15 = vld [vmem:[#allocation66_spill] sm:$0xff] }
 0xdd1   :  { %v6562_v60 = vpop.f32.mrf.mxu1 }
 0xdd2   :  { %v6566_v41 = vadd.f32 %v6562_v60, %v6490_v33  ;;  %v15835_v33 = vld [vmem:[#allocation65_spill] sm:$0xff]  ;;  %v15837_v60 = vld [vmem:[#allocation67_spill] sm:$0xff] }
 0xdd3   :  { %v6638_v3 = vpop.f32.mrf.mxu0  ;;  %v10094_v51 = vpop.f32.mrf.mxu1 }
 0xdd4   :  { %v6642_v19 = vadd.f32 %v6638_v3, %v6566_v41  ;;  %v15838_v41 = vld [vmem:[#allocation68_spill] sm:$0xff]  ;;  %v15839_v3 = vld [vmem:[#allocation69_spill] sm:$0xff] }
 0xdd5   :  { %v10101_v28 = vpop.f32.mrf.mxu0 }
 0xdd7   :  { %v6714_v47 = vpop.f32.mrf.mxu1 }
 0xdd8   :  { %v6718_v31 = vadd.f32 %v6714_v47, %v6642_v19  ;;  %v15840_v19 = vld [vmem:[#allocation70_spill] sm:$0xff]  ;;  %v15841_v47 = vld [vmem:[#allocation71_spill] sm:$0xff] }
 0xdd9   :  { %v6790_v58 = vpop.f32.mrf.mxu0  ;;  %v10108_v35 = vpop.f32.mrf.mxu1 }
 0xdda   :  { %v6794_v16 = vadd.f32 %v6790_v58, %v6718_v31  ;;  %v15842_v58 = vld [vmem:[#allocation72_spill] sm:$0xff] }
 0xddb   :  { %v10115_v54 = vpop.f32.mrf.mxu0 }
 0xddc   :  { %v6795_v24 = vmax.f32 %v6794_v16, 0.0  ;;  %v15843_v16 = vld [vmem:[#allocation73_spill] sm:$0xff] }
 0xdde   :  { %10147 = vmatmul.mubr.msk.f32.vlgmr.msra.gmra.mxu1 %vm6812_vm5, %v6795_v24 }
 0xddf   :  { %10189 = vmatpush3.msra.mxu1 %v13989_v2  ;;  %10192 = vmatprep.mubr.msk.f32.mxu1 %vm10697_vm13, %v15787_v49  ;;  %v14581_v2 = vld [vmem:[%s14921_s9 + $0x8] sm:$0xff] }
 0xde0   :  { %10190 = vmatprep.subr.mxu1 %v15787_v49  ;;  %10168 = vmatpush3.msra.mxu0 %v14581_v2 }
 0xde1   :  { %10191 = vmatpush3.msra.mxu1 %v14003_v46  ;;  %v14586_v46 = vld [vmem:[%s14921_s9] sm:$0xff]  ;;  %10169 = vmatprep.subr.mxu0 %v15787_v49 }
 0xde2   :  { %10202 = vmatprep.subr.mxu1 %v15787_v49  ;;  %10170 = vmatpush3.msra.mxu0 %v14586_v46 }
 0xde3   :  { %10174 = vmatprep.subr.mxu0 %v15787_v49  ;;  %10193 = vmatmul.mubr.msk.f32.vlgmr.msra.gmra.mxu1 %vm4888_vm11, %v7136_v48 }
 0xde4   :  { %10203 = vmatpush3.msra.mxu1 %v14030_v61  ;;  %10206 = vmatprep.mubr.msk.f32.mxu1 %vm10697_vm13, %v15787_v49  ;;  %v7442_v61 = vrot.slane %v14605_v5, 1 }
 0xde5   :  { %10204 = vmatprep.subr.mxu1 %v15787_v49 }
 0xde6   :  { %10205 = vmatpush3.msra.mxu1 %v14044_v14  ;;  %v7594_v14 = vrot.slane %v14605_v5, 3 }
 0xde7   :  { %10207 = vmatmul.mubr.msk.f32.vlgmr.msra.gmra.mxu1 %vm4888_vm11, %v7288_v34  ;;  %10216 = vmatprep.subr.mxu1 %v15787_v49 }
 0xde8   :  { %10217 = vmatpush3.msra.mxu1 %v14064_v36  ;;  %10220 = vmatprep.mubr.msk.f32.mxu1 %vm10697_vm13, %v15787_v49  ;;  %v14626_v36 = vld [vmem:[#allocation3 + $0x38] sm:$0x1f] }
 0xde9   :  { %10218 = vmatprep.subr.mxu1 %v15787_v49 }
 0xdea   :  { %10219 = vmatpush3.msra.mxu1 %v14078_v50  ;;  %v7900_v50 = vrot.slane %v14626_v36, 2 }
 0xdeb   :  { %10221 = vmatmul.mubr.msk.f32.vlgmr.msra.gmra.mxu1 %vm4888_vm11, %v7442_v61  ;;  %10230 = vmatprep.subr.mxu1 %v15787_v49 }
 0xdec   :  { %10231 = vmatpush3.msra.mxu1 %v14098_v59  ;;  %10234 = vmatprep.mubr.msk.f32.mxu1 %vm10697_vm13, %v15787_v49  ;;  %v8052_v59 = vrot.slane %v14626_v36, 4 }
 0xded   :  { %10232 = vmatprep.subr.mxu1 %v15787_v49 }
 0xdee   :  { %10233 = vmatpush3.msra.mxu1 %v14112_v37  ;;  %v14649_v37 = vld [vmem:[#allocation3 + $0x40] sm:$0x1f] }
 0xdef   :  { %10235 = vmatmul.mubr.msk.f32.vlgmr.msra.gmra.mxu1 %vm4888_vm11, %v7594_v14  ;;  %10244 = vmatprep.subr.mxu1 %v15787_v49 }
 0xdf0   :  { %10245 = vmatpush3.msra.mxu1 %v14132_v13  ;;  %10248 = vmatprep.mubr.msk.f32.mxu1 %vm10697_vm13, %v15787_v49  ;;  %v8206_v13 = vrot.slane %v14649_v37, 1 }
 0xdf1   :  { %10246 = vmatprep.subr.mxu1 %v15787_v49 }
 0xdf2   :  { %10247 = vmatpush3.msra.mxu1 %v14146_v39  ;;  %v8358_v39 = vrot.slane %v14649_v37, 3 }
 0xdf3   :  { %10249 = vmatmul.mubr.msk.f32.vlgmr.msra.gmra.mxu1 %vm4888_vm11, %v14626_v36  ;;  %10258 = vmatprep.subr.mxu1 %v15787_v49 }
 0xdf4   :  { %10259 = vmatpush3.msra.mxu1 %v14166_v8  ;;  %10262 = vmatprep.mubr.msk.f32.mxu1 %vm10697_vm13, %v15787_v49  ;;  %v14670_v8 = vld [vmem:[#allocation3 + $0x48] sm:$0x1f] }
 0xdf5   :  { %10260 = vmatprep.subr.mxu1 %v15787_v49 }
 0xdf6   :  { %10261 = vmatpush3.msra.mxu1 %v14180_v55  ;;  %v8664_v55 = vrot.slane %v14670_v8, 2 }
 0xdf7   :  { %10263 = vmatmul.mubr.msk.f32.vlgmr.msra.gmra.mxu1 %vm4888_vm11, %v7900_v50  ;;  %10272 = vmatprep.subr.mxu1 %v15787_v49 }
 0xdf8   :  { %10273 = vmatpush3.msra.mxu1 %v14200_v52  ;;  %10276 = vmatprep.mubr.msk.f32.mxu1 %vm10697_vm13, %v15787_v49  ;;  %v8816_v52 = vrot.slane %v14670_v8, 4 }
 0xdf9   :  { %10274 = vmatprep.subr.mxu1 %v15787_v49 }
 0xdfa   :  { %10275 = vmatpush3.msra.mxu1 %v14214_v9  ;;  %v6811_v9 = vld [vmem:[%s14920_s8] sm:$0x1] }
 0xdfb   :  { %10277 = vmatmul.mubr.msk.f32.vlgmr.msra.gmra.mxu1 %vm4888_vm11, %v8052_v59  ;;  %10286 = vmatprep.subr.mxu1 %v15787_v49 }
 0xdfc   :  { %10287 = vmatpush3.msra.mxu1 %v14234_v1  ;;  %10290 = vmatprep.mubr.msk.f32.mxu1 %vm10697_vm13, %v15787_v49 }
 0xdfd   :  { %10288 = vmatprep.subr.mxu1 %v15787_v49 }
 0xdfe   :  { %10289 = vmatpush3.msra.mxu1 %v14248_v45 }
 0xdff   :  { %10291 = vmatmul.mubr.msk.f32.vlgmr.msra.gmra.mxu1 %vm4888_vm11, %v8206_v13  ;;  %10300 = vmatprep.subr.mxu1 %v15787_v49 }
 0xe00   :  { %10301 = vmatpush3.msra.mxu1 %v14268_v21  ;;  %10304 = vmatprep.mubr.msk.f32.mxu1 %vm10697_vm13, %v15787_v49 }
 0xe01   :  { %10302 = vmatprep.subr.mxu1 %v15787_v49 }
 0xe02   :  { %10303 = vmatpush3.msra.mxu1 %v14282_v25 }
 0xe03   :  { %10305 = vmatmul.mubr.msk.f32.vlgmr.msra.gmra.mxu1 %vm4888_vm11, %v8358_v39  ;;  %10314 = vmatprep.subr.mxu1 %v15787_v49 }
 0xe04   :  { %10315 = vmatpush3.msra.mxu1 %v14302_v27  ;;  %10318 = vmatprep.mubr.msk.f32.mxu1 %vm10697_vm13, %v15787_v49  ;;  %v7060_v27 = vrot.slane %v14592_v44, 1 }
 0xe05   :  { %10316 = vmatprep.subr.mxu1 %v15787_v49 }
 0xe06   :  { %10317 = vmatpush3.msra.mxu1 %v14316_v32  ;;  %v15828_v32 = vld [vmem:[#allocation58_spill] sm:$0xff] }
 0xe07   :  { %10319 = vmatmul.mubr.msk.f32.vlgmr.msra.gmra.mxu1 %vm4888_vm11, %v14670_v8  ;;  %10328 = vmatprep.subr.mxu1 %v15787_v49 }
 0xe08   :  { %10329 = vmatpush3.msra.mxu1 %v14336_v12  ;;  %10332 = vmatprep.mubr.msk.f32.mxu1 %vm10697_vm13, %v15787_v49  ;;  %v15829_v12 = vld [vmem:[#allocation59_spill] sm:$0xff] }
 0xe09   :  { %10330 = vmatprep.subr.mxu1 %v15787_v49 }
 0xe0a   :  { %10331 = vmatpush3.msra.mxu1 %v14350_v23  ;;  %v15830_v23 = vld [vmem:[#allocation60_spill] sm:$0xff] }
 0xe0b   :  { %10333 = vmatmul.mubr.msk.f32.vlgmr.msra.gmra.mxu1 %vm4888_vm11, %v8664_v55  ;;  %10342 = vmatprep.subr.mxu1 %v15787_v49 }
 0xe0c   :  { %10343 = vmatpush3.msra.mxu1 %v14370_v17  ;;  %10346 = vmatprep.mubr.msk.f32.mxu1 %vm10697_vm13, %v15787_v49  ;;  %v15831_v17 = vld [vmem:[#allocation61_spill] sm:$0xff] }
 0xe0d   :  { %10344 = vmatprep.subr.mxu1 %v15787_v49 }
 0xe0e   :  { %10345 = vmatpush3.msra.mxu1 %v14384_v0  ;;  %v15832_v0 = vld [vmem:[#allocation62_spill] sm:$0xff] }
 0xe0f   :  { %10347 = vmatmul.mubr.msk.f32.vlgmr.msra.gmra.mxu1 %vm4888_vm11, %v8816_v52  ;;  %10382 = vmatprep.subr.mxu1 %v15787_v49 }
 0xe10   :  { %10404 = vmatprep.mubr.msk.f32.mxu1 %vm10697_vm13, %v15787_v49 }
 0xe9e   :  { %v6882_v1 = vpop.f32.mrf.mxu1 }
 0xe9f   :  { %v6883_v45 = vadd.f32 %v6882_v1, %v6811_v9 }
 0xea0   :  { %v10148_v21 = vpop.f32.mrf.mxu1 }
 0xea1   :  { %v6886_v25 = vmax.f32 %v6883_v45, 0.0  ;;  %v8991_v21 = vld [vmem:[%s14921_s9 + $0x50] sm:$0xf] }
 0xea2   :  { %10383 = vmatpush3.msk.msra.mxu1 %vm15844_vm14, %v8991_v21 }
 0xea3   :  { %10172 = vmatmul.mubr.msk.f32.vlgmr.msra.gmra.mxu0 %vm6899_vm8, %v6886_v25  ;;  %v14825_v51 = vpop.f32.mrf.mxu1  ;;  %10384 = vmatprep.subr.mxu1 %v15787_v49  ;;  %v15845_v25 = vld [vmem:[#allocation74_spill] sm:$0xff] }
 0xea4   :  { %10175 = vmatpush3.msra.mxu0 %v13975_v20  ;;  %10178 = vmatprep.mubr.msk.f32.mxu0 %vm10697_vm13, %v15787_v49  ;;  %v7212_v20 = vrot.slane %v14592_v44, 3 }
 0xea5   :  { %10176 = vmatprep.subr.mxu0 %v15787_v49  ;;  %v10194_v28 = vpop.f32.mrf.mxu1  ;;  %10385 = vmatpush3.msra.mxu1 %v15845_v25 }
 0xea6   :  { %10177 = vmatpush3.msra.mxu0 %v13980_v40  ;;  %v7518_v40 = vrot.slane %v14605_v5, 2  ;;  %10386 = vmatprep.subr.mxu1 %v15787_v49 }
 0xea7   :  { %10179 = vmatmul.mubr.msk.f32.vlgmr.msra.gmra.mxu0 %vm4888_vm11, %v14592_v44  ;;  %10181 = vmatprep.subr.mxu0 %v15787_v49  ;;  %v14831_v31 = vpop.f32.mrf.mxu1 }
 0xea8   :  { %10182 = vmatpush3.msra.mxu0 %v13995_v30  ;;  %10185 = vmatprep.mubr.msk.f32.mxu0 %vm10697_vm13, %v15787_v49  ;;  %v7670_v30 = vrot.slane %v14605_v5, 4 }
 0xea9   :  { %10183 = vmatprep.subr.mxu0 %v15787_v49  ;;  %v10208_v35 = vpop.f32.mrf.mxu1 }
 0xeaa   :  { %10184 = vmatpush3.msra.mxu0 %v14010_v57  ;;  %v7824_v57 = vrot.slane %v14626_v36, 1 }
 0xeab   :  { %10186 = vmatmul.mubr.msk.f32.vlgmr.msra.gmra.mxu0 %vm4888_vm11, %v7060_v27  ;;  %10195 = vmatprep.subr.mxu0 %v15787_v49  ;;  %v14837_v54 = vpop.f32.mrf.mxu1  ;;  %v15846_v27 = vld [vmem:[#allocation75_spill] sm:$0xff] }
 0xeac   :  { %10196 = vmatpush3.msra.mxu0 %v14020_v7  ;;  %10199 = vmatprep.mubr.msk.f32.mxu0 %vm10697_vm13, %v15787_v49  ;;  %v7976_v7 = vrot.slane %v14626_v36, 3 }
 0xead   :  { %10197 = vmatprep.subr.mxu0 %v15787_v49  ;;  %v10222_v24 = vpop.f32.mrf.mxu1  ;;  %10387 = vmatpush3.msra.mxu1 %v15846_v27 }
 0xeae   :  { %10198 = vmatpush3.msra.mxu0 %v14035_v53  ;;  %v15820_v53 = vld [vmem:[#allocation9_spill] sm:$0xff]  ;;  %10388 = vmatprep.subr.mxu1 %v15787_v49 }
 0xeaf   :  { %10200 = vmatmul.mubr.msk.f32.vlgmr.msra.gmra.mxu0 %vm4888_vm11, %v7212_v20  ;;  %10209 = vmatprep.subr.mxu0 %v15787_v49  ;;  %v14839_v44 = vpop.f32.mrf.mxu1  ;;  %v15847_v20 = vld [vmem:[#allocation76_spill] sm:$0xff] }
 0xeb0   :  { %10210 = vmatpush3.msra.mxu0 %v14054_v56  ;;  %10213 = vmatprep.mubr.msk.f32.mxu0 %vm10697_vm13, %v15787_v49  ;;  %v8282_v56 = vrot.slane %v14649_v37, 2 }
 0xeb1   :  { %10211 = vmatprep.subr.mxu0 %v15787_v49  ;;  %v10236_v48 = vpop.f32.mrf.mxu1  ;;  %10389 = vmatpush3.msra.mxu1 %v15847_v20 }
 0xeb2   :  { %10212 = vmatpush3.msra.mxu0 %v14069_v4  ;;  %v15821_v4 = vld [vmem:[#allocation11_spill] sm:$0xff]  ;;  %10390 = vmatprep.subr.mxu1 %v15787_v49 }
 0xeb3   :  { %10214 = vmatmul.mubr.msk.f32.vlgmr.msra.gmra.mxu0 %vm4888_vm11, %v14605_v5  ;;  %10223 = vmatprep.subr.mxu0 %v15787_v49  ;;  %v14841_v34 = vpop.f32.mrf.mxu1 }
 0xeb4   :  { %10224 = vmatpush3.msra.mxu0 %v14088_v43  ;;  %10227 = vmatprep.mubr.msk.f32.mxu0 %vm10697_vm13, %v15787_v49  ;;  %v15822_v43 = vld [vmem:[#allocation8_spill] sm:$0xff] }
 0xeb5   :  { %10225 = vmatprep.subr.mxu0 %v15787_v49  ;;  %v10250_v5 = vpop.f32.mrf.mxu1 }
 0xeb6   :  { %10226 = vmatpush3.msra.mxu0 %v14103_v63  ;;  %v8434_v63 = vrot.slane %v14649_v37, 4 }
 0xeb7   :  { %10228 = vmatmul.mubr.msk.f32.vlgmr.msra.gmra.mxu0 %vm4888_vm11, %v7518_v40  ;;  %10237 = vmatprep.subr.mxu0 %v15787_v49  ;;  %v14843_v61 = vpop.f32.mrf.mxu1  ;;  %v15848_v40 = vld [vmem:[#allocation77_spill] sm:$0xff] }
 0xeb8   :  { %10238 = vmatpush3.msra.mxu0 %v14122_v6  ;;  %10241 = vmatprep.mubr.msk.f32.mxu0 %vm10697_vm13, %v15787_v49  ;;  %v15823_v6 = vld [vmem:[#allocation10_spill] sm:$0xff] }
 0xeb9   :  { %10239 = vmatprep.subr.mxu0 %v15787_v49  ;;  %v10264_v14 = vpop.f32.mrf.mxu1  ;;  %10391 = vmatpush3.msra.mxu1 %v15848_v40 }
 0xeba   :  { %10240 = vmatpush3.msra.mxu0 %v14137_v62  ;;  %v15824_v62 = vld [vmem:[#allocation54_spill] sm:$0xff]  ;;  %10392 = vmatprep.subr.mxu1 %v15787_v49 }
 0xebb   :  { %10242 = vmatmul.mubr.msk.f32.vlgmr.msra.gmra.mxu0 %vm4888_vm11, %v7670_v30  ;;  %10251 = vmatprep.subr.mxu0 %v15787_v49  ;;  %v14845_v36 = vpop.f32.mrf.mxu1  ;;  %v15849_v30 = vld [vmem:[#allocation78_spill] sm:$0xff] }
 0xebc   :  { %10252 = vmatpush3.msra.mxu0 %v14156_v22  ;;  %10255 = vmatprep.mubr.msk.f32.mxu0 %vm10697_vm13, %v15787_v49  ;;  %v8588_v22 = vrot.slane %v14670_v8, 1 }
 0xebd   :  { %10253 = vmatprep.subr.mxu0 %v15787_v49  ;;  %v10278_v50 = vpop.f32.mrf.mxu1  ;;  %10393 = vmatpush3.msra.mxu1 %v15849_v30 }
 0xebe   :  { %10254 = vmatpush3.msra.mxu0 %v14171_v11  ;;  %v15825_v11 = vld [vmem:[#allocation55_spill] sm:$0xff]  ;;  %10394 = vmatprep.subr.mxu1 %v15787_v49 }
 0xebf   :  { %10256 = vmatmul.mubr.msk.f32.vlgmr.msra.gmra.mxu0 %vm4888_vm11, %v7824_v57  ;;  %10265 = vmatprep.subr.mxu0 %v15787_v49  ;;  %v14847_v59 = vpop.f32.mrf.mxu1  ;;  %v15850_v57 = vld [vmem:[#allocation79_spill] sm:$0xff] }
 0xec0   :  { %10266 = vmatpush3.msra.mxu0 %v14190_v18  ;;  %10269 = vmatprep.mubr.msk.f32.mxu0 %vm10697_vm13, %v15787_v49  ;;  %v15826_v18 = vld [vmem:[#allocation56_spill] sm:$0xff] }
 0xec1   :  { %10267 = vmatprep.subr.mxu0 %v15787_v49  ;;  %10395 = vmatpush3.msra.mxu1 %v15850_v57 }
 0xec2   :  { %10268 = vmatpush3.msra.mxu0 %v14205_v10  ;;  %v8740_v10 = vrot.slane %v14670_v8, 3  ;;  %10396 = vmatprep.subr.mxu1 %v15787_v49 }
 0xec3   :  { %10270 = vmatmul.mubr.msk.f32.vlgmr.msra.gmra.mxu0 %vm4888_vm11, %v7976_v7  ;;  %10279 = vmatprep.subr.mxu0 %v15787_v49  ;;  %v15851_v7 = vld [vmem:[#allocation80_spill] sm:$0xff] }
 0xec4   :  { %10280 = vmatpush3.msra.mxu0 %v14224_v42  ;;  %10283 = vmatprep.mubr.msk.f32.mxu0 %vm10697_vm13, %v15787_v49  ;;  %v15827_v42 = vld [vmem:[#allocation57_spill] sm:$0xff] }
 0xec5   :  { %10281 = vmatprep.subr.mxu0 %v15787_v49  ;;  %10397 = vmatpush3.msra.mxu1 %v15851_v7 }
 0xec6   :  { %10282 = vmatpush3.msra.mxu0 %v15820_v53  ;;  %10398 = vmatprep.subr.mxu1 %v15787_v49  ;;  %v6898_v53 = vld [vmem:[%s14922_s10] sm:$0x1] }
 0xec7   :  { %10284 = vmatmul.mubr.msk.f32.vlgmr.msra.gmra.mxu0 %vm4888_vm11, %v14649_v37  ;;  %10293 = vmatprep.subr.mxu0 %v15787_v49  ;;  %v10292_v37 = vpop.f32.mrf.mxu1 }
 0xec8   :  { %10294 = vmatpush3.msra.mxu0 %v15821_v4  ;;  %10297 = vmatprep.mubr.msk.f32.mxu0 %vm10697_vm13, %v15787_v49 }
 0xec9   :  { %10295 = vmatprep.subr.mxu0 %v15787_v49  ;;  %v14849_v13 = vpop.f32.mrf.mxu1  ;;  %10399 = vmatpush3.msra.mxu1 %v14574_v26  ;;  %v6979_v26 = vld [vmem:[%s14918_s6] sm:$0x1] }
 0xeca   :  { %10296 = vmatpush3.msra.mxu0 %v15822_v43  ;;  %10400 = vmatprep.subr.mxu1 %v15787_v49 }
 0xecb   :  { %10298 = vmatmul.mubr.msk.f32.vlgmr.msra.gmra.mxu0 %vm4888_vm11, %v8282_v56  ;;  %10307 = vmatprep.subr.mxu0 %v15787_v49  ;;  %v10306_v39 = vpop.f32.mrf.mxu1 }
 0xecc   :  { %10308 = vmatpush3.msra.mxu0 %v15823_v6  ;;  %10311 = vmatprep.mubr.msk.f32.mxu0 %vm10697_vm13, %v15787_v49 }
 0xecd   :  { %10309 = vmatprep.subr.mxu0 %v15787_v49  ;;  %v14851_v8 = vpop.f32.mrf.mxu1  ;;  %10401 = vmatpush3.msra.mxu1 %v14581_v2 }
 0xece   :  { %10310 = vmatpush3.msra.mxu0 %v15824_v62  ;;  %10402 = vmatprep.subr.mxu1 %v15787_v49 }
 0xecf   :  { %10312 = vmatmul.mubr.msk.f32.vlgmr.msra.gmra.mxu0 %vm4888_vm11, %v8434_v63  ;;  %10321 = vmatprep.subr.mxu0 %v15787_v49  ;;  %v10320_v55 = vpop.f32.mrf.mxu1 }
 0xed0   :  { %10322 = vmatpush3.msra.mxu0 %v15825_v11  ;;  %10325 = vmatprep.mubr.msk.f32.mxu0 %vm10697_vm13, %v15787_v49 }
 0xed1   :  { %10323 = vmatprep.subr.mxu0 %v15787_v49  ;;  %v14853_v52 = vpop.f32.mrf.mxu1  ;;  %10403 = vmatpush3.msra.mxu1 %v14586_v46 }
 0xed2   :  { %10324 = vmatpush3.msra.mxu0 %v15826_v18 }
 0xed3   :  { %10326 = vmatmul.mubr.msk.f32.vlgmr.msra.gmra.mxu0 %vm4888_vm11, %v8588_v22  ;;  %10335 = vmatprep.subr.mxu0 %v15787_v49  ;;  %v10334_v9 = vpop.f32.mrf.mxu1 }
 0xed4   :  { %10336 = vmatpush3.msra.mxu0 %v15827_v42  ;;  %10339 = vmatprep.mubr.msk.f32.mxu0 %vm10697_vm13, %v15787_v49 }
 0xed5   :  { %10337 = vmatprep.subr.mxu0 %v15787_v49  ;;  %v14855_v1 = vpop.f32.mrf.mxu1 }
 0xed6   :  { %10338 = vmatpush3.msra.mxu0 %v15828_v32 }
 0xed7   :  { %10340 = vmatmul.mubr.msk.f32.vlgmr.msra.gmra.mxu0 %vm4888_vm11, %v8740_v10  ;;  %10349 = vmatprep.subr.mxu0 %v15787_v49  ;;  %v10348_v45 = vpop.f32.mrf.mxu1 }
 0xed8   :  { %10350 = vmatpush3.msra.mxu0 %v15829_v12  ;;  %10379 = vmatprep.mubr.msk.f32.mxu0 %vm10697_vm13, %v15787_v49 }
 0xed9   :  { %10351 = vmatprep.subr.mxu0 %v15787_v49 }
 0xeda   :  { %10352 = vmatpush3.msra.mxu0 %v15830_v23 }
 0xedb   :  { %10353 = vmatprep.subr.mxu0 %v15787_v49 }
 0xedc   :  { %10354 = vmatpush3.msra.mxu0 %v15831_v17 }
 0xedd   :  { %10355 = vmatprep.subr.mxu0 %v15787_v49 }
 0xede   :  { %10356 = vmatpush3.msra.mxu0 %v15832_v0 }
 0xedf   :  { %10357 = vmatprep.subr.mxu0 %v15787_v49 }
 0xee0   :  { %10358 = vmatpush3.msra.mxu0 %v15833_v29 }
 0xee1   :  { %10359 = vmatprep.subr.mxu0 %v15787_v49 }
 0xee2   :  { %10360 = vmatpush3.msra.mxu0 %v15834_v38 }
 0xee3   :  { %10361 = vmatprep.subr.mxu0 %v15787_v49 }
 0xee4   :  { %10362 = vmatpush3.msra.mxu0 %v15835_v33 }
 0xee5   :  { %10363 = vmatprep.subr.mxu0 %v15787_v49 }
 0xee6   :  { %10364 = vmatpush3.msra.mxu0 %v15836_v15 }
 0xee7   :  { %10365 = vmatprep.subr.mxu0 %v15787_v49 }
 0xee8   :  { %10366 = vmatpush3.msra.mxu0 %v15837_v60 }
 0xee9   :  { %10367 = vmatprep.subr.mxu0 %v15787_v49 }
 0xeea   :  { %10368 = vmatpush3.msra.mxu0 %v15838_v41 }
 0xeeb   :  { %10369 = vmatprep.subr.mxu0 %v15787_v49 }
 0xeec   :  { %10370 = vmatpush3.msra.mxu0 %v15839_v3 }
 0xeed   :  { %10371 = vmatprep.subr.mxu0 %v15787_v49 }
 0xeee   :  { %10372 = vmatpush3.msra.mxu0 %v15840_v19 }
 0xeef   :  { %10373 = vmatprep.subr.mxu0 %v15787_v49 }
 0xef0   :  { %10374 = vmatpush3.msra.mxu0 %v15841_v47 }
 0xef1   :  { %10375 = vmatprep.subr.mxu0 %v15787_v49 }
 0xef2   :  { %10376 = vmatpush3.msra.mxu0 %v15842_v58 }
 0xef3   :  { %10377 = vmatprep.subr.mxu0 %v15787_v49 }
 0xef4   :  { %10378 = vmatpush3.msra.mxu0 %v15843_v16 }
 0xf63   :  { %v6973_v56 = vpop.f32.mrf.mxu0 }
 0xf64   :  { %v6974_v4 = vadd.f32 %v6973_v56, %v6898_v53 }
 0xf65   :  { %v10173_v43 = vpop.f32.mrf.mxu0 }
 0xf66   :  { %6978 = vst.msk [vmem:[#allocation5] sm:$0x1] %vm6977_vm3, %v6974_v4 }
 0xf67   :  { %v7053_v63 = vpop.f32.mrf.mxu0 }
 0xf68   :  { %v7057_v6 = vadd.f32 %v7053_v63, %v6979_v26 }
 0xf69   :  { %v10180_v2 = vpop.f32.mrf.mxu0 }
 0xf6b   :  { %v7129_v49 = vpop.f32.mrf.mxu0 }
 0xf6c   :  { %v7133_v62 = vadd.f32 %v7129_v49, %v7057_v6 }
 0xf6d   :  { %v10187_v46 = vpop.f32.mrf.mxu0 }
 0xf6e   :  { %v7209_v22 = vadd.f32 %v14825_v51, %v7133_v62 }
 0xf6f   :  { %v7281_v11 = vpop.f32.mrf.mxu0 }
 0xf70   :  { %v7285_v18 = vadd.f32 %v7281_v11, %v7209_v22 }
 0xf71   :  { %v10201_v10 = vpop.f32.mrf.mxu0 }
 0xf72   :  { %v7361_v42 = vadd.f32 %v14831_v31, %v7285_v18 }
 0xf73   :  { %v7435_v32 = vpop.f32.mrf.mxu0 }
 0xf74   :  { %v7439_v12 = vadd.f32 %v7435_v32, %v7361_v42 }
 0xf75   :  { %v10215_v23 = vpop.f32.mrf.mxu0 }
 0xf76   :  { %v7515_v17 = vadd.f32 %v14837_v54, %v7439_v12 }
 0xf77   :  { %v7587_v0 = vpop.f32.mrf.mxu0 }
 0xf78   :  { %v7591_v29 = vadd.f32 %v7587_v0, %v7515_v17 }
 0xf79   :  { %v10229_v38 = vpop.f32.mrf.mxu0 }
 0xf7a   :  { %v7667_v33 = vadd.f32 %v14839_v44, %v7591_v29 }
 0xf7b   :  { %v7739_v15 = vpop.f32.mrf.mxu0 }
 0xf7c   :  { %v7743_v60 = vadd.f32 %v7739_v15, %v7667_v33 }
 0xf7d   :  { %v10243_v41 = vpop.f32.mrf.mxu0 }
 0xf7e   :  { %v7821_v3 = vadd.f32 %v14841_v34, %v7743_v60 }
 0xf7f   :  { %v7893_v51 = vpop.f32.mrf.mxu0 }
 0xf80   :  { %v7897_v19 = vadd.f32 %v7893_v51, %v7821_v3 }
 0xf81   :  { %v10257_v28 = vpop.f32.mrf.mxu0 }
 0xf82   :  { %v7973_v47 = vadd.f32 %v14843_v61, %v7897_v19 }
 0xf83   :  { %v8045_v31 = vpop.f32.mrf.mxu0 }
 0xf84   :  { %v8049_v58 = vadd.f32 %v8045_v31, %v7973_v47 }
 0xf85   :  { %v10271_v35 = vpop.f32.mrf.mxu0 }
 0xf86   :  { %v8125_v16 = vadd.f32 %v14845_v36, %v8049_v58 }
 0xf87   :  { %v8199_v54 = vpop.f32.mrf.mxu0 }
 0xf88   :  { %v8203_v24 = vadd.f32 %v8199_v54, %v8125_v16 }
 0xf89   :  { %v10285_v48 = vpop.f32.mrf.mxu0 }
 0xf8a   :  { %v8279_v44 = vadd.f32 %v14847_v59, %v8203_v24 }
 0xf8b   :  { %v8351_v5 = vpop.f32.mrf.mxu0 }
 0xf8c   :  { %v8355_v14 = vadd.f32 %v8351_v5, %v8279_v44 }
 0xf8d   :  { %v10299_v50 = vpop.f32.mrf.mxu0 }
 0xf8e   :  { %v8431_v34 = vadd.f32 %v14849_v13, %v8355_v14  ;;  %v8906_v13 = vld [vmem:[%s14920_s8] sm:$0x1] }
 0xf8f   :  { %v8503_v37 = vpop.f32.mrf.mxu0 }
 0xf90   :  { %v8507_v39 = vadd.f32 %v8503_v37, %v8431_v34 }
 0xf91   :  { %v10313_v55 = vpop.f32.mrf.mxu0 }
 0xf92   :  { %v8585_v61 = vadd.f32 %v14851_v8, %v8507_v39 }
 0xf93   :  { %v8657_v9 = vpop.f32.mrf.mxu0 }
 0xf94   :  { %v8661_v45 = vadd.f32 %v8657_v9, %v8585_v61 }
 0xf95   :  { %v10327_v21 = vpop.f32.mrf.mxu0 }
 0xf96   :  { %v8737_v36 = vadd.f32 %v14853_v52, %v8661_v45  ;;  %v8992_v52 = vld [vmem:[%s14922_s10] sm:$0x1] }
 0xf97   :  { %v8809_v25 = vpop.f32.mrf.mxu0 }
 0xf98   :  { %v8813_v27 = vadd.f32 %v8809_v25, %v8737_v36 }
 0xf99   :  { %v10341_v20 = vpop.f32.mrf.mxu0 }
 0xf9a   :  { %v8889_v59 = vadd.f32 %v14855_v1, %v8813_v27 }
 0xf9c   :  { %v8890_v40 = vmax.f32 %v8889_v59, 0.0 }
 0xf9e   :  { %10380 = vmatmul.mubr.msk.f32.vlgmr.msra.gmra.mxu0 %vm6812_vm5, %v8890_v40 }
0x105e   :  { %v8976_v30 = vpop.f32.mrf.mxu0 }
0x105f   :  { %v8977_v57 = vadd.f32 %v8976_v30, %v8906_v13 }
0x1060   :  { %v10381_v8 = vpop.f32.mrf.mxu0 }
0x1061   :  { %v8980_v7 = vmax.f32 %v8977_v57, 0.0 }
0x1063   :  { %10405 = vmatmul.mubr.msk.f32.vlgmr.msra.gmra.mxu1 %vm6899_vm8, %v8980_v7 }
0x1123   :  { %v9065_v1 = vpop.f32.mrf.mxu1 }
0x1124   :  { %v9066_v53 = vadd.f32 %v9065_v1, %v8992_v52 }
0x1125   :  { %v10406_v56 = vpop.f32.mrf.mxu1 }
0x1126   :  { %9069 = vst.msk [vmem:[#allocation5 + $0x1] sm:$0x1] %vm6977_vm3, %v9066_v53 }
0x1127   :  { %10553 = shalt.err (!%p10550_p8)
}
0x1128   :  { %9079 = dma.vmem_to_hbm [thread:$0]  %s9077_s17, 32, %s14923_s11, [#allocation6]  }
0x1129   :  { %10578 = dma.done.wait [#allocation6], 32  }
0x112a   :  { %10579 = vsyncadd [#allocation6], 4294967264 }
0x112b   :  { %9083 = vsyncpa [#allocation6], 1 }

</bundles_post_ra>
